<compile_context>
chip_gen: v5e
topology: v5e:2x2
jax: 0.10.0
libtpu: 0.0.40
codegen_flags: <defaults>
</compile_context>

<pallas_src>
import jax
import jax.numpy as jnp
import numpy as np
from jax import lax
from jax.experimental import pallas as pl
from jax.experimental.pallas import tpu as pltpu


def _gru_step(gi_rz, gi_n, gh_raw, bhh_n, h, H):
    """One GRU cell update, PyTorch gate order (r, z, n).

    gi_rz : (1, 2H)  x@Wih[:, :2H] + bih[:, :2H] + bhh[:, :2H]  (r/z hidden bias pre-folded)
    gi_n  : (1, H)   x@Wih[:, 2H:] + bih[:, 2H:]
    gh_raw: (1, 3H)  h@Whh (no bias)
    bhh_n : (1, H)   hidden bias for the n gate (stays inside r*(.)).
    Matches PyTorch: n = tanh(x_n + b_in + r * (h_n + b_hn)); h' = (1-z)*n + z*h.
    """
    rz = jax.nn.sigmoid(gi_rz + gh_raw[:, :2 * H])   # r and z in one wide EUP op
    r = rz[:, :H]
    z = rz[:, H:]
    n = jnp.tanh(gi_n + r * (gh_raw[:, 2 * H:] + bhh_n))
    return (1.0 - z) * n + z * h


def encdec_kernel(x_ref, e_wih_ref, e_whh_ref, e_bih_ref, e_bhh_ref,
                  d_wih_ref, w_dec_ref, d_bih_ref, d_bhh_ref, b_out_ref,
                  out_ref):
    seq = x_ref.shape[0]
    H = e_whh_ref.shape[0]
    n_steps, vocab = out_ref.shape
    f32 = jnp.float32

    # ---------------- encoder ----------------
    # All per-step input projections in ONE matmul, off the serial chain.
    e_bhh = e_bhh_ref[...]                                       # (1, 3H)
    xproj = jnp.dot(x_ref[...], e_wih_ref[...],
                    preferred_element_type=f32) + e_bih_ref[...]  # (seq, 3H)
    xproj_rz = xproj[:, :2 * H] + e_bhh[:, :2 * H]               # fold r/z hidden bias once
    xproj_n = xproj[:, 2 * H:]
    e_bhh_n = e_bhh[:, 2 * H:]
    e_whh = e_whh_ref[...]                                       # (H, 3H)

    h = jnp.zeros((1, H), f32)
    for t in range(seq):                                         # fully unrolled
        gh_raw = jnp.dot(h, e_whh, preferred_element_type=f32)
        h = _gru_step(xproj_rz[t:t + 1], xproj_n[t:t + 1], gh_raw, e_bhh_n, h, H)

    # ---------------- greedy decoder ----------------
    # Decoder weights loaded only now (encoder weights are dead).
    d_wih = d_wih_ref[...]                                       # (vocab, 3H)
    w_dec = w_dec_ref[...]                                       # (H, vocab+3H) = [w_out | d_whh]
    d_bih = d_bih_ref[...]                                       # (1, 3H)
    d_bhh = d_bhh_ref[...]                                       # (1, 3H)
    b_out = b_out_ref[...]                                       # (1, vocab)

    d_bhh_n = d_bhh[:, 2 * H:]
    gi_bias_rz = d_bih[:, :2 * H] + d_bhh[:, :2 * H]             # pre-folded r/z biases
    gi_bias_n = d_bih[:, 2 * H:]

    lane = lax.broadcasted_iota(jnp.int32, (1, vocab), 1)        # lane indices
    sub = lax.broadcasted_iota(jnp.int32, (vocab, 1), 0)         # sublane indices

    # decoder_input starts as zeros -> ih projection is just the (folded) biases.
    gi_rz = gi_bias_rz
    gi_n = gi_bias_n
    # Prologue: gh pre-activation for step 0 from the encoder hidden.
    gh_raw = jnp.dot(h, w_dec, preferred_element_type=f32)[:, vocab:]

    for i in range(n_steps):                                     # fully unrolled (30 steps)
        h = _gru_step(gi_rz, gi_n, gh_raw, d_bhh_n, h, H)

        # One fused MXU pass: logits for step i + gh pre-activation for step i+1.
        combined = jnp.dot(h, w_dec, preferred_element_type=f32)  # (1, vocab+3H)
        logits = combined[:, :vocab] + b_out
        gh_raw = combined[:, vocab:]                              # dead on last iter

        # Argmax on logits (monotone w.r.t. log_softmax, same first-max
        # tie-break) and immediately pick the matching d_wih row: the
        # one_hot @ Wih matmul collapses to a sublane-mask select + reduce.
        m = jnp.max(logits, axis=-1, keepdims=True)
        idx = jnp.min(jnp.where(logits >= m, lane, vocab), axis=-1,
                      keepdims=True)                              # (1, 1) int32
        sel = (sub == idx).astype(f32)                            # (vocab, 1)
        gi_full = jnp.sum(sel * d_wih, axis=0, keepdims=True)     # (1, 3H)
        gi_rz = gi_full[:, :2 * H] + gi_bias_rz
        gi_n = gi_full[:, 2 * H:] + gi_bias_n

        # Log-softmax + store, off the serial recurrence (overlaps next step).
        shifted = logits - m
        logp = shifted - jnp.log(jnp.sum(jnp.exp(shifted), axis=-1, keepdims=True))
        out_ref[i:i + 1, :] = logp                                # static-row store


def encoder_decoder_forward(input_, params, max_output_chars=30):
    """input_: (seq, 1, input_size) f32 -> (max_output_chars, output_size) log-probs."""
    x = input_[:, 0, :]                                          # batch=1 squeezed
    # Fused decoder weight: one (1,H)@(H,vocab+3H) matmul per decode step.
    w_dec = jnp.concatenate([params['w_out'], params['d_whh']], axis=1)
    args = (x,
            params['e_wih'], params['e_whh'], params['e_bih'], params['e_bhh'],
            params['d_wih'], w_dec, params['d_bih'], params['d_bhh'],
            params['b_out'])
    vmem = pl.BlockSpec(memory_space=pltpu.MemorySpace.VMEM)
    out_size = params['b_out'].shape[-1]
    return pl.pallas_call(
        encdec_kernel,
        out_shape=jax.ShapeDtypeStruct((max_output_chars, out_size), jnp.float32),
        in_specs=[vmem] * len(args),
        out_specs=vmem,
    )(*args)


def init_params(key, input_size, hidden_size, output_size):
    """Deterministic init mimicking PyTorch's U(-1/sqrt(H), 1/sqrt(H)).

    Gate weights stored pre-transposed and stacked along the last dim as
    (in_features, 3H), gate order (r, z, n); biases as (1, 3H)."""
    ks = jax.random.split(key, 10)
    k = 1.0 / np.sqrt(hidden_size)

    def u(kk, shape):
        return jax.random.uniform(kk, shape, jnp.float32, -k, k)

    H3 = 3 * hidden_size
    return dict(
        e_wih=u(ks[0], (input_size, H3)),
        e_whh=u(ks[1], (hidden_size, H3)),
        e_bih=u(ks[2], (1, H3)),
        e_bhh=u(ks[3], (1, H3)),
        d_wih=u(ks[4], (output_size, H3)),
        d_whh=u(ks[5], (hidden_size, H3)),
        d_bih=u(ks[6], (1, H3)),
        d_bhh=u(ks[7], (1, H3)),
        w_out=u(ks[8], (hidden_size, output_size)),
        b_out=u(ks[9], (1, output_size)),
    )


def _gru_update_ref(gi, gh, h, H):
    rz = jax.nn.sigmoid(gi[:, :2 * H] + gh[:, :2 * H])
    r = rz[:, :H]
    z = rz[:, H:]
    n = jnp.tanh(gi[:, 2 * H:] + r * gh[:, 2 * H:])
    return (1.0 - z) * n + z * h


def ref_forward(input_, params, max_output_chars=30):
    """Pure-JAX reference mirroring the PyTorch forward (ground_truth=None)."""
    x = input_[:, 0, :]
    H = params['e_whh'].shape[0]
    vocab = params['b_out'].shape[-1]

    h = jnp.zeros((1, H), jnp.float32)
    for t in range(x.shape[0]):
        gi = x[t:t + 1] @ params['e_wih'] + params['e_bih']
        gh = h @ params['e_whh'] + params['e_bhh']
        h = _gru_update_ref(gi, gh, h, H)

    dec_in = jnp.zeros((1, vocab), jnp.float32)
    outs = []
    for _ in range(max_output_chars):
        gi = dec_in @ params['d_wih'] + params['d_bih']
        gh = h @ params['d_whh'] + params['d_bhh']
        h = _gru_update_ref(gi, gh, h, H)
        logp = jax.nn.log_softmax(h @ params['w_out'] + params['b_out'], axis=-1)
        outs.append(logp)
        idx = jnp.argmax(logp, axis=-1)
        dec_in = jax.nn.one_hot(idx, vocab, dtype=jnp.float32)
    return jnp.concatenate(outs, axis=0)


if __name__ == "__main__":
    seq, batch, input_size = 8, 1, 16
    hidden_size, output_size = 32, 16
    max_output_chars = 30  # EncoderDecoder.MAX_OUTPUT_CHARS

    key = jax.random.PRNGKey(0)
    kx, kp = jax.random.split(key)
    input_ = jax.random.normal(kx, (seq, batch, input_size), jnp.float32)
    params = init_params(kp, input_size, hidden_size, output_size)

    out = encoder_decoder_forward(input_, params, max_output_chars)
    out = jax.block_until_ready(out)

    ref = ref_forward(input_, params, max_output_chars)
    np.testing.assert_allclose(np.asarray(out), np.asarray(ref),
                               rtol=5e-5, atol=5e-5)
    print("KERNEL_OK")
</pallas_src>

<mosaic_0001>
module attributes {stable_mosaic.version = 11 : i64} {
  func.func @encdec_kernel(%arg0: memref<8x16xf32, #tpu.memory_space<vmem>>, %arg1: memref<16x96xf32, #tpu.memory_space<vmem>>, %arg2: memref<32x96xf32, #tpu.memory_space<vmem>>, %arg3: memref<1x96xf32, #tpu.memory_space<vmem>>, %arg4: memref<1x96xf32, #tpu.memory_space<vmem>>, %arg5: memref<16x96xf32, #tpu.memory_space<vmem>>, %arg6: memref<32x112xf32, #tpu.memory_space<vmem>>, %arg7: memref<1x96xf32, #tpu.memory_space<vmem>>, %arg8: memref<1x96xf32, #tpu.memory_space<vmem>>, %arg9: memref<1x16xf32, #tpu.memory_space<vmem>>, %arg10: memref<30x16xf32, #tpu.memory_space<vmem>>) attributes {dimension_semantics = [], scalar_prefetch = 0 : i64, scratch_operands = 0 : i64, tpu.core_type = #tpu.core_type<tc>} {
    %c0 = arith.constant 0 : index
    %c0_0 = arith.constant 0 : index
    %0 = vector.load %arg4[%c0, %c0_0] : memref<1x96xf32, #tpu.memory_space<vmem>>, vector<1x96xf32>
    %c0_1 = arith.constant 0 : index
    %c0_2 = arith.constant 0 : index
    %1 = vector.load %arg0[%c0_1, %c0_2] : memref<8x16xf32, #tpu.memory_space<vmem>>, vector<8x16xf32>
    %c0_3 = arith.constant 0 : index
    %c0_4 = arith.constant 0 : index
    %2 = vector.load %arg1[%c0_3, %c0_4] : memref<16x96xf32, #tpu.memory_space<vmem>>, vector<16x96xf32>
    %cst = arith.constant dense<0.000000e+00> : vector<8x96xf32>
    %3 = tpu.matmul %1, %2, %cst {dimension_numbers = #tpu.dot_dimension_numbers<[1], [0], [0], [1], [0, 0, 1, 1], [], []>} : vector<8x16xf32>, vector<16x96xf32>, vector<8x96xf32> -> vector<8x96xf32>
    %c0_5 = arith.constant 0 : index
    %c0_6 = arith.constant 0 : index
    %4 = vector.load %arg3[%c0_5, %c0_6] : memref<1x96xf32, #tpu.memory_space<vmem>>, vector<1x96xf32>
    %5 = vector.broadcast %4 : vector<1x96xf32> to vector<8x96xf32>
    %6 = arith.addf %3, %5 : vector<8x96xf32>
    %7 = vector.extract_strided_slice %6 {offsets = [0, 0], sizes = [8, 64], strides = [1, 1]} : vector<8x96xf32> to vector<8x64xf32>
    %8 = vector.extract_strided_slice %0 {offsets = [0, 0], sizes = [1, 64], strides = [1, 1]} : vector<1x96xf32> to vector<1x64xf32>
    %9 = vector.broadcast %8 : vector<1x64xf32> to vector<8x64xf32>
    %10 = arith.addf %7, %9 : vector<8x64xf32>
    %11 = vector.extract_strided_slice %6 {offsets = [0, 64], sizes = [8, 32], strides = [1, 1]} : vector<8x96xf32> to vector<8x32xf32>
    %12 = vector.extract_strided_slice %0 {offsets = [0, 64], sizes = [1, 32], strides = [1, 1]} : vector<1x96xf32> to vector<1x32xf32>
    %c0_7 = arith.constant 0 : index
    %c0_8 = arith.constant 0 : index
    %13 = vector.load %arg2[%c0_7, %c0_8] : memref<32x96xf32, #tpu.memory_space<vmem>>, vector<32x96xf32>
    %cst_9 = arith.constant 0.000000e+00 : f32
    %14 = vector.broadcast %cst_9 : f32 to vector<1x32xf32>
    %cst_10 = arith.constant dense<0.000000e+00> : vector<1x96xf32>
    %15 = tpu.matmul %14, %13, %cst_10 {dimension_numbers = #tpu.dot_dimension_numbers<[1], [0], [0], [1], [0, 0, 1, 1], [], []>} : vector<1x32xf32>, vector<32x96xf32>, vector<1x96xf32> -> vector<1x96xf32>
    %16 = vector.extract_strided_slice %10 {offsets = [0, 0], sizes = [1, 64], strides = [1, 1]} : vector<8x64xf32> to vector<1x64xf32>
    %17 = vector.extract_strided_slice %11 {offsets = [0, 0], sizes = [1, 32], strides = [1, 1]} : vector<8x32xf32> to vector<1x32xf32>
    %18 = vector.extract_strided_slice %15 {offsets = [0, 0], sizes = [1, 64], strides = [1, 1]} : vector<1x96xf32> to vector<1x64xf32>
    %19 = arith.addf %16, %18 : vector<1x64xf32>
    %20 = arith.negf %19 : vector<1x64xf32>
    %21 = math.exp %20 : vector<1x64xf32>
    %cst_11 = arith.constant 1.000000e+00 : f32
    %22 = vector.broadcast %cst_11 : f32 to vector<1x64xf32>
    %23 = arith.addf %22, %21 : vector<1x64xf32>
    %24 = arith.divf %22, %23 : vector<1x64xf32>
    %25 = vector.extract_strided_slice %24 {offsets = [0, 0], sizes = [1, 32], strides = [1, 1]} : vector<1x64xf32> to vector<1x32xf32>
    %26 = vector.extract_strided_slice %24 {offsets = [0, 32], sizes = [1, 32], strides = [1, 1]} : vector<1x64xf32> to vector<1x32xf32>
    %27 = vector.extract_strided_slice %15 {offsets = [0, 64], sizes = [1, 32], strides = [1, 1]} : vector<1x96xf32> to vector<1x32xf32>
    %28 = arith.addf %27, %12 : vector<1x32xf32>
    %29 = arith.mulf %25, %28 : vector<1x32xf32>
    %30 = arith.addf %17, %29 : vector<1x32xf32>
    %31 = math.tanh %30 : vector<1x32xf32>
    %cst_12 = arith.constant 1.000000e+00 : f32
    %32 = vector.broadcast %cst_12 : f32 to vector<1x32xf32>
    %33 = arith.subf %32, %26 : vector<1x32xf32>
    %34 = arith.mulf %33, %31 : vector<1x32xf32>
    %35 = arith.mulf %26, %14 : vector<1x32xf32>
    %36 = arith.addf %34, %35 : vector<1x32xf32>
    %cst_13 = arith.constant dense<0.000000e+00> : vector<1x96xf32>
    %37 = tpu.matmul %36, %13, %cst_13 {dimension_numbers = #tpu.dot_dimension_numbers<[1], [0], [0], [1], [0, 0, 1, 1], [], []>} : vector<1x32xf32>, vector<32x96xf32>, vector<1x96xf32> -> vector<1x96xf32>
    %38 = vector.extract_strided_slice %10 {offsets = [1, 0], sizes = [1, 64], strides = [1, 1]} : vector<8x64xf32> to vector<1x64xf32>
    %39 = vector.extract_strided_slice %11 {offsets = [1, 0], sizes = [1, 32], strides = [1, 1]} : vector<8x32xf32> to vector<1x32xf32>
    %40 = vector.extract_strided_slice %37 {offsets = [0, 0], sizes = [1, 64], strides = [1, 1]} : vector<1x96xf32> to vector<1x64xf32>
    %41 = arith.addf %38, %40 : vector<1x64xf32>
    %42 = arith.negf %41 : vector<1x64xf32>
    %43 = math.exp %42 : vector<1x64xf32>
    %cst_14 = arith.constant 1.000000e+00 : f32
    %44 = vector.broadcast %cst_14 : f32 to vector<1x64xf32>
    %45 = arith.addf %44, %43 : vector<1x64xf32>
    %46 = arith.divf %44, %45 : vector<1x64xf32>
    %47 = vector.extract_strided_slice %46 {offsets = [0, 0], sizes = [1, 32], strides = [1, 1]} : vector<1x64xf32> to vector<1x32xf32>
    %48 = vector.extract_strided_slice %46 {offsets = [0, 32], sizes = [1, 32], strides = [1, 1]} : vector<1x64xf32> to vector<1x32xf32>
    %49 = vector.extract_strided_slice %37 {offsets = [0, 64], sizes = [1, 32], strides = [1, 1]} : vector<1x96xf32> to vector<1x32xf32>
    %50 = arith.addf %49, %12 : vector<1x32xf32>
    %51 = arith.mulf %47, %50 : vector<1x32xf32>
    %52 = arith.addf %39, %51 : vector<1x32xf32>
    %53 = math.tanh %52 : vector<1x32xf32>
    %cst_15 = arith.constant 1.000000e+00 : f32
    %54 = vector.broadcast %cst_15 : f32 to vector<1x32xf32>
    %55 = arith.subf %54, %48 : vector<1x32xf32>
    %56 = arith.mulf %55, %53 : vector<1x32xf32>
    %57 = arith.mulf %48, %36 : vector<1x32xf32>
    %58 = arith.addf %56, %57 : vector<1x32xf32>
    %cst_16 = arith.constant dense<0.000000e+00> : vector<1x96xf32>
    %59 = tpu.matmul %58, %13, %cst_16 {dimension_numbers = #tpu.dot_dimension_numbers<[1], [0], [0], [1], [0, 0, 1, 1], [], []>} : vector<1x32xf32>, vector<32x96xf32>, vector<1x96xf32> -> vector<1x96xf32>
    %60 = vector.extract_strided_slice %10 {offsets = [2, 0], sizes = [1, 64], strides = [1, 1]} : vector<8x64xf32> to vector<1x64xf32>
    %61 = vector.extract_strided_slice %11 {offsets = [2, 0], sizes = [1, 32], strides = [1, 1]} : vector<8x32xf32> to vector<1x32xf32>
    %62 = vector.extract_strided_slice %59 {offsets = [0, 0], sizes = [1, 64], strides = [1, 1]} : vector<1x96xf32> to vector<1x64xf32>
    %63 = arith.addf %60, %62 : vector<1x64xf32>
    %64 = arith.negf %63 : vector<1x64xf32>
    %65 = math.exp %64 : vector<1x64xf32>
    %cst_17 = arith.constant 1.000000e+00 : f32
    %66 = vector.broadcast %cst_17 : f32 to vector<1x64xf32>
    %67 = arith.addf %66, %65 : vector<1x64xf32>
    %68 = arith.divf %66, %67 : vector<1x64xf32>
    %69 = vector.extract_strided_slice %68 {offsets = [0, 0], sizes = [1, 32], strides = [1, 1]} : vector<1x64xf32> to vector<1x32xf32>
    %70 = vector.extract_strided_slice %68 {offsets = [0, 32], sizes = [1, 32], strides = [1, 1]} : vector<1x64xf32> to vector<1x32xf32>
    %71 = vector.extract_strided_slice %59 {offsets = [0, 64], sizes = [1, 32], strides = [1, 1]} : vector<1x96xf32> to vector<1x32xf32>
    %72 = arith.addf %71, %12 : vector<1x32xf32>
    %73 = arith.mulf %69, %72 : vector<1x32xf32>
    %74 = arith.addf %61, %73 : vector<1x32xf32>
    %75 = math.tanh %74 : vector<1x32xf32>
    %cst_18 = arith.constant 1.000000e+00 : f32
    %76 = vector.broadcast %cst_18 : f32 to vector<1x32xf32>
    %77 = arith.subf %76, %70 : vector<1x32xf32>
    %78 = arith.mulf %77, %75 : vector<1x32xf32>
    %79 = arith.mulf %70, %58 : vector<1x32xf32>
    %80 = arith.addf %78, %79 : vector<1x32xf32>
    %cst_19 = arith.constant dense<0.000000e+00> : vector<1x96xf32>
    %81 = tpu.matmul %80, %13, %cst_19 {dimension_numbers = #tpu.dot_dimension_numbers<[1], [0], [0], [1], [0, 0, 1, 1], [], []>} : vector<1x32xf32>, vector<32x96xf32>, vector<1x96xf32> -> vector<1x96xf32>
    %82 = vector.extract_strided_slice %10 {offsets = [3, 0], sizes = [1, 64], strides = [1, 1]} : vector<8x64xf32> to vector<1x64xf32>
    %83 = vector.extract_strided_slice %11 {offsets = [3, 0], sizes = [1, 32], strides = [1, 1]} : vector<8x32xf32> to vector<1x32xf32>
    %84 = vector.extract_strided_slice %81 {offsets = [0, 0], sizes = [1, 64], strides = [1, 1]} : vector<1x96xf32> to vector<1x64xf32>
    %85 = arith.addf %82, %84 : vector<1x64xf32>
    %86 = arith.negf %85 : vector<1x64xf32>
    %87 = math.exp %86 : vector<1x64xf32>
    %cst_20 = arith.constant 1.000000e+00 : f32
    %88 = vector.broadcast %cst_20 : f32 to vector<1x64xf32>
    %89 = arith.addf %88, %87 : vector<1x64xf32>
    %90 = arith.divf %88, %89 : vector<1x64xf32>
    %91 = vector.extract_strided_slice %90 {offsets = [0, 0], sizes = [1, 32], strides = [1, 1]} : vector<1x64xf32> to vector<1x32xf32>
    %92 = vector.extract_strided_slice %90 {offsets = [0, 32], sizes = [1, 32], strides = [1, 1]} : vector<1x64xf32> to vector<1x32xf32>
    %93 = vector.extract_strided_slice %81 {offsets = [0, 64], sizes = [1, 32], strides = [1, 1]} : vector<1x96xf32> to vector<1x32xf32>
    %94 = arith.addf %93, %12 : vector<1x32xf32>
    %95 = arith.mulf %91, %94 : vector<1x32xf32>
    %96 = arith.addf %83, %95 : vector<1x32xf32>
    %97 = math.tanh %96 : vector<1x32xf32>
    %cst_21 = arith.constant 1.000000e+00 : f32
    %98 = vector.broadcast %cst_21 : f32 to vector<1x32xf32>
    %99 = arith.subf %98, %92 : vector<1x32xf32>
    %100 = arith.mulf %99, %97 : vector<1x32xf32>
    %101 = arith.mulf %92, %80 : vector<1x32xf32>
    %102 = arith.addf %100, %101 : vector<1x32xf32>
    %cst_22 = arith.constant dense<0.000000e+00> : vector<1x96xf32>
    %103 = tpu.matmul %102, %13, %cst_22 {dimension_numbers = #tpu.dot_dimension_numbers<[1], [0], [0], [1], [0, 0, 1, 1], [], []>} : vector<1x32xf32>, vector<32x96xf32>, vector<1x96xf32> -> vector<1x96xf32>
    %104 = vector.extract_strided_slice %10 {offsets = [4, 0], sizes = [1, 64], strides = [1, 1]} : vector<8x64xf32> to vector<1x64xf32>
    %105 = vector.extract_strided_slice %11 {offsets = [4, 0], sizes = [1, 32], strides = [1, 1]} : vector<8x32xf32> to vector<1x32xf32>
    %106 = vector.extract_strided_slice %103 {offsets = [0, 0], sizes = [1, 64], strides = [1, 1]} : vector<1x96xf32> to vector<1x64xf32>
    %107 = arith.addf %104, %106 : vector<1x64xf32>
    %108 = arith.negf %107 : vector<1x64xf32>
    %109 = math.exp %108 : vector<1x64xf32>
    %cst_23 = arith.constant 1.000000e+00 : f32
    %110 = vector.broadcast %cst_23 : f32 to vector<1x64xf32>
    %111 = arith.addf %110, %109 : vector<1x64xf32>
    %112 = arith.divf %110, %111 : vector<1x64xf32>
    %113 = vector.extract_strided_slice %112 {offsets = [0, 0], sizes = [1, 32], strides = [1, 1]} : vector<1x64xf32> to vector<1x32xf32>
    %114 = vector.extract_strided_slice %112 {offsets = [0, 32], sizes = [1, 32], strides = [1, 1]} : vector<1x64xf32> to vector<1x32xf32>
    %115 = vector.extract_strided_slice %103 {offsets = [0, 64], sizes = [1, 32], strides = [1, 1]} : vector<1x96xf32> to vector<1x32xf32>
    %116 = arith.addf %115, %12 : vector<1x32xf32>
    %117 = arith.mulf %113, %116 : vector<1x32xf32>
    %118 = arith.addf %105, %117 : vector<1x32xf32>
    %119 = math.tanh %118 : vector<1x32xf32>
    %cst_24 = arith.constant 1.000000e+00 : f32
    %120 = vector.broadcast %cst_24 : f32 to vector<1x32xf32>
    %121 = arith.subf %120, %114 : vector<1x32xf32>
    %122 = arith.mulf %121, %119 : vector<1x32xf32>
    %123 = arith.mulf %114, %102 : vector<1x32xf32>
    %124 = arith.addf %122, %123 : vector<1x32xf32>
    %cst_25 = arith.constant dense<0.000000e+00> : vector<1x96xf32>
    %125 = tpu.matmul %124, %13, %cst_25 {dimension_numbers = #tpu.dot_dimension_numbers<[1], [0], [0], [1], [0, 0, 1, 1], [], []>} : vector<1x32xf32>, vector<32x96xf32>, vector<1x96xf32> -> vector<1x96xf32>
    %126 = vector.extract_strided_slice %10 {offsets = [5, 0], sizes = [1, 64], strides = [1, 1]} : vector<8x64xf32> to vector<1x64xf32>
    %127 = vector.extract_strided_slice %11 {offsets = [5, 0], sizes = [1, 32], strides = [1, 1]} : vector<8x32xf32> to vector<1x32xf32>
    %128 = vector.extract_strided_slice %125 {offsets = [0, 0], sizes = [1, 64], strides = [1, 1]} : vector<1x96xf32> to vector<1x64xf32>
    %129 = arith.addf %126, %128 : vector<1x64xf32>
    %130 = arith.negf %129 : vector<1x64xf32>
    %131 = math.exp %130 : vector<1x64xf32>
    %cst_26 = arith.constant 1.000000e+00 : f32
    %132 = vector.broadcast %cst_26 : f32 to vector<1x64xf32>
    %133 = arith.addf %132, %131 : vector<1x64xf32>
    %134 = arith.divf %132, %133 : vector<1x64xf32>
    %135 = vector.extract_strided_slice %134 {offsets = [0, 0], sizes = [1, 32], strides = [1, 1]} : vector<1x64xf32> to vector<1x32xf32>
    %136 = vector.extract_strided_slice %134 {offsets = [0, 32], sizes = [1, 32], strides = [1, 1]} : vector<1x64xf32> to vector<1x32xf32>
    %137 = vector.extract_strided_slice %125 {offsets = [0, 64], sizes = [1, 32], strides = [1, 1]} : vector<1x96xf32> to vector<1x32xf32>
    %138 = arith.addf %137, %12 : vector<1x32xf32>
    %139 = arith.mulf %135, %138 : vector<1x32xf32>
    %140 = arith.addf %127, %139 : vector<1x32xf32>
    %141 = math.tanh %140 : vector<1x32xf32>
    %cst_27 = arith.constant 1.000000e+00 : f32
    %142 = vector.broadcast %cst_27 : f32 to vector<1x32xf32>
    %143 = arith.subf %142, %136 : vector<1x32xf32>
    %144 = arith.mulf %143, %141 : vector<1x32xf32>
    %145 = arith.mulf %136, %124 : vector<1x32xf32>
    %146 = arith.addf %144, %145 : vector<1x32xf32>
    %cst_28 = arith.constant dense<0.000000e+00> : vector<1x96xf32>
    %147 = tpu.matmul %146, %13, %cst_28 {dimension_numbers = #tpu.dot_dimension_numbers<[1], [0], [0], [1], [0, 0, 1, 1], [], []>} : vector<1x32xf32>, vector<32x96xf32>, vector<1x96xf32> -> vector<1x96xf32>
    %148 = vector.extract_strided_slice %10 {offsets = [6, 0], sizes = [1, 64], strides = [1, 1]} : vector<8x64xf32> to vector<1x64xf32>
    %149 = vector.extract_strided_slice %11 {offsets = [6, 0], sizes = [1, 32], strides = [1, 1]} : vector<8x32xf32> to vector<1x32xf32>
    %150 = vector.extract_strided_slice %147 {offsets = [0, 0], sizes = [1, 64], strides = [1, 1]} : vector<1x96xf32> to vector<1x64xf32>
    %151 = arith.addf %148, %150 : vector<1x64xf32>
    %152 = arith.negf %151 : vector<1x64xf32>
    %153 = math.exp %152 : vector<1x64xf32>
    %cst_29 = arith.constant 1.000000e+00 : f32
    %154 = vector.broadcast %cst_29 : f32 to vector<1x64xf32>
    %155 = arith.addf %154, %153 : vector<1x64xf32>
    %156 = arith.divf %154, %155 : vector<1x64xf32>
    %157 = vector.extract_strided_slice %156 {offsets = [0, 0], sizes = [1, 32], strides = [1, 1]} : vector<1x64xf32> to vector<1x32xf32>
    %158 = vector.extract_strided_slice %156 {offsets = [0, 32], sizes = [1, 32], strides = [1, 1]} : vector<1x64xf32> to vector<1x32xf32>
    %159 = vector.extract_strided_slice %147 {offsets = [0, 64], sizes = [1, 32], strides = [1, 1]} : vector<1x96xf32> to vector<1x32xf32>
    %160 = arith.addf %159, %12 : vector<1x32xf32>
    %161 = arith.mulf %157, %160 : vector<1x32xf32>
    %162 = arith.addf %149, %161 : vector<1x32xf32>
    %163 = math.tanh %162 : vector<1x32xf32>
    %cst_30 = arith.constant 1.000000e+00 : f32
    %164 = vector.broadcast %cst_30 : f32 to vector<1x32xf32>
    %165 = arith.subf %164, %158 : vector<1x32xf32>
    %166 = arith.mulf %165, %163 : vector<1x32xf32>
    %167 = arith.mulf %158, %146 : vector<1x32xf32>
    %168 = arith.addf %166, %167 : vector<1x32xf32>
    %cst_31 = arith.constant dense<0.000000e+00> : vector<1x96xf32>
    %169 = tpu.matmul %168, %13, %cst_31 {dimension_numbers = #tpu.dot_dimension_numbers<[1], [0], [0], [1], [0, 0, 1, 1], [], []>} : vector<1x32xf32>, vector<32x96xf32>, vector<1x96xf32> -> vector<1x96xf32>
    %170 = vector.extract_strided_slice %10 {offsets = [7, 0], sizes = [1, 64], strides = [1, 1]} : vector<8x64xf32> to vector<1x64xf32>
    %171 = vector.extract_strided_slice %11 {offsets = [7, 0], sizes = [1, 32], strides = [1, 1]} : vector<8x32xf32> to vector<1x32xf32>
    %172 = vector.extract_strided_slice %169 {offsets = [0, 0], sizes = [1, 64], strides = [1, 1]} : vector<1x96xf32> to vector<1x64xf32>
    %173 = arith.addf %170, %172 : vector<1x64xf32>
    %174 = arith.negf %173 : vector<1x64xf32>
    %175 = math.exp %174 : vector<1x64xf32>
    %cst_32 = arith.constant 1.000000e+00 : f32
    %176 = vector.broadcast %cst_32 : f32 to vector<1x64xf32>
    %177 = arith.addf %176, %175 : vector<1x64xf32>
    %178 = arith.divf %176, %177 : vector<1x64xf32>
    %179 = vector.extract_strided_slice %178 {offsets = [0, 0], sizes = [1, 32], strides = [1, 1]} : vector<1x64xf32> to vector<1x32xf32>
    %180 = vector.extract_strided_slice %178 {offsets = [0, 32], sizes = [1, 32], strides = [1, 1]} : vector<1x64xf32> to vector<1x32xf32>
    %181 = vector.extract_strided_slice %169 {offsets = [0, 64], sizes = [1, 32], strides = [1, 1]} : vector<1x96xf32> to vector<1x32xf32>
    %182 = arith.addf %181, %12 : vector<1x32xf32>
    %183 = arith.mulf %179, %182 : vector<1x32xf32>
    %184 = arith.addf %171, %183 : vector<1x32xf32>
    %185 = math.tanh %184 : vector<1x32xf32>
    %cst_33 = arith.constant 1.000000e+00 : f32
    %186 = vector.broadcast %cst_33 : f32 to vector<1x32xf32>
    %187 = arith.subf %186, %180 : vector<1x32xf32>
    %188 = arith.mulf %187, %185 : vector<1x32xf32>
    %189 = arith.mulf %180, %168 : vector<1x32xf32>
    %190 = arith.addf %188, %189 : vector<1x32xf32>
    %c0_34 = arith.constant 0 : index
    %c0_35 = arith.constant 0 : index
    %191 = vector.load %arg5[%c0_34, %c0_35] : memref<16x96xf32, #tpu.memory_space<vmem>>, vector<16x96xf32>
    %c0_36 = arith.constant 0 : index
    %c0_37 = arith.constant 0 : index
    %192 = vector.load %arg6[%c0_36, %c0_37] : memref<32x112xf32, #tpu.memory_space<vmem>>, vector<32x112xf32>
    %c0_38 = arith.constant 0 : index
    %c0_39 = arith.constant 0 : index
    %193 = vector.load %arg7[%c0_38, %c0_39] : memref<1x96xf32, #tpu.memory_space<vmem>>, vector<1x96xf32>
    %c0_40 = arith.constant 0 : index
    %c0_41 = arith.constant 0 : index
    %194 = vector.load %arg8[%c0_40, %c0_41] : memref<1x96xf32, #tpu.memory_space<vmem>>, vector<1x96xf32>
    %c0_42 = arith.constant 0 : index
    %c0_43 = arith.constant 0 : index
    %195 = vector.load %arg9[%c0_42, %c0_43] : memref<1x16xf32, #tpu.memory_space<vmem>>, vector<1x16xf32>
    %196 = vector.extract_strided_slice %194 {offsets = [0, 64], sizes = [1, 32], strides = [1, 1]} : vector<1x96xf32> to vector<1x32xf32>
    %197 = vector.extract_strided_slice %193 {offsets = [0, 0], sizes = [1, 64], strides = [1, 1]} : vector<1x96xf32> to vector<1x64xf32>
    %198 = vector.extract_strided_slice %194 {offsets = [0, 0], sizes = [1, 64], strides = [1, 1]} : vector<1x96xf32> to vector<1x64xf32>
    %199 = arith.addf %197, %198 : vector<1x64xf32>
    %200 = vector.extract_strided_slice %193 {offsets = [0, 64], sizes = [1, 32], strides = [1, 1]} : vector<1x96xf32> to vector<1x32xf32>
    %201 = tpu.iota {dimensions = array<i32: 1>} : vector<1x16xi32>
    %202 = tpu.iota {dimensions = array<i32: 0>} : vector<16x1xi32>
    %cst_44 = arith.constant dense<0.000000e+00> : vector<1x112xf32>
    %203 = tpu.matmul %190, %192, %cst_44 {dimension_numbers = #tpu.dot_dimension_numbers<[1], [0], [0], [1], [0, 0, 1, 1], [], []>} : vector<1x32xf32>, vector<32x112xf32>, vector<1x112xf32> -> vector<1x112xf32>
    %204 = vector.extract_strided_slice %203 {offsets = [0, 16], sizes = [1, 96], strides = [1, 1]} : vector<1x112xf32> to vector<1x96xf32>
    %205 = vector.extract_strided_slice %204 {offsets = [0, 0], sizes = [1, 64], strides = [1, 1]} : vector<1x96xf32> to vector<1x64xf32>
    %206 = arith.addf %199, %205 : vector<1x64xf32>
    %207 = arith.negf %206 : vector<1x64xf32>
    %208 = math.exp %207 : vector<1x64xf32>
    %cst_45 = arith.constant 1.000000e+00 : f32
    %209 = vector.broadcast %cst_45 : f32 to vector<1x64xf32>
    %210 = arith.addf %209, %208 : vector<1x64xf32>
    %211 = arith.divf %209, %210 : vector<1x64xf32>
    %212 = vector.extract_strided_slice %211 {offsets = [0, 0], sizes = [1, 32], strides = [1, 1]} : vector<1x64xf32> to vector<1x32xf32>
    %213 = vector.extract_strided_slice %211 {offsets = [0, 32], sizes = [1, 32], strides = [1, 1]} : vector<1x64xf32> to vector<1x32xf32>
    %214 = vector.extract_strided_slice %204 {offsets = [0, 64], sizes = [1, 32], strides = [1, 1]} : vector<1x96xf32> to vector<1x32xf32>
    %215 = arith.addf %214, %196 : vector<1x32xf32>
    %216 = arith.mulf %212, %215 : vector<1x32xf32>
    %217 = arith.addf %200, %216 : vector<1x32xf32>
    %218 = math.tanh %217 : vector<1x32xf32>
    %cst_46 = arith.constant 1.000000e+00 : f32
    %219 = vector.broadcast %cst_46 : f32 to vector<1x32xf32>
    %220 = arith.subf %219, %213 : vector<1x32xf32>
    %221 = arith.mulf %220, %218 : vector<1x32xf32>
    %222 = arith.mulf %213, %190 : vector<1x32xf32>
    %223 = arith.addf %221, %222 : vector<1x32xf32>
    %cst_47 = arith.constant dense<0.000000e+00> : vector<1x112xf32>
    %224 = tpu.matmul %223, %192, %cst_47 {dimension_numbers = #tpu.dot_dimension_numbers<[1], [0], [0], [1], [0, 0, 1, 1], [], []>} : vector<1x32xf32>, vector<32x112xf32>, vector<1x112xf32> -> vector<1x112xf32>
    %225 = vector.extract_strided_slice %224 {offsets = [0, 0], sizes = [1, 16], strides = [1, 1]} : vector<1x112xf32> to vector<1x16xf32>
    %226 = arith.addf %225, %195 : vector<1x16xf32>
    %227 = vector.extract_strided_slice %224 {offsets = [0, 16], sizes = [1, 96], strides = [1, 1]} : vector<1x112xf32> to vector<1x96xf32>
    %cst_48 = arith.constant dense<0xFF800000> : vector<1xf32>
    %228 = vector.multi_reduction <maximumf>, %226, %cst_48 [1] : vector<1x16xf32> to vector<1xf32>
    %229 = vector.shape_cast %228 : vector<1xf32> to vector<1x1xf32>
    %230 = vector.broadcast %229 : vector<1x1xf32> to vector<1x16xf32>
    %231 = arith.cmpf oge, %226, %230 : vector<1x16xf32>
    %c16_i32 = arith.constant 16 : i32
    %232 = vector.broadcast %c16_i32 : i32 to vector<1x16xi32>
    %233 = arith.select %231, %201, %232 : vector<1x16xi1>, vector<1x16xi32>
    %cst_49 = arith.constant dense<2147483647> : vector<1xi32>
    %234 = vector.multi_reduction <minsi>, %233, %cst_49 [1] : vector<1x16xi32> to vector<1xi32>
    %235 = vector.shape_cast %234 : vector<1xi32> to vector<1x1xi32>
    %236 = vector.broadcast %235 : vector<1x1xi32> to vector<16x1xi32>
    %237 = arith.cmpi eq, %202, %236 : vector<16x1xi32>
    %238 = arith.extui %237 : vector<16x1xi1> to vector<16x1xi32>
    %239 = arith.sitofp %238 : vector<16x1xi32> to vector<16x1xf32>
    %240 = vector.broadcast %239 : vector<16x1xf32> to vector<16x96xf32>
    %241 = arith.mulf %240, %191 : vector<16x96xf32>
    %cst_50 = arith.constant dense<0.000000e+00> : vector<96xf32>
    %242 = vector.multi_reduction <add>, %241, %cst_50 [0] : vector<16x96xf32> to vector<96xf32>
    %243 = vector.shape_cast %242 : vector<96xf32> to vector<1x96xf32>
    %244 = vector.extract_strided_slice %243 {offsets = [0, 0], sizes = [1, 64], strides = [1, 1]} : vector<1x96xf32> to vector<1x64xf32>
    %245 = arith.addf %244, %199 : vector<1x64xf32>
    %246 = vector.extract_strided_slice %243 {offsets = [0, 64], sizes = [1, 32], strides = [1, 1]} : vector<1x96xf32> to vector<1x32xf32>
    %247 = arith.addf %246, %200 : vector<1x32xf32>
    %248 = vector.broadcast %229 : vector<1x1xf32> to vector<1x16xf32>
    %249 = arith.subf %226, %248 : vector<1x16xf32>
    %250 = math.exp %249 : vector<1x16xf32>
    %cst_51 = arith.constant dense<0.000000e+00> : vector<1xf32>
    %251 = vector.multi_reduction <add>, %250, %cst_51 [1] : vector<1x16xf32> to vector<1xf32>
    %252 = vector.shape_cast %251 : vector<1xf32> to vector<1x1xf32>
    %253 = math.log %252 : vector<1x1xf32>
    %254 = vector.broadcast %253 : vector<1x1xf32> to vector<1x16xf32>
    %255 = arith.subf %249, %254 : vector<1x16xf32>
    %c0_52 = arith.constant 0 : index
    %c0_53 = arith.constant 0 : index
    %256 = vector.load %arg10[%c0_52, %c0_53] : memref<30x16xf32, #tpu.memory_space<vmem>>, vector<1x16xf32>
    tpu.vector_store %arg10[%c0_52, %c0_53], %255 {strides = array<i32>} : memref<30x16xf32, #tpu.memory_space<vmem>>, vector<1x16xf32>,
    %257 = vector.extract_strided_slice %227 {offsets = [0, 0], sizes = [1, 64], strides = [1, 1]} : vector<1x96xf32> to vector<1x64xf32>
    %258 = arith.addf %245, %257 : vector<1x64xf32>
    %259 = arith.negf %258 : vector<1x64xf32>
    %260 = math.exp %259 : vector<1x64xf32>
    %cst_54 = arith.constant 1.000000e+00 : f32
    %261 = vector.broadcast %cst_54 : f32 to vector<1x64xf32>
    %262 = arith.addf %261, %260 : vector<1x64xf32>
    %263 = arith.divf %261, %262 : vector<1x64xf32>
    %264 = vector.extract_strided_slice %263 {offsets = [0, 0], sizes = [1, 32], strides = [1, 1]} : vector<1x64xf32> to vector<1x32xf32>
    %265 = vector.extract_strided_slice %263 {offsets = [0, 32], sizes = [1, 32], strides = [1, 1]} : vector<1x64xf32> to vector<1x32xf32>
    %266 = vector.extract_strided_slice %227 {offsets = [0, 64], sizes = [1, 32], strides = [1, 1]} : vector<1x96xf32> to vector<1x32xf32>
    %267 = arith.addf %266, %196 : vector<1x32xf32>
    %268 = arith.mulf %264, %267 : vector<1x32xf32>
    %269 = arith.addf %247, %268 : vector<1x32xf32>
    %270 = math.tanh %269 : vector<1x32xf32>
    %cst_55 = arith.constant 1.000000e+00 : f32
    %271 = vector.broadcast %cst_55 : f32 to vector<1x32xf32>
    %272 = arith.subf %271, %265 : vector<1x32xf32>
    %273 = arith.mulf %272, %270 : vector<1x32xf32>
    %274 = arith.mulf %265, %223 : vector<1x32xf32>
    %275 = arith.addf %273, %274 : vector<1x32xf32>
    %cst_56 = arith.constant dense<0.000000e+00> : vector<1x112xf32>
    %276 = tpu.matmul %275, %192, %cst_56 {dimension_numbers = #tpu.dot_dimension_numbers<[1], [0], [0], [1], [0, 0, 1, 1], [], []>} : vector<1x32xf32>, vector<32x112xf32>, vector<1x112xf32> -> vector<1x112xf32>
    %277 = vector.extract_strided_slice %276 {offsets = [0, 0], sizes = [1, 16], strides = [1, 1]} : vector<1x112xf32> to vector<1x16xf32>
    %278 = arith.addf %277, %195 : vector<1x16xf32>
    %279 = vector.extract_strided_slice %276 {offsets = [0, 16], sizes = [1, 96], strides = [1, 1]} : vector<1x112xf32> to vector<1x96xf32>
    %cst_57 = arith.constant dense<0xFF800000> : vector<1xf32>
    %280 = vector.multi_reduction <maximumf>, %278, %cst_57 [1] : vector<1x16xf32> to vector<1xf32>
    %281 = vector.shape_cast %280 : vector<1xf32> to vector<1x1xf32>
    %282 = vector.broadcast %281 : vector<1x1xf32> to vector<1x16xf32>
    %283 = arith.cmpf oge, %278, %282 : vector<1x16xf32>
    %c16_i32_58 = arith.constant 16 : i32
    %284 = vector.broadcast %c16_i32_58 : i32 to vector<1x16xi32>
    %285 = arith.select %283, %201, %284 : vector<1x16xi1>, vector<1x16xi32>
    %cst_59 = arith.constant dense<2147483647> : vector<1xi32>
    %286 = vector.multi_reduction <minsi>, %285, %cst_59 [1] : vector<1x16xi32> to vector<1xi32>
    %287 = vector.shape_cast %286 : vector<1xi32> to vector<1x1xi32>
    %288 = vector.broadcast %287 : vector<1x1xi32> to vector<16x1xi32>
    %289 = arith.cmpi eq, %202, %288 : vector<16x1xi32>
    %290 = arith.extui %289 : vector<16x1xi1> to vector<16x1xi32>
    %291 = arith.sitofp %290 : vector<16x1xi32> to vector<16x1xf32>
    %292 = vector.broadcast %291 : vector<16x1xf32> to vector<16x96xf32>
    %293 = arith.mulf %292, %191 : vector<16x96xf32>
    %cst_60 = arith.constant dense<0.000000e+00> : vector<96xf32>
    %294 = vector.multi_reduction <add>, %293, %cst_60 [0] : vector<16x96xf32> to vector<96xf32>
    %295 = vector.shape_cast %294 : vector<96xf32> to vector<1x96xf32>
    %296 = vector.extract_strided_slice %295 {offsets = [0, 0], sizes = [1, 64], strides = [1, 1]} : vector<1x96xf32> to vector<1x64xf32>
    %297 = arith.addf %296, %199 : vector<1x64xf32>
    %298 = vector.extract_strided_slice %295 {offsets = [0, 64], sizes = [1, 32], strides = [1, 1]} : vector<1x96xf32> to vector<1x32xf32>
    %299 = arith.addf %298, %200 : vector<1x32xf32>
    %300 = vector.broadcast %281 : vector<1x1xf32> to vector<1x16xf32>
    %301 = arith.subf %278, %300 : vector<1x16xf32>
    %302 = math.exp %301 : vector<1x16xf32>
    %cst_61 = arith.constant dense<0.000000e+00> : vector<1xf32>
    %303 = vector.multi_reduction <add>, %302, %cst_61 [1] : vector<1x16xf32> to vector<1xf32>
    %304 = vector.shape_cast %303 : vector<1xf32> to vector<1x1xf32>
    %305 = math.log %304 : vector<1x1xf32>
    %306 = vector.broadcast %305 : vector<1x1xf32> to vector<1x16xf32>
    %307 = arith.subf %301, %306 : vector<1x16xf32>
    %c1 = arith.constant 1 : index
    %c0_62 = arith.constant 0 : index
    %308 = vector.load %arg10[%c1, %c0_62] : memref<30x16xf32, #tpu.memory_space<vmem>>, vector<1x16xf32>
    tpu.vector_store %arg10[%c1, %c0_62], %307 {strides = array<i32>} : memref<30x16xf32, #tpu.memory_space<vmem>>, vector<1x16xf32>,
    %309 = vector.extract_strided_slice %279 {offsets = [0, 0], sizes = [1, 64], strides = [1, 1]} : vector<1x96xf32> to vector<1x64xf32>
    %310 = arith.addf %297, %309 : vector<1x64xf32>
    %311 = arith.negf %310 : vector<1x64xf32>
    %312 = math.exp %311 : vector<1x64xf32>
    %cst_63 = arith.constant 1.000000e+00 : f32
    %313 = vector.broadcast %cst_63 : f32 to vector<1x64xf32>
    %314 = arith.addf %313, %312 : vector<1x64xf32>
    %315 = arith.divf %313, %314 : vector<1x64xf32>
    %316 = vector.extract_strided_slice %315 {offsets = [0, 0], sizes = [1, 32], strides = [1, 1]} : vector<1x64xf32> to vector<1x32xf32>
    %317 = vector.extract_strided_slice %315 {offsets = [0, 32], sizes = [1, 32], strides = [1, 1]} : vector<1x64xf32> to vector<1x32xf32>
    %318 = vector.extract_strided_slice %279 {offsets = [0, 64], sizes = [1, 32], strides = [1, 1]} : vector<1x96xf32> to vector<1x32xf32>
    %319 = arith.addf %318, %196 : vector<1x32xf32>
    %320 = arith.mulf %316, %319 : vector<1x32xf32>
    %321 = arith.addf %299, %320 : vector<1x32xf32>
    %322 = math.tanh %321 : vector<1x32xf32>
    %cst_64 = arith.constant 1.000000e+00 : f32
    %323 = vector.broadcast %cst_64 : f32 to vector<1x32xf32>
    %324 = arith.subf %323, %317 : vector<1x32xf32>
    %325 = arith.mulf %324, %322 : vector<1x32xf32>
    %326 = arith.mulf %317, %275 : vector<1x32xf32>
    %327 = arith.addf %325, %326 : vector<1x32xf32>
    %cst_65 = arith.constant dense<0.000000e+00> : vector<1x112xf32>
    %328 = tpu.matmul %327, %192, %cst_65 {dimension_numbers = #tpu.dot_dimension_numbers<[1], [0], [0], [1], [0, 0, 1, 1], [], []>} : vector<1x32xf32>, vector<32x112xf32>, vector<1x112xf32> -> vector<1x112xf32>
    %329 = vector.extract_strided_slice %328 {offsets = [0, 0], sizes = [1, 16], strides = [1, 1]} : vector<1x112xf32> to vector<1x16xf32>
    %330 = arith.addf %329, %195 : vector<1x16xf32>
    %331 = vector.extract_strided_slice %328 {offsets = [0, 16], sizes = [1, 96], strides = [1, 1]} : vector<1x112xf32> to vector<1x96xf32>
    %cst_66 = arith.constant dense<0xFF800000> : vector<1xf32>
    %332 = vector.multi_reduction <maximumf>, %330, %cst_66 [1] : vector<1x16xf32> to vector<1xf32>
    %333 = vector.shape_cast %332 : vector<1xf32> to vector<1x1xf32>
    %334 = vector.broadcast %333 : vector<1x1xf32> to vector<1x16xf32>
    %335 = arith.cmpf oge, %330, %334 : vector<1x16xf32>
    %c16_i32_67 = arith.constant 16 : i32
    %336 = vector.broadcast %c16_i32_67 : i32 to vector<1x16xi32>
    %337 = arith.select %335, %201, %336 : vector<1x16xi1>, vector<1x16xi32>
    %cst_68 = arith.constant dense<2147483647> : vector<1xi32>
    %338 = vector.multi_reduction <minsi>, %337, %cst_68 [1] : vector<1x16xi32> to vector<1xi32>
    %339 = vector.shape_cast %338 : vector<1xi32> to vector<1x1xi32>
    %340 = vector.broadcast %339 : vector<1x1xi32> to vector<16x1xi32>
    %341 = arith.cmpi eq, %202, %340 : vector<16x1xi32>
    %342 = arith.extui %341 : vector<16x1xi1> to vector<16x1xi32>
    %343 = arith.sitofp %342 : vector<16x1xi32> to vector<16x1xf32>
    %344 = vector.broadcast %343 : vector<16x1xf32> to vector<16x96xf32>
    %345 = arith.mulf %344, %191 : vector<16x96xf32>
    %cst_69 = arith.constant dense<0.000000e+00> : vector<96xf32>
    %346 = vector.multi_reduction <add>, %345, %cst_69 [0] : vector<16x96xf32> to vector<96xf32>
    %347 = vector.shape_cast %346 : vector<96xf32> to vector<1x96xf32>
    %348 = vector.extract_strided_slice %347 {offsets = [0, 0], sizes = [1, 64], strides = [1, 1]} : vector<1x96xf32> to vector<1x64xf32>
    %349 = arith.addf %348, %199 : vector<1x64xf32>
    %350 = vector.extract_strided_slice %347 {offsets = [0, 64], sizes = [1, 32], strides = [1, 1]} : vector<1x96xf32> to vector<1x32xf32>
    %351 = arith.addf %350, %200 : vector<1x32xf32>
    %352 = vector.broadcast %333 : vector<1x1xf32> to vector<1x16xf32>
    %353 = arith.subf %330, %352 : vector<1x16xf32>
    %354 = math.exp %353 : vector<1x16xf32>
    %cst_70 = arith.constant dense<0.000000e+00> : vector<1xf32>
    %355 = vector.multi_reduction <add>, %354, %cst_70 [1] : vector<1x16xf32> to vector<1xf32>
    %356 = vector.shape_cast %355 : vector<1xf32> to vector<1x1xf32>
    %357 = math.log %356 : vector<1x1xf32>
    %358 = vector.broadcast %357 : vector<1x1xf32> to vector<1x16xf32>
    %359 = arith.subf %353, %358 : vector<1x16xf32>
    %c2 = arith.constant 2 : index
    %c0_71 = arith.constant 0 : index
    %360 = vector.load %arg10[%c2, %c0_71] : memref<30x16xf32, #tpu.memory_space<vmem>>, vector<1x16xf32>
    tpu.vector_store %arg10[%c2, %c0_71], %359 {strides = array<i32>} : memref<30x16xf32, #tpu.memory_space<vmem>>, vector<1x16xf32>,
    %361 = vector.extract_strided_slice %331 {offsets = [0, 0], sizes = [1, 64], strides = [1, 1]} : vector<1x96xf32> to vector<1x64xf32>
    %362 = arith.addf %349, %361 : vector<1x64xf32>
    %363 = arith.negf %362 : vector<1x64xf32>
    %364 = math.exp %363 : vector<1x64xf32>
    %cst_72 = arith.constant 1.000000e+00 : f32
    %365 = vector.broadcast %cst_72 : f32 to vector<1x64xf32>
    %366 = arith.addf %365, %364 : vector<1x64xf32>
    %367 = arith.divf %365, %366 : vector<1x64xf32>
    %368 = vector.extract_strided_slice %367 {offsets = [0, 0], sizes = [1, 32], strides = [1, 1]} : vector<1x64xf32> to vector<1x32xf32>
    %369 = vector.extract_strided_slice %367 {offsets = [0, 32], sizes = [1, 32], strides = [1, 1]} : vector<1x64xf32> to vector<1x32xf32>
    %370 = vector.extract_strided_slice %331 {offsets = [0, 64], sizes = [1, 32], strides = [1, 1]} : vector<1x96xf32> to vector<1x32xf32>
    %371 = arith.addf %370, %196 : vector<1x32xf32>
    %372 = arith.mulf %368, %371 : vector<1x32xf32>
    %373 = arith.addf %351, %372 : vector<1x32xf32>
    %374 = math.tanh %373 : vector<1x32xf32>
    %cst_73 = arith.constant 1.000000e+00 : f32
    %375 = vector.broadcast %cst_73 : f32 to vector<1x32xf32>
    %376 = arith.subf %375, %369 : vector<1x32xf32>
    %377 = arith.mulf %376, %374 : vector<1x32xf32>
    %378 = arith.mulf %369, %327 : vector<1x32xf32>
    %379 = arith.addf %377, %378 : vector<1x32xf32>
    %cst_74 = arith.constant dense<0.000000e+00> : vector<1x112xf32>
    %380 = tpu.matmul %379, %192, %cst_74 {dimension_numbers = #tpu.dot_dimension_numbers<[1], [0], [0], [1], [0, 0, 1, 1], [], []>} : vector<1x32xf32>, vector<32x112xf32>, vector<1x112xf32> -> vector<1x112xf32>
    %381 = vector.extract_strided_slice %380 {offsets = [0, 0], sizes = [1, 16], strides = [1, 1]} : vector<1x112xf32> to vector<1x16xf32>
    %382 = arith.addf %381, %195 : vector<1x16xf32>
    %383 = vector.extract_strided_slice %380 {offsets = [0, 16], sizes = [1, 96], strides = [1, 1]} : vector<1x112xf32> to vector<1x96xf32>
    %cst_75 = arith.constant dense<0xFF800000> : vector<1xf32>
    %384 = vector.multi_reduction <maximumf>, %382, %cst_75 [1] : vector<1x16xf32> to vector<1xf32>
    %385 = vector.shape_cast %384 : vector<1xf32> to vector<1x1xf32>
    %386 = vector.broadcast %385 : vector<1x1xf32> to vector<1x16xf32>
    %387 = arith.cmpf oge, %382, %386 : vector<1x16xf32>
    %c16_i32_76 = arith.constant 16 : i32
    %388 = vector.broadcast %c16_i32_76 : i32 to vector<1x16xi32>
    %389 = arith.select %387, %201, %388 : vector<1x16xi1>, vector<1x16xi32>
    %cst_77 = arith.constant dense<2147483647> : vector<1xi32>
    %390 = vector.multi_reduction <minsi>, %389, %cst_77 [1] : vector<1x16xi32> to vector<1xi32>
    %391 = vector.shape_cast %390 : vector<1xi32> to vector<1x1xi32>
    %392 = vector.broadcast %391 : vector<1x1xi32> to vector<16x1xi32>
    %393 = arith.cmpi eq, %202, %392 : vector<16x1xi32>
    %394 = arith.extui %393 : vector<16x1xi1> to vector<16x1xi32>
    %395 = arith.sitofp %394 : vector<16x1xi32> to vector<16x1xf32>
    %396 = vector.broadcast %395 : vector<16x1xf32> to vector<16x96xf32>
    %397 = arith.mulf %396, %191 : vector<16x96xf32>
    %cst_78 = arith.constant dense<0.000000e+00> : vector<96xf32>
    %398 = vector.multi_reduction <add>, %397, %cst_78 [0] : vector<16x96xf32> to vector<96xf32>
    %399 = vector.shape_cast %398 : vector<96xf32> to vector<1x96xf32>
    %400 = vector.extract_strided_slice %399 {offsets = [0, 0], sizes = [1, 64], strides = [1, 1]} : vector<1x96xf32> to vector<1x64xf32>
    %401 = arith.addf %400, %199 : vector<1x64xf32>
    %402 = vector.extract_strided_slice %399 {offsets = [0, 64], sizes = [1, 32], strides = [1, 1]} : vector<1x96xf32> to vector<1x32xf32>
    %403 = arith.addf %402, %200 : vector<1x32xf32>
    %404 = vector.broadcast %385 : vector<1x1xf32> to vector<1x16xf32>
    %405 = arith.subf %382, %404 : vector<1x16xf32>
    %406 = math.exp %405 : vector<1x16xf32>
    %cst_79 = arith.constant dense<0.000000e+00> : vector<1xf32>
    %407 = vector.multi_reduction <add>, %406, %cst_79 [1] : vector<1x16xf32> to vector<1xf32>
    %408 = vector.shape_cast %407 : vector<1xf32> to vector<1x1xf32>
    %409 = math.log %408 : vector<1x1xf32>
    %410 = vector.broadcast %409 : vector<1x1xf32> to vector<1x16xf32>
    %411 = arith.subf %405, %410 : vector<1x16xf32>
    %c3 = arith.constant 3 : index
    %c0_80 = arith.constant 0 : index
    %412 = vector.load %arg10[%c3, %c0_80] : memref<30x16xf32, #tpu.memory_space<vmem>>, vector<1x16xf32>
    tpu.vector_store %arg10[%c3, %c0_80], %411 {strides = array<i32>} : memref<30x16xf32, #tpu.memory_space<vmem>>, vector<1x16xf32>,
    %413 = vector.extract_strided_slice %383 {offsets = [0, 0], sizes = [1, 64], strides = [1, 1]} : vector<1x96xf32> to vector<1x64xf32>
    %414 = arith.addf %401, %413 : vector<1x64xf32>
    %415 = arith.negf %414 : vector<1x64xf32>
    %416 = math.exp %415 : vector<1x64xf32>
    %cst_81 = arith.constant 1.000000e+00 : f32
    %417 = vector.broadcast %cst_81 : f32 to vector<1x64xf32>
    %418 = arith.addf %417, %416 : vector<1x64xf32>
    %419 = arith.divf %417, %418 : vector<1x64xf32>
    %420 = vector.extract_strided_slice %419 {offsets = [0, 0], sizes = [1, 32], strides = [1, 1]} : vector<1x64xf32> to vector<1x32xf32>
    %421 = vector.extract_strided_slice %419 {offsets = [0, 32], sizes = [1, 32], strides = [1, 1]} : vector<1x64xf32> to vector<1x32xf32>
    %422 = vector.extract_strided_slice %383 {offsets = [0, 64], sizes = [1, 32], strides = [1, 1]} : vector<1x96xf32> to vector<1x32xf32>
    %423 = arith.addf %422, %196 : vector<1x32xf32>
    %424 = arith.mulf %420, %423 : vector<1x32xf32>
    %425 = arith.addf %403, %424 : vector<1x32xf32>
    %426 = math.tanh %425 : vector<1x32xf32>
    %cst_82 = arith.constant 1.000000e+00 : f32
    %427 = vector.broadcast %cst_82 : f32 to vector<1x32xf32>
    %428 = arith.subf %427, %421 : vector<1x32xf32>
    %429 = arith.mulf %428, %426 : vector<1x32xf32>
    %430 = arith.mulf %421, %379 : vector<1x32xf32>
    %431 = arith.addf %429, %430 : vector<1x32xf32>
    %cst_83 = arith.constant dense<0.000000e+00> : vector<1x112xf32>
    %432 = tpu.matmul %431, %192, %cst_83 {dimension_numbers = #tpu.dot_dimension_numbers<[1], [0], [0], [1], [0, 0, 1, 1], [], []>} : vector<1x32xf32>, vector<32x112xf32>, vector<1x112xf32> -> vector<1x112xf32>
    %433 = vector.extract_strided_slice %432 {offsets = [0, 0], sizes = [1, 16], strides = [1, 1]} : vector<1x112xf32> to vector<1x16xf32>
    %434 = arith.addf %433, %195 : vector<1x16xf32>
    %435 = vector.extract_strided_slice %432 {offsets = [0, 16], sizes = [1, 96], strides = [1, 1]} : vector<1x112xf32> to vector<1x96xf32>
    %cst_84 = arith.constant dense<0xFF800000> : vector<1xf32>
    %436 = vector.multi_reduction <maximumf>, %434, %cst_84 [1] : vector<1x16xf32> to vector<1xf32>
    %437 = vector.shape_cast %436 : vector<1xf32> to vector<1x1xf32>
    %438 = vector.broadcast %437 : vector<1x1xf32> to vector<1x16xf32>
    %439 = arith.cmpf oge, %434, %438 : vector<1x16xf32>
    %c16_i32_85 = arith.constant 16 : i32
    %440 = vector.broadcast %c16_i32_85 : i32 to vector<1x16xi32>
    %441 = arith.select %439, %201, %440 : vector<1x16xi1>, vector<1x16xi32>
    %cst_86 = arith.constant dense<2147483647> : vector<1xi32>
    %442 = vector.multi_reduction <minsi>, %441, %cst_86 [1] : vector<1x16xi32> to vector<1xi32>
    %443 = vector.shape_cast %442 : vector<1xi32> to vector<1x1xi32>
    %444 = vector.broadcast %443 : vector<1x1xi32> to vector<16x1xi32>
    %445 = arith.cmpi eq, %202, %444 : vector<16x1xi32>
    %446 = arith.extui %445 : vector<16x1xi1> to vector<16x1xi32>
    %447 = arith.sitofp %446 : vector<16x1xi32> to vector<16x1xf32>
    %448 = vector.broadcast %447 : vector<16x1xf32> to vector<16x96xf32>
    %449 = arith.mulf %448, %191 : vector<16x96xf32>
    %cst_87 = arith.constant dense<0.000000e+00> : vector<96xf32>
    %450 = vector.multi_reduction <add>, %449, %cst_87 [0] : vector<16x96xf32> to vector<96xf32>
    %451 = vector.shape_cast %450 : vector<96xf32> to vector<1x96xf32>
    %452 = vector.extract_strided_slice %451 {offsets = [0, 0], sizes = [1, 64], strides = [1, 1]} : vector<1x96xf32> to vector<1x64xf32>
    %453 = arith.addf %452, %199 : vector<1x64xf32>
    %454 = vector.extract_strided_slice %451 {offsets = [0, 64], sizes = [1, 32], strides = [1, 1]} : vector<1x96xf32> to vector<1x32xf32>
    %455 = arith.addf %454, %200 : vector<1x32xf32>
    %456 = vector.broadcast %437 : vector<1x1xf32> to vector<1x16xf32>
    %457 = arith.subf %434, %456 : vector<1x16xf32>
    %458 = math.exp %457 : vector<1x16xf32>
    %cst_88 = arith.constant dense<0.000000e+00> : vector<1xf32>
    %459 = vector.multi_reduction <add>, %458, %cst_88 [1] : vector<1x16xf32> to vector<1xf32>
    %460 = vector.shape_cast %459 : vector<1xf32> to vector<1x1xf32>
    %461 = math.log %460 : vector<1x1xf32>
    %462 = vector.broadcast %461 : vector<1x1xf32> to vector<1x16xf32>
    %463 = arith.subf %457, %462 : vector<1x16xf32>
    %c4 = arith.constant 4 : index
    %c0_89 = arith.constant 0 : index
    %464 = vector.load %arg10[%c4, %c0_89] : memref<30x16xf32, #tpu.memory_space<vmem>>, vector<1x16xf32>
    tpu.vector_store %arg10[%c4, %c0_89], %463 {strides = array<i32>} : memref<30x16xf32, #tpu.memory_space<vmem>>, vector<1x16xf32>,
    %465 = vector.extract_strided_slice %435 {offsets = [0, 0], sizes = [1, 64], strides = [1, 1]} : vector<1x96xf32> to vector<1x64xf32>
    %466 = arith.addf %453, %465 : vector<1x64xf32>
    %467 = arith.negf %466 : vector<1x64xf32>
    %468 = math.exp %467 : vector<1x64xf32>
    %cst_90 = arith.constant 1.000000e+00 : f32
    %469 = vector.broadcast %cst_90 : f32 to vector<1x64xf32>
    %470 = arith.addf %469, %468 : vector<1x64xf32>
    %471 = arith.divf %469, %470 : vector<1x64xf32>
    %472 = vector.extract_strided_slice %471 {offsets = [0, 0], sizes = [1, 32], strides = [1, 1]} : vector<1x64xf32> to vector<1x32xf32>
    %473 = vector.extract_strided_slice %471 {offsets = [0, 32], sizes = [1, 32], strides = [1, 1]} : vector<1x64xf32> to vector<1x32xf32>
    %474 = vector.extract_strided_slice %435 {offsets = [0, 64], sizes = [1, 32], strides = [1, 1]} : vector<1x96xf32> to vector<1x32xf32>
    %475 = arith.addf %474, %196 : vector<1x32xf32>
    %476 = arith.mulf %472, %475 : vector<1x32xf32>
    %477 = arith.addf %455, %476 : vector<1x32xf32>
    %478 = math.tanh %477 : vector<1x32xf32>
    %cst_91 = arith.constant 1.000000e+00 : f32
    %479 = vector.broadcast %cst_91 : f32 to vector<1x32xf32>
    %480 = arith.subf %479, %473 : vector<1x32xf32>
    %481 = arith.mulf %480, %478 : vector<1x32xf32>
    %482 = arith.mulf %473, %431 : vector<1x32xf32>
    %483 = arith.addf %481, %482 : vector<1x32xf32>
    %cst_92 = arith.constant dense<0.000000e+00> : vector<1x112xf32>
    %484 = tpu.matmul %483, %192, %cst_92 {dimension_numbers = #tpu.dot_dimension_numbers<[1], [0], [0], [1], [0, 0, 1, 1], [], []>} : vector<1x32xf32>, vector<32x112xf32>, vector<1x112xf32> -> vector<1x112xf32>
    %485 = vector.extract_strided_slice %484 {offsets = [0, 0], sizes = [1, 16], strides = [1, 1]} : vector<1x112xf32> to vector<1x16xf32>
    %486 = arith.addf %485, %195 : vector<1x16xf32>
    %487 = vector.extract_strided_slice %484 {offsets = [0, 16], sizes = [1, 96], strides = [1, 1]} : vector<1x112xf32> to vector<1x96xf32>
    %cst_93 = arith.constant dense<0xFF800000> : vector<1xf32>
    %488 = vector.multi_reduction <maximumf>, %486, %cst_93 [1] : vector<1x16xf32> to vector<1xf32>
    %489 = vector.shape_cast %488 : vector<1xf32> to vector<1x1xf32>
    %490 = vector.broadcast %489 : vector<1x1xf32> to vector<1x16xf32>
    %491 = arith.cmpf oge, %486, %490 : vector<1x16xf32>
    %c16_i32_94 = arith.constant 16 : i32
    %492 = vector.broadcast %c16_i32_94 : i32 to vector<1x16xi32>
    %493 = arith.select %491, %201, %492 : vector<1x16xi1>, vector<1x16xi32>
    %cst_95 = arith.constant dense<2147483647> : vector<1xi32>
    %494 = vector.multi_reduction <minsi>, %493, %cst_95 [1] : vector<1x16xi32> to vector<1xi32>
    %495 = vector.shape_cast %494 : vector<1xi32> to vector<1x1xi32>
    %496 = vector.broadcast %495 : vector<1x1xi32> to vector<16x1xi32>
    %497 = arith.cmpi eq, %202, %496 : vector<16x1xi32>
    %498 = arith.extui %497 : vector<16x1xi1> to vector<16x1xi32>
    %499 = arith.sitofp %498 : vector<16x1xi32> to vector<16x1xf32>
    %500 = vector.broadcast %499 : vector<16x1xf32> to vector<16x96xf32>
    %501 = arith.mulf %500, %191 : vector<16x96xf32>
    %cst_96 = arith.constant dense<0.000000e+00> : vector<96xf32>
    %502 = vector.multi_reduction <add>, %501, %cst_96 [0] : vector<16x96xf32> to vector<96xf32>
    %503 = vector.shape_cast %502 : vector<96xf32> to vector<1x96xf32>
    %504 = vector.extract_strided_slice %503 {offsets = [0, 0], sizes = [1, 64], strides = [1, 1]} : vector<1x96xf32> to vector<1x64xf32>
    %505 = arith.addf %504, %199 : vector<1x64xf32>
    %506 = vector.extract_strided_slice %503 {offsets = [0, 64], sizes = [1, 32], strides = [1, 1]} : vector<1x96xf32> to vector<1x32xf32>
    %507 = arith.addf %506, %200 : vector<1x32xf32>
    %508 = vector.broadcast %489 : vector<1x1xf32> to vector<1x16xf32>
    %509 = arith.subf %486, %508 : vector<1x16xf32>
    %510 = math.exp %509 : vector<1x16xf32>
    %cst_97 = arith.constant dense<0.000000e+00> : vector<1xf32>
    %511 = vector.multi_reduction <add>, %510, %cst_97 [1] : vector<1x16xf32> to vector<1xf32>
    %512 = vector.shape_cast %511 : vector<1xf32> to vector<1x1xf32>
    %513 = math.log %512 : vector<1x1xf32>
    %514 = vector.broadcast %513 : vector<1x1xf32> to vector<1x16xf32>
    %515 = arith.subf %509, %514 : vector<1x16xf32>
    %c5 = arith.constant 5 : index
    %c0_98 = arith.constant 0 : index
    %516 = vector.load %arg10[%c5, %c0_98] : memref<30x16xf32, #tpu.memory_space<vmem>>, vector<1x16xf32>
    tpu.vector_store %arg10[%c5, %c0_98], %515 {strides = array<i32>} : memref<30x16xf32, #tpu.memory_space<vmem>>, vector<1x16xf32>,
    %517 = vector.extract_strided_slice %487 {offsets = [0, 0], sizes = [1, 64], strides = [1, 1]} : vector<1x96xf32> to vector<1x64xf32>
    %518 = arith.addf %505, %517 : vector<1x64xf32>
    %519 = arith.negf %518 : vector<1x64xf32>
    %520 = math.exp %519 : vector<1x64xf32>
    %cst_99 = arith.constant 1.000000e+00 : f32
    %521 = vector.broadcast %cst_99 : f32 to vector<1x64xf32>
    %522 = arith.addf %521, %520 : vector<1x64xf32>
    %523 = arith.divf %521, %522 : vector<1x64xf32>
    %524 = vector.extract_strided_slice %523 {offsets = [0, 0], sizes = [1, 32], strides = [1, 1]} : vector<1x64xf32> to vector<1x32xf32>
    %525 = vector.extract_strided_slice %523 {offsets = [0, 32], sizes = [1, 32], strides = [1, 1]} : vector<1x64xf32> to vector<1x32xf32>
    %526 = vector.extract_strided_slice %487 {offsets = [0, 64], sizes = [1, 32], strides = [1, 1]} : vector<1x96xf32> to vector<1x32xf32>
    %527 = arith.addf %526, %196 : vector<1x32xf32>
    %528 = arith.mulf %524, %527 : vector<1x32xf32>
    %529 = arith.addf %507, %528 : vector<1x32xf32>
    %530 = math.tanh %529 : vector<1x32xf32>
    %cst_100 = arith.constant 1.000000e+00 : f32
    %531 = vector.broadcast %cst_100 : f32 to vector<1x32xf32>
    %532 = arith.subf %531, %525 : vector<1x32xf32>
    %533 = arith.mulf %532, %530 : vector<1x32xf32>
    %534 = arith.mulf %525, %483 : vector<1x32xf32>
    %535 = arith.addf %533, %534 : vector<1x32xf32>
    %cst_101 = arith.constant dense<0.000000e+00> : vector<1x112xf32>
    %536 = tpu.matmul %535, %192, %cst_101 {dimension_numbers = #tpu.dot_dimension_numbers<[1], [0], [0], [1], [0, 0, 1, 1], [], []>} : vector<1x32xf32>, vector<32x112xf32>, vector<1x112xf32> -> vector<1x112xf32>
    %537 = vector.extract_strided_slice %536 {offsets = [0, 0], sizes = [1, 16], strides = [1, 1]} : vector<1x112xf32> to vector<1x16xf32>
    %538 = arith.addf %537, %195 : vector<1x16xf32>
    %539 = vector.extract_strided_slice %536 {offsets = [0, 16], sizes = [1, 96], strides = [1, 1]} : vector<1x112xf32> to vector<1x96xf32>
    %cst_102 = arith.constant dense<0xFF800000> : vector<1xf32>
    %540 = vector.multi_reduction <maximumf>, %538, %cst_102 [1] : vector<1x16xf32> to vector<1xf32>
    %541 = vector.shape_cast %540 : vector<1xf32> to vector<1x1xf32>
    %542 = vector.broadcast %541 : vector<1x1xf32> to vector<1x16xf32>
    %543 = arith.cmpf oge, %538, %542 : vector<1x16xf32>
    %c16_i32_103 = arith.constant 16 : i32
    %544 = vector.broadcast %c16_i32_103 : i32 to vector<1x16xi32>
    %545 = arith.select %543, %201, %544 : vector<1x16xi1>, vector<1x16xi32>
    %cst_104 = arith.constant dense<2147483647> : vector<1xi32>
    %546 = vector.multi_reduction <minsi>, %545, %cst_104 [1] : vector<1x16xi32> to vector<1xi32>
    %547 = vector.shape_cast %546 : vector<1xi32> to vector<1x1xi32>
    %548 = vector.broadcast %547 : vector<1x1xi32> to vector<16x1xi32>
    %549 = arith.cmpi eq, %202, %548 : vector<16x1xi32>
    %550 = arith.extui %549 : vector<16x1xi1> to vector<16x1xi32>
    %551 = arith.sitofp %550 : vector<16x1xi32> to vector<16x1xf32>
    %552 = vector.broadcast %551 : vector<16x1xf32> to vector<16x96xf32>
    %553 = arith.mulf %552, %191 : vector<16x96xf32>
    %cst_105 = arith.constant dense<0.000000e+00> : vector<96xf32>
    %554 = vector.multi_reduction <add>, %553, %cst_105 [0] : vector<16x96xf32> to vector<96xf32>
    %555 = vector.shape_cast %554 : vector<96xf32> to vector<1x96xf32>
    %556 = vector.extract_strided_slice %555 {offsets = [0, 0], sizes = [1, 64], strides = [1, 1]} : vector<1x96xf32> to vector<1x64xf32>
    %557 = arith.addf %556, %199 : vector<1x64xf32>
    %558 = vector.extract_strided_slice %555 {offsets = [0, 64], sizes = [1, 32], strides = [1, 1]} : vector<1x96xf32> to vector<1x32xf32>
    %559 = arith.addf %558, %200 : vector<1x32xf32>
    %560 = vector.broadcast %541 : vector<1x1xf32> to vector<1x16xf32>
    %561 = arith.subf %538, %560 : vector<1x16xf32>
    %562 = math.exp %561 : vector<1x16xf32>
    %cst_106 = arith.constant dense<0.000000e+00> : vector<1xf32>
    %563 = vector.multi_reduction <add>, %562, %cst_106 [1] : vector<1x16xf32> to vector<1xf32>
    %564 = vector.shape_cast %563 : vector<1xf32> to vector<1x1xf32>
    %565 = math.log %564 : vector<1x1xf32>
    %566 = vector.broadcast %565 : vector<1x1xf32> to vector<1x16xf32>
    %567 = arith.subf %561, %566 : vector<1x16xf32>
    %c6 = arith.constant 6 : index
    %c0_107 = arith.constant 0 : index
    %568 = vector.load %arg10[%c6, %c0_107] : memref<30x16xf32, #tpu.memory_space<vmem>>, vector<1x16xf32>
    tpu.vector_store %arg10[%c6, %c0_107], %567 {strides = array<i32>} : memref<30x16xf32, #tpu.memory_space<vmem>>, vector<1x16xf32>,
    %569 = vector.extract_strided_slice %539 {offsets = [0, 0], sizes = [1, 64], strides = [1, 1]} : vector<1x96xf32> to vector<1x64xf32>
    %570 = arith.addf %557, %569 : vector<1x64xf32>
    %571 = arith.negf %570 : vector<1x64xf32>
    %572 = math.exp %571 : vector<1x64xf32>
    %cst_108 = arith.constant 1.000000e+00 : f32
    %573 = vector.broadcast %cst_108 : f32 to vector<1x64xf32>
    %574 = arith.addf %573, %572 : vector<1x64xf32>
    %575 = arith.divf %573, %574 : vector<1x64xf32>
    %576 = vector.extract_strided_slice %575 {offsets = [0, 0], sizes = [1, 32], strides = [1, 1]} : vector<1x64xf32> to vector<1x32xf32>
    %577 = vector.extract_strided_slice %575 {offsets = [0, 32], sizes = [1, 32], strides = [1, 1]} : vector<1x64xf32> to vector<1x32xf32>
    %578 = vector.extract_strided_slice %539 {offsets = [0, 64], sizes = [1, 32], strides = [1, 1]} : vector<1x96xf32> to vector<1x32xf32>
    %579 = arith.addf %578, %196 : vector<1x32xf32>
    %580 = arith.mulf %576, %579 : vector<1x32xf32>
    %581 = arith.addf %559, %580 : vector<1x32xf32>
    %582 = math.tanh %581 : vector<1x32xf32>
    %cst_109 = arith.constant 1.000000e+00 : f32
    %583 = vector.broadcast %cst_109 : f32 to vector<1x32xf32>
    %584 = arith.subf %583, %577 : vector<1x32xf32>
    %585 = arith.mulf %584, %582 : vector<1x32xf32>
    %586 = arith.mulf %577, %535 : vector<1x32xf32>
    %587 = arith.addf %585, %586 : vector<1x32xf32>
    %cst_110 = arith.constant dense<0.000000e+00> : vector<1x112xf32>
    %588 = tpu.matmul %587, %192, %cst_110 {dimension_numbers = #tpu.dot_dimension_numbers<[1], [0], [0], [1], [0, 0, 1, 1], [], []>} : vector<1x32xf32>, vector<32x112xf32>, vector<1x112xf32> -> vector<1x112xf32>
    %589 = vector.extract_strided_slice %588 {offsets = [0, 0], sizes = [1, 16], strides = [1, 1]} : vector<1x112xf32> to vector<1x16xf32>
    %590 = arith.addf %589, %195 : vector<1x16xf32>
    %591 = vector.extract_strided_slice %588 {offsets = [0, 16], sizes = [1, 96], strides = [1, 1]} : vector<1x112xf32> to vector<1x96xf32>
    %cst_111 = arith.constant dense<0xFF800000> : vector<1xf32>
    %592 = vector.multi_reduction <maximumf>, %590, %cst_111 [1] : vector<1x16xf32> to vector<1xf32>
    %593 = vector.shape_cast %592 : vector<1xf32> to vector<1x1xf32>
    %594 = vector.broadcast %593 : vector<1x1xf32> to vector<1x16xf32>
    %595 = arith.cmpf oge, %590, %594 : vector<1x16xf32>
    %c16_i32_112 = arith.constant 16 : i32
    %596 = vector.broadcast %c16_i32_112 : i32 to vector<1x16xi32>
    %597 = arith.select %595, %201, %596 : vector<1x16xi1>, vector<1x16xi32>
    %cst_113 = arith.constant dense<2147483647> : vector<1xi32>
    %598 = vector.multi_reduction <minsi>, %597, %cst_113 [1] : vector<1x16xi32> to vector<1xi32>
    %599 = vector.shape_cast %598 : vector<1xi32> to vector<1x1xi32>
    %600 = vector.broadcast %599 : vector<1x1xi32> to vector<16x1xi32>
    %601 = arith.cmpi eq, %202, %600 : vector<16x1xi32>
    %602 = arith.extui %601 : vector<16x1xi1> to vector<16x1xi32>
    %603 = arith.sitofp %602 : vector<16x1xi32> to vector<16x1xf32>
    %604 = vector.broadcast %603 : vector<16x1xf32> to vector<16x96xf32>
    %605 = arith.mulf %604, %191 : vector<16x96xf32>
    %cst_114 = arith.constant dense<0.000000e+00> : vector<96xf32>
    %606 = vector.multi_reduction <add>, %605, %cst_114 [0] : vector<16x96xf32> to vector<96xf32>
    %607 = vector.shape_cast %606 : vector<96xf32> to vector<1x96xf32>
    %608 = vector.extract_strided_slice %607 {offsets = [0, 0], sizes = [1, 64], strides = [1, 1]} : vector<1x96xf32> to vector<1x64xf32>
    %609 = arith.addf %608, %199 : vector<1x64xf32>
    %610 = vector.extract_strided_slice %607 {offsets = [0, 64], sizes = [1, 32], strides = [1, 1]} : vector<1x96xf32> to vector<1x32xf32>
    %611 = arith.addf %610, %200 : vector<1x32xf32>
    %612 = vector.broadcast %593 : vector<1x1xf32> to vector<1x16xf32>
    %613 = arith.subf %590, %612 : vector<1x16xf32>
    %614 = math.exp %613 : vector<1x16xf32>
    %cst_115 = arith.constant dense<0.000000e+00> : vector<1xf32>
    %615 = vector.multi_reduction <add>, %614, %cst_115 [1] : vector<1x16xf32> to vector<1xf32>
    %616 = vector.shape_cast %615 : vector<1xf32> to vector<1x1xf32>
    %617 = math.log %616 : vector<1x1xf32>
    %618 = vector.broadcast %617 : vector<1x1xf32> to vector<1x16xf32>
    %619 = arith.subf %613, %618 : vector<1x16xf32>
    %c7 = arith.constant 7 : index
    %c0_116 = arith.constant 0 : index
    %620 = vector.load %arg10[%c7, %c0_116] : memref<30x16xf32, #tpu.memory_space<vmem>>, vector<1x16xf32>
    tpu.vector_store %arg10[%c7, %c0_116], %619 {strides = array<i32>} : memref<30x16xf32, #tpu.memory_space<vmem>>, vector<1x16xf32>,
    %621 = vector.extract_strided_slice %591 {offsets = [0, 0], sizes = [1, 64], strides = [1, 1]} : vector<1x96xf32> to vector<1x64xf32>
    %622 = arith.addf %609, %621 : vector<1x64xf32>
    %623 = arith.negf %622 : vector<1x64xf32>
    %624 = math.exp %623 : vector<1x64xf32>
    %cst_117 = arith.constant 1.000000e+00 : f32
    %625 = vector.broadcast %cst_117 : f32 to vector<1x64xf32>
    %626 = arith.addf %625, %624 : vector<1x64xf32>
    %627 = arith.divf %625, %626 : vector<1x64xf32>
    %628 = vector.extract_strided_slice %627 {offsets = [0, 0], sizes = [1, 32], strides = [1, 1]} : vector<1x64xf32> to vector<1x32xf32>
    %629 = vector.extract_strided_slice %627 {offsets = [0, 32], sizes = [1, 32], strides = [1, 1]} : vector<1x64xf32> to vector<1x32xf32>
    %630 = vector.extract_strided_slice %591 {offsets = [0, 64], sizes = [1, 32], strides = [1, 1]} : vector<1x96xf32> to vector<1x32xf32>
    %631 = arith.addf %630, %196 : vector<1x32xf32>
    %632 = arith.mulf %628, %631 : vector<1x32xf32>
    %633 = arith.addf %611, %632 : vector<1x32xf32>
    %634 = math.tanh %633 : vector<1x32xf32>
    %cst_118 = arith.constant 1.000000e+00 : f32
    %635 = vector.broadcast %cst_118 : f32 to vector<1x32xf32>
    %636 = arith.subf %635, %629 : vector<1x32xf32>
    %637 = arith.mulf %636, %634 : vector<1x32xf32>
    %638 = arith.mulf %629, %587 : vector<1x32xf32>
    %639 = arith.addf %637, %638 : vector<1x32xf32>
    %cst_119 = arith.constant dense<0.000000e+00> : vector<1x112xf32>
    %640 = tpu.matmul %639, %192, %cst_119 {dimension_numbers = #tpu.dot_dimension_numbers<[1], [0], [0], [1], [0, 0, 1, 1], [], []>} : vector<1x32xf32>, vector<32x112xf32>, vector<1x112xf32> -> vector<1x112xf32>
    %641 = vector.extract_strided_slice %640 {offsets = [0, 0], sizes = [1, 16], strides = [1, 1]} : vector<1x112xf32> to vector<1x16xf32>
    %642 = arith.addf %641, %195 : vector<1x16xf32>
    %643 = vector.extract_strided_slice %640 {offsets = [0, 16], sizes = [1, 96], strides = [1, 1]} : vector<1x112xf32> to vector<1x96xf32>
    %cst_120 = arith.constant dense<0xFF800000> : vector<1xf32>
    %644 = vector.multi_reduction <maximumf>, %642, %cst_120 [1] : vector<1x16xf32> to vector<1xf32>
    %645 = vector.shape_cast %644 : vector<1xf32> to vector<1x1xf32>
    %646 = vector.broadcast %645 : vector<1x1xf32> to vector<1x16xf32>
    %647 = arith.cmpf oge, %642, %646 : vector<1x16xf32>
    %c16_i32_121 = arith.constant 16 : i32
    %648 = vector.broadcast %c16_i32_121 : i32 to vector<1x16xi32>
    %649 = arith.select %647, %201, %648 : vector<1x16xi1>, vector<1x16xi32>
    %cst_122 = arith.constant dense<2147483647> : vector<1xi32>
    %650 = vector.multi_reduction <minsi>, %649, %cst_122 [1] : vector<1x16xi32> to vector<1xi32>
    %651 = vector.shape_cast %650 : vector<1xi32> to vector<1x1xi32>
    %652 = vector.broadcast %651 : vector<1x1xi32> to vector<16x1xi32>
    %653 = arith.cmpi eq, %202, %652 : vector<16x1xi32>
    %654 = arith.extui %653 : vector<16x1xi1> to vector<16x1xi32>
    %655 = arith.sitofp %654 : vector<16x1xi32> to vector<16x1xf32>
    %656 = vector.broadcast %655 : vector<16x1xf32> to vector<16x96xf32>
    %657 = arith.mulf %656, %191 : vector<16x96xf32>
    %cst_123 = arith.constant dense<0.000000e+00> : vector<96xf32>
    %658 = vector.multi_reduction <add>, %657, %cst_123 [0] : vector<16x96xf32> to vector<96xf32>
    %659 = vector.shape_cast %658 : vector<96xf32> to vector<1x96xf32>
    %660 = vector.extract_strided_slice %659 {offsets = [0, 0], sizes = [1, 64], strides = [1, 1]} : vector<1x96xf32> to vector<1x64xf32>
    %661 = arith.addf %660, %199 : vector<1x64xf32>
    %662 = vector.extract_strided_slice %659 {offsets = [0, 64], sizes = [1, 32], strides = [1, 1]} : vector<1x96xf32> to vector<1x32xf32>
    %663 = arith.addf %662, %200 : vector<1x32xf32>
    %664 = vector.broadcast %645 : vector<1x1xf32> to vector<1x16xf32>
    %665 = arith.subf %642, %664 : vector<1x16xf32>
    %666 = math.exp %665 : vector<1x16xf32>
    %cst_124 = arith.constant dense<0.000000e+00> : vector<1xf32>
    %667 = vector.multi_reduction <add>, %666, %cst_124 [1] : vector<1x16xf32> to vector<1xf32>
    %668 = vector.shape_cast %667 : vector<1xf32> to vector<1x1xf32>
    %669 = math.log %668 : vector<1x1xf32>
    %670 = vector.broadcast %669 : vector<1x1xf32> to vector<1x16xf32>
    %671 = arith.subf %665, %670 : vector<1x16xf32>
    %c8 = arith.constant 8 : index
    %c0_125 = arith.constant 0 : index
    %672 = vector.load %arg10[%c8, %c0_125] : memref<30x16xf32, #tpu.memory_space<vmem>>, vector<1x16xf32>
    tpu.vector_store %arg10[%c8, %c0_125], %671 {strides = array<i32>} : memref<30x16xf32, #tpu.memory_space<vmem>>, vector<1x16xf32>,
    %673 = vector.extract_strided_slice %643 {offsets = [0, 0], sizes = [1, 64], strides = [1, 1]} : vector<1x96xf32> to vector<1x64xf32>
    %674 = arith.addf %661, %673 : vector<1x64xf32>
    %675 = arith.negf %674 : vector<1x64xf32>
    %676 = math.exp %675 : vector<1x64xf32>
    %cst_126 = arith.constant 1.000000e+00 : f32
    %677 = vector.broadcast %cst_126 : f32 to vector<1x64xf32>
    %678 = arith.addf %677, %676 : vector<1x64xf32>
    %679 = arith.divf %677, %678 : vector<1x64xf32>
    %680 = vector.extract_strided_slice %679 {offsets = [0, 0], sizes = [1, 32], strides = [1, 1]} : vector<1x64xf32> to vector<1x32xf32>
    %681 = vector.extract_strided_slice %679 {offsets = [0, 32], sizes = [1, 32], strides = [1, 1]} : vector<1x64xf32> to vector<1x32xf32>
    %682 = vector.extract_strided_slice %643 {offsets = [0, 64], sizes = [1, 32], strides = [1, 1]} : vector<1x96xf32> to vector<1x32xf32>
    %683 = arith.addf %682, %196 : vector<1x32xf32>
    %684 = arith.mulf %680, %683 : vector<1x32xf32>
    %685 = arith.addf %663, %684 : vector<1x32xf32>
    %686 = math.tanh %685 : vector<1x32xf32>
    %cst_127 = arith.constant 1.000000e+00 : f32
    %687 = vector.broadcast %cst_127 : f32 to vector<1x32xf32>
    %688 = arith.subf %687, %681 : vector<1x32xf32>
    %689 = arith.mulf %688, %686 : vector<1x32xf32>
    %690 = arith.mulf %681, %639 : vector<1x32xf32>
    %691 = arith.addf %689, %690 : vector<1x32xf32>
    %cst_128 = arith.constant dense<0.000000e+00> : vector<1x112xf32>
    %692 = tpu.matmul %691, %192, %cst_128 {dimension_numbers = #tpu.dot_dimension_numbers<[1], [0], [0], [1], [0, 0, 1, 1], [], []>} : vector<1x32xf32>, vector<32x112xf32>, vector<1x112xf32> -> vector<1x112xf32>
    %693 = vector.extract_strided_slice %692 {offsets = [0, 0], sizes = [1, 16], strides = [1, 1]} : vector<1x112xf32> to vector<1x16xf32>
    %694 = arith.addf %693, %195 : vector<1x16xf32>
    %695 = vector.extract_strided_slice %692 {offsets = [0, 16], sizes = [1, 96], strides = [1, 1]} : vector<1x112xf32> to vector<1x96xf32>
    %cst_129 = arith.constant dense<0xFF800000> : vector<1xf32>
    %696 = vector.multi_reduction <maximumf>, %694, %cst_129 [1] : vector<1x16xf32> to vector<1xf32>
    %697 = vector.shape_cast %696 : vector<1xf32> to vector<1x1xf32>
    %698 = vector.broadcast %697 : vector<1x1xf32> to vector<1x16xf32>
    %699 = arith.cmpf oge, %694, %698 : vector<1x16xf32>
    %c16_i32_130 = arith.constant 16 : i32
    %700 = vector.broadcast %c16_i32_130 : i32 to vector<1x16xi32>
    %701 = arith.select %699, %201, %700 : vector<1x16xi1>, vector<1x16xi32>
    %cst_131 = arith.constant dense<2147483647> : vector<1xi32>
    %702 = vector.multi_reduction <minsi>, %701, %cst_131 [1] : vector<1x16xi32> to vector<1xi32>
    %703 = vector.shape_cast %702 : vector<1xi32> to vector<1x1xi32>
    %704 = vector.broadcast %703 : vector<1x1xi32> to vector<16x1xi32>
    %705 = arith.cmpi eq, %202, %704 : vector<16x1xi32>
    %706 = arith.extui %705 : vector<16x1xi1> to vector<16x1xi32>
    %707 = arith.sitofp %706 : vector<16x1xi32> to vector<16x1xf32>
    %708 = vector.broadcast %707 : vector<16x1xf32> to vector<16x96xf32>
    %709 = arith.mulf %708, %191 : vector<16x96xf32>
    %cst_132 = arith.constant dense<0.000000e+00> : vector<96xf32>
    %710 = vector.multi_reduction <add>, %709, %cst_132 [0] : vector<16x96xf32> to vector<96xf32>
    %711 = vector.shape_cast %710 : vector<96xf32> to vector<1x96xf32>
    %712 = vector.extract_strided_slice %711 {offsets = [0, 0], sizes = [1, 64], strides = [1, 1]} : vector<1x96xf32> to vector<1x64xf32>
    %713 = arith.addf %712, %199 : vector<1x64xf32>
    %714 = vector.extract_strided_slice %711 {offsets = [0, 64], sizes = [1, 32], strides = [1, 1]} : vector<1x96xf32> to vector<1x32xf32>
    %715 = arith.addf %714, %200 : vector<1x32xf32>
    %716 = vector.broadcast %697 : vector<1x1xf32> to vector<1x16xf32>
    %717 = arith.subf %694, %716 : vector<1x16xf32>
    %718 = math.exp %717 : vector<1x16xf32>
    %cst_133 = arith.constant dense<0.000000e+00> : vector<1xf32>
    %719 = vector.multi_reduction <add>, %718, %cst_133 [1] : vector<1x16xf32> to vector<1xf32>
    %720 = vector.shape_cast %719 : vector<1xf32> to vector<1x1xf32>
    %721 = math.log %720 : vector<1x1xf32>
    %722 = vector.broadcast %721 : vector<1x1xf32> to vector<1x16xf32>
    %723 = arith.subf %717, %722 : vector<1x16xf32>
    %c9 = arith.constant 9 : index
    %c0_134 = arith.constant 0 : index
    %724 = vector.load %arg10[%c9, %c0_134] : memref<30x16xf32, #tpu.memory_space<vmem>>, vector<1x16xf32>
    tpu.vector_store %arg10[%c9, %c0_134], %723 {strides = array<i32>} : memref<30x16xf32, #tpu.memory_space<vmem>>, vector<1x16xf32>,
    %725 = vector.extract_strided_slice %695 {offsets = [0, 0], sizes = [1, 64], strides = [1, 1]} : vector<1x96xf32> to vector<1x64xf32>
    %726 = arith.addf %713, %725 : vector<1x64xf32>
    %727 = arith.negf %726 : vector<1x64xf32>
    %728 = math.exp %727 : vector<1x64xf32>
    %cst_135 = arith.constant 1.000000e+00 : f32
    %729 = vector.broadcast %cst_135 : f32 to vector<1x64xf32>
    %730 = arith.addf %729, %728 : vector<1x64xf32>
    %731 = arith.divf %729, %730 : vector<1x64xf32>
    %732 = vector.extract_strided_slice %731 {offsets = [0, 0], sizes = [1, 32], strides = [1, 1]} : vector<1x64xf32> to vector<1x32xf32>
    %733 = vector.extract_strided_slice %731 {offsets = [0, 32], sizes = [1, 32], strides = [1, 1]} : vector<1x64xf32> to vector<1x32xf32>
    %734 = vector.extract_strided_slice %695 {offsets = [0, 64], sizes = [1, 32], strides = [1, 1]} : vector<1x96xf32> to vector<1x32xf32>
    %735 = arith.addf %734, %196 : vector<1x32xf32>
    %736 = arith.mulf %732, %735 : vector<1x32xf32>
    %737 = arith.addf %715, %736 : vector<1x32xf32>
    %738 = math.tanh %737 : vector<1x32xf32>
    %cst_136 = arith.constant 1.000000e+00 : f32
    %739 = vector.broadcast %cst_136 : f32 to vector<1x32xf32>
    %740 = arith.subf %739, %733 : vector<1x32xf32>
    %741 = arith.mulf %740, %738 : vector<1x32xf32>
    %742 = arith.mulf %733, %691 : vector<1x32xf32>
    %743 = arith.addf %741, %742 : vector<1x32xf32>
    %cst_137 = arith.constant dense<0.000000e+00> : vector<1x112xf32>
    %744 = tpu.matmul %743, %192, %cst_137 {dimension_numbers = #tpu.dot_dimension_numbers<[1], [0], [0], [1], [0, 0, 1, 1], [], []>} : vector<1x32xf32>, vector<32x112xf32>, vector<1x112xf32> -> vector<1x112xf32>
    %745 = vector.extract_strided_slice %744 {offsets = [0, 0], sizes = [1, 16], strides = [1, 1]} : vector<1x112xf32> to vector<1x16xf32>
    %746 = arith.addf %745, %195 : vector<1x16xf32>
    %747 = vector.extract_strided_slice %744 {offsets = [0, 16], sizes = [1, 96], strides = [1, 1]} : vector<1x112xf32> to vector<1x96xf32>
    %cst_138 = arith.constant dense<0xFF800000> : vector<1xf32>
    %748 = vector.multi_reduction <maximumf>, %746, %cst_138 [1] : vector<1x16xf32> to vector<1xf32>
    %749 = vector.shape_cast %748 : vector<1xf32> to vector<1x1xf32>
    %750 = vector.broadcast %749 : vector<1x1xf32> to vector<1x16xf32>
    %751 = arith.cmpf oge, %746, %750 : vector<1x16xf32>
    %c16_i32_139 = arith.constant 16 : i32
    %752 = vector.broadcast %c16_i32_139 : i32 to vector<1x16xi32>
    %753 = arith.select %751, %201, %752 : vector<1x16xi1>, vector<1x16xi32>
    %cst_140 = arith.constant dense<2147483647> : vector<1xi32>
    %754 = vector.multi_reduction <minsi>, %753, %cst_140 [1] : vector<1x16xi32> to vector<1xi32>
    %755 = vector.shape_cast %754 : vector<1xi32> to vector<1x1xi32>
    %756 = vector.broadcast %755 : vector<1x1xi32> to vector<16x1xi32>
    %757 = arith.cmpi eq, %202, %756 : vector<16x1xi32>
    %758 = arith.extui %757 : vector<16x1xi1> to vector<16x1xi32>
    %759 = arith.sitofp %758 : vector<16x1xi32> to vector<16x1xf32>
    %760 = vector.broadcast %759 : vector<16x1xf32> to vector<16x96xf32>
    %761 = arith.mulf %760, %191 : vector<16x96xf32>
    %cst_141 = arith.constant dense<0.000000e+00> : vector<96xf32>
    %762 = vector.multi_reduction <add>, %761, %cst_141 [0] : vector<16x96xf32> to vector<96xf32>
    %763 = vector.shape_cast %762 : vector<96xf32> to vector<1x96xf32>
    %764 = vector.extract_strided_slice %763 {offsets = [0, 0], sizes = [1, 64], strides = [1, 1]} : vector<1x96xf32> to vector<1x64xf32>
    %765 = arith.addf %764, %199 : vector<1x64xf32>
    %766 = vector.extract_strided_slice %763 {offsets = [0, 64], sizes = [1, 32], strides = [1, 1]} : vector<1x96xf32> to vector<1x32xf32>
    %767 = arith.addf %766, %200 : vector<1x32xf32>
    %768 = vector.broadcast %749 : vector<1x1xf32> to vector<1x16xf32>
    %769 = arith.subf %746, %768 : vector<1x16xf32>
    %770 = math.exp %769 : vector<1x16xf32>
    %cst_142 = arith.constant dense<0.000000e+00> : vector<1xf32>
    %771 = vector.multi_reduction <add>, %770, %cst_142 [1] : vector<1x16xf32> to vector<1xf32>
    %772 = vector.shape_cast %771 : vector<1xf32> to vector<1x1xf32>
    %773 = math.log %772 : vector<1x1xf32>
    %774 = vector.broadcast %773 : vector<1x1xf32> to vector<1x16xf32>
    %775 = arith.subf %769, %774 : vector<1x16xf32>
    %c10 = arith.constant 10 : index
    %c0_143 = arith.constant 0 : index
    %776 = vector.load %arg10[%c10, %c0_143] : memref<30x16xf32, #tpu.memory_space<vmem>>, vector<1x16xf32>
    tpu.vector_store %arg10[%c10, %c0_143], %775 {strides = array<i32>} : memref<30x16xf32, #tpu.memory_space<vmem>>, vector<1x16xf32>,
    %777 = vector.extract_strided_slice %747 {offsets = [0, 0], sizes = [1, 64], strides = [1, 1]} : vector<1x96xf32> to vector<1x64xf32>
    %778 = arith.addf %765, %777 : vector<1x64xf32>
    %779 = arith.negf %778 : vector<1x64xf32>
    %780 = math.exp %779 : vector<1x64xf32>
    %cst_144 = arith.constant 1.000000e+00 : f32
    %781 = vector.broadcast %cst_144 : f32 to vector<1x64xf32>
    %782 = arith.addf %781, %780 : vector<1x64xf32>
    %783 = arith.divf %781, %782 : vector<1x64xf32>
    %784 = vector.extract_strided_slice %783 {offsets = [0, 0], sizes = [1, 32], strides = [1, 1]} : vector<1x64xf32> to vector<1x32xf32>
    %785 = vector.extract_strided_slice %783 {offsets = [0, 32], sizes = [1, 32], strides = [1, 1]} : vector<1x64xf32> to vector<1x32xf32>
    %786 = vector.extract_strided_slice %747 {offsets = [0, 64], sizes = [1, 32], strides = [1, 1]} : vector<1x96xf32> to vector<1x32xf32>
    %787 = arith.addf %786, %196 : vector<1x32xf32>
    %788 = arith.mulf %784, %787 : vector<1x32xf32>
    %789 = arith.addf %767, %788 : vector<1x32xf32>
    %790 = math.tanh %789 : vector<1x32xf32>
    %cst_145 = arith.constant 1.000000e+00 : f32
    %791 = vector.broadcast %cst_145 : f32 to vector<1x32xf32>
    %792 = arith.subf %791, %785 : vector<1x32xf32>
    %793 = arith.mulf %792, %790 : vector<1x32xf32>
    %794 = arith.mulf %785, %743 : vector<1x32xf32>
    %795 = arith.addf %793, %794 : vector<1x32xf32>
    %cst_146 = arith.constant dense<0.000000e+00> : vector<1x112xf32>
    %796 = tpu.matmul %795, %192, %cst_146 {dimension_numbers = #tpu.dot_dimension_numbers<[1], [0], [0], [1], [0, 0, 1, 1], [], []>} : vector<1x32xf32>, vector<32x112xf32>, vector<1x112xf32> -> vector<1x112xf32>
    %797 = vector.extract_strided_slice %796 {offsets = [0, 0], sizes = [1, 16], strides = [1, 1]} : vector<1x112xf32> to vector<1x16xf32>
    %798 = arith.addf %797, %195 : vector<1x16xf32>
    %799 = vector.extract_strided_slice %796 {offsets = [0, 16], sizes = [1, 96], strides = [1, 1]} : vector<1x112xf32> to vector<1x96xf32>
    %cst_147 = arith.constant dense<0xFF800000> : vector<1xf32>
    %800 = vector.multi_reduction <maximumf>, %798, %cst_147 [1] : vector<1x16xf32> to vector<1xf32>
    %801 = vector.shape_cast %800 : vector<1xf32> to vector<1x1xf32>
    %802 = vector.broadcast %801 : vector<1x1xf32> to vector<1x16xf32>
    %803 = arith.cmpf oge, %798, %802 : vector<1x16xf32>
    %c16_i32_148 = arith.constant 16 : i32
    %804 = vector.broadcast %c16_i32_148 : i32 to vector<1x16xi32>
    %805 = arith.select %803, %201, %804 : vector<1x16xi1>, vector<1x16xi32>
    %cst_149 = arith.constant dense<2147483647> : vector<1xi32>
    %806 = vector.multi_reduction <minsi>, %805, %cst_149 [1] : vector<1x16xi32> to vector<1xi32>
    %807 = vector.shape_cast %806 : vector<1xi32> to vector<1x1xi32>
    %808 = vector.broadcast %807 : vector<1x1xi32> to vector<16x1xi32>
    %809 = arith.cmpi eq, %202, %808 : vector<16x1xi32>
    %810 = arith.extui %809 : vector<16x1xi1> to vector<16x1xi32>
    %811 = arith.sitofp %810 : vector<16x1xi32> to vector<16x1xf32>
    %812 = vector.broadcast %811 : vector<16x1xf32> to vector<16x96xf32>
    %813 = arith.mulf %812, %191 : vector<16x96xf32>
    %cst_150 = arith.constant dense<0.000000e+00> : vector<96xf32>
    %814 = vector.multi_reduction <add>, %813, %cst_150 [0] : vector<16x96xf32> to vector<96xf32>
    %815 = vector.shape_cast %814 : vector<96xf32> to vector<1x96xf32>
    %816 = vector.extract_strided_slice %815 {offsets = [0, 0], sizes = [1, 64], strides = [1, 1]} : vector<1x96xf32> to vector<1x64xf32>
    %817 = arith.addf %816, %199 : vector<1x64xf32>
    %818 = vector.extract_strided_slice %815 {offsets = [0, 64], sizes = [1, 32], strides = [1, 1]} : vector<1x96xf32> to vector<1x32xf32>
    %819 = arith.addf %818, %200 : vector<1x32xf32>
    %820 = vector.broadcast %801 : vector<1x1xf32> to vector<1x16xf32>
    %821 = arith.subf %798, %820 : vector<1x16xf32>
    %822 = math.exp %821 : vector<1x16xf32>
    %cst_151 = arith.constant dense<0.000000e+00> : vector<1xf32>
    %823 = vector.multi_reduction <add>, %822, %cst_151 [1] : vector<1x16xf32> to vector<1xf32>
    %824 = vector.shape_cast %823 : vector<1xf32> to vector<1x1xf32>
    %825 = math.log %824 : vector<1x1xf32>
    %826 = vector.broadcast %825 : vector<1x1xf32> to vector<1x16xf32>
    %827 = arith.subf %821, %826 : vector<1x16xf32>
    %c11 = arith.constant 11 : index
    %c0_152 = arith.constant 0 : index
    %828 = vector.load %arg10[%c11, %c0_152] : memref<30x16xf32, #tpu.memory_space<vmem>>, vector<1x16xf32>
    tpu.vector_store %arg10[%c11, %c0_152], %827 {strides = array<i32>} : memref<30x16xf32, #tpu.memory_space<vmem>>, vector<1x16xf32>,
    %829 = vector.extract_strided_slice %799 {offsets = [0, 0], sizes = [1, 64], strides = [1, 1]} : vector<1x96xf32> to vector<1x64xf32>
    %830 = arith.addf %817, %829 : vector<1x64xf32>
    %831 = arith.negf %830 : vector<1x64xf32>
    %832 = math.exp %831 : vector<1x64xf32>
    %cst_153 = arith.constant 1.000000e+00 : f32
    %833 = vector.broadcast %cst_153 : f32 to vector<1x64xf32>
    %834 = arith.addf %833, %832 : vector<1x64xf32>
    %835 = arith.divf %833, %834 : vector<1x64xf32>
    %836 = vector.extract_strided_slice %835 {offsets = [0, 0], sizes = [1, 32], strides = [1, 1]} : vector<1x64xf32> to vector<1x32xf32>
    %837 = vector.extract_strided_slice %835 {offsets = [0, 32], sizes = [1, 32], strides = [1, 1]} : vector<1x64xf32> to vector<1x32xf32>
    %838 = vector.extract_strided_slice %799 {offsets = [0, 64], sizes = [1, 32], strides = [1, 1]} : vector<1x96xf32> to vector<1x32xf32>
    %839 = arith.addf %838, %196 : vector<1x32xf32>
    %840 = arith.mulf %836, %839 : vector<1x32xf32>
    %841 = arith.addf %819, %840 : vector<1x32xf32>
    %842 = math.tanh %841 : vector<1x32xf32>
    %cst_154 = arith.constant 1.000000e+00 : f32
    %843 = vector.broadcast %cst_154 : f32 to vector<1x32xf32>
    %844 = arith.subf %843, %837 : vector<1x32xf32>
    %845 = arith.mulf %844, %842 : vector<1x32xf32>
    %846 = arith.mulf %837, %795 : vector<1x32xf32>
    %847 = arith.addf %845, %846 : vector<1x32xf32>
    %cst_155 = arith.constant dense<0.000000e+00> : vector<1x112xf32>
    %848 = tpu.matmul %847, %192, %cst_155 {dimension_numbers = #tpu.dot_dimension_numbers<[1], [0], [0], [1], [0, 0, 1, 1], [], []>} : vector<1x32xf32>, vector<32x112xf32>, vector<1x112xf32> -> vector<1x112xf32>
    %849 = vector.extract_strided_slice %848 {offsets = [0, 0], sizes = [1, 16], strides = [1, 1]} : vector<1x112xf32> to vector<1x16xf32>
    %850 = arith.addf %849, %195 : vector<1x16xf32>
    %851 = vector.extract_strided_slice %848 {offsets = [0, 16], sizes = [1, 96], strides = [1, 1]} : vector<1x112xf32> to vector<1x96xf32>
    %cst_156 = arith.constant dense<0xFF800000> : vector<1xf32>
    %852 = vector.multi_reduction <maximumf>, %850, %cst_156 [1] : vector<1x16xf32> to vector<1xf32>
    %853 = vector.shape_cast %852 : vector<1xf32> to vector<1x1xf32>
    %854 = vector.broadcast %853 : vector<1x1xf32> to vector<1x16xf32>
    %855 = arith.cmpf oge, %850, %854 : vector<1x16xf32>
    %c16_i32_157 = arith.constant 16 : i32
    %856 = vector.broadcast %c16_i32_157 : i32 to vector<1x16xi32>
    %857 = arith.select %855, %201, %856 : vector<1x16xi1>, vector<1x16xi32>
    %cst_158 = arith.constant dense<2147483647> : vector<1xi32>
    %858 = vector.multi_reduction <minsi>, %857, %cst_158 [1] : vector<1x16xi32> to vector<1xi32>
    %859 = vector.shape_cast %858 : vector<1xi32> to vector<1x1xi32>
    %860 = vector.broadcast %859 : vector<1x1xi32> to vector<16x1xi32>
    %861 = arith.cmpi eq, %202, %860 : vector<16x1xi32>
    %862 = arith.extui %861 : vector<16x1xi1> to vector<16x1xi32>
    %863 = arith.sitofp %862 : vector<16x1xi32> to vector<16x1xf32>
    %864 = vector.broadcast %863 : vector<16x1xf32> to vector<16x96xf32>
    %865 = arith.mulf %864, %191 : vector<16x96xf32>
    %cst_159 = arith.constant dense<0.000000e+00> : vector<96xf32>
    %866 = vector.multi_reduction <add>, %865, %cst_159 [0] : vector<16x96xf32> to vector<96xf32>
    %867 = vector.shape_cast %866 : vector<96xf32> to vector<1x96xf32>
    %868 = vector.extract_strided_slice %867 {offsets = [0, 0], sizes = [1, 64], strides = [1, 1]} : vector<1x96xf32> to vector<1x64xf32>
    %869 = arith.addf %868, %199 : vector<1x64xf32>
    %870 = vector.extract_strided_slice %867 {offsets = [0, 64], sizes = [1, 32], strides = [1, 1]} : vector<1x96xf32> to vector<1x32xf32>
    %871 = arith.addf %870, %200 : vector<1x32xf32>
    %872 = vector.broadcast %853 : vector<1x1xf32> to vector<1x16xf32>
    %873 = arith.subf %850, %872 : vector<1x16xf32>
    %874 = math.exp %873 : vector<1x16xf32>
    %cst_160 = arith.constant dense<0.000000e+00> : vector<1xf32>
    %875 = vector.multi_reduction <add>, %874, %cst_160 [1] : vector<1x16xf32> to vector<1xf32>
    %876 = vector.shape_cast %875 : vector<1xf32> to vector<1x1xf32>
    %877 = math.log %876 : vector<1x1xf32>
    %878 = vector.broadcast %877 : vector<1x1xf32> to vector<1x16xf32>
    %879 = arith.subf %873, %878 : vector<1x16xf32>
    %c12 = arith.constant 12 : index
    %c0_161 = arith.constant 0 : index
    %880 = vector.load %arg10[%c12, %c0_161] : memref<30x16xf32, #tpu.memory_space<vmem>>, vector<1x16xf32>
    tpu.vector_store %arg10[%c12, %c0_161], %879 {strides = array<i32>} : memref<30x16xf32, #tpu.memory_space<vmem>>, vector<1x16xf32>,
    %881 = vector.extract_strided_slice %851 {offsets = [0, 0], sizes = [1, 64], strides = [1, 1]} : vector<1x96xf32> to vector<1x64xf32>
    %882 = arith.addf %869, %881 : vector<1x64xf32>
    %883 = arith.negf %882 : vector<1x64xf32>
    %884 = math.exp %883 : vector<1x64xf32>
    %cst_162 = arith.constant 1.000000e+00 : f32
    %885 = vector.broadcast %cst_162 : f32 to vector<1x64xf32>
    %886 = arith.addf %885, %884 : vector<1x64xf32>
    %887 = arith.divf %885, %886 : vector<1x64xf32>
    %888 = vector.extract_strided_slice %887 {offsets = [0, 0], sizes = [1, 32], strides = [1, 1]} : vector<1x64xf32> to vector<1x32xf32>
    %889 = vector.extract_strided_slice %887 {offsets = [0, 32], sizes = [1, 32], strides = [1, 1]} : vector<1x64xf32> to vector<1x32xf32>
    %890 = vector.extract_strided_slice %851 {offsets = [0, 64], sizes = [1, 32], strides = [1, 1]} : vector<1x96xf32> to vector<1x32xf32>
    %891 = arith.addf %890, %196 : vector<1x32xf32>
    %892 = arith.mulf %888, %891 : vector<1x32xf32>
    %893 = arith.addf %871, %892 : vector<1x32xf32>
    %894 = math.tanh %893 : vector<1x32xf32>
    %cst_163 = arith.constant 1.000000e+00 : f32
    %895 = vector.broadcast %cst_163 : f32 to vector<1x32xf32>
    %896 = arith.subf %895, %889 : vector<1x32xf32>
    %897 = arith.mulf %896, %894 : vector<1x32xf32>
    %898 = arith.mulf %889, %847 : vector<1x32xf32>
    %899 = arith.addf %897, %898 : vector<1x32xf32>
    %cst_164 = arith.constant dense<0.000000e+00> : vector<1x112xf32>
    %900 = tpu.matmul %899, %192, %cst_164 {dimension_numbers = #tpu.dot_dimension_numbers<[1], [0], [0], [1], [0, 0, 1, 1], [], []>} : vector<1x32xf32>, vector<32x112xf32>, vector<1x112xf32> -> vector<1x112xf32>
    %901 = vector.extract_strided_slice %900 {offsets = [0, 0], sizes = [1, 16], strides = [1, 1]} : vector<1x112xf32> to vector<1x16xf32>
    %902 = arith.addf %901, %195 : vector<1x16xf32>
    %903 = vector.extract_strided_slice %900 {offsets = [0, 16], sizes = [1, 96], strides = [1, 1]} : vector<1x112xf32> to vector<1x96xf32>
    %cst_165 = arith.constant dense<0xFF800000> : vector<1xf32>
    %904 = vector.multi_reduction <maximumf>, %902, %cst_165 [1] : vector<1x16xf32> to vector<1xf32>
    %905 = vector.shape_cast %904 : vector<1xf32> to vector<1x1xf32>
    %906 = vector.broadcast %905 : vector<1x1xf32> to vector<1x16xf32>
    %907 = arith.cmpf oge, %902, %906 : vector<1x16xf32>
    %c16_i32_166 = arith.constant 16 : i32
    %908 = vector.broadcast %c16_i32_166 : i32 to vector<1x16xi32>
    %909 = arith.select %907, %201, %908 : vector<1x16xi1>, vector<1x16xi32>
    %cst_167 = arith.constant dense<2147483647> : vector<1xi32>
    %910 = vector.multi_reduction <minsi>, %909, %cst_167 [1] : vector<1x16xi32> to vector<1xi32>
    %911 = vector.shape_cast %910 : vector<1xi32> to vector<1x1xi32>
    %912 = vector.broadcast %911 : vector<1x1xi32> to vector<16x1xi32>
    %913 = arith.cmpi eq, %202, %912 : vector<16x1xi32>
    %914 = arith.extui %913 : vector<16x1xi1> to vector<16x1xi32>
    %915 = arith.sitofp %914 : vector<16x1xi32> to vector<16x1xf32>
    %916 = vector.broadcast %915 : vector<16x1xf32> to vector<16x96xf32>
    %917 = arith.mulf %916, %191 : vector<16x96xf32>
    %cst_168 = arith.constant dense<0.000000e+00> : vector<96xf32>
    %918 = vector.multi_reduction <add>, %917, %cst_168 [0] : vector<16x96xf32> to vector<96xf32>
    %919 = vector.shape_cast %918 : vector<96xf32> to vector<1x96xf32>
    %920 = vector.extract_strided_slice %919 {offsets = [0, 0], sizes = [1, 64], strides = [1, 1]} : vector<1x96xf32> to vector<1x64xf32>
    %921 = arith.addf %920, %199 : vector<1x64xf32>
    %922 = vector.extract_strided_slice %919 {offsets = [0, 64], sizes = [1, 32], strides = [1, 1]} : vector<1x96xf32> to vector<1x32xf32>
    %923 = arith.addf %922, %200 : vector<1x32xf32>
    %924 = vector.broadcast %905 : vector<1x1xf32> to vector<1x16xf32>
    %925 = arith.subf %902, %924 : vector<1x16xf32>
    %926 = math.exp %925 : vector<1x16xf32>
    %cst_169 = arith.constant dense<0.000000e+00> : vector<1xf32>
    %927 = vector.multi_reduction <add>, %926, %cst_169 [1] : vector<1x16xf32> to vector<1xf32>
    %928 = vector.shape_cast %927 : vector<1xf32> to vector<1x1xf32>
    %929 = math.log %928 : vector<1x1xf32>
    %930 = vector.broadcast %929 : vector<1x1xf32> to vector<1x16xf32>
    %931 = arith.subf %925, %930 : vector<1x16xf32>
    %c13 = arith.constant 13 : index
    %c0_170 = arith.constant 0 : index
    %932 = vector.load %arg10[%c13, %c0_170] : memref<30x16xf32, #tpu.memory_space<vmem>>, vector<1x16xf32>
    tpu.vector_store %arg10[%c13, %c0_170], %931 {strides = array<i32>} : memref<30x16xf32, #tpu.memory_space<vmem>>, vector<1x16xf32>,
    %933 = vector.extract_strided_slice %903 {offsets = [0, 0], sizes = [1, 64], strides = [1, 1]} : vector<1x96xf32> to vector<1x64xf32>
    %934 = arith.addf %921, %933 : vector<1x64xf32>
    %935 = arith.negf %934 : vector<1x64xf32>
    %936 = math.exp %935 : vector<1x64xf32>
    %cst_171 = arith.constant 1.000000e+00 : f32
    %937 = vector.broadcast %cst_171 : f32 to vector<1x64xf32>
    %938 = arith.addf %937, %936 : vector<1x64xf32>
    %939 = arith.divf %937, %938 : vector<1x64xf32>
    %940 = vector.extract_strided_slice %939 {offsets = [0, 0], sizes = [1, 32], strides = [1, 1]} : vector<1x64xf32> to vector<1x32xf32>
    %941 = vector.extract_strided_slice %939 {offsets = [0, 32], sizes = [1, 32], strides = [1, 1]} : vector<1x64xf32> to vector<1x32xf32>
    %942 = vector.extract_strided_slice %903 {offsets = [0, 64], sizes = [1, 32], strides = [1, 1]} : vector<1x96xf32> to vector<1x32xf32>
    %943 = arith.addf %942, %196 : vector<1x32xf32>
    %944 = arith.mulf %940, %943 : vector<1x32xf32>
    %945 = arith.addf %923, %944 : vector<1x32xf32>
    %946 = math.tanh %945 : vector<1x32xf32>
    %cst_172 = arith.constant 1.000000e+00 : f32
    %947 = vector.broadcast %cst_172 : f32 to vector<1x32xf32>
    %948 = arith.subf %947, %941 : vector<1x32xf32>
    %949 = arith.mulf %948, %946 : vector<1x32xf32>
    %950 = arith.mulf %941, %899 : vector<1x32xf32>
    %951 = arith.addf %949, %950 : vector<1x32xf32>
    %cst_173 = arith.constant dense<0.000000e+00> : vector<1x112xf32>
    %952 = tpu.matmul %951, %192, %cst_173 {dimension_numbers = #tpu.dot_dimension_numbers<[1], [0], [0], [1], [0, 0, 1, 1], [], []>} : vector<1x32xf32>, vector<32x112xf32>, vector<1x112xf32> -> vector<1x112xf32>
    %953 = vector.extract_strided_slice %952 {offsets = [0, 0], sizes = [1, 16], strides = [1, 1]} : vector<1x112xf32> to vector<1x16xf32>
    %954 = arith.addf %953, %195 : vector<1x16xf32>
    %955 = vector.extract_strided_slice %952 {offsets = [0, 16], sizes = [1, 96], strides = [1, 1]} : vector<1x112xf32> to vector<1x96xf32>
    %cst_174 = arith.constant dense<0xFF800000> : vector<1xf32>
    %956 = vector.multi_reduction <maximumf>, %954, %cst_174 [1] : vector<1x16xf32> to vector<1xf32>
    %957 = vector.shape_cast %956 : vector<1xf32> to vector<1x1xf32>
    %958 = vector.broadcast %957 : vector<1x1xf32> to vector<1x16xf32>
    %959 = arith.cmpf oge, %954, %958 : vector<1x16xf32>
    %c16_i32_175 = arith.constant 16 : i32
    %960 = vector.broadcast %c16_i32_175 : i32 to vector<1x16xi32>
    %961 = arith.select %959, %201, %960 : vector<1x16xi1>, vector<1x16xi32>
    %cst_176 = arith.constant dense<2147483647> : vector<1xi32>
    %962 = vector.multi_reduction <minsi>, %961, %cst_176 [1] : vector<1x16xi32> to vector<1xi32>
    %963 = vector.shape_cast %962 : vector<1xi32> to vector<1x1xi32>
    %964 = vector.broadcast %963 : vector<1x1xi32> to vector<16x1xi32>
    %965 = arith.cmpi eq, %202, %964 : vector<16x1xi32>
    %966 = arith.extui %965 : vector<16x1xi1> to vector<16x1xi32>
    %967 = arith.sitofp %966 : vector<16x1xi32> to vector<16x1xf32>
    %968 = vector.broadcast %967 : vector<16x1xf32> to vector<16x96xf32>
    %969 = arith.mulf %968, %191 : vector<16x96xf32>
    %cst_177 = arith.constant dense<0.000000e+00> : vector<96xf32>
    %970 = vector.multi_reduction <add>, %969, %cst_177 [0] : vector<16x96xf32> to vector<96xf32>
    %971 = vector.shape_cast %970 : vector<96xf32> to vector<1x96xf32>
    %972 = vector.extract_strided_slice %971 {offsets = [0, 0], sizes = [1, 64], strides = [1, 1]} : vector<1x96xf32> to vector<1x64xf32>
    %973 = arith.addf %972, %199 : vector<1x64xf32>
    %974 = vector.extract_strided_slice %971 {offsets = [0, 64], sizes = [1, 32], strides = [1, 1]} : vector<1x96xf32> to vector<1x32xf32>
    %975 = arith.addf %974, %200 : vector<1x32xf32>
    %976 = vector.broadcast %957 : vector<1x1xf32> to vector<1x16xf32>
    %977 = arith.subf %954, %976 : vector<1x16xf32>
    %978 = math.exp %977 : vector<1x16xf32>
    %cst_178 = arith.constant dense<0.000000e+00> : vector<1xf32>
    %979 = vector.multi_reduction <add>, %978, %cst_178 [1] : vector<1x16xf32> to vector<1xf32>
    %980 = vector.shape_cast %979 : vector<1xf32> to vector<1x1xf32>
    %981 = math.log %980 : vector<1x1xf32>
    %982 = vector.broadcast %981 : vector<1x1xf32> to vector<1x16xf32>
    %983 = arith.subf %977, %982 : vector<1x16xf32>
    %c14 = arith.constant 14 : index
    %c0_179 = arith.constant 0 : index
    %984 = vector.load %arg10[%c14, %c0_179] : memref<30x16xf32, #tpu.memory_space<vmem>>, vector<1x16xf32>
    tpu.vector_store %arg10[%c14, %c0_179], %983 {strides = array<i32>} : memref<30x16xf32, #tpu.memory_space<vmem>>, vector<1x16xf32>,
    %985 = vector.extract_strided_slice %955 {offsets = [0, 0], sizes = [1, 64], strides = [1, 1]} : vector<1x96xf32> to vector<1x64xf32>
    %986 = arith.addf %973, %985 : vector<1x64xf32>
    %987 = arith.negf %986 : vector<1x64xf32>
    %988 = math.exp %987 : vector<1x64xf32>
    %cst_180 = arith.constant 1.000000e+00 : f32
    %989 = vector.broadcast %cst_180 : f32 to vector<1x64xf32>
    %990 = arith.addf %989, %988 : vector<1x64xf32>
    %991 = arith.divf %989, %990 : vector<1x64xf32>
    %992 = vector.extract_strided_slice %991 {offsets = [0, 0], sizes = [1, 32], strides = [1, 1]} : vector<1x64xf32> to vector<1x32xf32>
    %993 = vector.extract_strided_slice %991 {offsets = [0, 32], sizes = [1, 32], strides = [1, 1]} : vector<1x64xf32> to vector<1x32xf32>
    %994 = vector.extract_strided_slice %955 {offsets = [0, 64], sizes = [1, 32], strides = [1, 1]} : vector<1x96xf32> to vector<1x32xf32>
    %995 = arith.addf %994, %196 : vector<1x32xf32>
    %996 = arith.mulf %992, %995 : vector<1x32xf32>
    %997 = arith.addf %975, %996 : vector<1x32xf32>
    %998 = math.tanh %997 : vector<1x32xf32>
    %cst_181 = arith.constant 1.000000e+00 : f32
    %999 = vector.broadcast %cst_181 : f32 to vector<1x32xf32>
    %1000 = arith.subf %999, %993 : vector<1x32xf32>
    %1001 = arith.mulf %1000, %998 : vector<1x32xf32>
    %1002 = arith.mulf %993, %951 : vector<1x32xf32>
    %1003 = arith.addf %1001, %1002 : vector<1x32xf32>
    %cst_182 = arith.constant dense<0.000000e+00> : vector<1x112xf32>
    %1004 = tpu.matmul %1003, %192, %cst_182 {dimension_numbers = #tpu.dot_dimension_numbers<[1], [0], [0], [1], [0, 0, 1, 1], [], []>} : vector<1x32xf32>, vector<32x112xf32>, vector<1x112xf32> -> vector<1x112xf32>
    %1005 = vector.extract_strided_slice %1004 {offsets = [0, 0], sizes = [1, 16], strides = [1, 1]} : vector<1x112xf32> to vector<1x16xf32>
    %1006 = arith.addf %1005, %195 : vector<1x16xf32>
    %1007 = vector.extract_strided_slice %1004 {offsets = [0, 16], sizes = [1, 96], strides = [1, 1]} : vector<1x112xf32> to vector<1x96xf32>
    %cst_183 = arith.constant dense<0xFF800000> : vector<1xf32>
    %1008 = vector.multi_reduction <maximumf>, %1006, %cst_183 [1] : vector<1x16xf32> to vector<1xf32>
    %1009 = vector.shape_cast %1008 : vector<1xf32> to vector<1x1xf32>
    %1010 = vector.broadcast %1009 : vector<1x1xf32> to vector<1x16xf32>
    %1011 = arith.cmpf oge, %1006, %1010 : vector<1x16xf32>
    %c16_i32_184 = arith.constant 16 : i32
    %1012 = vector.broadcast %c16_i32_184 : i32 to vector<1x16xi32>
    %1013 = arith.select %1011, %201, %1012 : vector<1x16xi1>, vector<1x16xi32>
    %cst_185 = arith.constant dense<2147483647> : vector<1xi32>
    %1014 = vector.multi_reduction <minsi>, %1013, %cst_185 [1] : vector<1x16xi32> to vector<1xi32>
    %1015 = vector.shape_cast %1014 : vector<1xi32> to vector<1x1xi32>
    %1016 = vector.broadcast %1015 : vector<1x1xi32> to vector<16x1xi32>
    %1017 = arith.cmpi eq, %202, %1016 : vector<16x1xi32>
    %1018 = arith.extui %1017 : vector<16x1xi1> to vector<16x1xi32>
    %1019 = arith.sitofp %1018 : vector<16x1xi32> to vector<16x1xf32>
    %1020 = vector.broadcast %1019 : vector<16x1xf32> to vector<16x96xf32>
    %1021 = arith.mulf %1020, %191 : vector<16x96xf32>
    %cst_186 = arith.constant dense<0.000000e+00> : vector<96xf32>
    %1022 = vector.multi_reduction <add>, %1021, %cst_186 [0] : vector<16x96xf32> to vector<96xf32>
    %1023 = vector.shape_cast %1022 : vector<96xf32> to vector<1x96xf32>
    %1024 = vector.extract_strided_slice %1023 {offsets = [0, 0], sizes = [1, 64], strides = [1, 1]} : vector<1x96xf32> to vector<1x64xf32>
    %1025 = arith.addf %1024, %199 : vector<1x64xf32>
    %1026 = vector.extract_strided_slice %1023 {offsets = [0, 64], sizes = [1, 32], strides = [1, 1]} : vector<1x96xf32> to vector<1x32xf32>
    %1027 = arith.addf %1026, %200 : vector<1x32xf32>
    %1028 = vector.broadcast %1009 : vector<1x1xf32> to vector<1x16xf32>
    %1029 = arith.subf %1006, %1028 : vector<1x16xf32>
    %1030 = math.exp %1029 : vector<1x16xf32>
    %cst_187 = arith.constant dense<0.000000e+00> : vector<1xf32>
    %1031 = vector.multi_reduction <add>, %1030, %cst_187 [1] : vector<1x16xf32> to vector<1xf32>
    %1032 = vector.shape_cast %1031 : vector<1xf32> to vector<1x1xf32>
    %1033 = math.log %1032 : vector<1x1xf32>
    %1034 = vector.broadcast %1033 : vector<1x1xf32> to vector<1x16xf32>
    %1035 = arith.subf %1029, %1034 : vector<1x16xf32>
    %c15 = arith.constant 15 : index
    %c0_188 = arith.constant 0 : index
    %1036 = vector.load %arg10[%c15, %c0_188] : memref<30x16xf32, #tpu.memory_space<vmem>>, vector<1x16xf32>
    tpu.vector_store %arg10[%c15, %c0_188], %1035 {strides = array<i32>} : memref<30x16xf32, #tpu.memory_space<vmem>>, vector<1x16xf32>,
    %1037 = vector.extract_strided_slice %1007 {offsets = [0, 0], sizes = [1, 64], strides = [1, 1]} : vector<1x96xf32> to vector<1x64xf32>
    %1038 = arith.addf %1025, %1037 : vector<1x64xf32>
    %1039 = arith.negf %1038 : vector<1x64xf32>
    %1040 = math.exp %1039 : vector<1x64xf32>
    %cst_189 = arith.constant 1.000000e+00 : f32
    %1041 = vector.broadcast %cst_189 : f32 to vector<1x64xf32>
    %1042 = arith.addf %1041, %1040 : vector<1x64xf32>
    %1043 = arith.divf %1041, %1042 : vector<1x64xf32>
    %1044 = vector.extract_strided_slice %1043 {offsets = [0, 0], sizes = [1, 32], strides = [1, 1]} : vector<1x64xf32> to vector<1x32xf32>
    %1045 = vector.extract_strided_slice %1043 {offsets = [0, 32], sizes = [1, 32], strides = [1, 1]} : vector<1x64xf32> to vector<1x32xf32>
    %1046 = vector.extract_strided_slice %1007 {offsets = [0, 64], sizes = [1, 32], strides = [1, 1]} : vector<1x96xf32> to vector<1x32xf32>
    %1047 = arith.addf %1046, %196 : vector<1x32xf32>
    %1048 = arith.mulf %1044, %1047 : vector<1x32xf32>
    %1049 = arith.addf %1027, %1048 : vector<1x32xf32>
    %1050 = math.tanh %1049 : vector<1x32xf32>
    %cst_190 = arith.constant 1.000000e+00 : f32
    %1051 = vector.broadcast %cst_190 : f32 to vector<1x32xf32>
    %1052 = arith.subf %1051, %1045 : vector<1x32xf32>
    %1053 = arith.mulf %1052, %1050 : vector<1x32xf32>
    %1054 = arith.mulf %1045, %1003 : vector<1x32xf32>
    %1055 = arith.addf %1053, %1054 : vector<1x32xf32>
    %cst_191 = arith.constant dense<0.000000e+00> : vector<1x112xf32>
    %1056 = tpu.matmul %1055, %192, %cst_191 {dimension_numbers = #tpu.dot_dimension_numbers<[1], [0], [0], [1], [0, 0, 1, 1], [], []>} : vector<1x32xf32>, vector<32x112xf32>, vector<1x112xf32> -> vector<1x112xf32>
    %1057 = vector.extract_strided_slice %1056 {offsets = [0, 0], sizes = [1, 16], strides = [1, 1]} : vector<1x112xf32> to vector<1x16xf32>
    %1058 = arith.addf %1057, %195 : vector<1x16xf32>
    %1059 = vector.extract_strided_slice %1056 {offsets = [0, 16], sizes = [1, 96], strides = [1, 1]} : vector<1x112xf32> to vector<1x96xf32>
    %cst_192 = arith.constant dense<0xFF800000> : vector<1xf32>
    %1060 = vector.multi_reduction <maximumf>, %1058, %cst_192 [1] : vector<1x16xf32> to vector<1xf32>
    %1061 = vector.shape_cast %1060 : vector<1xf32> to vector<1x1xf32>
    %1062 = vector.broadcast %1061 : vector<1x1xf32> to vector<1x16xf32>
    %1063 = arith.cmpf oge, %1058, %1062 : vector<1x16xf32>
    %c16_i32_193 = arith.constant 16 : i32
    %1064 = vector.broadcast %c16_i32_193 : i32 to vector<1x16xi32>
    %1065 = arith.select %1063, %201, %1064 : vector<1x16xi1>, vector<1x16xi32>
    %cst_194 = arith.constant dense<2147483647> : vector<1xi32>
    %1066 = vector.multi_reduction <minsi>, %1065, %cst_194 [1] : vector<1x16xi32> to vector<1xi32>
    %1067 = vector.shape_cast %1066 : vector<1xi32> to vector<1x1xi32>
    %1068 = vector.broadcast %1067 : vector<1x1xi32> to vector<16x1xi32>
    %1069 = arith.cmpi eq, %202, %1068 : vector<16x1xi32>
    %1070 = arith.extui %1069 : vector<16x1xi1> to vector<16x1xi32>
    %1071 = arith.sitofp %1070 : vector<16x1xi32> to vector<16x1xf32>
    %1072 = vector.broadcast %1071 : vector<16x1xf32> to vector<16x96xf32>
    %1073 = arith.mulf %1072, %191 : vector<16x96xf32>
    %cst_195 = arith.constant dense<0.000000e+00> : vector<96xf32>
    %1074 = vector.multi_reduction <add>, %1073, %cst_195 [0] : vector<16x96xf32> to vector<96xf32>
    %1075 = vector.shape_cast %1074 : vector<96xf32> to vector<1x96xf32>
    %1076 = vector.extract_strided_slice %1075 {offsets = [0, 0], sizes = [1, 64], strides = [1, 1]} : vector<1x96xf32> to vector<1x64xf32>
    %1077 = arith.addf %1076, %199 : vector<1x64xf32>
    %1078 = vector.extract_strided_slice %1075 {offsets = [0, 64], sizes = [1, 32], strides = [1, 1]} : vector<1x96xf32> to vector<1x32xf32>
    %1079 = arith.addf %1078, %200 : vector<1x32xf32>
    %1080 = vector.broadcast %1061 : vector<1x1xf32> to vector<1x16xf32>
    %1081 = arith.subf %1058, %1080 : vector<1x16xf32>
    %1082 = math.exp %1081 : vector<1x16xf32>
    %cst_196 = arith.constant dense<0.000000e+00> : vector<1xf32>
    %1083 = vector.multi_reduction <add>, %1082, %cst_196 [1] : vector<1x16xf32> to vector<1xf32>
    %1084 = vector.shape_cast %1083 : vector<1xf32> to vector<1x1xf32>
    %1085 = math.log %1084 : vector<1x1xf32>
    %1086 = vector.broadcast %1085 : vector<1x1xf32> to vector<1x16xf32>
    %1087 = arith.subf %1081, %1086 : vector<1x16xf32>
    %c16 = arith.constant 16 : index
    %c0_197 = arith.constant 0 : index
    %1088 = vector.load %arg10[%c16, %c0_197] : memref<30x16xf32, #tpu.memory_space<vmem>>, vector<1x16xf32>
    tpu.vector_store %arg10[%c16, %c0_197], %1087 {strides = array<i32>} : memref<30x16xf32, #tpu.memory_space<vmem>>, vector<1x16xf32>,
    %1089 = vector.extract_strided_slice %1059 {offsets = [0, 0], sizes = [1, 64], strides = [1, 1]} : vector<1x96xf32> to vector<1x64xf32>
    %1090 = arith.addf %1077, %1089 : vector<1x64xf32>
    %1091 = arith.negf %1090 : vector<1x64xf32>
    %1092 = math.exp %1091 : vector<1x64xf32>
    %cst_198 = arith.constant 1.000000e+00 : f32
    %1093 = vector.broadcast %cst_198 : f32 to vector<1x64xf32>
    %1094 = arith.addf %1093, %1092 : vector<1x64xf32>
    %1095 = arith.divf %1093, %1094 : vector<1x64xf32>
    %1096 = vector.extract_strided_slice %1095 {offsets = [0, 0], sizes = [1, 32], strides = [1, 1]} : vector<1x64xf32> to vector<1x32xf32>
    %1097 = vector.extract_strided_slice %1095 {offsets = [0, 32], sizes = [1, 32], strides = [1, 1]} : vector<1x64xf32> to vector<1x32xf32>
    %1098 = vector.extract_strided_slice %1059 {offsets = [0, 64], sizes = [1, 32], strides = [1, 1]} : vector<1x96xf32> to vector<1x32xf32>
    %1099 = arith.addf %1098, %196 : vector<1x32xf32>
    %1100 = arith.mulf %1096, %1099 : vector<1x32xf32>
    %1101 = arith.addf %1079, %1100 : vector<1x32xf32>
    %1102 = math.tanh %1101 : vector<1x32xf32>
    %cst_199 = arith.constant 1.000000e+00 : f32
    %1103 = vector.broadcast %cst_199 : f32 to vector<1x32xf32>
    %1104 = arith.subf %1103, %1097 : vector<1x32xf32>
    %1105 = arith.mulf %1104, %1102 : vector<1x32xf32>
    %1106 = arith.mulf %1097, %1055 : vector<1x32xf32>
    %1107 = arith.addf %1105, %1106 : vector<1x32xf32>
    %cst_200 = arith.constant dense<0.000000e+00> : vector<1x112xf32>
    %1108 = tpu.matmul %1107, %192, %cst_200 {dimension_numbers = #tpu.dot_dimension_numbers<[1], [0], [0], [1], [0, 0, 1, 1], [], []>} : vector<1x32xf32>, vector<32x112xf32>, vector<1x112xf32> -> vector<1x112xf32>
    %1109 = vector.extract_strided_slice %1108 {offsets = [0, 0], sizes = [1, 16], strides = [1, 1]} : vector<1x112xf32> to vector<1x16xf32>
    %1110 = arith.addf %1109, %195 : vector<1x16xf32>
    %1111 = vector.extract_strided_slice %1108 {offsets = [0, 16], sizes = [1, 96], strides = [1, 1]} : vector<1x112xf32> to vector<1x96xf32>
    %cst_201 = arith.constant dense<0xFF800000> : vector<1xf32>
    %1112 = vector.multi_reduction <maximumf>, %1110, %cst_201 [1] : vector<1x16xf32> to vector<1xf32>
    %1113 = vector.shape_cast %1112 : vector<1xf32> to vector<1x1xf32>
    %1114 = vector.broadcast %1113 : vector<1x1xf32> to vector<1x16xf32>
    %1115 = arith.cmpf oge, %1110, %1114 : vector<1x16xf32>
    %c16_i32_202 = arith.constant 16 : i32
    %1116 = vector.broadcast %c16_i32_202 : i32 to vector<1x16xi32>
    %1117 = arith.select %1115, %201, %1116 : vector<1x16xi1>, vector<1x16xi32>
    %cst_203 = arith.constant dense<2147483647> : vector<1xi32>
    %1118 = vector.multi_reduction <minsi>, %1117, %cst_203 [1] : vector<1x16xi32> to vector<1xi32>
    %1119 = vector.shape_cast %1118 : vector<1xi32> to vector<1x1xi32>
    %1120 = vector.broadcast %1119 : vector<1x1xi32> to vector<16x1xi32>
    %1121 = arith.cmpi eq, %202, %1120 : vector<16x1xi32>
    %1122 = arith.extui %1121 : vector<16x1xi1> to vector<16x1xi32>
    %1123 = arith.sitofp %1122 : vector<16x1xi32> to vector<16x1xf32>
    %1124 = vector.broadcast %1123 : vector<16x1xf32> to vector<16x96xf32>
    %1125 = arith.mulf %1124, %191 : vector<16x96xf32>
    %cst_204 = arith.constant dense<0.000000e+00> : vector<96xf32>
    %1126 = vector.multi_reduction <add>, %1125, %cst_204 [0] : vector<16x96xf32> to vector<96xf32>
    %1127 = vector.shape_cast %1126 : vector<96xf32> to vector<1x96xf32>
    %1128 = vector.extract_strided_slice %1127 {offsets = [0, 0], sizes = [1, 64], strides = [1, 1]} : vector<1x96xf32> to vector<1x64xf32>
    %1129 = arith.addf %1128, %199 : vector<1x64xf32>
    %1130 = vector.extract_strided_slice %1127 {offsets = [0, 64], sizes = [1, 32], strides = [1, 1]} : vector<1x96xf32> to vector<1x32xf32>
    %1131 = arith.addf %1130, %200 : vector<1x32xf32>
    %1132 = vector.broadcast %1113 : vector<1x1xf32> to vector<1x16xf32>
    %1133 = arith.subf %1110, %1132 : vector<1x16xf32>
    %1134 = math.exp %1133 : vector<1x16xf32>
    %cst_205 = arith.constant dense<0.000000e+00> : vector<1xf32>
    %1135 = vector.multi_reduction <add>, %1134, %cst_205 [1] : vector<1x16xf32> to vector<1xf32>
    %1136 = vector.shape_cast %1135 : vector<1xf32> to vector<1x1xf32>
    %1137 = math.log %1136 : vector<1x1xf32>
    %1138 = vector.broadcast %1137 : vector<1x1xf32> to vector<1x16xf32>
    %1139 = arith.subf %1133, %1138 : vector<1x16xf32>
    %c17 = arith.constant 17 : index
    %c0_206 = arith.constant 0 : index
    %1140 = vector.load %arg10[%c17, %c0_206] : memref<30x16xf32, #tpu.memory_space<vmem>>, vector<1x16xf32>
    tpu.vector_store %arg10[%c17, %c0_206], %1139 {strides = array<i32>} : memref<30x16xf32, #tpu.memory_space<vmem>>, vector<1x16xf32>,
    %1141 = vector.extract_strided_slice %1111 {offsets = [0, 0], sizes = [1, 64], strides = [1, 1]} : vector<1x96xf32> to vector<1x64xf32>
    %1142 = arith.addf %1129, %1141 : vector<1x64xf32>
    %1143 = arith.negf %1142 : vector<1x64xf32>
    %1144 = math.exp %1143 : vector<1x64xf32>
    %cst_207 = arith.constant 1.000000e+00 : f32
    %1145 = vector.broadcast %cst_207 : f32 to vector<1x64xf32>
    %1146 = arith.addf %1145, %1144 : vector<1x64xf32>
    %1147 = arith.divf %1145, %1146 : vector<1x64xf32>
    %1148 = vector.extract_strided_slice %1147 {offsets = [0, 0], sizes = [1, 32], strides = [1, 1]} : vector<1x64xf32> to vector<1x32xf32>
    %1149 = vector.extract_strided_slice %1147 {offsets = [0, 32], sizes = [1, 32], strides = [1, 1]} : vector<1x64xf32> to vector<1x32xf32>
    %1150 = vector.extract_strided_slice %1111 {offsets = [0, 64], sizes = [1, 32], strides = [1, 1]} : vector<1x96xf32> to vector<1x32xf32>
    %1151 = arith.addf %1150, %196 : vector<1x32xf32>
    %1152 = arith.mulf %1148, %1151 : vector<1x32xf32>
    %1153 = arith.addf %1131, %1152 : vector<1x32xf32>
    %1154 = math.tanh %1153 : vector<1x32xf32>
    %cst_208 = arith.constant 1.000000e+00 : f32
    %1155 = vector.broadcast %cst_208 : f32 to vector<1x32xf32>
    %1156 = arith.subf %1155, %1149 : vector<1x32xf32>
    %1157 = arith.mulf %1156, %1154 : vector<1x32xf32>
    %1158 = arith.mulf %1149, %1107 : vector<1x32xf32>
    %1159 = arith.addf %1157, %1158 : vector<1x32xf32>
    %cst_209 = arith.constant dense<0.000000e+00> : vector<1x112xf32>
    %1160 = tpu.matmul %1159, %192, %cst_209 {dimension_numbers = #tpu.dot_dimension_numbers<[1], [0], [0], [1], [0, 0, 1, 1], [], []>} : vector<1x32xf32>, vector<32x112xf32>, vector<1x112xf32> -> vector<1x112xf32>
    %1161 = vector.extract_strided_slice %1160 {offsets = [0, 0], sizes = [1, 16], strides = [1, 1]} : vector<1x112xf32> to vector<1x16xf32>
    %1162 = arith.addf %1161, %195 : vector<1x16xf32>
    %1163 = vector.extract_strided_slice %1160 {offsets = [0, 16], sizes = [1, 96], strides = [1, 1]} : vector<1x112xf32> to vector<1x96xf32>
    %cst_210 = arith.constant dense<0xFF800000> : vector<1xf32>
    %1164 = vector.multi_reduction <maximumf>, %1162, %cst_210 [1] : vector<1x16xf32> to vector<1xf32>
    %1165 = vector.shape_cast %1164 : vector<1xf32> to vector<1x1xf32>
    %1166 = vector.broadcast %1165 : vector<1x1xf32> to vector<1x16xf32>
    %1167 = arith.cmpf oge, %1162, %1166 : vector<1x16xf32>
    %c16_i32_211 = arith.constant 16 : i32
    %1168 = vector.broadcast %c16_i32_211 : i32 to vector<1x16xi32>
    %1169 = arith.select %1167, %201, %1168 : vector<1x16xi1>, vector<1x16xi32>
    %cst_212 = arith.constant dense<2147483647> : vector<1xi32>
    %1170 = vector.multi_reduction <minsi>, %1169, %cst_212 [1] : vector<1x16xi32> to vector<1xi32>
    %1171 = vector.shape_cast %1170 : vector<1xi32> to vector<1x1xi32>
    %1172 = vector.broadcast %1171 : vector<1x1xi32> to vector<16x1xi32>
    %1173 = arith.cmpi eq, %202, %1172 : vector<16x1xi32>
    %1174 = arith.extui %1173 : vector<16x1xi1> to vector<16x1xi32>
    %1175 = arith.sitofp %1174 : vector<16x1xi32> to vector<16x1xf32>
    %1176 = vector.broadcast %1175 : vector<16x1xf32> to vector<16x96xf32>
    %1177 = arith.mulf %1176, %191 : vector<16x96xf32>
    %cst_213 = arith.constant dense<0.000000e+00> : vector<96xf32>
    %1178 = vector.multi_reduction <add>, %1177, %cst_213 [0] : vector<16x96xf32> to vector<96xf32>
    %1179 = vector.shape_cast %1178 : vector<96xf32> to vector<1x96xf32>
    %1180 = vector.extract_strided_slice %1179 {offsets = [0, 0], sizes = [1, 64], strides = [1, 1]} : vector<1x96xf32> to vector<1x64xf32>
    %1181 = arith.addf %1180, %199 : vector<1x64xf32>
    %1182 = vector.extract_strided_slice %1179 {offsets = [0, 64], sizes = [1, 32], strides = [1, 1]} : vector<1x96xf32> to vector<1x32xf32>
    %1183 = arith.addf %1182, %200 : vector<1x32xf32>
    %1184 = vector.broadcast %1165 : vector<1x1xf32> to vector<1x16xf32>
    %1185 = arith.subf %1162, %1184 : vector<1x16xf32>
    %1186 = math.exp %1185 : vector<1x16xf32>
    %cst_214 = arith.constant dense<0.000000e+00> : vector<1xf32>
    %1187 = vector.multi_reduction <add>, %1186, %cst_214 [1] : vector<1x16xf32> to vector<1xf32>
    %1188 = vector.shape_cast %1187 : vector<1xf32> to vector<1x1xf32>
    %1189 = math.log %1188 : vector<1x1xf32>
    %1190 = vector.broadcast %1189 : vector<1x1xf32> to vector<1x16xf32>
    %1191 = arith.subf %1185, %1190 : vector<1x16xf32>
    %c18 = arith.constant 18 : index
    %c0_215 = arith.constant 0 : index
    %1192 = vector.load %arg10[%c18, %c0_215] : memref<30x16xf32, #tpu.memory_space<vmem>>, vector<1x16xf32>
    tpu.vector_store %arg10[%c18, %c0_215], %1191 {strides = array<i32>} : memref<30x16xf32, #tpu.memory_space<vmem>>, vector<1x16xf32>,
    %1193 = vector.extract_strided_slice %1163 {offsets = [0, 0], sizes = [1, 64], strides = [1, 1]} : vector<1x96xf32> to vector<1x64xf32>
    %1194 = arith.addf %1181, %1193 : vector<1x64xf32>
    %1195 = arith.negf %1194 : vector<1x64xf32>
    %1196 = math.exp %1195 : vector<1x64xf32>
    %cst_216 = arith.constant 1.000000e+00 : f32
    %1197 = vector.broadcast %cst_216 : f32 to vector<1x64xf32>
    %1198 = arith.addf %1197, %1196 : vector<1x64xf32>
    %1199 = arith.divf %1197, %1198 : vector<1x64xf32>
    %1200 = vector.extract_strided_slice %1199 {offsets = [0, 0], sizes = [1, 32], strides = [1, 1]} : vector<1x64xf32> to vector<1x32xf32>
    %1201 = vector.extract_strided_slice %1199 {offsets = [0, 32], sizes = [1, 32], strides = [1, 1]} : vector<1x64xf32> to vector<1x32xf32>
    %1202 = vector.extract_strided_slice %1163 {offsets = [0, 64], sizes = [1, 32], strides = [1, 1]} : vector<1x96xf32> to vector<1x32xf32>
    %1203 = arith.addf %1202, %196 : vector<1x32xf32>
    %1204 = arith.mulf %1200, %1203 : vector<1x32xf32>
    %1205 = arith.addf %1183, %1204 : vector<1x32xf32>
    %1206 = math.tanh %1205 : vector<1x32xf32>
    %cst_217 = arith.constant 1.000000e+00 : f32
    %1207 = vector.broadcast %cst_217 : f32 to vector<1x32xf32>
    %1208 = arith.subf %1207, %1201 : vector<1x32xf32>
    %1209 = arith.mulf %1208, %1206 : vector<1x32xf32>
    %1210 = arith.mulf %1201, %1159 : vector<1x32xf32>
    %1211 = arith.addf %1209, %1210 : vector<1x32xf32>
    %cst_218 = arith.constant dense<0.000000e+00> : vector<1x112xf32>
    %1212 = tpu.matmul %1211, %192, %cst_218 {dimension_numbers = #tpu.dot_dimension_numbers<[1], [0], [0], [1], [0, 0, 1, 1], [], []>} : vector<1x32xf32>, vector<32x112xf32>, vector<1x112xf32> -> vector<1x112xf32>
    %1213 = vector.extract_strided_slice %1212 {offsets = [0, 0], sizes = [1, 16], strides = [1, 1]} : vector<1x112xf32> to vector<1x16xf32>
    %1214 = arith.addf %1213, %195 : vector<1x16xf32>
    %1215 = vector.extract_strided_slice %1212 {offsets = [0, 16], sizes = [1, 96], strides = [1, 1]} : vector<1x112xf32> to vector<1x96xf32>
    %cst_219 = arith.constant dense<0xFF800000> : vector<1xf32>
    %1216 = vector.multi_reduction <maximumf>, %1214, %cst_219 [1] : vector<1x16xf32> to vector<1xf32>
    %1217 = vector.shape_cast %1216 : vector<1xf32> to vector<1x1xf32>
    %1218 = vector.broadcast %1217 : vector<1x1xf32> to vector<1x16xf32>
    %1219 = arith.cmpf oge, %1214, %1218 : vector<1x16xf32>
    %c16_i32_220 = arith.constant 16 : i32
    %1220 = vector.broadcast %c16_i32_220 : i32 to vector<1x16xi32>
    %1221 = arith.select %1219, %201, %1220 : vector<1x16xi1>, vector<1x16xi32>
    %cst_221 = arith.constant dense<2147483647> : vector<1xi32>
    %1222 = vector.multi_reduction <minsi>, %1221, %cst_221 [1] : vector<1x16xi32> to vector<1xi32>
    %1223 = vector.shape_cast %1222 : vector<1xi32> to vector<1x1xi32>
    %1224 = vector.broadcast %1223 : vector<1x1xi32> to vector<16x1xi32>
    %1225 = arith.cmpi eq, %202, %1224 : vector<16x1xi32>
    %1226 = arith.extui %1225 : vector<16x1xi1> to vector<16x1xi32>
    %1227 = arith.sitofp %1226 : vector<16x1xi32> to vector<16x1xf32>
    %1228 = vector.broadcast %1227 : vector<16x1xf32> to vector<16x96xf32>
    %1229 = arith.mulf %1228, %191 : vector<16x96xf32>
    %cst_222 = arith.constant dense<0.000000e+00> : vector<96xf32>
    %1230 = vector.multi_reduction <add>, %1229, %cst_222 [0] : vector<16x96xf32> to vector<96xf32>
    %1231 = vector.shape_cast %1230 : vector<96xf32> to vector<1x96xf32>
    %1232 = vector.extract_strided_slice %1231 {offsets = [0, 0], sizes = [1, 64], strides = [1, 1]} : vector<1x96xf32> to vector<1x64xf32>
    %1233 = arith.addf %1232, %199 : vector<1x64xf32>
    %1234 = vector.extract_strided_slice %1231 {offsets = [0, 64], sizes = [1, 32], strides = [1, 1]} : vector<1x96xf32> to vector<1x32xf32>
    %1235 = arith.addf %1234, %200 : vector<1x32xf32>
    %1236 = vector.broadcast %1217 : vector<1x1xf32> to vector<1x16xf32>
    %1237 = arith.subf %1214, %1236 : vector<1x16xf32>
    %1238 = math.exp %1237 : vector<1x16xf32>
    %cst_223 = arith.constant dense<0.000000e+00> : vector<1xf32>
    %1239 = vector.multi_reduction <add>, %1238, %cst_223 [1] : vector<1x16xf32> to vector<1xf32>
    %1240 = vector.shape_cast %1239 : vector<1xf32> to vector<1x1xf32>
    %1241 = math.log %1240 : vector<1x1xf32>
    %1242 = vector.broadcast %1241 : vector<1x1xf32> to vector<1x16xf32>
    %1243 = arith.subf %1237, %1242 : vector<1x16xf32>
    %c19 = arith.constant 19 : index
    %c0_224 = arith.constant 0 : index
    %1244 = vector.load %arg10[%c19, %c0_224] : memref<30x16xf32, #tpu.memory_space<vmem>>, vector<1x16xf32>
    tpu.vector_store %arg10[%c19, %c0_224], %1243 {strides = array<i32>} : memref<30x16xf32, #tpu.memory_space<vmem>>, vector<1x16xf32>,
    %1245 = vector.extract_strided_slice %1215 {offsets = [0, 0], sizes = [1, 64], strides = [1, 1]} : vector<1x96xf32> to vector<1x64xf32>
    %1246 = arith.addf %1233, %1245 : vector<1x64xf32>
    %1247 = arith.negf %1246 : vector<1x64xf32>
    %1248 = math.exp %1247 : vector<1x64xf32>
    %cst_225 = arith.constant 1.000000e+00 : f32
    %1249 = vector.broadcast %cst_225 : f32 to vector<1x64xf32>
    %1250 = arith.addf %1249, %1248 : vector<1x64xf32>
    %1251 = arith.divf %1249, %1250 : vector<1x64xf32>
    %1252 = vector.extract_strided_slice %1251 {offsets = [0, 0], sizes = [1, 32], strides = [1, 1]} : vector<1x64xf32> to vector<1x32xf32>
    %1253 = vector.extract_strided_slice %1251 {offsets = [0, 32], sizes = [1, 32], strides = [1, 1]} : vector<1x64xf32> to vector<1x32xf32>
    %1254 = vector.extract_strided_slice %1215 {offsets = [0, 64], sizes = [1, 32], strides = [1, 1]} : vector<1x96xf32> to vector<1x32xf32>
    %1255 = arith.addf %1254, %196 : vector<1x32xf32>
    %1256 = arith.mulf %1252, %1255 : vector<1x32xf32>
    %1257 = arith.addf %1235, %1256 : vector<1x32xf32>
    %1258 = math.tanh %1257 : vector<1x32xf32>
    %cst_226 = arith.constant 1.000000e+00 : f32
    %1259 = vector.broadcast %cst_226 : f32 to vector<1x32xf32>
    %1260 = arith.subf %1259, %1253 : vector<1x32xf32>
    %1261 = arith.mulf %1260, %1258 : vector<1x32xf32>
    %1262 = arith.mulf %1253, %1211 : vector<1x32xf32>
    %1263 = arith.addf %1261, %1262 : vector<1x32xf32>
    %cst_227 = arith.constant dense<0.000000e+00> : vector<1x112xf32>
    %1264 = tpu.matmul %1263, %192, %cst_227 {dimension_numbers = #tpu.dot_dimension_numbers<[1], [0], [0], [1], [0, 0, 1, 1], [], []>} : vector<1x32xf32>, vector<32x112xf32>, vector<1x112xf32> -> vector<1x112xf32>
    %1265 = vector.extract_strided_slice %1264 {offsets = [0, 0], sizes = [1, 16], strides = [1, 1]} : vector<1x112xf32> to vector<1x16xf32>
    %1266 = arith.addf %1265, %195 : vector<1x16xf32>
    %1267 = vector.extract_strided_slice %1264 {offsets = [0, 16], sizes = [1, 96], strides = [1, 1]} : vector<1x112xf32> to vector<1x96xf32>
    %cst_228 = arith.constant dense<0xFF800000> : vector<1xf32>
    %1268 = vector.multi_reduction <maximumf>, %1266, %cst_228 [1] : vector<1x16xf32> to vector<1xf32>
    %1269 = vector.shape_cast %1268 : vector<1xf32> to vector<1x1xf32>
    %1270 = vector.broadcast %1269 : vector<1x1xf32> to vector<1x16xf32>
    %1271 = arith.cmpf oge, %1266, %1270 : vector<1x16xf32>
    %c16_i32_229 = arith.constant 16 : i32
    %1272 = vector.broadcast %c16_i32_229 : i32 to vector<1x16xi32>
    %1273 = arith.select %1271, %201, %1272 : vector<1x16xi1>, vector<1x16xi32>
    %cst_230 = arith.constant dense<2147483647> : vector<1xi32>
    %1274 = vector.multi_reduction <minsi>, %1273, %cst_230 [1] : vector<1x16xi32> to vector<1xi32>
    %1275 = vector.shape_cast %1274 : vector<1xi32> to vector<1x1xi32>
    %1276 = vector.broadcast %1275 : vector<1x1xi32> to vector<16x1xi32>
    %1277 = arith.cmpi eq, %202, %1276 : vector<16x1xi32>
    %1278 = arith.extui %1277 : vector<16x1xi1> to vector<16x1xi32>
    %1279 = arith.sitofp %1278 : vector<16x1xi32> to vector<16x1xf32>
    %1280 = vector.broadcast %1279 : vector<16x1xf32> to vector<16x96xf32>
    %1281 = arith.mulf %1280, %191 : vector<16x96xf32>
    %cst_231 = arith.constant dense<0.000000e+00> : vector<96xf32>
    %1282 = vector.multi_reduction <add>, %1281, %cst_231 [0] : vector<16x96xf32> to vector<96xf32>
    %1283 = vector.shape_cast %1282 : vector<96xf32> to vector<1x96xf32>
    %1284 = vector.extract_strided_slice %1283 {offsets = [0, 0], sizes = [1, 64], strides = [1, 1]} : vector<1x96xf32> to vector<1x64xf32>
    %1285 = arith.addf %1284, %199 : vector<1x64xf32>
    %1286 = vector.extract_strided_slice %1283 {offsets = [0, 64], sizes = [1, 32], strides = [1, 1]} : vector<1x96xf32> to vector<1x32xf32>
    %1287 = arith.addf %1286, %200 : vector<1x32xf32>
    %1288 = vector.broadcast %1269 : vector<1x1xf32> to vector<1x16xf32>
    %1289 = arith.subf %1266, %1288 : vector<1x16xf32>
    %1290 = math.exp %1289 : vector<1x16xf32>
    %cst_232 = arith.constant dense<0.000000e+00> : vector<1xf32>
    %1291 = vector.multi_reduction <add>, %1290, %cst_232 [1] : vector<1x16xf32> to vector<1xf32>
    %1292 = vector.shape_cast %1291 : vector<1xf32> to vector<1x1xf32>
    %1293 = math.log %1292 : vector<1x1xf32>
    %1294 = vector.broadcast %1293 : vector<1x1xf32> to vector<1x16xf32>
    %1295 = arith.subf %1289, %1294 : vector<1x16xf32>
    %c20 = arith.constant 20 : index
    %c0_233 = arith.constant 0 : index
    %1296 = vector.load %arg10[%c20, %c0_233] : memref<30x16xf32, #tpu.memory_space<vmem>>, vector<1x16xf32>
    tpu.vector_store %arg10[%c20, %c0_233], %1295 {strides = array<i32>} : memref<30x16xf32, #tpu.memory_space<vmem>>, vector<1x16xf32>,
    %1297 = vector.extract_strided_slice %1267 {offsets = [0, 0], sizes = [1, 64], strides = [1, 1]} : vector<1x96xf32> to vector<1x64xf32>
    %1298 = arith.addf %1285, %1297 : vector<1x64xf32>
    %1299 = arith.negf %1298 : vector<1x64xf32>
    %1300 = math.exp %1299 : vector<1x64xf32>
    %cst_234 = arith.constant 1.000000e+00 : f32
    %1301 = vector.broadcast %cst_234 : f32 to vector<1x64xf32>
    %1302 = arith.addf %1301, %1300 : vector<1x64xf32>
    %1303 = arith.divf %1301, %1302 : vector<1x64xf32>
    %1304 = vector.extract_strided_slice %1303 {offsets = [0, 0], sizes = [1, 32], strides = [1, 1]} : vector<1x64xf32> to vector<1x32xf32>
    %1305 = vector.extract_strided_slice %1303 {offsets = [0, 32], sizes = [1, 32], strides = [1, 1]} : vector<1x64xf32> to vector<1x32xf32>
    %1306 = vector.extract_strided_slice %1267 {offsets = [0, 64], sizes = [1, 32], strides = [1, 1]} : vector<1x96xf32> to vector<1x32xf32>
    %1307 = arith.addf %1306, %196 : vector<1x32xf32>
    %1308 = arith.mulf %1304, %1307 : vector<1x32xf32>
    %1309 = arith.addf %1287, %1308 : vector<1x32xf32>
    %1310 = math.tanh %1309 : vector<1x32xf32>
    %cst_235 = arith.constant 1.000000e+00 : f32
    %1311 = vector.broadcast %cst_235 : f32 to vector<1x32xf32>
    %1312 = arith.subf %1311, %1305 : vector<1x32xf32>
    %1313 = arith.mulf %1312, %1310 : vector<1x32xf32>
    %1314 = arith.mulf %1305, %1263 : vector<1x32xf32>
    %1315 = arith.addf %1313, %1314 : vector<1x32xf32>
    %cst_236 = arith.constant dense<0.000000e+00> : vector<1x112xf32>
    %1316 = tpu.matmul %1315, %192, %cst_236 {dimension_numbers = #tpu.dot_dimension_numbers<[1], [0], [0], [1], [0, 0, 1, 1], [], []>} : vector<1x32xf32>, vector<32x112xf32>, vector<1x112xf32> -> vector<1x112xf32>
    %1317 = vector.extract_strided_slice %1316 {offsets = [0, 0], sizes = [1, 16], strides = [1, 1]} : vector<1x112xf32> to vector<1x16xf32>
    %1318 = arith.addf %1317, %195 : vector<1x16xf32>
    %1319 = vector.extract_strided_slice %1316 {offsets = [0, 16], sizes = [1, 96], strides = [1, 1]} : vector<1x112xf32> to vector<1x96xf32>
    %cst_237 = arith.constant dense<0xFF800000> : vector<1xf32>
    %1320 = vector.multi_reduction <maximumf>, %1318, %cst_237 [1] : vector<1x16xf32> to vector<1xf32>
    %1321 = vector.shape_cast %1320 : vector<1xf32> to vector<1x1xf32>
    %1322 = vector.broadcast %1321 : vector<1x1xf32> to vector<1x16xf32>
    %1323 = arith.cmpf oge, %1318, %1322 : vector<1x16xf32>
    %c16_i32_238 = arith.constant 16 : i32
    %1324 = vector.broadcast %c16_i32_238 : i32 to vector<1x16xi32>
    %1325 = arith.select %1323, %201, %1324 : vector<1x16xi1>, vector<1x16xi32>
    %cst_239 = arith.constant dense<2147483647> : vector<1xi32>
    %1326 = vector.multi_reduction <minsi>, %1325, %cst_239 [1] : vector<1x16xi32> to vector<1xi32>
    %1327 = vector.shape_cast %1326 : vector<1xi32> to vector<1x1xi32>
    %1328 = vector.broadcast %1327 : vector<1x1xi32> to vector<16x1xi32>
    %1329 = arith.cmpi eq, %202, %1328 : vector<16x1xi32>
    %1330 = arith.extui %1329 : vector<16x1xi1> to vector<16x1xi32>
    %1331 = arith.sitofp %1330 : vector<16x1xi32> to vector<16x1xf32>
    %1332 = vector.broadcast %1331 : vector<16x1xf32> to vector<16x96xf32>
    %1333 = arith.mulf %1332, %191 : vector<16x96xf32>
    %cst_240 = arith.constant dense<0.000000e+00> : vector<96xf32>
    %1334 = vector.multi_reduction <add>, %1333, %cst_240 [0] : vector<16x96xf32> to vector<96xf32>
    %1335 = vector.shape_cast %1334 : vector<96xf32> to vector<1x96xf32>
    %1336 = vector.extract_strided_slice %1335 {offsets = [0, 0], sizes = [1, 64], strides = [1, 1]} : vector<1x96xf32> to vector<1x64xf32>
    %1337 = arith.addf %1336, %199 : vector<1x64xf32>
    %1338 = vector.extract_strided_slice %1335 {offsets = [0, 64], sizes = [1, 32], strides = [1, 1]} : vector<1x96xf32> to vector<1x32xf32>
    %1339 = arith.addf %1338, %200 : vector<1x32xf32>
    %1340 = vector.broadcast %1321 : vector<1x1xf32> to vector<1x16xf32>
    %1341 = arith.subf %1318, %1340 : vector<1x16xf32>
    %1342 = math.exp %1341 : vector<1x16xf32>
    %cst_241 = arith.constant dense<0.000000e+00> : vector<1xf32>
    %1343 = vector.multi_reduction <add>, %1342, %cst_241 [1] : vector<1x16xf32> to vector<1xf32>
    %1344 = vector.shape_cast %1343 : vector<1xf32> to vector<1x1xf32>
    %1345 = math.log %1344 : vector<1x1xf32>
    %1346 = vector.broadcast %1345 : vector<1x1xf32> to vector<1x16xf32>
    %1347 = arith.subf %1341, %1346 : vector<1x16xf32>
    %c21 = arith.constant 21 : index
    %c0_242 = arith.constant 0 : index
    %1348 = vector.load %arg10[%c21, %c0_242] : memref<30x16xf32, #tpu.memory_space<vmem>>, vector<1x16xf32>
    tpu.vector_store %arg10[%c21, %c0_242], %1347 {strides = array<i32>} : memref<30x16xf32, #tpu.memory_space<vmem>>, vector<1x16xf32>,
    %1349 = vector.extract_strided_slice %1319 {offsets = [0, 0], sizes = [1, 64], strides = [1, 1]} : vector<1x96xf32> to vector<1x64xf32>
    %1350 = arith.addf %1337, %1349 : vector<1x64xf32>
    %1351 = arith.negf %1350 : vector<1x64xf32>
    %1352 = math.exp %1351 : vector<1x64xf32>
    %cst_243 = arith.constant 1.000000e+00 : f32
    %1353 = vector.broadcast %cst_243 : f32 to vector<1x64xf32>
    %1354 = arith.addf %1353, %1352 : vector<1x64xf32>
    %1355 = arith.divf %1353, %1354 : vector<1x64xf32>
    %1356 = vector.extract_strided_slice %1355 {offsets = [0, 0], sizes = [1, 32], strides = [1, 1]} : vector<1x64xf32> to vector<1x32xf32>
    %1357 = vector.extract_strided_slice %1355 {offsets = [0, 32], sizes = [1, 32], strides = [1, 1]} : vector<1x64xf32> to vector<1x32xf32>
    %1358 = vector.extract_strided_slice %1319 {offsets = [0, 64], sizes = [1, 32], strides = [1, 1]} : vector<1x96xf32> to vector<1x32xf32>
    %1359 = arith.addf %1358, %196 : vector<1x32xf32>
    %1360 = arith.mulf %1356, %1359 : vector<1x32xf32>
    %1361 = arith.addf %1339, %1360 : vector<1x32xf32>
    %1362 = math.tanh %1361 : vector<1x32xf32>
    %cst_244 = arith.constant 1.000000e+00 : f32
    %1363 = vector.broadcast %cst_244 : f32 to vector<1x32xf32>
    %1364 = arith.subf %1363, %1357 : vector<1x32xf32>
    %1365 = arith.mulf %1364, %1362 : vector<1x32xf32>
    %1366 = arith.mulf %1357, %1315 : vector<1x32xf32>
    %1367 = arith.addf %1365, %1366 : vector<1x32xf32>
    %cst_245 = arith.constant dense<0.000000e+00> : vector<1x112xf32>
    %1368 = tpu.matmul %1367, %192, %cst_245 {dimension_numbers = #tpu.dot_dimension_numbers<[1], [0], [0], [1], [0, 0, 1, 1], [], []>} : vector<1x32xf32>, vector<32x112xf32>, vector<1x112xf32> -> vector<1x112xf32>
    %1369 = vector.extract_strided_slice %1368 {offsets = [0, 0], sizes = [1, 16], strides = [1, 1]} : vector<1x112xf32> to vector<1x16xf32>
    %1370 = arith.addf %1369, %195 : vector<1x16xf32>
    %1371 = vector.extract_strided_slice %1368 {offsets = [0, 16], sizes = [1, 96], strides = [1, 1]} : vector<1x112xf32> to vector<1x96xf32>
    %cst_246 = arith.constant dense<0xFF800000> : vector<1xf32>
    %1372 = vector.multi_reduction <maximumf>, %1370, %cst_246 [1] : vector<1x16xf32> to vector<1xf32>
    %1373 = vector.shape_cast %1372 : vector<1xf32> to vector<1x1xf32>
    %1374 = vector.broadcast %1373 : vector<1x1xf32> to vector<1x16xf32>
    %1375 = arith.cmpf oge, %1370, %1374 : vector<1x16xf32>
    %c16_i32_247 = arith.constant 16 : i32
    %1376 = vector.broadcast %c16_i32_247 : i32 to vector<1x16xi32>
    %1377 = arith.select %1375, %201, %1376 : vector<1x16xi1>, vector<1x16xi32>
    %cst_248 = arith.constant dense<2147483647> : vector<1xi32>
    %1378 = vector.multi_reduction <minsi>, %1377, %cst_248 [1] : vector<1x16xi32> to vector<1xi32>
    %1379 = vector.shape_cast %1378 : vector<1xi32> to vector<1x1xi32>
    %1380 = vector.broadcast %1379 : vector<1x1xi32> to vector<16x1xi32>
    %1381 = arith.cmpi eq, %202, %1380 : vector<16x1xi32>
    %1382 = arith.extui %1381 : vector<16x1xi1> to vector<16x1xi32>
    %1383 = arith.sitofp %1382 : vector<16x1xi32> to vector<16x1xf32>
    %1384 = vector.broadcast %1383 : vector<16x1xf32> to vector<16x96xf32>
    %1385 = arith.mulf %1384, %191 : vector<16x96xf32>
    %cst_249 = arith.constant dense<0.000000e+00> : vector<96xf32>
    %1386 = vector.multi_reduction <add>, %1385, %cst_249 [0] : vector<16x96xf32> to vector<96xf32>
    %1387 = vector.shape_cast %1386 : vector<96xf32> to vector<1x96xf32>
    %1388 = vector.extract_strided_slice %1387 {offsets = [0, 0], sizes = [1, 64], strides = [1, 1]} : vector<1x96xf32> to vector<1x64xf32>
    %1389 = arith.addf %1388, %199 : vector<1x64xf32>
    %1390 = vector.extract_strided_slice %1387 {offsets = [0, 64], sizes = [1, 32], strides = [1, 1]} : vector<1x96xf32> to vector<1x32xf32>
    %1391 = arith.addf %1390, %200 : vector<1x32xf32>
    %1392 = vector.broadcast %1373 : vector<1x1xf32> to vector<1x16xf32>
    %1393 = arith.subf %1370, %1392 : vector<1x16xf32>
    %1394 = math.exp %1393 : vector<1x16xf32>
    %cst_250 = arith.constant dense<0.000000e+00> : vector<1xf32>
    %1395 = vector.multi_reduction <add>, %1394, %cst_250 [1] : vector<1x16xf32> to vector<1xf32>
    %1396 = vector.shape_cast %1395 : vector<1xf32> to vector<1x1xf32>
    %1397 = math.log %1396 : vector<1x1xf32>
    %1398 = vector.broadcast %1397 : vector<1x1xf32> to vector<1x16xf32>
    %1399 = arith.subf %1393, %1398 : vector<1x16xf32>
    %c22 = arith.constant 22 : index
    %c0_251 = arith.constant 0 : index
    %1400 = vector.load %arg10[%c22, %c0_251] : memref<30x16xf32, #tpu.memory_space<vmem>>, vector<1x16xf32>
    tpu.vector_store %arg10[%c22, %c0_251], %1399 {strides = array<i32>} : memref<30x16xf32, #tpu.memory_space<vmem>>, vector<1x16xf32>,
    %1401 = vector.extract_strided_slice %1371 {offsets = [0, 0], sizes = [1, 64], strides = [1, 1]} : vector<1x96xf32> to vector<1x64xf32>
    %1402 = arith.addf %1389, %1401 : vector<1x64xf32>
    %1403 = arith.negf %1402 : vector<1x64xf32>
    %1404 = math.exp %1403 : vector<1x64xf32>
    %cst_252 = arith.constant 1.000000e+00 : f32
    %1405 = vector.broadcast %cst_252 : f32 to vector<1x64xf32>
    %1406 = arith.addf %1405, %1404 : vector<1x64xf32>
    %1407 = arith.divf %1405, %1406 : vector<1x64xf32>
    %1408 = vector.extract_strided_slice %1407 {offsets = [0, 0], sizes = [1, 32], strides = [1, 1]} : vector<1x64xf32> to vector<1x32xf32>
    %1409 = vector.extract_strided_slice %1407 {offsets = [0, 32], sizes = [1, 32], strides = [1, 1]} : vector<1x64xf32> to vector<1x32xf32>
    %1410 = vector.extract_strided_slice %1371 {offsets = [0, 64], sizes = [1, 32], strides = [1, 1]} : vector<1x96xf32> to vector<1x32xf32>
    %1411 = arith.addf %1410, %196 : vector<1x32xf32>
    %1412 = arith.mulf %1408, %1411 : vector<1x32xf32>
    %1413 = arith.addf %1391, %1412 : vector<1x32xf32>
    %1414 = math.tanh %1413 : vector<1x32xf32>
    %cst_253 = arith.constant 1.000000e+00 : f32
    %1415 = vector.broadcast %cst_253 : f32 to vector<1x32xf32>
    %1416 = arith.subf %1415, %1409 : vector<1x32xf32>
    %1417 = arith.mulf %1416, %1414 : vector<1x32xf32>
    %1418 = arith.mulf %1409, %1367 : vector<1x32xf32>
    %1419 = arith.addf %1417, %1418 : vector<1x32xf32>
    %cst_254 = arith.constant dense<0.000000e+00> : vector<1x112xf32>
    %1420 = tpu.matmul %1419, %192, %cst_254 {dimension_numbers = #tpu.dot_dimension_numbers<[1], [0], [0], [1], [0, 0, 1, 1], [], []>} : vector<1x32xf32>, vector<32x112xf32>, vector<1x112xf32> -> vector<1x112xf32>
    %1421 = vector.extract_strided_slice %1420 {offsets = [0, 0], sizes = [1, 16], strides = [1, 1]} : vector<1x112xf32> to vector<1x16xf32>
    %1422 = arith.addf %1421, %195 : vector<1x16xf32>
    %1423 = vector.extract_strided_slice %1420 {offsets = [0, 16], sizes = [1, 96], strides = [1, 1]} : vector<1x112xf32> to vector<1x96xf32>
    %cst_255 = arith.constant dense<0xFF800000> : vector<1xf32>
    %1424 = vector.multi_reduction <maximumf>, %1422, %cst_255 [1] : vector<1x16xf32> to vector<1xf32>
    %1425 = vector.shape_cast %1424 : vector<1xf32> to vector<1x1xf32>
    %1426 = vector.broadcast %1425 : vector<1x1xf32> to vector<1x16xf32>
    %1427 = arith.cmpf oge, %1422, %1426 : vector<1x16xf32>
    %c16_i32_256 = arith.constant 16 : i32
    %1428 = vector.broadcast %c16_i32_256 : i32 to vector<1x16xi32>
    %1429 = arith.select %1427, %201, %1428 : vector<1x16xi1>, vector<1x16xi32>
    %cst_257 = arith.constant dense<2147483647> : vector<1xi32>
    %1430 = vector.multi_reduction <minsi>, %1429, %cst_257 [1] : vector<1x16xi32> to vector<1xi32>
    %1431 = vector.shape_cast %1430 : vector<1xi32> to vector<1x1xi32>
    %1432 = vector.broadcast %1431 : vector<1x1xi32> to vector<16x1xi32>
    %1433 = arith.cmpi eq, %202, %1432 : vector<16x1xi32>
    %1434 = arith.extui %1433 : vector<16x1xi1> to vector<16x1xi32>
    %1435 = arith.sitofp %1434 : vector<16x1xi32> to vector<16x1xf32>
    %1436 = vector.broadcast %1435 : vector<16x1xf32> to vector<16x96xf32>
    %1437 = arith.mulf %1436, %191 : vector<16x96xf32>
    %cst_258 = arith.constant dense<0.000000e+00> : vector<96xf32>
    %1438 = vector.multi_reduction <add>, %1437, %cst_258 [0] : vector<16x96xf32> to vector<96xf32>
    %1439 = vector.shape_cast %1438 : vector<96xf32> to vector<1x96xf32>
    %1440 = vector.extract_strided_slice %1439 {offsets = [0, 0], sizes = [1, 64], strides = [1, 1]} : vector<1x96xf32> to vector<1x64xf32>
    %1441 = arith.addf %1440, %199 : vector<1x64xf32>
    %1442 = vector.extract_strided_slice %1439 {offsets = [0, 64], sizes = [1, 32], strides = [1, 1]} : vector<1x96xf32> to vector<1x32xf32>
    %1443 = arith.addf %1442, %200 : vector<1x32xf32>
    %1444 = vector.broadcast %1425 : vector<1x1xf32> to vector<1x16xf32>
    %1445 = arith.subf %1422, %1444 : vector<1x16xf32>
    %1446 = math.exp %1445 : vector<1x16xf32>
    %cst_259 = arith.constant dense<0.000000e+00> : vector<1xf32>
    %1447 = vector.multi_reduction <add>, %1446, %cst_259 [1] : vector<1x16xf32> to vector<1xf32>
    %1448 = vector.shape_cast %1447 : vector<1xf32> to vector<1x1xf32>
    %1449 = math.log %1448 : vector<1x1xf32>
    %1450 = vector.broadcast %1449 : vector<1x1xf32> to vector<1x16xf32>
    %1451 = arith.subf %1445, %1450 : vector<1x16xf32>
    %c23 = arith.constant 23 : index
    %c0_260 = arith.constant 0 : index
    %1452 = vector.load %arg10[%c23, %c0_260] : memref<30x16xf32, #tpu.memory_space<vmem>>, vector<1x16xf32>
    tpu.vector_store %arg10[%c23, %c0_260], %1451 {strides = array<i32>} : memref<30x16xf32, #tpu.memory_space<vmem>>, vector<1x16xf32>,
    %1453 = vector.extract_strided_slice %1423 {offsets = [0, 0], sizes = [1, 64], strides = [1, 1]} : vector<1x96xf32> to vector<1x64xf32>
    %1454 = arith.addf %1441, %1453 : vector<1x64xf32>
    %1455 = arith.negf %1454 : vector<1x64xf32>
    %1456 = math.exp %1455 : vector<1x64xf32>
    %cst_261 = arith.constant 1.000000e+00 : f32
    %1457 = vector.broadcast %cst_261 : f32 to vector<1x64xf32>
    %1458 = arith.addf %1457, %1456 : vector<1x64xf32>
    %1459 = arith.divf %1457, %1458 : vector<1x64xf32>
    %1460 = vector.extract_strided_slice %1459 {offsets = [0, 0], sizes = [1, 32], strides = [1, 1]} : vector<1x64xf32> to vector<1x32xf32>
    %1461 = vector.extract_strided_slice %1459 {offsets = [0, 32], sizes = [1, 32], strides = [1, 1]} : vector<1x64xf32> to vector<1x32xf32>
    %1462 = vector.extract_strided_slice %1423 {offsets = [0, 64], sizes = [1, 32], strides = [1, 1]} : vector<1x96xf32> to vector<1x32xf32>
    %1463 = arith.addf %1462, %196 : vector<1x32xf32>
    %1464 = arith.mulf %1460, %1463 : vector<1x32xf32>
    %1465 = arith.addf %1443, %1464 : vector<1x32xf32>
    %1466 = math.tanh %1465 : vector<1x32xf32>
    %cst_262 = arith.constant 1.000000e+00 : f32
    %1467 = vector.broadcast %cst_262 : f32 to vector<1x32xf32>
    %1468 = arith.subf %1467, %1461 : vector<1x32xf32>
    %1469 = arith.mulf %1468, %1466 : vector<1x32xf32>
    %1470 = arith.mulf %1461, %1419 : vector<1x32xf32>
    %1471 = arith.addf %1469, %1470 : vector<1x32xf32>
    %cst_263 = arith.constant dense<0.000000e+00> : vector<1x112xf32>
    %1472 = tpu.matmul %1471, %192, %cst_263 {dimension_numbers = #tpu.dot_dimension_numbers<[1], [0], [0], [1], [0, 0, 1, 1], [], []>} : vector<1x32xf32>, vector<32x112xf32>, vector<1x112xf32> -> vector<1x112xf32>
    %1473 = vector.extract_strided_slice %1472 {offsets = [0, 0], sizes = [1, 16], strides = [1, 1]} : vector<1x112xf32> to vector<1x16xf32>
    %1474 = arith.addf %1473, %195 : vector<1x16xf32>
    %1475 = vector.extract_strided_slice %1472 {offsets = [0, 16], sizes = [1, 96], strides = [1, 1]} : vector<1x112xf32> to vector<1x96xf32>
    %cst_264 = arith.constant dense<0xFF800000> : vector<1xf32>
    %1476 = vector.multi_reduction <maximumf>, %1474, %cst_264 [1] : vector<1x16xf32> to vector<1xf32>
    %1477 = vector.shape_cast %1476 : vector<1xf32> to vector<1x1xf32>
    %1478 = vector.broadcast %1477 : vector<1x1xf32> to vector<1x16xf32>
    %1479 = arith.cmpf oge, %1474, %1478 : vector<1x16xf32>
    %c16_i32_265 = arith.constant 16 : i32
    %1480 = vector.broadcast %c16_i32_265 : i32 to vector<1x16xi32>
    %1481 = arith.select %1479, %201, %1480 : vector<1x16xi1>, vector<1x16xi32>
    %cst_266 = arith.constant dense<2147483647> : vector<1xi32>
    %1482 = vector.multi_reduction <minsi>, %1481, %cst_266 [1] : vector<1x16xi32> to vector<1xi32>
    %1483 = vector.shape_cast %1482 : vector<1xi32> to vector<1x1xi32>
    %1484 = vector.broadcast %1483 : vector<1x1xi32> to vector<16x1xi32>
    %1485 = arith.cmpi eq, %202, %1484 : vector<16x1xi32>
    %1486 = arith.extui %1485 : vector<16x1xi1> to vector<16x1xi32>
    %1487 = arith.sitofp %1486 : vector<16x1xi32> to vector<16x1xf32>
    %1488 = vector.broadcast %1487 : vector<16x1xf32> to vector<16x96xf32>
    %1489 = arith.mulf %1488, %191 : vector<16x96xf32>
    %cst_267 = arith.constant dense<0.000000e+00> : vector<96xf32>
    %1490 = vector.multi_reduction <add>, %1489, %cst_267 [0] : vector<16x96xf32> to vector<96xf32>
    %1491 = vector.shape_cast %1490 : vector<96xf32> to vector<1x96xf32>
    %1492 = vector.extract_strided_slice %1491 {offsets = [0, 0], sizes = [1, 64], strides = [1, 1]} : vector<1x96xf32> to vector<1x64xf32>
    %1493 = arith.addf %1492, %199 : vector<1x64xf32>
    %1494 = vector.extract_strided_slice %1491 {offsets = [0, 64], sizes = [1, 32], strides = [1, 1]} : vector<1x96xf32> to vector<1x32xf32>
    %1495 = arith.addf %1494, %200 : vector<1x32xf32>
    %1496 = vector.broadcast %1477 : vector<1x1xf32> to vector<1x16xf32>
    %1497 = arith.subf %1474, %1496 : vector<1x16xf32>
    %1498 = math.exp %1497 : vector<1x16xf32>
    %cst_268 = arith.constant dense<0.000000e+00> : vector<1xf32>
    %1499 = vector.multi_reduction <add>, %1498, %cst_268 [1] : vector<1x16xf32> to vector<1xf32>
    %1500 = vector.shape_cast %1499 : vector<1xf32> to vector<1x1xf32>
    %1501 = math.log %1500 : vector<1x1xf32>
    %1502 = vector.broadcast %1501 : vector<1x1xf32> to vector<1x16xf32>
    %1503 = arith.subf %1497, %1502 : vector<1x16xf32>
    %c24 = arith.constant 24 : index
    %c0_269 = arith.constant 0 : index
    %1504 = vector.load %arg10[%c24, %c0_269] : memref<30x16xf32, #tpu.memory_space<vmem>>, vector<1x16xf32>
    tpu.vector_store %arg10[%c24, %c0_269], %1503 {strides = array<i32>} : memref<30x16xf32, #tpu.memory_space<vmem>>, vector<1x16xf32>,
    %1505 = vector.extract_strided_slice %1475 {offsets = [0, 0], sizes = [1, 64], strides = [1, 1]} : vector<1x96xf32> to vector<1x64xf32>
    %1506 = arith.addf %1493, %1505 : vector<1x64xf32>
    %1507 = arith.negf %1506 : vector<1x64xf32>
    %1508 = math.exp %1507 : vector<1x64xf32>
    %cst_270 = arith.constant 1.000000e+00 : f32
    %1509 = vector.broadcast %cst_270 : f32 to vector<1x64xf32>
    %1510 = arith.addf %1509, %1508 : vector<1x64xf32>
    %1511 = arith.divf %1509, %1510 : vector<1x64xf32>
    %1512 = vector.extract_strided_slice %1511 {offsets = [0, 0], sizes = [1, 32], strides = [1, 1]} : vector<1x64xf32> to vector<1x32xf32>
    %1513 = vector.extract_strided_slice %1511 {offsets = [0, 32], sizes = [1, 32], strides = [1, 1]} : vector<1x64xf32> to vector<1x32xf32>
    %1514 = vector.extract_strided_slice %1475 {offsets = [0, 64], sizes = [1, 32], strides = [1, 1]} : vector<1x96xf32> to vector<1x32xf32>
    %1515 = arith.addf %1514, %196 : vector<1x32xf32>
    %1516 = arith.mulf %1512, %1515 : vector<1x32xf32>
    %1517 = arith.addf %1495, %1516 : vector<1x32xf32>
    %1518 = math.tanh %1517 : vector<1x32xf32>
    %cst_271 = arith.constant 1.000000e+00 : f32
    %1519 = vector.broadcast %cst_271 : f32 to vector<1x32xf32>
    %1520 = arith.subf %1519, %1513 : vector<1x32xf32>
    %1521 = arith.mulf %1520, %1518 : vector<1x32xf32>
    %1522 = arith.mulf %1513, %1471 : vector<1x32xf32>
    %1523 = arith.addf %1521, %1522 : vector<1x32xf32>
    %cst_272 = arith.constant dense<0.000000e+00> : vector<1x112xf32>
    %1524 = tpu.matmul %1523, %192, %cst_272 {dimension_numbers = #tpu.dot_dimension_numbers<[1], [0], [0], [1], [0, 0, 1, 1], [], []>} : vector<1x32xf32>, vector<32x112xf32>, vector<1x112xf32> -> vector<1x112xf32>
    %1525 = vector.extract_strided_slice %1524 {offsets = [0, 0], sizes = [1, 16], strides = [1, 1]} : vector<1x112xf32> to vector<1x16xf32>
    %1526 = arith.addf %1525, %195 : vector<1x16xf32>
    %1527 = vector.extract_strided_slice %1524 {offsets = [0, 16], sizes = [1, 96], strides = [1, 1]} : vector<1x112xf32> to vector<1x96xf32>
    %cst_273 = arith.constant dense<0xFF800000> : vector<1xf32>
    %1528 = vector.multi_reduction <maximumf>, %1526, %cst_273 [1] : vector<1x16xf32> to vector<1xf32>
    %1529 = vector.shape_cast %1528 : vector<1xf32> to vector<1x1xf32>
    %1530 = vector.broadcast %1529 : vector<1x1xf32> to vector<1x16xf32>
    %1531 = arith.cmpf oge, %1526, %1530 : vector<1x16xf32>
    %c16_i32_274 = arith.constant 16 : i32
    %1532 = vector.broadcast %c16_i32_274 : i32 to vector<1x16xi32>
    %1533 = arith.select %1531, %201, %1532 : vector<1x16xi1>, vector<1x16xi32>
    %cst_275 = arith.constant dense<2147483647> : vector<1xi32>
    %1534 = vector.multi_reduction <minsi>, %1533, %cst_275 [1] : vector<1x16xi32> to vector<1xi32>
    %1535 = vector.shape_cast %1534 : vector<1xi32> to vector<1x1xi32>
    %1536 = vector.broadcast %1535 : vector<1x1xi32> to vector<16x1xi32>
    %1537 = arith.cmpi eq, %202, %1536 : vector<16x1xi32>
    %1538 = arith.extui %1537 : vector<16x1xi1> to vector<16x1xi32>
    %1539 = arith.sitofp %1538 : vector<16x1xi32> to vector<16x1xf32>
    %1540 = vector.broadcast %1539 : vector<16x1xf32> to vector<16x96xf32>
    %1541 = arith.mulf %1540, %191 : vector<16x96xf32>
    %cst_276 = arith.constant dense<0.000000e+00> : vector<96xf32>
    %1542 = vector.multi_reduction <add>, %1541, %cst_276 [0] : vector<16x96xf32> to vector<96xf32>
    %1543 = vector.shape_cast %1542 : vector<96xf32> to vector<1x96xf32>
    %1544 = vector.extract_strided_slice %1543 {offsets = [0, 0], sizes = [1, 64], strides = [1, 1]} : vector<1x96xf32> to vector<1x64xf32>
    %1545 = arith.addf %1544, %199 : vector<1x64xf32>
    %1546 = vector.extract_strided_slice %1543 {offsets = [0, 64], sizes = [1, 32], strides = [1, 1]} : vector<1x96xf32> to vector<1x32xf32>
    %1547 = arith.addf %1546, %200 : vector<1x32xf32>
    %1548 = vector.broadcast %1529 : vector<1x1xf32> to vector<1x16xf32>
    %1549 = arith.subf %1526, %1548 : vector<1x16xf32>
    %1550 = math.exp %1549 : vector<1x16xf32>
    %cst_277 = arith.constant dense<0.000000e+00> : vector<1xf32>
    %1551 = vector.multi_reduction <add>, %1550, %cst_277 [1] : vector<1x16xf32> to vector<1xf32>
    %1552 = vector.shape_cast %1551 : vector<1xf32> to vector<1x1xf32>
    %1553 = math.log %1552 : vector<1x1xf32>
    %1554 = vector.broadcast %1553 : vector<1x1xf32> to vector<1x16xf32>
    %1555 = arith.subf %1549, %1554 : vector<1x16xf32>
    %c25 = arith.constant 25 : index
    %c0_278 = arith.constant 0 : index
    %1556 = vector.load %arg10[%c25, %c0_278] : memref<30x16xf32, #tpu.memory_space<vmem>>, vector<1x16xf32>
    tpu.vector_store %arg10[%c25, %c0_278], %1555 {strides = array<i32>} : memref<30x16xf32, #tpu.memory_space<vmem>>, vector<1x16xf32>,
    %1557 = vector.extract_strided_slice %1527 {offsets = [0, 0], sizes = [1, 64], strides = [1, 1]} : vector<1x96xf32> to vector<1x64xf32>
    %1558 = arith.addf %1545, %1557 : vector<1x64xf32>
    %1559 = arith.negf %1558 : vector<1x64xf32>
    %1560 = math.exp %1559 : vector<1x64xf32>
    %cst_279 = arith.constant 1.000000e+00 : f32
    %1561 = vector.broadcast %cst_279 : f32 to vector<1x64xf32>
    %1562 = arith.addf %1561, %1560 : vector<1x64xf32>
    %1563 = arith.divf %1561, %1562 : vector<1x64xf32>
    %1564 = vector.extract_strided_slice %1563 {offsets = [0, 0], sizes = [1, 32], strides = [1, 1]} : vector<1x64xf32> to vector<1x32xf32>
    %1565 = vector.extract_strided_slice %1563 {offsets = [0, 32], sizes = [1, 32], strides = [1, 1]} : vector<1x64xf32> to vector<1x32xf32>
    %1566 = vector.extract_strided_slice %1527 {offsets = [0, 64], sizes = [1, 32], strides = [1, 1]} : vector<1x96xf32> to vector<1x32xf32>
    %1567 = arith.addf %1566, %196 : vector<1x32xf32>
    %1568 = arith.mulf %1564, %1567 : vector<1x32xf32>
    %1569 = arith.addf %1547, %1568 : vector<1x32xf32>
    %1570 = math.tanh %1569 : vector<1x32xf32>
    %cst_280 = arith.constant 1.000000e+00 : f32
    %1571 = vector.broadcast %cst_280 : f32 to vector<1x32xf32>
    %1572 = arith.subf %1571, %1565 : vector<1x32xf32>
    %1573 = arith.mulf %1572, %1570 : vector<1x32xf32>
    %1574 = arith.mulf %1565, %1523 : vector<1x32xf32>
    %1575 = arith.addf %1573, %1574 : vector<1x32xf32>
    %cst_281 = arith.constant dense<0.000000e+00> : vector<1x112xf32>
    %1576 = tpu.matmul %1575, %192, %cst_281 {dimension_numbers = #tpu.dot_dimension_numbers<[1], [0], [0], [1], [0, 0, 1, 1], [], []>} : vector<1x32xf32>, vector<32x112xf32>, vector<1x112xf32> -> vector<1x112xf32>
    %1577 = vector.extract_strided_slice %1576 {offsets = [0, 0], sizes = [1, 16], strides = [1, 1]} : vector<1x112xf32> to vector<1x16xf32>
    %1578 = arith.addf %1577, %195 : vector<1x16xf32>
    %1579 = vector.extract_strided_slice %1576 {offsets = [0, 16], sizes = [1, 96], strides = [1, 1]} : vector<1x112xf32> to vector<1x96xf32>
    %cst_282 = arith.constant dense<0xFF800000> : vector<1xf32>
    %1580 = vector.multi_reduction <maximumf>, %1578, %cst_282 [1] : vector<1x16xf32> to vector<1xf32>
    %1581 = vector.shape_cast %1580 : vector<1xf32> to vector<1x1xf32>
    %1582 = vector.broadcast %1581 : vector<1x1xf32> to vector<1x16xf32>
    %1583 = arith.cmpf oge, %1578, %1582 : vector<1x16xf32>
    %c16_i32_283 = arith.constant 16 : i32
    %1584 = vector.broadcast %c16_i32_283 : i32 to vector<1x16xi32>
    %1585 = arith.select %1583, %201, %1584 : vector<1x16xi1>, vector<1x16xi32>
    %cst_284 = arith.constant dense<2147483647> : vector<1xi32>
    %1586 = vector.multi_reduction <minsi>, %1585, %cst_284 [1] : vector<1x16xi32> to vector<1xi32>
    %1587 = vector.shape_cast %1586 : vector<1xi32> to vector<1x1xi32>
    %1588 = vector.broadcast %1587 : vector<1x1xi32> to vector<16x1xi32>
    %1589 = arith.cmpi eq, %202, %1588 : vector<16x1xi32>
    %1590 = arith.extui %1589 : vector<16x1xi1> to vector<16x1xi32>
    %1591 = arith.sitofp %1590 : vector<16x1xi32> to vector<16x1xf32>
    %1592 = vector.broadcast %1591 : vector<16x1xf32> to vector<16x96xf32>
    %1593 = arith.mulf %1592, %191 : vector<16x96xf32>
    %cst_285 = arith.constant dense<0.000000e+00> : vector<96xf32>
    %1594 = vector.multi_reduction <add>, %1593, %cst_285 [0] : vector<16x96xf32> to vector<96xf32>
    %1595 = vector.shape_cast %1594 : vector<96xf32> to vector<1x96xf32>
    %1596 = vector.extract_strided_slice %1595 {offsets = [0, 0], sizes = [1, 64], strides = [1, 1]} : vector<1x96xf32> to vector<1x64xf32>
    %1597 = arith.addf %1596, %199 : vector<1x64xf32>
    %1598 = vector.extract_strided_slice %1595 {offsets = [0, 64], sizes = [1, 32], strides = [1, 1]} : vector<1x96xf32> to vector<1x32xf32>
    %1599 = arith.addf %1598, %200 : vector<1x32xf32>
    %1600 = vector.broadcast %1581 : vector<1x1xf32> to vector<1x16xf32>
    %1601 = arith.subf %1578, %1600 : vector<1x16xf32>
    %1602 = math.exp %1601 : vector<1x16xf32>
    %cst_286 = arith.constant dense<0.000000e+00> : vector<1xf32>
    %1603 = vector.multi_reduction <add>, %1602, %cst_286 [1] : vector<1x16xf32> to vector<1xf32>
    %1604 = vector.shape_cast %1603 : vector<1xf32> to vector<1x1xf32>
    %1605 = math.log %1604 : vector<1x1xf32>
    %1606 = vector.broadcast %1605 : vector<1x1xf32> to vector<1x16xf32>
    %1607 = arith.subf %1601, %1606 : vector<1x16xf32>
    %c26 = arith.constant 26 : index
    %c0_287 = arith.constant 0 : index
    %1608 = vector.load %arg10[%c26, %c0_287] : memref<30x16xf32, #tpu.memory_space<vmem>>, vector<1x16xf32>
    tpu.vector_store %arg10[%c26, %c0_287], %1607 {strides = array<i32>} : memref<30x16xf32, #tpu.memory_space<vmem>>, vector<1x16xf32>,
    %1609 = vector.extract_strided_slice %1579 {offsets = [0, 0], sizes = [1, 64], strides = [1, 1]} : vector<1x96xf32> to vector<1x64xf32>
    %1610 = arith.addf %1597, %1609 : vector<1x64xf32>
    %1611 = arith.negf %1610 : vector<1x64xf32>
    %1612 = math.exp %1611 : vector<1x64xf32>
    %cst_288 = arith.constant 1.000000e+00 : f32
    %1613 = vector.broadcast %cst_288 : f32 to vector<1x64xf32>
    %1614 = arith.addf %1613, %1612 : vector<1x64xf32>
    %1615 = arith.divf %1613, %1614 : vector<1x64xf32>
    %1616 = vector.extract_strided_slice %1615 {offsets = [0, 0], sizes = [1, 32], strides = [1, 1]} : vector<1x64xf32> to vector<1x32xf32>
    %1617 = vector.extract_strided_slice %1615 {offsets = [0, 32], sizes = [1, 32], strides = [1, 1]} : vector<1x64xf32> to vector<1x32xf32>
    %1618 = vector.extract_strided_slice %1579 {offsets = [0, 64], sizes = [1, 32], strides = [1, 1]} : vector<1x96xf32> to vector<1x32xf32>
    %1619 = arith.addf %1618, %196 : vector<1x32xf32>
    %1620 = arith.mulf %1616, %1619 : vector<1x32xf32>
    %1621 = arith.addf %1599, %1620 : vector<1x32xf32>
    %1622 = math.tanh %1621 : vector<1x32xf32>
    %cst_289 = arith.constant 1.000000e+00 : f32
    %1623 = vector.broadcast %cst_289 : f32 to vector<1x32xf32>
    %1624 = arith.subf %1623, %1617 : vector<1x32xf32>
    %1625 = arith.mulf %1624, %1622 : vector<1x32xf32>
    %1626 = arith.mulf %1617, %1575 : vector<1x32xf32>
    %1627 = arith.addf %1625, %1626 : vector<1x32xf32>
    %cst_290 = arith.constant dense<0.000000e+00> : vector<1x112xf32>
    %1628 = tpu.matmul %1627, %192, %cst_290 {dimension_numbers = #tpu.dot_dimension_numbers<[1], [0], [0], [1], [0, 0, 1, 1], [], []>} : vector<1x32xf32>, vector<32x112xf32>, vector<1x112xf32> -> vector<1x112xf32>
    %1629 = vector.extract_strided_slice %1628 {offsets = [0, 0], sizes = [1, 16], strides = [1, 1]} : vector<1x112xf32> to vector<1x16xf32>
    %1630 = arith.addf %1629, %195 : vector<1x16xf32>
    %1631 = vector.extract_strided_slice %1628 {offsets = [0, 16], sizes = [1, 96], strides = [1, 1]} : vector<1x112xf32> to vector<1x96xf32>
    %cst_291 = arith.constant dense<0xFF800000> : vector<1xf32>
    %1632 = vector.multi_reduction <maximumf>, %1630, %cst_291 [1] : vector<1x16xf32> to vector<1xf32>
    %1633 = vector.shape_cast %1632 : vector<1xf32> to vector<1x1xf32>
    %1634 = vector.broadcast %1633 : vector<1x1xf32> to vector<1x16xf32>
    %1635 = arith.cmpf oge, %1630, %1634 : vector<1x16xf32>
    %c16_i32_292 = arith.constant 16 : i32
    %1636 = vector.broadcast %c16_i32_292 : i32 to vector<1x16xi32>
    %1637 = arith.select %1635, %201, %1636 : vector<1x16xi1>, vector<1x16xi32>
    %cst_293 = arith.constant dense<2147483647> : vector<1xi32>
    %1638 = vector.multi_reduction <minsi>, %1637, %cst_293 [1] : vector<1x16xi32> to vector<1xi32>
    %1639 = vector.shape_cast %1638 : vector<1xi32> to vector<1x1xi32>
    %1640 = vector.broadcast %1639 : vector<1x1xi32> to vector<16x1xi32>
    %1641 = arith.cmpi eq, %202, %1640 : vector<16x1xi32>
    %1642 = arith.extui %1641 : vector<16x1xi1> to vector<16x1xi32>
    %1643 = arith.sitofp %1642 : vector<16x1xi32> to vector<16x1xf32>
    %1644 = vector.broadcast %1643 : vector<16x1xf32> to vector<16x96xf32>
    %1645 = arith.mulf %1644, %191 : vector<16x96xf32>
    %cst_294 = arith.constant dense<0.000000e+00> : vector<96xf32>
    %1646 = vector.multi_reduction <add>, %1645, %cst_294 [0] : vector<16x96xf32> to vector<96xf32>
    %1647 = vector.shape_cast %1646 : vector<96xf32> to vector<1x96xf32>
    %1648 = vector.extract_strided_slice %1647 {offsets = [0, 0], sizes = [1, 64], strides = [1, 1]} : vector<1x96xf32> to vector<1x64xf32>
    %1649 = arith.addf %1648, %199 : vector<1x64xf32>
    %1650 = vector.extract_strided_slice %1647 {offsets = [0, 64], sizes = [1, 32], strides = [1, 1]} : vector<1x96xf32> to vector<1x32xf32>
    %1651 = arith.addf %1650, %200 : vector<1x32xf32>
    %1652 = vector.broadcast %1633 : vector<1x1xf32> to vector<1x16xf32>
    %1653 = arith.subf %1630, %1652 : vector<1x16xf32>
    %1654 = math.exp %1653 : vector<1x16xf32>
    %cst_295 = arith.constant dense<0.000000e+00> : vector<1xf32>
    %1655 = vector.multi_reduction <add>, %1654, %cst_295 [1] : vector<1x16xf32> to vector<1xf32>
    %1656 = vector.shape_cast %1655 : vector<1xf32> to vector<1x1xf32>
    %1657 = math.log %1656 : vector<1x1xf32>
    %1658 = vector.broadcast %1657 : vector<1x1xf32> to vector<1x16xf32>
    %1659 = arith.subf %1653, %1658 : vector<1x16xf32>
    %c27 = arith.constant 27 : index
    %c0_296 = arith.constant 0 : index
    %1660 = vector.load %arg10[%c27, %c0_296] : memref<30x16xf32, #tpu.memory_space<vmem>>, vector<1x16xf32>
    tpu.vector_store %arg10[%c27, %c0_296], %1659 {strides = array<i32>} : memref<30x16xf32, #tpu.memory_space<vmem>>, vector<1x16xf32>,
    %1661 = vector.extract_strided_slice %1631 {offsets = [0, 0], sizes = [1, 64], strides = [1, 1]} : vector<1x96xf32> to vector<1x64xf32>
    %1662 = arith.addf %1649, %1661 : vector<1x64xf32>
    %1663 = arith.negf %1662 : vector<1x64xf32>
    %1664 = math.exp %1663 : vector<1x64xf32>
    %cst_297 = arith.constant 1.000000e+00 : f32
    %1665 = vector.broadcast %cst_297 : f32 to vector<1x64xf32>
    %1666 = arith.addf %1665, %1664 : vector<1x64xf32>
    %1667 = arith.divf %1665, %1666 : vector<1x64xf32>
    %1668 = vector.extract_strided_slice %1667 {offsets = [0, 0], sizes = [1, 32], strides = [1, 1]} : vector<1x64xf32> to vector<1x32xf32>
    %1669 = vector.extract_strided_slice %1667 {offsets = [0, 32], sizes = [1, 32], strides = [1, 1]} : vector<1x64xf32> to vector<1x32xf32>
    %1670 = vector.extract_strided_slice %1631 {offsets = [0, 64], sizes = [1, 32], strides = [1, 1]} : vector<1x96xf32> to vector<1x32xf32>
    %1671 = arith.addf %1670, %196 : vector<1x32xf32>
    %1672 = arith.mulf %1668, %1671 : vector<1x32xf32>
    %1673 = arith.addf %1651, %1672 : vector<1x32xf32>
    %1674 = math.tanh %1673 : vector<1x32xf32>
    %cst_298 = arith.constant 1.000000e+00 : f32
    %1675 = vector.broadcast %cst_298 : f32 to vector<1x32xf32>
    %1676 = arith.subf %1675, %1669 : vector<1x32xf32>
    %1677 = arith.mulf %1676, %1674 : vector<1x32xf32>
    %1678 = arith.mulf %1669, %1627 : vector<1x32xf32>
    %1679 = arith.addf %1677, %1678 : vector<1x32xf32>
    %cst_299 = arith.constant dense<0.000000e+00> : vector<1x112xf32>
    %1680 = tpu.matmul %1679, %192, %cst_299 {dimension_numbers = #tpu.dot_dimension_numbers<[1], [0], [0], [1], [0, 0, 1, 1], [], []>} : vector<1x32xf32>, vector<32x112xf32>, vector<1x112xf32> -> vector<1x112xf32>
    %1681 = vector.extract_strided_slice %1680 {offsets = [0, 0], sizes = [1, 16], strides = [1, 1]} : vector<1x112xf32> to vector<1x16xf32>
    %1682 = arith.addf %1681, %195 : vector<1x16xf32>
    %1683 = vector.extract_strided_slice %1680 {offsets = [0, 16], sizes = [1, 96], strides = [1, 1]} : vector<1x112xf32> to vector<1x96xf32>
    %cst_300 = arith.constant dense<0xFF800000> : vector<1xf32>
    %1684 = vector.multi_reduction <maximumf>, %1682, %cst_300 [1] : vector<1x16xf32> to vector<1xf32>
    %1685 = vector.shape_cast %1684 : vector<1xf32> to vector<1x1xf32>
    %1686 = vector.broadcast %1685 : vector<1x1xf32> to vector<1x16xf32>
    %1687 = arith.cmpf oge, %1682, %1686 : vector<1x16xf32>
    %c16_i32_301 = arith.constant 16 : i32
    %1688 = vector.broadcast %c16_i32_301 : i32 to vector<1x16xi32>
    %1689 = arith.select %1687, %201, %1688 : vector<1x16xi1>, vector<1x16xi32>
    %cst_302 = arith.constant dense<2147483647> : vector<1xi32>
    %1690 = vector.multi_reduction <minsi>, %1689, %cst_302 [1] : vector<1x16xi32> to vector<1xi32>
    %1691 = vector.shape_cast %1690 : vector<1xi32> to vector<1x1xi32>
    %1692 = vector.broadcast %1691 : vector<1x1xi32> to vector<16x1xi32>
    %1693 = arith.cmpi eq, %202, %1692 : vector<16x1xi32>
    %1694 = arith.extui %1693 : vector<16x1xi1> to vector<16x1xi32>
    %1695 = arith.sitofp %1694 : vector<16x1xi32> to vector<16x1xf32>
    %1696 = vector.broadcast %1695 : vector<16x1xf32> to vector<16x96xf32>
    %1697 = arith.mulf %1696, %191 : vector<16x96xf32>
    %cst_303 = arith.constant dense<0.000000e+00> : vector<96xf32>
    %1698 = vector.multi_reduction <add>, %1697, %cst_303 [0] : vector<16x96xf32> to vector<96xf32>
    %1699 = vector.shape_cast %1698 : vector<96xf32> to vector<1x96xf32>
    %1700 = vector.extract_strided_slice %1699 {offsets = [0, 0], sizes = [1, 64], strides = [1, 1]} : vector<1x96xf32> to vector<1x64xf32>
    %1701 = arith.addf %1700, %199 : vector<1x64xf32>
    %1702 = vector.extract_strided_slice %1699 {offsets = [0, 64], sizes = [1, 32], strides = [1, 1]} : vector<1x96xf32> to vector<1x32xf32>
    %1703 = arith.addf %1702, %200 : vector<1x32xf32>
    %1704 = vector.broadcast %1685 : vector<1x1xf32> to vector<1x16xf32>
    %1705 = arith.subf %1682, %1704 : vector<1x16xf32>
    %1706 = math.exp %1705 : vector<1x16xf32>
    %cst_304 = arith.constant dense<0.000000e+00> : vector<1xf32>
    %1707 = vector.multi_reduction <add>, %1706, %cst_304 [1] : vector<1x16xf32> to vector<1xf32>
    %1708 = vector.shape_cast %1707 : vector<1xf32> to vector<1x1xf32>
    %1709 = math.log %1708 : vector<1x1xf32>
    %1710 = vector.broadcast %1709 : vector<1x1xf32> to vector<1x16xf32>
    %1711 = arith.subf %1705, %1710 : vector<1x16xf32>
    %c28 = arith.constant 28 : index
    %c0_305 = arith.constant 0 : index
    %1712 = vector.load %arg10[%c28, %c0_305] : memref<30x16xf32, #tpu.memory_space<vmem>>, vector<1x16xf32>
    tpu.vector_store %arg10[%c28, %c0_305], %1711 {strides = array<i32>} : memref<30x16xf32, #tpu.memory_space<vmem>>, vector<1x16xf32>,
    %1713 = vector.extract_strided_slice %1683 {offsets = [0, 0], sizes = [1, 64], strides = [1, 1]} : vector<1x96xf32> to vector<1x64xf32>
    %1714 = arith.addf %1701, %1713 : vector<1x64xf32>
    %1715 = arith.negf %1714 : vector<1x64xf32>
    %1716 = math.exp %1715 : vector<1x64xf32>
    %cst_306 = arith.constant 1.000000e+00 : f32
    %1717 = vector.broadcast %cst_306 : f32 to vector<1x64xf32>
    %1718 = arith.addf %1717, %1716 : vector<1x64xf32>
    %1719 = arith.divf %1717, %1718 : vector<1x64xf32>
    %1720 = vector.extract_strided_slice %1719 {offsets = [0, 0], sizes = [1, 32], strides = [1, 1]} : vector<1x64xf32> to vector<1x32xf32>
    %1721 = vector.extract_strided_slice %1719 {offsets = [0, 32], sizes = [1, 32], strides = [1, 1]} : vector<1x64xf32> to vector<1x32xf32>
    %1722 = vector.extract_strided_slice %1683 {offsets = [0, 64], sizes = [1, 32], strides = [1, 1]} : vector<1x96xf32> to vector<1x32xf32>
    %1723 = arith.addf %1722, %196 : vector<1x32xf32>
    %1724 = arith.mulf %1720, %1723 : vector<1x32xf32>
    %1725 = arith.addf %1703, %1724 : vector<1x32xf32>
    %1726 = math.tanh %1725 : vector<1x32xf32>
    %cst_307 = arith.constant 1.000000e+00 : f32
    %1727 = vector.broadcast %cst_307 : f32 to vector<1x32xf32>
    %1728 = arith.subf %1727, %1721 : vector<1x32xf32>
    %1729 = arith.mulf %1728, %1726 : vector<1x32xf32>
    %1730 = arith.mulf %1721, %1679 : vector<1x32xf32>
    %1731 = arith.addf %1729, %1730 : vector<1x32xf32>
    %cst_308 = arith.constant dense<0.000000e+00> : vector<1x112xf32>
    %1732 = tpu.matmul %1731, %192, %cst_308 {dimension_numbers = #tpu.dot_dimension_numbers<[1], [0], [0], [1], [0, 0, 1, 1], [], []>} : vector<1x32xf32>, vector<32x112xf32>, vector<1x112xf32> -> vector<1x112xf32>
    %1733 = vector.extract_strided_slice %1732 {offsets = [0, 0], sizes = [1, 16], strides = [1, 1]} : vector<1x112xf32> to vector<1x16xf32>
    %1734 = arith.addf %1733, %195 : vector<1x16xf32>
    %cst_309 = arith.constant dense<0xFF800000> : vector<1xf32>
    %1735 = vector.multi_reduction <maximumf>, %1734, %cst_309 [1] : vector<1x16xf32> to vector<1xf32>
    %1736 = vector.shape_cast %1735 : vector<1xf32> to vector<1x1xf32>
    %1737 = vector.broadcast %1736 : vector<1x1xf32> to vector<1x16xf32>
    %1738 = arith.subf %1734, %1737 : vector<1x16xf32>
    %1739 = math.exp %1738 : vector<1x16xf32>
    %cst_310 = arith.constant dense<0.000000e+00> : vector<1xf32>
    %1740 = vector.multi_reduction <add>, %1739, %cst_310 [1] : vector<1x16xf32> to vector<1xf32>
    %1741 = vector.shape_cast %1740 : vector<1xf32> to vector<1x1xf32>
    %1742 = math.log %1741 : vector<1x1xf32>
    %1743 = vector.broadcast %1742 : vector<1x1xf32> to vector<1x16xf32>
    %1744 = arith.subf %1738, %1743 : vector<1x16xf32>
    %c29 = arith.constant 29 : index
    %c0_311 = arith.constant 0 : index
    %1745 = vector.load %arg10[%c29, %c0_311] : memref<30x16xf32, #tpu.memory_space<vmem>>, vector<1x16xf32>
    tpu.vector_store %arg10[%c29, %c0_311], %1744 {strides = array<i32>} : memref<30x16xf32, #tpu.memory_space<vmem>>, vector<1x16xf32>,
    return
  }
}

</mosaic_0001>

<bundles_post_ra>
// kernel: tpu_custom_call.1
= control target key start
LH: loop header
LB: loop body
LE: loop exit
PB: predicated region body
PF: predicated region fallthrough
CT: control target
= control target key end

     0   :  { %15 = vsyncpa [#allocation3], 0  ;;  %s6639_s0 = inlined_call_operand.hbm [shape: f32[8,16], index: 0, kind: input, shape index: {}]   ;;  %s6640_s1 = inlined_call_operand.hbm [shape: f32[16,96], index: 1, kind: input, shape index: {}]   ;;  %s6641_s2 = inlined_call_operand.hbm [shape: f32[32,96], index: 2, kind: input, shape index: {}]   ;;  %s6642_s3 = inlined_call_operand.vmem [shape: f32[1,96], index: 3, kind: input, shape index: {}]   ;;  %s6643_s4 = inlined_call_operand.vmem [shape: f32[1,96], index: 4, kind: input, shape index: {}]   ;;  %s6644_s5 = inlined_call_operand.hbm [shape: f32[16,96], index: 5, kind: input, shape index: {}]   ;;  %s6645_s6 = inlined_call_operand.hbm [shape: f32[32,112], index: 6, kind: input, shape index: {}]   ;;  %s6646_s7 = inlined_call_operand.vmem [shape: f32[1,96], index: 7, kind: input, shape index: {}]   ;;  %s6647_s8 = inlined_call_operand.vmem [shape: f32[1,96], index: 8, kind: input, shape index: {}]   ;;  %s6648_s9 = inlined_call_operand.vmem [shape: f32[1,16], index: 9, kind: input, shape index: {}]   ;;  %s6649_s10 = inlined_call_operand.vmem [shape: f32[30,16], index: 10, kind: output, shape index: {}]  }
   0x1   :  { %16 = vsyncpa [#allocation5], 0  ;;  %s33_s15 = sshll.u32 %s6640_s1, 4  ;;  %s34_s15 = int_to_ptr.hbm [resolvable:$true] %s33_s15 }
   0x2   :  { %17 = vsyncpa [#allocation8], 0  ;;  %s4994_s16 = smov [#allocation4]   ;;  %s63_s20 = sshll.u32 %s6644_s5, 4  ;;  %s64_s20 = int_to_ptr.hbm [resolvable:$true] %s63_s20 }
   0x3   :  { %s35_s17 = sshll.u32 %s4994_s16, 4  ;;  %s4995_s21 = smov 128   ;;  %s36_s17 = int_to_ptr.vmem [resolvable:$true] %s35_s17 }
   0x4   :  { %s4996_s22 = smov 8   ;;  %s4997_s23 = smov [#allocation7]  }
   0x5   :  { %41 = dma.hbm_to_vmem [thread:$0]  %s34_s15, 256, %s36_s17, [#allocation5], %s4995_s21, %s4995_s21, %s4996_s22  }
   0x6   :  { %s65_s24 = sshll.u32 %s4997_s23, 4  ;;  %s23_s27 = sshll.u32 %s6639_s0, 4  ;;  %s66_s24 = int_to_ptr.vmem [resolvable:$true] %s65_s24  ;;  %s24_s27 = int_to_ptr.hbm [resolvable:$true] %s23_s27 }
   0x7   :  { %71 = dma.hbm_to_vmem [thread:$0]  %s64_s20, 256, %s66_s24, [#allocation8], %s4995_s21, %s4995_s21, %s4996_s22  }
   0x8   :  { %s46_s29 = sshll.u32 %s6641_s2, 4  ;;  %s4998_s30 = smov [#allocation2]   ;;  %s47_s29 = int_to_ptr.hbm [resolvable:$true] %s46_s29 }
   0x9   :  { %s25_s11 = sshll.u32 %s4998_s30, 4  ;;  %s4999_s5 = smov [#allocation6]   ;;  %s26_s11 = int_to_ptr.vmem [resolvable:$true] %s25_s11 }
   0xa   :  { %28 = dma.hbm_to_vmem [thread:$0]  %s24_s27, 128, %s26_s11, [#allocation3]  }
   0xb   :  { %s48_s12 = sshll.u32 %s4999_s5, 4  ;;  %s76_s15 = sshll.u32 %s6645_s6, 4  ;;  %s49_s12 = int_to_ptr.vmem [resolvable:$true] %s48_s12  ;;  %s77_s15 = int_to_ptr.hbm [resolvable:$true] %s76_s15 }
   0xc   :  { %54 = dma.hbm_to_vmem [thread:$0]  %s47_s29, 512, %s49_s12, [#allocation5], %s4995_s21, %s4995_s21, %s4996_s22  }
   0xd   :  { %s5000_s0 = smov [#allocation9]  }
   0xe   :  { %s78_s16 = sshll.u32 %s5000_s0, 4  ;;  %s79_s16 = int_to_ptr.vmem [resolvable:$true] %s78_s16 }
   0xf   :  { %84 = dma.hbm_to_vmem [thread:$0]  %s77_s15, 512, %s79_s16, [#allocation8], %s4995_s21, %s4995_s21, %s4996_s22  }
  0x10   :  { %4988 = dma.done.wait [#allocation3], 128  }
  0x11   :  { %4989 = vsyncadd [#allocation3], 4294967168 }
  0x12   :  { %4990 = dma.done.wait [#allocation5], 768  }
  0x13   :  { %4991 = vsyncadd [#allocation5], 4294966528 }
  0x14   :  { %4992 = dma.done.wait [#allocation8], 768  }
  0x15   :  { %4993 = vsyncadd [#allocation8], 4294966528  ;;  %v114_v0 = vld [vmem:[#allocation4 + $0x8] sm:$0xff]  ;;  %v113_v2 = vld [vmem:[#allocation4] sm:$0xff]  ;;  %vm119_vm0 = vcmask 130048   ;;  %v6650_v7 = vmov 0.0  }
  0x16   :  { %v150_v1 = vld [vmem:[#allocation6 + $0x18] sm:$0xff]  ;;  %137 = vmatpush.msra.mxu0 %v114_v0  ;;  %v149_v3 = vld [vmem:[#allocation6 + $0x10] sm:$0xff]  ;;  %v112_v4 = vld [vmem:[#allocation2] sm:$0xff]  ;;  %s5002_s17 = smov 64   ;;  %vm151_vm5 = vcmask 261120   ;;  %s5004_s23 = smov 16  }
  0x17   :  { %167 = vmatpush.msra.mxu1 %v150_v1  ;;  %v148_v5 = vld [vmem:[#allocation6 + $0x8] sm:$0xff]  ;;  %232 = vmatpush.msra.mxu2 %v150_v1  ;;  %v147_v6 = vld [vmem:[#allocation6] sm:$0xff]  ;;  %s5005_s24 = smov 112   ;;  %s5006_s25 = smov 48  }
  0x18   :  { %304 = vmatpush.msra.mxu3 %v150_v1  ;;  %138 = vmatpush.msra.mxu0 %v113_v2  ;;  %v5081_v8 = vld [vmem:[%s6643_s4] sm:$0x1] }
  0x19   :  { %168 = vmatpush.msra.mxu1 %v149_v3  ;;  %4341 = vmatmul.msk.f32.vlgmr.msra.gmra.mxu0 %vm119_vm0, %v112_v4  ;;  %v4489_v11 = vld [vmem:[%s6642_s3] ss:$0 sm:$0xff]  ;;  %s5003_s3 = smov 96  }
  0x1a   :  { %233 = vmatpush.msra.mxu2 %v149_v3  ;;  %305 = vmatpush.msra.mxu3 %v149_v3  ;;  %v4490_v14 = vld [vmem:[%s6643_s4] ss:$0 sm:$0xff] }
  0x1b   :  { %169 = vmatpush.msra.mxu1 %v148_v5  ;;  %376 = vmatpush.msrb.mxu0 %v150_v1 }
  0x1c   :  { %234 = vmatpush.msra.mxu2 %v148_v5  ;;  %306 = vmatpush.msra.mxu3 %v148_v5 }
  0x1d   :  { %170 = vmatpush.msra.mxu1 %v147_v6  ;;  %377 = vmatpush.msrb.mxu0 %v149_v3 }
  0x1e   :  { %171 = vmatmul.f32.vlgmr.msra.gmra.mxu1 %v6650_v7  ;;  %235 = vmatpush.msra.mxu2 %v147_v6 }
  0x1f   :  { %307 = vmatpush.msra.mxu3 %v147_v6  ;;  %448 = vmatpush.msrb.mxu1 %v150_v1 }
  0x20   :  { %520 = vmatpush.msrb.mxu2 %v150_v1  ;;  %378 = vmatpush.msrb.mxu0 %v148_v5 }
  0x21   :  { %592 = vmatpush.msrb.mxu3 %v150_v1  ;;  %449 = vmatpush.msrb.mxu1 %v149_v3 }
  0x22   :  { %521 = vmatpush.msrb.mxu2 %v149_v3  ;;  %379 = vmatpush.msrb.mxu0 %v147_v6 }
  0x23   :  { %593 = vmatpush.msrb.mxu3 %v149_v3  ;;  %450 = vmatpush.msrb.mxu1 %v148_v5 }
  0x24   :  { %522 = vmatpush.msrb.mxu2 %v148_v5  ;;  %664 = vmatpush.msra.mxu0 %v150_v1 }
  0x25   :  { %594 = vmatpush.msrb.mxu3 %v148_v5  ;;  %451 = vmatpush.msrb.mxu1 %v147_v6 }
  0x26   :  { %523 = vmatpush.msrb.mxu2 %v147_v6  ;;  %665 = vmatpush.msra.mxu0 %v149_v3 }
  0x27   :  { %595 = vmatpush.msrb.mxu3 %v147_v6 }
  0x28   :  { %666 = vmatpush.msra.mxu0 %v148_v5 }
  0x2a   :  { %667 = vmatpush.msra.mxu0 %v147_v6 }
  0x96   :  { %v140_v12 = vpop.f32.mrf.mxu0 }
  0x97   :  { %v5088_v13 = vadd.f32 %v4489_v11, %v140_v12 }
  0x99   :  { %v5094_v15 = vadd.f32 %v4490_v14, %v5088_v13 }
  0x9b   :  { %v172_v9 = vpop.f32.mrf.mxu1 }
  0x9c   :  { %v195_v10 = vadd.f32 %v172_v9, %v5081_v8  ;;  %v175_v16 = vadd.f32 %v172_v9, %v5094_v15 }
  0x9e   :  { %197 = vrot.lane.b32.xlu0 %v195_v10, %s5002_s17  ;;  %v4342_v17 = vmul.f32 -1.442695, %v175_v16 }
  0xa0   :  { %4492 = vpow2.f32 %v4342_v17 }
  0xa6   :  { %v4493_v18 = vpop.eup %4492 }
  0xa7   :  { %v179_v19 = vadd.f32 1.0, %v4493_v18 }
  0xa9   :  { %4494 = vrcp.f32 %v179_v19  ;;  %v191_v25 = vand.u32 2147483648, %v179_v19  ;;  %vm185_vm2 = vweird.f32 %v179_v19  ;;  %v189_v26 = vand.u32 2147483647, %v179_v19 }
  0xab   :  { %v192_v28 = vor.u32 1.1754944e-38, %v191_v25  ;;  %vm190_vm4 = vcmp.eq.f32.partialorder %v189_v26, 8.507059e+37 }
  0xaf   :  { %v4495_v20 = vpop.eup %4494 }
  0xb0   :  { %v181_v21 = vmul.f32 %v4495_v20, %v179_v19  ;;  %vm186_vm1 = vweird.f32 %v4495_v20 }
  0xb1   :  { %vm187_vm3 = vmor %vm185_vm2, %vm186_vm1 }
  0xb2   :  { %v182_v22 = vsub.f32 1.0, %v181_v21 }
  0xb4   :  { %v183_v23 = vmul.f32 %v4495_v20, %v182_v22 }
  0xb6   :  { %v184_v24 = vadd.f32 %v4495_v20, %v183_v23 }
  0xb8   :  { %v188_v27 = vsel %vm187_vm3, %v4495_v20, %v184_v24 }
  0xb9   :  { %v193_v30 = vsel %vm190_vm4, %v192_v28, %v188_v27 }
  0xba   :  { %v207_v35 = vsub.f32 1.0, %v193_v30  ;;  %v213_v37 = vmul.f32 0.0, %v193_v30 }
 0x110   :  { %v198_v29 = vpop.permute.xlu0 %197 }
 0x111   :  { %v200_v31 = vmul.f32 %v198_v29, %v193_v30 }
 0x113   :  { %202 = vrot.lane.b32.xlu0 %v200_v31, %s5002_s17 }
 0x185   :  { %v203_v32 = vpop.permute.xlu0 %202 }
 0x186   :  { %v205_v33 = vadd.f32 %v203_v32, %v5088_v13 }
 0x188   :  { %4496 = vtanh.f32 %v205_v33 }
 0x18e   :  { %v4497_v34 = vpop.eup %4496 }
 0x18f   :  { %209 = vrot.lane.b32.xlu1 %v4497_v34, %s5003_s3 }
 0x201   :  { %v210_v36 = vpop.permute.xlu1 %209 }
 0x202   :  { %v212_v38 = vmul.f32 %v210_v36, %v207_v35 }
 0x204   :  { %v214_v39 = vadd.f32 %v213_v37, %v212_v38 }
 0x206   :  { %216 = vrot.lane.b32.xlu1 %v214_v39, %s5003_s3  ;;  %v282_v57 = vrot.slane %v214_v39, 7 }
 0x278   :  { %v217_v40 = vpop.permute.xlu1 %216 }
 0x279   :  { %4343 = vmatmul.msk.f32.vlgmr.msra.gmra.mxu2 %vm151_vm5, %v217_v40 }
 0x2fc   :  { %v237_v41 = vpop.f32.mrf.mxu2 }
 0x2fd   :  { %v241_v42 = vrot.slane %v237_v41, 7  ;;  %v263_v43 = vadd.f32 %v237_v41, %v5081_v8 }
 0x2ff   :  { %v243_v44 = vadd.f32 %v241_v42, %v5094_v15  ;;  %v265_v45 = vrot.slane %v263_v43, 7 }
 0x301   :  { %v4344_v46 = vmul.f32 -1.442695, %v243_v44  ;;  %266 = vrot.lane.b32.xlu2 %v265_v45, %s5002_s17 }
 0x303   :  { %4498 = vpow2.f32 %v4344_v46 }
 0x309   :  { %v4499_v47 = vpop.eup %4498 }
 0x30a   :  { %v247_v48 = vadd.f32 1.0, %v4499_v47 }
 0x30c   :  { %4500 = vrcp.f32 %v247_v48  ;;  %v259_v52 = vand.u32 2147483648, %v247_v48  ;;  %v257_v54 = vand.u32 2147483647, %v247_v48  ;;  %vm253_vm7 = vweird.f32 %v247_v48 }
 0x30e   :  { %v260_v56 = vor.u32 1.1754944e-38, %v259_v52  ;;  %vm258_vm9 = vcmp.eq.f32.partialorder %v257_v54, 8.507059e+37 }
 0x312   :  { %v4501_v49 = vpop.eup %4500 }
 0x313   :  { %v249_v50 = vmul.f32 %v4501_v49, %v247_v48  ;;  %vm254_vm6 = vweird.f32 %v4501_v49 }
 0x314   :  { %vm255_vm8 = vmor %vm253_vm7, %vm254_vm6 }
 0x315   :  { %v250_v51 = vsub.f32 1.0, %v249_v50 }
 0x317   :  { %v251_v53 = vmul.f32 %v4501_v49, %v250_v51 }
 0x319   :  { %v252_v55 = vadd.f32 %v4501_v49, %v251_v53 }
 0x31b   :  { %v256_v58 = vsel %vm255_vm8, %v4501_v49, %v252_v55 }
 0x31c   :  { %v261_v59 = vsel %vm258_vm9, %v260_v56, %v256_v58 }
 0x31d   :  { %v284_v60 = vmul.f32 %v282_v57, %v261_v59  ;;  %v276_v2 = vsub.f32 1.0, %v261_v59 }
 0x35b   :  { %v267_v61 = vpop.permute.xlu2 %266 }
 0x35c   :  { %v269_v62 = vmul.f32 %v267_v61, %v261_v59 }
 0x35e   :  { %271 = vrot.lane.b32.xlu2 %v269_v62, %s5002_s17 }
 0x3b8   :  { %v272_v63 = vpop.permute.xlu2 %271 }
 0x3b9   :  { %v274_v0 = vadd.f32 %v272_v63, %v5088_v13 }
 0x3bb   :  { %4502 = vtanh.f32 %v274_v0 }
 0x3c1   :  { %v4503_v1 = vpop.eup %4502 }
 0x3c2   :  { %278 = vrot.lane.b32.xlu0 %v4503_v1, %s5003_s3 }
 0x434   :  { %v279_v3 = vpop.permute.xlu0 %278 }
 0x435   :  { %v281_v4 = vmul.f32 %v279_v3, %v276_v2 }
 0x437   :  { %v285_v5 = vadd.f32 %v284_v60, %v281_v4 }
 0x439   :  { %v287_v6 = vrot.slane %v285_v5, 1  ;;  %v354_v28 = vrot.slane %v285_v5, 7 }
 0x43b   :  { %288 = vrot.lane.b32.xlu1 %v287_v6, %s5003_s3 }
 0x4ad   :  { %v289_v9 = vpop.permute.xlu1 %288 }
 0x4ae   :  { %4345 = vmatmul.msk.f32.vlgmr.msra.gmra.mxu3 %vm151_vm5, %v289_v9 }
 0x531   :  { %v309_v10 = vpop.f32.mrf.mxu3 }
 0x532   :  { %v313_v11 = vrot.slane %v309_v10, 6  ;;  %v335_v12 = vadd.f32 %v309_v10, %v5081_v8 }
 0x534   :  { %v315_v14 = vadd.f32 %v313_v11, %v5094_v15  ;;  %v337_v16 = vrot.slane %v335_v12, 6 }
 0x536   :  { %v4346_v17 = vmul.f32 -1.442695, %v315_v14  ;;  %338 = vrot.lane.b32.xlu2 %v337_v16, %s5002_s17 }
 0x538   :  { %4504 = vpow2.f32 %v4346_v17 }
 0x53e   :  { %v4505_v18 = vpop.eup %4504 }
 0x53f   :  { %v319_v19 = vadd.f32 1.0, %v4505_v18 }
 0x541   :  { %4506 = vrcp.f32 %v319_v19  ;;  %v331_v23 = vand.u32 2147483648, %v319_v19  ;;  %v329_v25 = vand.u32 2147483647, %v319_v19  ;;  %vm325_vm11 = vweird.f32 %v319_v19 }
 0x543   :  { %v332_v27 = vor.u32 1.1754944e-38, %v331_v23  ;;  %vm330_vm13 = vcmp.eq.f32.partialorder %v329_v25, 8.507059e+37 }
 0x547   :  { %v4507_v20 = vpop.eup %4506 }
 0x548   :  { %v321_v21 = vmul.f32 %v4507_v20, %v319_v19  ;;  %vm326_vm10 = vweird.f32 %v4507_v20 }
 0x549   :  { %vm327_vm12 = vmor %vm325_vm11, %vm326_vm10 }
 0x54a   :  { %v322_v22 = vsub.f32 1.0, %v321_v21 }
 0x54c   :  { %v323_v24 = vmul.f32 %v4507_v20, %v322_v22 }
 0x54e   :  { %v324_v26 = vadd.f32 %v4507_v20, %v323_v24 }
 0x550   :  { %v328_v29 = vsel %vm327_vm12, %v4507_v20, %v324_v26 }
 0x551   :  { %v333_v30 = vsel %vm330_vm13, %v332_v27, %v328_v29 }
 0x552   :  { %v356_v31 = vmul.f32 %v354_v28, %v333_v30  ;;  %v348_v37 = vsub.f32 1.0, %v333_v30 }
 0x590   :  { %v339_v32 = vpop.permute.xlu2 %338 }
 0x591   :  { %v341_v33 = vmul.f32 %v339_v32, %v333_v30 }
 0x593   :  { %343 = vrot.lane.b32.xlu0 %v341_v33, %s5002_s17 }
 0x605   :  { %v344_v34 = vpop.permute.xlu0 %343 }
 0x606   :  { %v346_v35 = vadd.f32 %v344_v34, %v5088_v13 }
 0x608   :  { %4508 = vtanh.f32 %v346_v35 }
 0x60e   :  { %v4509_v36 = vpop.eup %4508 }
 0x60f   :  { %350 = vrot.lane.b32.xlu1 %v4509_v36, %s5003_s3 }
 0x681   :  { %v351_v38 = vpop.permute.xlu1 %350 }
 0x682   :  { %v353_v39 = vmul.f32 %v351_v38, %v348_v37 }
 0x684   :  { %v357_v40 = vadd.f32 %v356_v31, %v353_v39 }
 0x686   :  { %v359_v41 = vrot.slane %v357_v40, 2  ;;  %v426_v2 = vrot.slane %v357_v40, 7 }
 0x688   :  { %360 = vrot.lane.b32.xlu2 %v359_v41, %s5003_s3 }
 0x6e2   :  { %v361_v42 = vpop.permute.xlu2 %360 }
 0x6e3   :  { %4347 = vmatmul.msk.f32.vlgmr.msrb.gmra.mxu0 %vm151_vm5, %v361_v42 }
 0x760   :  { %v381_v43 = vpop.f32.mrf.mxu0 }
 0x761   :  { %v407_v44 = vadd.f32 %v381_v43, %v5081_v8  ;;  %v385_v46 = vrot.slane %v381_v43, 5 }
 0x763   :  { %v409_v45 = vrot.slane %v407_v44, 5  ;;  %v387_v47 = vadd.f32 %v385_v46, %v5094_v15 }
 0x765   :  { %410 = vrot.lane.b32.xlu0 %v409_v45, %s5002_s17  ;;  %v4348_v48 = vmul.f32 -1.442695, %v387_v47 }
 0x767   :  { %4510 = vpow2.f32 %v4348_v48 }
 0x76d   :  { %v4511_v49 = vpop.eup %4510 }
 0x76e   :  { %v391_v50 = vadd.f32 1.0, %v4511_v49 }
 0x770   :  { %4512 = vrcp.f32 %v391_v50  ;;  %v403_v56 = vand.u32 2147483648, %v391_v50  ;;  %vm397_vm15 = vweird.f32 %v391_v50  ;;  %v401_v57 = vand.u32 2147483647, %v391_v50 }
 0x772   :  { %v404_v59 = vor.u32 1.1754944e-38, %v403_v56  ;;  %vm402_vm1 = vcmp.eq.f32.partialorder %v401_v57, 8.507059e+37 }
 0x776   :  { %v4513_v51 = vpop.eup %4512 }
 0x777   :  { %v393_v52 = vmul.f32 %v4513_v51, %v391_v50  ;;  %vm398_vm14 = vweird.f32 %v4513_v51 }
 0x778   :  { %vm399_vm0 = vmor %vm397_vm15, %vm398_vm14 }
 0x779   :  { %v394_v53 = vsub.f32 1.0, %v393_v52 }
 0x77b   :  { %v395_v54 = vmul.f32 %v4513_v51, %v394_v53 }
 0x77d   :  { %v396_v55 = vadd.f32 %v4513_v51, %v395_v54 }
 0x77f   :  { %v400_v58 = vsel %vm399_vm0, %v4513_v51, %v396_v55 }
 0x780   :  { %v405_v61 = vsel %vm402_vm1, %v404_v59, %v400_v58 }
 0x781   :  { %v420_v3 = vsub.f32 1.0, %v405_v61  ;;  %v428_v5 = vmul.f32 %v426_v2, %v405_v61 }
 0x7d7   :  { %v411_v60 = vpop.permute.xlu0 %410 }
 0x7d8   :  { %v413_v62 = vmul.f32 %v411_v60, %v405_v61 }
 0x7da   :  { %415 = vrot.lane.b32.xlu1 %v413_v62, %s5002_s17 }
 0x84c   :  { %v416_v63 = vpop.permute.xlu1 %415 }
 0x84d   :  { %v418_v0 = vadd.f32 %v416_v63, %v5088_v13 }
 0x84f   :  { %4514 = vtanh.f32 %v418_v0 }
 0x855   :  { %v4515_v1 = vpop.eup %4514 }
 0x856   :  { %422 = vrot.lane.b32.xlu2 %v4515_v1, %s5003_s3 }
 0x8b0   :  { %v423_v4 = vpop.permute.xlu2 %422 }
 0x8b1   :  { %v425_v6 = vmul.f32 %v423_v4, %v420_v3 }
 0x8b3   :  { %v429_v9 = vadd.f32 %v428_v5, %v425_v6 }
 0x8b5   :  { %v431_v10 = vrot.slane %v429_v9, 3  ;;  %v498_v37 = vrot.slane %v429_v9, 7 }
 0x8b7   :  { %432 = vrot.lane.b32.xlu0 %v431_v10, %s5003_s3 }
 0x929   :  { %v433_v11 = vpop.permute.xlu0 %432 }
 0x92a   :  { %4349 = vmatmul.msk.f32.vlgmr.msrb.gmra.mxu1 %vm151_vm5, %v433_v11 }
 0x9a7   :  { %v453_v12 = vpop.f32.mrf.mxu1 }
 0x9a8   :  { %v479_v14 = vadd.f32 %v453_v12, %v5081_v8  ;;  %v457_v17 = vrot.slane %v453_v12, 4 }
 0x9aa   :  { %v481_v16 = vrot.slane %v479_v14, 4  ;;  %v459_v18 = vadd.f32 %v457_v17, %v5094_v15 }
 0x9ac   :  { %482 = vrot.lane.b32.xlu1 %v481_v16, %s5002_s17  ;;  %v4350_v19 = vmul.f32 -1.442695, %v459_v18 }
 0x9ae   :  { %4516 = vpow2.f32 %v4350_v19 }
 0x9b4   :  { %v4517_v20 = vpop.eup %4516 }
 0x9b5   :  { %v463_v21 = vadd.f32 1.0, %v4517_v20 }
 0x9b7   :  { %4518 = vrcp.f32 %v463_v21  ;;  %v475_v27 = vand.u32 2147483648, %v463_v21  ;;  %vm469_vm3 = vweird.f32 %v463_v21  ;;  %v473_v28 = vand.u32 2147483647, %v463_v21 }
 0x9b9   :  { %v476_v30 = vor.u32 1.1754944e-38, %v475_v27  ;;  %vm474_vm6 = vcmp.eq.f32.partialorder %v473_v28, 8.507059e+37 }
 0x9bd   :  { %v4519_v22 = vpop.eup %4518 }
 0x9be   :  { %v465_v23 = vmul.f32 %v4519_v22, %v463_v21  ;;  %vm470_vm2 = vweird.f32 %v4519_v22 }
 0x9bf   :  { %vm471_vm4 = vmor %vm469_vm3, %vm470_vm2 }
 0x9c0   :  { %v466_v24 = vsub.f32 1.0, %v465_v23 }
 0x9c2   :  { %v467_v25 = vmul.f32 %v4519_v22, %v466_v24 }
 0x9c4   :  { %v468_v26 = vadd.f32 %v4519_v22, %v467_v25 }
 0x9c6   :  { %v472_v29 = vsel %vm471_vm4, %v4519_v22, %v468_v26 }
 0x9c7   :  { %v477_v32 = vsel %vm474_vm6, %v476_v30, %v472_v29 }
 0x9c8   :  { %v492_v38 = vsub.f32 1.0, %v477_v32  ;;  %v500_v40 = vmul.f32 %v498_v37, %v477_v32 }
 0xa1e   :  { %v483_v31 = vpop.permute.xlu1 %482 }
 0xa1f   :  { %v485_v33 = vmul.f32 %v483_v31, %v477_v32 }
 0xa21   :  { %487 = vrot.lane.b32.xlu2 %v485_v33, %s5002_s17 }
 0xa7b   :  { %v488_v34 = vpop.permute.xlu2 %487 }
 0xa7c   :  { %v490_v35 = vadd.f32 %v488_v34, %v5088_v13 }
 0xa7e   :  { %4520 = vtanh.f32 %v490_v35 }
 0xa84   :  { %v4521_v36 = vpop.eup %4520 }
 0xa85   :  { %494 = vrot.lane.b32.xlu0 %v4521_v36, %s5003_s3 }
 0xaf7   :  { %v495_v39 = vpop.permute.xlu0 %494 }
 0xaf8   :  { %v497_v41 = vmul.f32 %v495_v39, %v492_v38 }
 0xafa   :  { %v501_v42 = vadd.f32 %v500_v40, %v497_v41 }
 0xafc   :  { %v503_v43 = vrot.slane %v501_v42, 4  ;;  %v570_v61 = vrot.slane %v501_v42, 7 }
 0xafe   :  { %504 = vrot.lane.b32.xlu1 %v503_v43, %s5003_s3 }
 0xb70   :  { %v505_v44 = vpop.permute.xlu1 %504 }
 0xb71   :  { %4351 = vmatmul.msk.f32.vlgmr.msrb.gmra.mxu2 %vm151_vm5, %v505_v44 }
 0xbf4   :  { %v525_v45 = vpop.f32.mrf.mxu2 }
 0xbf5   :  { %v529_v46 = vrot.slane %v525_v45, 3  ;;  %v551_v47 = vadd.f32 %v525_v45, %v5081_v8 }
 0xbf7   :  { %v531_v48 = vadd.f32 %v529_v46, %v5094_v15  ;;  %v553_v49 = vrot.slane %v551_v47, 3 }
 0xbf9   :  { %v4352_v50 = vmul.f32 -1.442695, %v531_v48  ;;  %554 = vrot.lane.b32.xlu2 %v553_v49, %s5002_s17 }
 0xbfb   :  { %4522 = vpow2.f32 %v4352_v50 }
 0xc01   :  { %v4523_v51 = vpop.eup %4522 }
 0xc02   :  { %v535_v52 = vadd.f32 1.0, %v4523_v51 }
 0xc04   :  { %4524 = vrcp.f32 %v535_v52  ;;  %v547_v56 = vand.u32 2147483648, %v535_v52  ;;  %v545_v58 = vand.u32 2147483647, %v535_v52  ;;  %vm541_vm8 = vweird.f32 %v535_v52 }
 0xc06   :  { %v548_v60 = vor.u32 1.1754944e-38, %v547_v56  ;;  %vm546_vm10 = vcmp.eq.f32.partialorder %v545_v58, 8.507059e+37 }
 0xc0a   :  { %v4525_v53 = vpop.eup %4524 }
 0xc0b   :  { %v537_v54 = vmul.f32 %v4525_v53, %v535_v52  ;;  %vm542_vm7 = vweird.f32 %v4525_v53 }
 0xc0c   :  { %vm543_vm9 = vmor %vm541_vm8, %vm542_vm7  ;;  %vm839_vm8 = vcmask 122880  }
 0xc0d   :  { %v538_v55 = vsub.f32 1.0, %v537_v54 }
 0xc0f   :  { %v539_v57 = vmul.f32 %v4525_v53, %v538_v55 }
 0xc11   :  { %v540_v59 = vadd.f32 %v4525_v53, %v539_v57 }
 0xc13   :  { %v544_v62 = vsel %vm543_vm9, %v4525_v53, %v540_v59 }
 0xc14   :  { %v549_v63 = vsel %vm546_vm10, %v548_v60, %v544_v62 }
 0xc15   :  { %v572_v0 = vmul.f32 %v570_v61, %v549_v63  ;;  %v564_v6 = vsub.f32 1.0, %v549_v63 }
 0xc53   :  { %v555_v1 = vpop.permute.xlu2 %554 }
 0xc54   :  { %v557_v2 = vmul.f32 %v555_v1, %v549_v63 }
 0xc56   :  { %559 = vrot.lane.b32.xlu0 %v557_v2, %s5002_s17 }
 0xcc8   :  { %v560_v3 = vpop.permute.xlu0 %559 }
 0xcc9   :  { %v562_v4 = vadd.f32 %v560_v3, %v5088_v13 }
 0xccb   :  { %4526 = vtanh.f32 %v562_v4  ;;  %v5159_v4 = vld [vmem:[#allocation9 + $0x18] sm:$0xff] }
 0xccc   :  { %751 = vmatpush.msra.mxu1 %v5159_v4  ;;  %830 = vmatpush.msra.mxu2 %v5159_v4 }
 0xccd   :  { %952 = vmatpush.msra.mxu3 %v5159_v4  ;;  %1072 = vmatpush.msrb.mxu0 %v5159_v4 }
 0xcd1   :  { %v4527_v5 = vpop.eup %4526 }
 0xcd2   :  { %566 = vrot.lane.b32.xlu1 %v4527_v5, %s5003_s3  ;;  %v5161_v5 = vld [vmem:[#allocation9 + $0x10] sm:$0xff] }
 0xcd3   :  { %752 = vmatpush.msra.mxu1 %v5161_v5  ;;  %831 = vmatpush.msra.mxu2 %v5161_v5 }
 0xcd4   :  { %953 = vmatpush.msra.mxu3 %v5161_v5  ;;  %1073 = vmatpush.msrb.mxu0 %v5161_v5 }
 0xd44   :  { %v567_v9 = vpop.permute.xlu1 %566 }
 0xd45   :  { %v569_v10 = vmul.f32 %v567_v9, %v564_v6  ;;  %v5165_v6 = vld [vmem:[#allocation9 + $0x8] sm:$0xff] }
 0xd46   :  { %753 = vmatpush.msra.mxu1 %v5165_v6  ;;  %832 = vmatpush.msra.mxu2 %v5165_v6 }
 0xd47   :  { %v573_v11 = vadd.f32 %v572_v0, %v569_v10  ;;  %954 = vmatpush.msra.mxu3 %v5165_v6  ;;  %1074 = vmatpush.msrb.mxu0 %v5165_v6 }
 0xd49   :  { %v575_v12 = vrot.slane %v573_v11, 5  ;;  %v642_v39 = vrot.slane %v573_v11, 7 }
 0xd4b   :  { %576 = vrot.lane.b32.xlu2 %v575_v12, %s5003_s3 }
 0xda5   :  { %v577_v14 = vpop.permute.xlu2 %576 }
 0xda6   :  { %4353 = vmatmul.msk.f32.vlgmr.msrb.gmra.mxu3 %vm151_vm5, %v577_v14 }
 0xe29   :  { %v597_v16 = vpop.f32.mrf.mxu3 }
 0xe2a   :  { %v623_v17 = vadd.f32 %v597_v16, %v5081_v8  ;;  %v601_v19 = vrot.slane %v597_v16, 2 }
 0xe2c   :  { %v625_v18 = vrot.slane %v623_v17, 2  ;;  %v603_v20 = vadd.f32 %v601_v19, %v5094_v15 }
 0xe2e   :  { %626 = vrot.lane.b32.xlu0 %v625_v18, %s5002_s17  ;;  %v4354_v21 = vmul.f32 -1.442695, %v603_v20  ;;  %v4491_v18 = vld [vmem:[%s6647_s8] ss:$0 sm:$0xff] }
 0xe30   :  { %4528 = vpow2.f32 %v4354_v21 }
 0xe36   :  { %v4529_v22 = vpop.eup %4528 }
 0xe37   :  { %v607_v23 = vadd.f32 1.0, %v4529_v22 }
 0xe39   :  { %4530 = vrcp.f32 %v607_v23  ;;  %v619_v29 = vand.u32 2147483648, %v607_v23  ;;  %vm613_vm12 = vweird.f32 %v607_v23  ;;  %v617_v30 = vand.u32 2147483647, %v607_v23 }
 0xe3b   :  { %v620_v32 = vor.u32 1.1754944e-38, %v619_v29  ;;  %vm618_vm14 = vcmp.eq.f32.partialorder %v617_v30, 8.507059e+37 }
 0xe3f   :  { %v4531_v24 = vpop.eup %4530 }
 0xe40   :  { %v609_v25 = vmul.f32 %v4531_v24, %v607_v23  ;;  %vm614_vm11 = vweird.f32 %v4531_v24  ;;  %v5217_v23 = vld [vmem:[%s6646_s7] sm:$0x1] }
 0xe41   :  { %vm615_vm13 = vmor %vm613_vm12, %vm614_vm11 }
 0xe42   :  { %v610_v26 = vsub.f32 1.0, %v609_v25 }
 0xe44   :  { %v611_v27 = vmul.f32 %v4531_v24, %v610_v26 }
 0xe46   :  { %v612_v28 = vadd.f32 %v4531_v24, %v611_v27 }
 0xe48   :  { %v616_v31 = vsel %vm615_vm13, %v4531_v24, %v612_v28  ;;  %v725_v24 = vld [vmem:[%s6647_s8] sm:$0x1]  ;;  %vm869_vm13 = vcmask 785408  }
 0xe49   :  { %v621_v34 = vsel %vm618_vm14, %v620_v32, %v616_v31  ;;  %v5223_v25 = vadd.f32 %v725_v24, %v5217_v23 }
 0xe4a   :  { %v636_v40 = vsub.f32 1.0, %v621_v34  ;;  %v644_v42 = vmul.f32 %v642_v39, %v621_v34 }
 0xea0   :  { %v627_v33 = vpop.permute.xlu0 %626 }
 0xea1   :  { %v629_v35 = vmul.f32 %v627_v33, %v621_v34 }
 0xea3   :  { %631 = vrot.lane.b32.xlu1 %v629_v35, %s5002_s17 }
 0xf15   :  { %v632_v36 = vpop.permute.xlu1 %631 }
 0xf16   :  { %v634_v37 = vadd.f32 %v632_v36, %v5088_v13 }
 0xf18   :  { %4532 = vtanh.f32 %v634_v37 }
 0xf1e   :  { %v4533_v38 = vpop.eup %4532 }
 0xf1f   :  { %638 = vrot.lane.b32.xlu2 %v4533_v38, %s5003_s3 }
 0xf79   :  { %v639_v41 = vpop.permute.xlu2 %638 }
 0xf7a   :  { %v641_v43 = vmul.f32 %v639_v41, %v636_v40 }
 0xf7c   :  { %v5148_v44 = vadd.f32 %v644_v42, %v641_v43 }
 0xf7e   :  { %v647_v45 = vrot.slane %v5148_v44, 6  ;;  %v714_v9 = vrot.slane %v5148_v44, 7 }
 0xf80   :  { %648 = vrot.lane.b32.xlu0 %v647_v45, %s5003_s3 }
 0xff2   :  { %v649_v46 = vpop.permute.xlu0 %648 }
 0xff3   :  { %4355 = vmatmul.msk.f32.vlgmr.msra.gmra.mxu0 %vm151_vm5, %v649_v46 }
0x1070   :  { %v669_v47 = vpop.f32.mrf.mxu0 }
0x1071   :  { %v695_v48 = vadd.f32 %v669_v47, %v5081_v8  ;;  %v673_v50 = vrot.slane %v669_v47, 1 }
0x1073   :  { %v697_v49 = vrot.slane %v695_v48, 1  ;;  %v675_v51 = vadd.f32 %v673_v50, %v5094_v15 }
0x1075   :  { %698 = vrot.lane.b32.xlu1 %v697_v49, %s5002_s17  ;;  %v4356_v52 = vmul.f32 -1.442695, %v675_v51 }
0x1077   :  { %4534 = vpow2.f32 %v4356_v52 }
0x107d   :  { %v4535_v53 = vpop.eup %4534 }
0x107e   :  { %v679_v54 = vadd.f32 1.0, %v4535_v53 }
0x1080   :  { %4536 = vrcp.f32 %v679_v54  ;;  %v691_v60 = vand.u32 2147483648, %v679_v54  ;;  %vm685_vm0 = vweird.f32 %v679_v54  ;;  %v689_v8 = vand.u32 2147483647, %v679_v54 }
0x1082   :  { %v692_v62 = vor.u32 1.1754944e-38, %v691_v60  ;;  %vm690_vm2 = vcmp.eq.f32.partialorder %v689_v8, 8.507059e+37 }
0x1086   :  { %v4537_v55 = vpop.eup %4536 }
0x1087   :  { %v681_v56 = vmul.f32 %v4537_v55, %v679_v54  ;;  %vm686_vm15 = vweird.f32 %v4537_v55  ;;  %v5241_v54 = vld [vmem:[%s6648_s9] sm:$0x1] }
0x1088   :  { %vm687_vm1 = vmor %vm685_vm0, %vm686_vm15 }
0x1089   :  { %v682_v57 = vsub.f32 1.0, %v681_v56 }
0x108b   :  { %v683_v58 = vmul.f32 %v4537_v55, %v682_v57 }
0x108d   :  { %v684_v59 = vadd.f32 %v4537_v55, %v683_v58  ;;  %v728_v58 = vlaneseq }
0x108f   :  { %v688_v61 = vsel %vm687_vm1, %v4537_v55, %v684_v59  ;;  %v5249_v59 = vand.u32 127, %v728_v58 }
0x1090   :  { %v693_v15 = vsel %vm690_vm2, %v692_v62, %v688_v61 }
0x1091   :  { %v708_v10 = vsub.f32 1.0, %v693_v15  ;;  %v716_v12 = vmul.f32 %v714_v9, %v693_v15 }
0x10e7   :  { %v699_v63 = vpop.permute.xlu1 %698 }
0x10e8   :  { %v701_v0 = vmul.f32 %v699_v63, %v693_v15 }
0x10ea   :  { %703 = vrot.lane.b32.xlu2 %v701_v0, %s5002_s17 }
0x10f2   :  { %785 = vrot.lane.b32.xlu2 %v4491_v18, %s5004_s23 }
0x1144   :  { %v704_v1 = vpop.permute.xlu2 %703 }
0x1145   :  { %v706_v2 = vadd.f32 %v704_v1, %v5088_v13  ;;  %v5171_v13 = vld [vmem:[#allocation9] sm:$0xff] }
0x1146   :  { %754 = vmatpush.msra.mxu1 %v5171_v13  ;;  %833 = vmatpush.msra.mxu2 %v5171_v13 }
0x1147   :  { %4538 = vtanh.f32 %v706_v2  ;;  %955 = vmatpush.msra.mxu3 %v5171_v13  ;;  %1075 = vmatpush.msrb.mxu0 %v5171_v13 }
0x1148   :  { %1192 = vmatpush.msrb.mxu1 %v5159_v4  ;;  %1312 = vmatpush.msrb.mxu2 %v5159_v4 }
0x1149   :  { %1432 = vmatpush.msrb.mxu3 %v5159_v4  ;;  %1552 = vmatpush.msra.mxu0 %v5159_v4 }
0x114a   :  { %1193 = vmatpush.msrb.mxu1 %v5161_v5  ;;  %1313 = vmatpush.msrb.mxu2 %v5161_v5 }
0x114b   :  { %1433 = vmatpush.msrb.mxu3 %v5161_v5  ;;  %1553 = vmatpush.msra.mxu0 %v5161_v5 }
0x114c   :  { %1194 = vmatpush.msrb.mxu1 %v5165_v6  ;;  %1314 = vmatpush.msrb.mxu2 %v5165_v6  ;;  %v5209_v20 = vpop.permute.xlu2 %785 }
0x114d   :  { %v4539_v3 = vpop.eup %4538  ;;  %1434 = vmatpush.msrb.mxu3 %v5165_v6  ;;  %1554 = vmatpush.msra.mxu0 %v5165_v6 }
0x114e   :  { %710 = vrot.lane.b32.xlu0 %v4539_v3, %s5003_s3  ;;  %1195 = vmatpush.msrb.mxu1 %v5171_v13 }
0x114f   :  { %1315 = vmatpush.msrb.mxu2 %v5171_v13  ;;  %1435 = vmatpush.msrb.mxu3 %v5171_v13 }
0x1150   :  { %1555 = vmatpush.msra.mxu0 %v5171_v13 }
0x11c0   :  { %v711_v11 = vpop.permute.xlu0 %710 }
0x11c1   :  { %v713_v14 = vmul.f32 %v711_v11, %v708_v10  ;;  %v5259_v10 = vshrl.u32 %v728_v58, 7 }
0x11c3   :  { %v717_v16 = vadd.f32 %v716_v12, %v713_v14 }
0x11c5   :  { %806 = vst [vmem:[#allocation1] sm:$0xff] %v717_v16  ;;  %v734_v17 = vrot.slane %v717_v16, 7  ;;  %v5262_v16 = vadd.s32 8, %v5259_v10 }
0x11c7   :  { %735 = vrot.lane.b32.xlu1 %v734_v17, %s5003_s3 }
0x11cc   :  { %v808_v47 = vld [vmem:[#allocation1 + $0x7] ss:$9 sm:$0xff] }
0x1239   :  { %v736_v19 = vpop.permute.xlu1 %735 }
0x123a   :  { %4357 = vmatmul.msk.f32.vlgmr.msra.gmra.mxu1 %vm151_vm5, %v736_v19  ;;  %v5264_v19 = vld [vmem:[#allocation7] sm:$0xff] }
0x123b   :  { %1672 = vmatpush.msra.mxu1 %v5159_v4 }
0x123d   :  { %1673 = vmatpush.msra.mxu1 %v5161_v5 }
0x123f   :  { %1674 = vmatpush.msra.mxu1 %v5165_v6 }
0x1241   :  { %1675 = vmatpush.msra.mxu1 %v5171_v13 }
0x12b7   :  { %v756_v21 = vpop.f32.mrf.mxu1 }
0x12b8   :  { %760 = vrot.lane.b32.xlu0 %v756_v21, %s5005_s24  ;;  %v788_v22 = vadd.f32 %v5209_v20, %v756_v21  ;;  %v5266_v21 = vld [vmem:[#allocation7 + $0x8] sm:$0xff] }
0x12ba   :  { %790 = vrot.lane.b32.xlu1 %v788_v22, %s5006_s25 }
0x132a   :  { %v761_v26 = vpop.permute.xlu0 %760 }
0x132b   :  { %v763_v27 = vadd.f32 %v761_v26, %v5223_v25 }
0x132c   :  { %v791_v41 = vpop.permute.xlu1 %790 }
0x132d   :  { %v4358_v28 = vmul.f32 -1.442695, %v763_v27 }
0x132f   :  { %4540 = vpow2.f32 %v4358_v28 }
0x1335   :  { %v4541_v29 = vpop.eup %4540 }
0x1336   :  { %v767_v30 = vadd.f32 1.0, %v4541_v29 }
0x1338   :  { %4542 = vrcp.f32 %v767_v30  ;;  %v779_v34 = vand.u32 2147483648, %v767_v30  ;;  %v777_v36 = vand.u32 2147483647, %v767_v30  ;;  %vm773_vm4 = vweird.f32 %v767_v30 }
0x133a   :  { %v780_v38 = vor.u32 1.1754944e-38, %v779_v34  ;;  %vm778_vm7 = vcmp.eq.f32.partialorder %v777_v36, 8.507059e+37 }
0x133e   :  { %v4543_v31 = vpop.eup %4542 }
0x133f   :  { %v769_v32 = vmul.f32 %v4543_v31, %v767_v30  ;;  %vm774_vm3 = vweird.f32 %v4543_v31 }
0x1340   :  { %vm775_vm6 = vmor %vm773_vm4, %vm774_vm3 }
0x1341   :  { %v770_v33 = vsub.f32 1.0, %v769_v32 }
0x1343   :  { %v771_v35 = vmul.f32 %v4543_v31, %v770_v33 }
0x1345   :  { %v772_v37 = vadd.f32 %v4543_v31, %v771_v35 }
0x1347   :  { %v776_v39 = vsel %vm775_vm6, %v4543_v31, %v772_v37 }
0x1348   :  { %v781_v40 = vsel %vm778_vm7, %v780_v38, %v776_v39 }
0x1349   :  { %v793_v42 = vmul.f32 %v791_v41, %v781_v40  ;;  %v800_v46 = vsub.f32 1.0, %v781_v40  ;;  %v810_v49 = vmul.f32 %v808_v47, %v781_v40 }
0x134b   :  { %795 = vrot.lane.b32.xlu2 %v793_v42, %s5002_s17 }
0x13a5   :  { %v796_v43 = vpop.permute.xlu2 %795 }
0x13a6   :  { %v798_v44 = vadd.f32 %v796_v43, %v5217_v23 }
0x13a8   :  { %4544 = vtanh.f32 %v798_v44 }
0x13ae   :  { %v4545_v45 = vpop.eup %4544 }
0x13af   :  { %802 = vrot.lane.b32.xlu0 %v4545_v45, %s5003_s3 }
0x1421   :  { %v803_v48 = vpop.permute.xlu0 %802 }
0x1422   :  { %v805_v50 = vmul.f32 %v803_v48, %v800_v46 }
0x1424   :  { %v5229_v51 = vadd.f32 %v810_v49, %v805_v50 }
0x1426   :  { %v813_v52 = vperm.slane %v5229_v51, 0 }
0x1428   :  { %814 = vrot.lane.b32.xlu1 %v813_v52, %s5003_s3 }
0x149a   :  { %v815_v53 = vpop.permute.xlu1 %814 }
0x149b   :  { %4359 = vmatmul.msk.f32.vlgmr.msra.gmra.mxu2 %vm151_vm5, %v815_v53 }
0x149c   :  { %1792 = vmatpush.msra.mxu2 %v5159_v4 }
0x149e   :  { %1793 = vmatpush.msra.mxu2 %v5161_v5 }
0x14a0   :  { %1794 = vmatpush.msra.mxu2 %v5165_v6 }
0x14a2   :  { %1795 = vmatpush.msra.mxu2 %v5171_v13 }
0x151e   :  { %v835_v55 = vpop.f32.mrf.mxu2 }
0x151f   :  { %v5244_v56 = vadd.f32 %v835_v55, %v5241_v54  ;;  %v915_v15 = vadd.f32 %v835_v55, %v5209_v20 }
0x1521   :  { %v840_v57 = vsel %vm839_vm8, %v5244_v56, -inf }
0x1522   :  { %841 = vmax.xlane.f32.xlu2 %v840_v57 }
0x153a   :  { %892 = vrot.lane.b32.xlu2 %v835_v55, %s5005_s24 }
0x1595   :  { %v5251_v60 = vpop.xlane.xlu2 %841 }
0x1596   :  { %vm843_vm9 = vcmp.ge.f32.partialorder %v5244_v56, %v5251_v60 }
0x1597   :  { %v844_v8 = vsel %vm843_vm9, %v5249_v59, 16 }
0x1598   :  { %v845_v61 = vsel %vm839_vm8, %v844_v8, 2147483647 }
0x1599   :  { %v847_v62 = vshra.s32 %v845_v61, 16  ;;  %v846_v0 = vand.u32 65535, %v845_v61 }
0x159b   :  { %v849_v63 = vcvt.s32.f32 %v847_v62  ;;  %v848_v2 = vcvt.s32.f32 %v846_v0 }
0x159d   :  { %850 = vmin.xlane.f32.xlu0 %v849_v63  ;;  %v893_v38 = vpop.permute.xlu2 %892 }
0x15b1   :  { %917 = vrot.lane.b32.xlu0 %v915_v15, %s5006_s25 }
0x1610   :  { %v851_v1 = vpop.xlane.xlu0 %850 }
0x1611   :  { %vm852_vm10 = vcmp.eq.f32.partialorder %v849_v63, %v851_v1  ;;  %v857_v9 = vcvt.f32.s32 %v851_v1 }
0x1612   :  { %v853_v3 = vsel %vm852_vm10, %v848_v2, inf }
0x1613   :  { %854 = vmin.xlane.f32.xlu1 %v853_v3  ;;  %v858_v12 = vshll.u32 %v857_v9, 16 }
0x1623   :  { %v918_v53 = vpop.permute.xlu0 %917 }
0x1686   :  { %v855_v11 = vpop.xlane.xlu1 %854 }
0x1687   :  { %v856_v14 = vcvt.f32.s32 %v855_v11 }
0x1689   :  { %v859_v17 = vadd.s32 %v858_v12, %v856_v14 }
0x168b   :  { %v860_v18 = vperm.slane %v859_v17, 0 }
0x168d   :  { %vm861_vm11 = vcmp.eq.s32.totalorder %v5259_v10, %v860_v18  ;;  %vm862_vm12 = vcmp.eq.s32.totalorder %v5262_v16, %v860_v18 }
0x168e   :  { %v4360_v22 = vsel %vm861_vm11, 1.0, %v6650_v7  ;;  %v4361_v24 = vsel %vm862_vm12, 1.0, %v6650_v7 }
0x168f   :  { %v867_v26 = vmul.f32 %v4360_v22, %v5264_v19  ;;  %v868_v27 = vmul.f32 %v4361_v24, %v5266_v21 }
0x1691   :  { %v870_v28 = vsel %vm869_vm13, %v867_v26, 0.0  ;;  %v871_v29 = vsel %vm869_vm13, %v868_v27, 0.0 }
0x1692   :  { %v872_v30 = vadd.f32 %v871_v29, %v870_v28 }
0x1694   :  { %v873_v31 = vrot.slane %v872_v30, 4 }
0x1696   :  { %v874_v32 = vadd.f32 %v873_v31, %v872_v30 }
0x1698   :  { %v875_v33 = vrot.slane %v874_v32, 2 }
0x169a   :  { %v876_v34 = vadd.f32 %v875_v33, %v874_v32 }
0x169c   :  { %v877_v35 = vrot.slane %v876_v34, 1 }
0x169e   :  { %v878_v36 = vadd.f32 %v877_v35, %v876_v34 }
0x16a0   :  { %v879_v37 = vadd.f32 %v878_v36, %v5223_v25  ;;  %v880_v58 = vadd.f32 %v878_v36, %v5217_v23 }
0x16a2   :  { %v895_v39 = vadd.f32 %v893_v38, %v879_v37 }
0x16a4   :  { %v4362_v40 = vmul.f32 -1.442695, %v895_v39 }
0x16a6   :  { %4546 = vpow2.f32 %v4362_v40 }
0x16ac   :  { %v4547_v41 = vpop.eup %4546 }
0x16ad   :  { %v899_v42 = vadd.f32 1.0, %v4547_v41 }
0x16af   :  { %4548 = vrcp.f32 %v899_v42  ;;  %v911_v46 = vand.u32 2147483648, %v899_v42  ;;  %v909_v48 = vand.u32 2147483647, %v899_v42  ;;  %vm905_vm15 = vweird.f32 %v899_v42 }
0x16b1   :  { %v912_v50 = vor.u32 1.1754944e-38, %v911_v46  ;;  %vm910_vm1 = vcmp.eq.f32.partialorder %v909_v48, 8.507059e+37 }
0x16b5   :  { %v4549_v43 = vpop.eup %4548 }
0x16b6   :  { %v901_v44 = vmul.f32 %v4549_v43, %v899_v42  ;;  %vm906_vm14 = vweird.f32 %v4549_v43 }
0x16b7   :  { %vm907_vm0 = vmor %vm905_vm15, %vm906_vm14 }
0x16b8   :  { %v902_v45 = vsub.f32 1.0, %v901_v44 }
0x16ba   :  { %v903_v47 = vmul.f32 %v4549_v43, %v902_v45 }
0x16bc   :  { %v904_v49 = vadd.f32 %v4549_v43, %v903_v47 }
0x16be   :  { %v908_v52 = vsel %vm907_vm0, %v4549_v43, %v904_v49 }
0x16bf   :  { %v913_v55 = vsel %vm910_vm1, %v912_v50, %v908_v52 }
0x16c0   :  { %v920_v57 = vmul.f32 %v918_v53, %v913_v55  ;;  %v927_v63 = vsub.f32 1.0, %v913_v55  ;;  %v933_v0 = vmul.f32 %v913_v55, %v5229_v51 }
0x16c2   :  { %922 = vrot.lane.b32.xlu1 %v920_v57, %s5002_s17 }
0x1734   :  { %v923_v8 = vpop.permute.xlu1 %922 }
0x1735   :  { %v925_v61 = vadd.f32 %v923_v8, %v880_v58 }
0x1737   :  { %4550 = vtanh.f32 %v925_v61 }
0x173d   :  { %v4551_v62 = vpop.eup %4550 }
0x173e   :  { %929 = vrot.lane.b32.xlu2 %v4551_v62, %s5003_s3 }
0x1798   :  { %v930_v15 = vpop.permute.xlu2 %929 }
0x1799   :  { %v932_v1 = vmul.f32 %v930_v15, %v927_v63 }
0x179b   :  { %v5281_v2 = vadd.f32 %v933_v0, %v932_v1 }
0x179d   :  { %936 = vrot.lane.b32.xlu0 %v5281_v2, %s5003_s3 }
0x180f   :  { %v937_v3 = vpop.permute.xlu0 %936 }
0x1810   :  { %4363 = vmatmul.msk.f32.vlgmr.msra.gmra.mxu3 %vm151_vm5, %v937_v3 }
0x1811   :  { %1912 = vmatpush.msra.mxu3 %v5159_v4 }
0x1813   :  { %1913 = vmatpush.msra.mxu3 %v5161_v5 }
0x1815   :  { %1914 = vmatpush.msra.mxu3 %v5165_v6 }
0x1817   :  { %1915 = vmatpush.msra.mxu3 %v5171_v13 }
0x1893   :  { %v957_v9 = vpop.f32.mrf.mxu3 }
0x1894   :  { %v5291_v51 = vadd.f32 %v957_v9, %v5241_v54  ;;  %v1035_v24 = vadd.f32 %v957_v9, %v5209_v20 }
0x1896   :  { %v961_v11 = vsel %vm839_vm8, %v5291_v51, -inf }
0x1897   :  { %962 = vmax.xlane.f32.xlu2 %v961_v11 }
0x18af   :  { %1012 = vrot.lane.b32.xlu2 %v957_v9, %s5005_s24 }
0x190a   :  { %v5296_v12 = vpop.xlane.xlu2 %962 }
0x190b   :  { %vm964_vm2 = vcmp.ge.f32.partialorder %v5291_v51, %v5296_v12 }
0x190c   :  { %v965_v14 = vsel %vm964_vm2, %v5249_v59, 16 }
0x190d   :  { %v966_v17 = vsel %vm839_vm8, %v965_v14, 2147483647 }
0x190e   :  { %v968_v18 = vshra.s32 %v966_v17, 16  ;;  %v967_v26 = vand.u32 65535, %v966_v17 }
0x1910   :  { %v970_v22 = vcvt.s32.f32 %v968_v18  ;;  %v969_v28 = vcvt.s32.f32 %v967_v26 }
0x1912   :  { %971 = vmin.xlane.f32.xlu1 %v970_v22  ;;  %v1013_v50 = vpop.permute.xlu2 %1012 }
0x192b   :  { %1037 = vrot.lane.b32.xlu1 %v1035_v24, %s5006_s25 }
0x1985   :  { %v972_v27 = vpop.xlane.xlu1 %971 }
0x1986   :  { %vm973_vm3 = vcmp.eq.f32.partialorder %v970_v22, %v972_v27  ;;  %v978_v30 = vcvt.f32.s32 %v972_v27 }
0x1987   :  { %v974_v29 = vsel %vm973_vm3, %v969_v28, inf }
0x1988   :  { %975 = vmin.xlane.f32.xlu0 %v974_v29  ;;  %v979_v32 = vshll.u32 %v978_v30, 16 }
0x199d   :  { %v1038_v9 = vpop.permute.xlu1 %1037 }
0x19fb   :  { %v976_v31 = vpop.xlane.xlu0 %975 }
0x19fc   :  { %v977_v33 = vcvt.f32.s32 %v976_v31 }
0x19fe   :  { %v980_v34 = vadd.s32 %v979_v32, %v977_v33 }
0x1a00   :  { %v981_v35 = vperm.slane %v980_v34, 0 }
0x1a02   :  { %vm982_vm4 = vcmp.eq.s32.totalorder %v5259_v10, %v981_v35  ;;  %vm983_vm6 = vcmp.eq.s32.totalorder %v5262_v16, %v981_v35 }
0x1a03   :  { %v4364_v36 = vsel %vm982_vm4, 1.0, %v6650_v7  ;;  %v4365_v37 = vsel %vm983_vm6, 1.0, %v6650_v7 }
0x1a04   :  { %v988_v38 = vmul.f32 %v4364_v36, %v5264_v19  ;;  %v989_v39 = vmul.f32 %v4365_v37, %v5266_v21 }
0x1a06   :  { %v990_v40 = vsel %vm869_vm13, %v988_v38, 0.0  ;;  %v991_v41 = vsel %vm869_vm13, %v989_v39, 0.0 }
0x1a07   :  { %v992_v42 = vadd.f32 %v991_v41, %v990_v40 }
0x1a09   :  { %v993_v43 = vrot.slane %v992_v42, 4 }
0x1a0b   :  { %v994_v44 = vadd.f32 %v993_v43, %v992_v42 }
0x1a0d   :  { %v995_v45 = vrot.slane %v994_v44, 2 }
0x1a0f   :  { %v996_v46 = vadd.f32 %v995_v45, %v994_v44 }
0x1a11   :  { %v997_v47 = vrot.slane %v996_v46, 1 }
0x1a13   :  { %v998_v48 = vadd.f32 %v997_v47, %v996_v46 }
0x1a15   :  { %v999_v49 = vadd.f32 %v998_v48, %v5223_v25  ;;  %v1000_v17 = vadd.f32 %v998_v48, %v5217_v23 }
0x1a17   :  { %v1015_v52 = vadd.f32 %v1013_v50, %v999_v49 }
0x1a19   :  { %v4366_v53 = vmul.f32 -1.442695, %v1015_v52 }
0x1a1b   :  { %4552 = vpow2.f32 %v4366_v53 }
0x1a21   :  { %v4553_v55 = vpop.eup %4552 }
0x1a22   :  { %v1019_v57 = vadd.f32 1.0, %v4553_v55 }
0x1a24   :  { %4554 = vrcp.f32 %v1019_v57  ;;  %v1031_v62 = vand.u32 2147483648, %v1019_v57  ;;  %v1029_v15 = vand.u32 2147483647, %v1019_v57  ;;  %vm1025_vm9 = vweird.f32 %v1019_v57 }
0x1a26   :  { %v1032_v1 = vor.u32 1.1754944e-38, %v1031_v62  ;;  %vm1030_vm11 = vcmp.eq.f32.partialorder %v1029_v15, 8.507059e+37 }
0x1a2a   :  { %v4555_v58 = vpop.eup %4554 }
0x1a2b   :  { %v1021_v8 = vmul.f32 %v4555_v58, %v1019_v57  ;;  %vm1026_vm7 = vweird.f32 %v4555_v58 }
0x1a2c   :  { %vm1027_vm10 = vmor %vm1025_vm9, %vm1026_vm7 }
0x1a2d   :  { %v1022_v61 = vsub.f32 1.0, %v1021_v8 }
0x1a2f   :  { %v1023_v63 = vmul.f32 %v4555_v58, %v1022_v61 }
0x1a31   :  { %v1024_v0 = vadd.f32 %v4555_v58, %v1023_v63 }
0x1a33   :  { %v1028_v3 = vsel %vm1027_vm10, %v4555_v58, %v1024_v0 }
0x1a34   :  { %v1033_v11 = vsel %vm1030_vm11, %v1032_v1, %v1028_v3 }
0x1a35   :  { %v1040_v14 = vmul.f32 %v1038_v9, %v1033_v11  ;;  %v1047_v26 = vsub.f32 1.0, %v1033_v11  ;;  %v1053_v28 = vmul.f32 %v1033_v11, %v5281_v2 }
0x1a37   :  { %1042 = vrot.lane.b32.xlu0 %v1040_v14, %s5002_s17 }
0x1aa9   :  { %v1043_v18 = vpop.permute.xlu0 %1042 }
0x1aaa   :  { %v1045_v22 = vadd.f32 %v1043_v18, %v1000_v17 }
0x1aac   :  { %4556 = vtanh.f32 %v1045_v22 }
0x1ab2   :  { %v4557_v24 = vpop.eup %4556 }
0x1ab3   :  { %1049 = vrot.lane.b32.xlu2 %v4557_v24, %s5003_s3 }
0x1b0d   :  { %v1050_v27 = vpop.permute.xlu2 %1049 }
0x1b0e   :  { %v1052_v29 = vmul.f32 %v1050_v27, %v1047_v26 }
0x1b10   :  { %v5317_v30 = vadd.f32 %v1053_v28, %v1052_v29 }
0x1b12   :  { %1056 = vrot.lane.b32.xlu0 %v5317_v30, %s5003_s3 }
0x1b84   :  { %v1057_v31 = vpop.permute.xlu0 %1056 }
0x1b85   :  { %4367 = vmatmul.msk.f32.vlgmr.msrb.gmra.mxu0 %vm151_vm5, %v1057_v31 }
0x1b86   :  { %2032 = vmatpush.msrb.mxu0 %v5159_v4 }
0x1b88   :  { %2033 = vmatpush.msrb.mxu0 %v5161_v5 }
0x1b8a   :  { %2034 = vmatpush.msrb.mxu0 %v5165_v6 }
0x1b8c   :  { %2035 = vmatpush.msrb.mxu0 %v5171_v13 }
0x1c02   :  { %v1077_v32 = vpop.f32.mrf.mxu0 }
0x1c03   :  { %v5327_v2 = vadd.f32 %v1077_v32, %v5241_v54  ;;  %v1155_v39 = vadd.f32 %v1077_v32, %v5209_v20 }
0x1c05   :  { %v1081_v33 = vsel %vm839_vm8, %v5327_v2, -inf }
0x1c06   :  { %1082 = vmax.xlane.f32.xlu1 %v1081_v33 }
0x1c1f   :  { %1132 = vrot.lane.b32.xlu1 %v1077_v32, %s5005_s24 }
0x1c79   :  { %v5332_v34 = vpop.xlane.xlu1 %1082 }
0x1c7a   :  { %vm1084_vm12 = vcmp.ge.f32.partialorder %v5327_v2, %v5332_v34 }
0x1c7b   :  { %v1085_v35 = vsel %vm1084_vm12, %v5249_v59, 16 }
0x1c7c   :  { %v1086_v36 = vsel %vm839_vm8, %v1085_v35, 2147483647 }
0x1c7d   :  { %v1088_v37 = vshra.s32 %v1086_v36, 16  ;;  %v1087_v40 = vand.u32 65535, %v1086_v36 }
0x1c7f   :  { %v1090_v38 = vcvt.s32.f32 %v1088_v37  ;;  %v1089_v42 = vcvt.s32.f32 %v1087_v40 }
0x1c81   :  { %1091 = vmin.xlane.f32.xlu2 %v1090_v38 }
0x1c91   :  { %v1133_v9 = vpop.permute.xlu1 %1132 }
0x1c99   :  { %1157 = vrot.lane.b32.xlu2 %v1155_v39, %s5006_s25 }
0x1cf4   :  { %v1092_v41 = vpop.xlane.xlu2 %1091 }
0x1cf5   :  { %vm1093_vm14 = vcmp.eq.f32.partialorder %v1090_v38, %v1092_v41  ;;  %v1098_v44 = vcvt.f32.s32 %v1092_v41 }
0x1cf6   :  { %v1094_v43 = vsel %vm1093_vm14, %v1089_v42, inf }
0x1cf7   :  { %1095 = vmin.xlane.f32.xlu0 %v1094_v43  ;;  %v1099_v46 = vshll.u32 %v1098_v44, 16 }
0x1cfc   :  { %v1158_v35 = vpop.permute.xlu2 %1157 }
0x1d6a   :  { %v1096_v45 = vpop.xlane.xlu0 %1095 }
0x1d6b   :  { %v1097_v47 = vcvt.f32.s32 %v1096_v45 }
0x1d6d   :  { %v1100_v48 = vadd.s32 %v1099_v46, %v1097_v47 }
0x1d6f   :  { %v1101_v49 = vperm.slane %v1100_v48, 0 }
0x1d71   :  { %vm1102_vm15 = vcmp.eq.s32.totalorder %v5259_v10, %v1101_v49  ;;  %vm1103_vm0 = vcmp.eq.s32.totalorder %v5262_v16, %v1101_v49 }
0x1d72   :  { %v4368_v50 = vsel %vm1102_vm15, 1.0, %v6650_v7  ;;  %v4369_v52 = vsel %vm1103_vm0, 1.0, %v6650_v7 }
0x1d73   :  { %v1108_v53 = vmul.f32 %v4368_v50, %v5264_v19  ;;  %v1109_v55 = vmul.f32 %v4369_v52, %v5266_v21 }
0x1d75   :  { %v1110_v57 = vsel %vm869_vm13, %v1108_v53, 0.0  ;;  %v1111_v58 = vsel %vm869_vm13, %v1109_v55, 0.0 }
0x1d76   :  { %v1112_v8 = vadd.f32 %v1111_v58, %v1110_v57 }
0x1d78   :  { %v1113_v61 = vrot.slane %v1112_v8, 4 }
0x1d7a   :  { %v1114_v62 = vadd.f32 %v1113_v61, %v1112_v8 }
0x1d7c   :  { %v1115_v63 = vrot.slane %v1114_v62, 2 }
0x1d7e   :  { %v1116_v15 = vadd.f32 %v1115_v63, %v1114_v62 }
0x1d80   :  { %v1117_v0 = vrot.slane %v1116_v15, 1 }
0x1d82   :  { %v1118_v1 = vadd.f32 %v1117_v0, %v1116_v15 }
0x1d84   :  { %v1119_v3 = vadd.f32 %v1118_v1, %v5223_v25  ;;  %v1120_v38 = vadd.f32 %v1118_v1, %v5217_v23 }
0x1d86   :  { %v1135_v11 = vadd.f32 %v1133_v9, %v1119_v3 }
0x1d88   :  { %v4370_v14 = vmul.f32 -1.442695, %v1135_v11 }
0x1d8a   :  { %4558 = vpow2.f32 %v4370_v14 }
0x1d90   :  { %v4559_v17 = vpop.eup %4558 }
0x1d91   :  { %v1139_v18 = vadd.f32 1.0, %v4559_v17 }
0x1d93   :  { %4560 = vrcp.f32 %v1139_v18  ;;  %v1151_v27 = vand.u32 2147483648, %v1139_v18  ;;  %v1149_v29 = vand.u32 2147483647, %v1139_v18  ;;  %vm1145_vm2 = vweird.f32 %v1139_v18 }
0x1d95   :  { %v1152_v32 = vor.u32 1.1754944e-38, %v1151_v27  ;;  %vm1150_vm4 = vcmp.eq.f32.partialorder %v1149_v29, 8.507059e+37 }
0x1d99   :  { %v4561_v22 = vpop.eup %4560 }
0x1d9a   :  { %v1141_v24 = vmul.f32 %v4561_v22, %v1139_v18  ;;  %vm1146_vm1 = vweird.f32 %v4561_v22 }
0x1d9b   :  { %vm1147_vm3 = vmor %vm1145_vm2, %vm1146_vm1 }
0x1d9c   :  { %v1142_v26 = vsub.f32 1.0, %v1141_v24 }
0x1d9e   :  { %v1143_v28 = vmul.f32 %v4561_v22, %v1142_v26 }
0x1da0   :  { %v1144_v31 = vadd.f32 %v4561_v22, %v1143_v28 }
0x1da2   :  { %v1148_v33 = vsel %vm1147_vm3, %v4561_v22, %v1144_v31 }
0x1da3   :  { %v1153_v36 = vsel %vm1150_vm4, %v1152_v32, %v1148_v33 }
0x1da4   :  { %v1160_v37 = vmul.f32 %v1158_v35, %v1153_v36  ;;  %v1167_v42 = vsub.f32 1.0, %v1153_v36  ;;  %v1173_v44 = vmul.f32 %v1153_v36, %v5317_v30 }
0x1da6   :  { %1162 = vrot.lane.b32.xlu0 %v1160_v37, %s5002_s17 }
0x1e18   :  { %v1163_v39 = vpop.permute.xlu0 %1162 }
0x1e19   :  { %v1165_v40 = vadd.f32 %v1163_v39, %v1120_v38 }
0x1e1b   :  { %4562 = vtanh.f32 %v1165_v40 }
0x1e21   :  { %v4563_v41 = vpop.eup %4562 }
0x1e22   :  { %1169 = vrot.lane.b32.xlu1 %v4563_v41, %s5003_s3 }
0x1e94   :  { %v1170_v43 = vpop.permute.xlu1 %1169 }
0x1e95   :  { %v1172_v45 = vmul.f32 %v1170_v43, %v1167_v42 }
0x1e97   :  { %v5353_v46 = vadd.f32 %v1173_v44, %v1172_v45 }
0x1e99   :  { %1176 = vrot.lane.b32.xlu0 %v5353_v46, %s5003_s3 }
0x1f0b   :  { %v1177_v47 = vpop.permute.xlu0 %1176 }
0x1f0c   :  { %4371 = vmatmul.msk.f32.vlgmr.msrb.gmra.mxu1 %vm151_vm5, %v1177_v47 }
0x1f0d   :  { %2152 = vmatpush.msrb.mxu1 %v5159_v4 }
0x1f0f   :  { %2153 = vmatpush.msrb.mxu1 %v5161_v5 }
0x1f11   :  { %2154 = vmatpush.msrb.mxu1 %v5165_v6 }
0x1f13   :  { %2155 = vmatpush.msrb.mxu1 %v5171_v13 }
0x1f89   :  { %v1197_v48 = vpop.f32.mrf.mxu1 }
0x1f8a   :  { %v5363_v30 = vadd.f32 %v1197_v48, %v5241_v54  ;;  %v1275_v58 = vadd.f32 %v1197_v48, %v5209_v20 }
0x1f8c   :  { %v1201_v49 = vsel %vm839_vm8, %v5363_v30, -inf }
0x1f8d   :  { %1202 = vmax.xlane.f32.xlu2 %v1201_v49 }
0x1fa5   :  { %1252 = vrot.lane.b32.xlu2 %v1197_v48, %s5005_s24 }
0x2000   :  { %v5368_v50 = vpop.xlane.xlu2 %1202 }
0x2001   :  { %vm1204_vm6 = vcmp.ge.f32.partialorder %v5363_v30, %v5368_v50 }
0x2002   :  { %v1205_v52 = vsel %vm1204_vm6, %v5249_v59, 16 }
0x2003   :  { %v1206_v53 = vsel %vm839_vm8, %v1205_v52, 2147483647 }
0x2004   :  { %v1208_v55 = vshra.s32 %v1206_v53, 16  ;;  %v1207_v8 = vand.u32 65535, %v1206_v53 }
0x2006   :  { %v1210_v57 = vcvt.s32.f32 %v1208_v55  ;;  %v1209_v62 = vcvt.s32.f32 %v1207_v8 }
0x2008   :  { %1211 = vmin.xlane.f32.xlu1 %v1210_v57  ;;  %v1253_v37 = vpop.permute.xlu2 %1252 }
0x2021   :  { %1277 = vrot.lane.b32.xlu1 %v1275_v58, %s5006_s25 }
0x207b   :  { %v1212_v61 = vpop.xlane.xlu1 %1211 }
0x207c   :  { %vm1213_vm7 = vcmp.eq.f32.partialorder %v1210_v57, %v1212_v61  ;;  %v1218_v15 = vcvt.f32.s32 %v1212_v61 }
0x207d   :  { %v1214_v63 = vsel %vm1213_vm7, %v1209_v62, inf }
0x207e   :  { %1215 = vmin.xlane.f32.xlu0 %v1214_v63  ;;  %v1219_v1 = vshll.u32 %v1218_v15, 16 }
0x2093   :  { %v1278_v55 = vpop.permute.xlu1 %1277 }
0x20f1   :  { %v1216_v0 = vpop.xlane.xlu0 %1215 }
0x20f2   :  { %v1217_v3 = vcvt.f32.s32 %v1216_v0 }
0x20f4   :  { %v1220_v9 = vadd.s32 %v1219_v1, %v1217_v3 }
0x20f6   :  { %v1221_v11 = vperm.slane %v1220_v9, 0 }
0x20f8   :  { %vm1222_vm9 = vcmp.eq.s32.totalorder %v5259_v10, %v1221_v11  ;;  %vm1223_vm10 = vcmp.eq.s32.totalorder %v5262_v16, %v1221_v11 }
0x20f9   :  { %v4372_v14 = vsel %vm1222_vm9, 1.0, %v6650_v7  ;;  %v4373_v17 = vsel %vm1223_vm10, 1.0, %v6650_v7 }
0x20fa   :  { %v1228_v18 = vmul.f32 %v4372_v14, %v5264_v19  ;;  %v1229_v22 = vmul.f32 %v4373_v17, %v5266_v21 }
0x20fc   :  { %v1230_v24 = vsel %vm869_vm13, %v1228_v18, 0.0  ;;  %v1231_v26 = vsel %vm869_vm13, %v1229_v22, 0.0 }
0x20fd   :  { %v1232_v27 = vadd.f32 %v1231_v26, %v1230_v24 }
0x20ff   :  { %v1233_v28 = vrot.slane %v1232_v27, 4 }
0x2101   :  { %v1234_v29 = vadd.f32 %v1233_v28, %v1232_v27 }
0x2103   :  { %v1235_v31 = vrot.slane %v1234_v29, 2 }
0x2105   :  { %v1236_v32 = vadd.f32 %v1235_v31, %v1234_v29 }
0x2107   :  { %v1237_v33 = vrot.slane %v1236_v32, 1 }
0x2109   :  { %v1238_v35 = vadd.f32 %v1237_v33, %v1236_v32 }
0x210b   :  { %v1239_v36 = vadd.f32 %v1238_v35, %v5223_v25  ;;  %v1240_v8 = vadd.f32 %v1238_v35, %v5217_v23 }
0x210d   :  { %v1255_v38 = vadd.f32 %v1253_v37, %v1239_v36 }
0x210f   :  { %v4374_v39 = vmul.f32 -1.442695, %v1255_v38 }
0x2111   :  { %4564 = vpow2.f32 %v4374_v39 }
0x2117   :  { %v4565_v40 = vpop.eup %4564 }
0x2118   :  { %v1259_v41 = vadd.f32 1.0, %v4565_v40 }
0x211a   :  { %4566 = vrcp.f32 %v1259_v41  ;;  %v1271_v45 = vand.u32 2147483648, %v1259_v41  ;;  %v1269_v48 = vand.u32 2147483647, %v1259_v41  ;;  %vm1265_vm12 = vweird.f32 %v1259_v41 }
0x211c   :  { %v1272_v52 = vor.u32 1.1754944e-38, %v1271_v45  ;;  %vm1270_vm15 = vcmp.eq.f32.partialorder %v1269_v48, 8.507059e+37 }
0x2120   :  { %v4567_v42 = vpop.eup %4566 }
0x2121   :  { %v1261_v43 = vmul.f32 %v4567_v42, %v1259_v41  ;;  %vm1266_vm11 = vweird.f32 %v4567_v42 }
0x2122   :  { %vm1267_vm14 = vmor %vm1265_vm12, %vm1266_vm11 }
0x2123   :  { %v1262_v44 = vsub.f32 1.0, %v1261_v43 }
0x2125   :  { %v1263_v47 = vmul.f32 %v4567_v42, %v1262_v44 }
0x2127   :  { %v1264_v49 = vadd.f32 %v4567_v42, %v1263_v47 }
0x2129   :  { %v1268_v53 = vsel %vm1267_vm14, %v4567_v42, %v1264_v49 }
0x212a   :  { %v1273_v57 = vsel %vm1270_vm15, %v1272_v52, %v1268_v53 }
0x212b   :  { %v1280_v58 = vmul.f32 %v1278_v55, %v1273_v57  ;;  %v1287_v15 = vsub.f32 1.0, %v1273_v57  ;;  %v1293_v1 = vmul.f32 %v1273_v57, %v5353_v46 }
0x212d   :  { %1282 = vrot.lane.b32.xlu0 %v1280_v58, %s5002_s17 }
0x219f   :  { %v1283_v61 = vpop.permute.xlu0 %1282 }
0x21a0   :  { %v1285_v62 = vadd.f32 %v1283_v61, %v1240_v8 }
0x21a2   :  { %4568 = vtanh.f32 %v1285_v62 }
0x21a8   :  { %v4569_v63 = vpop.eup %4568 }
0x21a9   :  { %1289 = vrot.lane.b32.xlu2 %v4569_v63, %s5003_s3 }
0x2203   :  { %v1290_v0 = vpop.permute.xlu2 %1289 }
0x2204   :  { %v1292_v3 = vmul.f32 %v1290_v0, %v1287_v15 }
0x2206   :  { %v5389_v9 = vadd.f32 %v1293_v1, %v1292_v3 }
0x2208   :  { %1296 = vrot.lane.b32.xlu0 %v5389_v9, %s5003_s3 }
0x227a   :  { %v1297_v11 = vpop.permute.xlu0 %1296 }
0x227b   :  { %4375 = vmatmul.msk.f32.vlgmr.msrb.gmra.mxu2 %vm151_vm5, %v1297_v11 }
0x227c   :  { %2272 = vmatpush.msrb.mxu2 %v5159_v4 }
0x227e   :  { %2273 = vmatpush.msrb.mxu2 %v5161_v5 }
0x2280   :  { %2274 = vmatpush.msrb.mxu2 %v5165_v6 }
0x2282   :  { %2275 = vmatpush.msrb.mxu2 %v5171_v13 }
0x22fe   :  { %v1317_v14 = vpop.f32.mrf.mxu2 }
0x22ff   :  { %v5399_v46 = vadd.f32 %v1317_v14, %v5241_v54  ;;  %v1395_v18 = vadd.f32 %v1317_v14, %v5209_v20 }
0x2301   :  { %v1321_v17 = vsel %vm839_vm8, %v5399_v46, -inf }
0x2302   :  { %1322 = vmax.xlane.f32.xlu1 %v1321_v17 }
0x231b   :  { %1397 = vrot.lane.b32.xlu1 %v1395_v18, %s5006_s25 }
0x2375   :  { %v5405_v22 = vpop.xlane.xlu1 %1322 }
0x2376   :  { %vm1324_vm0 = vcmp.ge.f32.partialorder %v5399_v46, %v5405_v22 }
0x2377   :  { %v1325_v4 = vsel %vm1324_vm0, %v5249_v59, 16 }
0x2378   :  { %v1326_v5 = vsel %vm839_vm8, %v1325_v4, 2147483647 }
0x2379   :  { %v1328_v6 = vshra.s32 %v1326_v5, 16  ;;  %v1327_v24 = vand.u32 65535, %v1326_v5 }
0x237b   :  { %v1330_v13 = vcvt.s32.f32 %v1328_v6  ;;  %v1329_v27 = vcvt.s32.f32 %v1327_v24 }
0x237d   :  { %1331 = vmin.xlane.f32.xlu2 %v1330_v13 }
0x238d   :  { %v1398_v18 = vpop.permute.xlu1 %1397 }
0x2395   :  { %1372 = vrot.lane.b32.xlu2 %v1317_v14, %s5005_s24 }
0x23f0   :  { %v1332_v26 = vpop.xlane.xlu2 %1331 }
0x23f1   :  { %vm1333_vm1 = vcmp.eq.f32.partialorder %v1330_v13, %v1332_v26  ;;  %v1338_v29 = vcvt.f32.s32 %v1332_v26 }
0x23f2   :  { %v1334_v28 = vsel %vm1333_vm1, %v1329_v27, inf }
0x23f3   :  { %1335 = vmin.xlane.f32.xlu0 %v1334_v28  ;;  %v1339_v32 = vshll.u32 %v1338_v29, 16 }
0x23f8   :  { %v1373_v55 = vpop.permute.xlu2 %1372 }
0x2466   :  { %v1336_v31 = vpop.xlane.xlu0 %1335 }
0x2467   :  { %v1337_v33 = vcvt.f32.s32 %v1336_v31 }
0x2469   :  { %v1340_v35 = vadd.s32 %v1339_v32, %v1337_v33 }
0x246b   :  { %v1341_v36 = vperm.slane %v1340_v35, 0  ;;  %v5433_v35 = vld [vmem:[#allocation9 + $0x10] sm:$0xff] }
0x246d   :  { %vm1342_vm2 = vcmp.eq.s32.totalorder %v5259_v10, %v1341_v36  ;;  %vm1343_vm3 = vcmp.eq.s32.totalorder %v5262_v16, %v1341_v36  ;;  %v5436_v36 = vld [vmem:[#allocation9 + $0x8] sm:$0xff] }
0x246e   :  { %v4376_v37 = vsel %vm1342_vm2, 1.0, %v6650_v7  ;;  %v4377_v38 = vsel %vm1343_vm3, 1.0, %v6650_v7 }
0x246f   :  { %v1348_v39 = vmul.f32 %v4376_v37, %v5264_v19  ;;  %v1349_v40 = vmul.f32 %v4377_v38, %v5266_v21 }
0x2471   :  { %v1350_v41 = vsel %vm869_vm13, %v1348_v39, 0.0  ;;  %v1351_v42 = vsel %vm869_vm13, %v1349_v40, 0.0 }
0x2472   :  { %v1352_v43 = vadd.f32 %v1351_v42, %v1350_v41 }
0x2474   :  { %v1353_v44 = vrot.slane %v1352_v43, 4 }
0x2476   :  { %v1354_v45 = vadd.f32 %v1353_v44, %v1352_v43 }
0x2478   :  { %v1355_v47 = vrot.slane %v1354_v45, 2 }
0x247a   :  { %v1356_v48 = vadd.f32 %v1355_v47, %v1354_v45 }
0x247c   :  { %v1357_v49 = vrot.slane %v1356_v48, 1 }
0x247e   :  { %v1358_v52 = vadd.f32 %v1357_v49, %v1356_v48 }
0x2480   :  { %v1359_v53 = vadd.f32 %v1358_v52, %v5223_v25  ;;  %v1360_v6 = vadd.f32 %v1358_v52, %v5217_v23  ;;  %v5430_v23 = vld [vmem:[#allocation9 + $0x18] sm:$0xff] }
0x2482   :  { %v1375_v57 = vadd.f32 %v1373_v55, %v1359_v53 }
0x2484   :  { %v4378_v58 = vmul.f32 -1.442695, %v1375_v57 }
0x2486   :  { %4570 = vpow2.f32 %v4378_v58 }
0x248c   :  { %v4571_v8 = vpop.eup %4570 }
0x248d   :  { %v1379_v61 = vadd.f32 1.0, %v4571_v8 }
0x248f   :  { %4572 = vrcp.f32 %v1379_v61  ;;  %v1391_v0 = vand.u32 2147483648, %v1379_v61  ;;  %v1389_v3 = vand.u32 2147483647, %v1379_v61  ;;  %vm1385_vm6 = vweird.f32 %v1379_v61 }
0x2491   :  { %v1392_v14 = vor.u32 1.1754944e-38, %v1391_v0  ;;  %vm1390_vm9 = vcmp.eq.f32.partialorder %v1389_v3, 8.507059e+37 }
0x2495   :  { %v4573_v62 = vpop.eup %4572 }
0x2496   :  { %v1381_v63 = vmul.f32 %v4573_v62, %v1379_v61  ;;  %vm1386_vm4 = vweird.f32 %v4573_v62 }
0x2497   :  { %vm1387_vm7 = vmor %vm1385_vm6, %vm1386_vm4 }
0x2498   :  { %v1382_v15 = vsub.f32 1.0, %v1381_v63 }
0x249a   :  { %v1383_v1 = vmul.f32 %v4573_v62, %v1382_v15 }
0x249c   :  { %v1384_v11 = vadd.f32 %v4573_v62, %v1383_v1 }
0x249e   :  { %v1388_v17 = vsel %vm1387_vm7, %v4573_v62, %v1384_v11 }
0x249f   :  { %v1393_v4 = vsel %vm1390_vm9, %v1392_v14, %v1388_v17 }
0x24a0   :  { %v1400_v5 = vmul.f32 %v1398_v18, %v1393_v4  ;;  %v1407_v27 = vsub.f32 1.0, %v1393_v4  ;;  %v1413_v29 = vmul.f32 %v1393_v4, %v5389_v9  ;;  %v5439_v9 = vld [vmem:[#allocation9] sm:$0xff] }
0x24a2   :  { %1402 = vrot.lane.b32.xlu0 %v1400_v5, %s5002_s17 }
0x2514   :  { %v1403_v13 = vpop.permute.xlu0 %1402 }
0x2515   :  { %v1405_v24 = vadd.f32 %v1403_v13, %v1360_v6 }
0x2517   :  { %4574 = vtanh.f32 %v1405_v24 }
0x251d   :  { %v4575_v26 = vpop.eup %4574 }
0x251e   :  { %1409 = vrot.lane.b32.xlu2 %v4575_v26, %s5003_s3 }
0x2578   :  { %v1410_v28 = vpop.permute.xlu2 %1409 }
0x2579   :  { %v1412_v31 = vmul.f32 %v1410_v28, %v1407_v27 }
0x257b   :  { %v5425_v32 = vadd.f32 %v1413_v29, %v1412_v31 }
0x257d   :  { %1416 = vrot.lane.b32.xlu0 %v5425_v32, %s5003_s3 }
0x25ef   :  { %v1417_v33 = vpop.permute.xlu0 %1416 }
0x25f0   :  { %4379 = vmatmul.msk.f32.vlgmr.msrb.gmra.mxu3 %vm151_vm5, %v1417_v33 }
0x25f1   :  { %2392 = vmatpush.msrb.mxu3 %v5430_v23 }
0x25f3   :  { %2393 = vmatpush.msrb.mxu3 %v5433_v35 }
0x25f5   :  { %2394 = vmatpush.msrb.mxu3 %v5436_v36 }
0x25f7   :  { %2395 = vmatpush.msrb.mxu3 %v5439_v9 }
0x2673   :  { %v1437_v37 = vpop.f32.mrf.mxu3 }
0x2674   :  { %v5443_v38 = vadd.f32 %v1437_v37, %v5241_v54  ;;  %v1515_v54 = vadd.f32 %v1437_v37, %v5209_v20 }
0x2676   :  { %v1441_v39 = vsel %vm839_vm8, %v5443_v38, -inf }
0x2677   :  { %1442 = vmax.xlane.f32.xlu1 %v1441_v39 }
0x2690   :  { %1492 = vrot.lane.b32.xlu1 %v1437_v37, %s5005_s24 }
0x26ea   :  { %v5448_v40 = vpop.xlane.xlu1 %1442 }
0x26eb   :  { %vm1444_vm10 = vcmp.ge.f32.partialorder %v5443_v38, %v5448_v40 }
0x26ec   :  { %v1445_v41 = vsel %vm1444_vm10, %v5249_v59, 16 }
0x26ed   :  { %v1446_v42 = vsel %vm839_vm8, %v1445_v41, 2147483647 }
0x26ee   :  { %v1448_v43 = vshra.s32 %v1446_v42, 16  ;;  %v1447_v45 = vand.u32 65535, %v1446_v42 }
0x26f0   :  { %v1450_v44 = vcvt.s32.f32 %v1448_v43  ;;  %v1449_v48 = vcvt.s32.f32 %v1447_v45 }
0x26f2   :  { %1451 = vmin.xlane.f32.xlu2 %v1450_v44 }
0x2702   :  { %v1493_v13 = vpop.permute.xlu1 %1492 }
0x270a   :  { %1517 = vrot.lane.b32.xlu2 %v1515_v54, %s5006_s25 }
0x2765   :  { %v1452_v47 = vpop.xlane.xlu2 %1451 }
0x2766   :  { %vm1453_vm11 = vcmp.eq.f32.partialorder %v1450_v44, %v1452_v47  ;;  %v1458_v52 = vcvt.f32.s32 %v1452_v47 }
0x2767   :  { %v1454_v49 = vsel %vm1453_vm11, %v1449_v48, inf  ;;  %v5469_v48 = vld [vmem:[%s6646_s7] sm:$0x1] }
0x2768   :  { %1455 = vmin.xlane.f32.xlu0 %v1454_v49  ;;  %v1459_v55 = vshll.u32 %v1458_v52, 16 }
0x276d   :  { %v1518_v54 = vpop.permute.xlu2 %1517 }
0x27db   :  { %v1456_v53 = vpop.xlane.xlu0 %1455 }
0x27dc   :  { %v1457_v57 = vcvt.f32.s32 %v1456_v53 }
0x27de   :  { %v1460_v58 = vadd.s32 %v1459_v55, %v1457_v57 }
0x27e0   :  { %v1461_v8 = vperm.slane %v1460_v58, 0 }
0x27e2   :  { %vm1462_vm12 = vcmp.eq.s32.totalorder %v5259_v10, %v1461_v8  ;;  %vm1463_vm14 = vcmp.eq.s32.totalorder %v5262_v16, %v1461_v8 }
0x27e3   :  { %v4380_v61 = vsel %vm1462_vm12, 1.0, %v6650_v7  ;;  %v4381_v62 = vsel %vm1463_vm14, 1.0, %v6650_v7 }
0x27e4   :  { %v1468_v63 = vmul.f32 %v4380_v61, %v5264_v19  ;;  %v1469_v15 = vmul.f32 %v4381_v62, %v5266_v21 }
0x27e6   :  { %v1470_v0 = vsel %vm869_vm13, %v1468_v63, 0.0  ;;  %v1471_v1 = vsel %vm869_vm13, %v1469_v15, 0.0 }
0x27e7   :  { %v1472_v3 = vadd.f32 %v1471_v1, %v1470_v0 }
0x27e9   :  { %v1473_v11 = vrot.slane %v1472_v3, 4 }
0x27eb   :  { %v1474_v14 = vadd.f32 %v1473_v11, %v1472_v3 }
0x27ed   :  { %v1475_v17 = vrot.slane %v1474_v14, 2 }
0x27ef   :  { %v1476_v18 = vadd.f32 %v1475_v17, %v1474_v14 }
0x27f1   :  { %v1477_v4 = vrot.slane %v1476_v18, 1 }
0x27f3   :  { %v1478_v5 = vadd.f32 %v1477_v4, %v1476_v18 }
0x27f5   :  { %v1479_v6 = vadd.f32 %v1478_v5, %v5223_v25  ;;  %v1480_v49 = vadd.f32 %v5469_v48, %v1478_v5 }
0x27f7   :  { %v1495_v24 = vadd.f32 %v1493_v13, %v1479_v6 }
0x27f9   :  { %v4382_v26 = vmul.f32 -1.442695, %v1495_v24 }
0x27fb   :  { %4576 = vpow2.f32 %v4382_v26 }
0x2801   :  { %v4577_v27 = vpop.eup %4576 }
0x2802   :  { %v1499_v28 = vadd.f32 1.0, %v4577_v27 }
0x2804   :  { %4578 = vrcp.f32 %v1499_v28  ;;  %v1511_v37 = vand.u32 2147483648, %v1499_v28  ;;  %v1509_v41 = vand.u32 2147483647, %v1499_v28  ;;  %vm1505_vm0 = vweird.f32 %v1499_v28 }
0x2806   :  { %v1512_v43 = vor.u32 1.1754944e-38, %v1511_v37  ;;  %vm1510_vm2 = vcmp.eq.f32.partialorder %v1509_v41, 8.507059e+37 }
0x280a   :  { %v4579_v29 = vpop.eup %4578 }
0x280b   :  { %v1501_v31 = vmul.f32 %v4579_v29, %v1499_v28  ;;  %vm1506_vm15 = vweird.f32 %v4579_v29 }
0x280c   :  { %vm1507_vm1 = vmor %vm1505_vm0, %vm1506_vm15 }
0x280d   :  { %v1502_v33 = vsub.f32 1.0, %v1501_v31 }
0x280f   :  { %v1503_v39 = vmul.f32 %v4579_v29, %v1502_v33 }
0x2811   :  { %v1504_v42 = vadd.f32 %v4579_v29, %v1503_v39 }
0x2813   :  { %v1508_v44 = vsel %vm1507_vm1, %v4579_v29, %v1504_v42 }
0x2814   :  { %v1513_v45 = vsel %vm1510_vm2, %v1512_v43, %v1508_v44 }
0x2815   :  { %v1520_v47 = vmul.f32 %v1518_v54, %v1513_v45  ;;  %v1527_v57 = vsub.f32 1.0, %v1513_v45  ;;  %v1533_v8 = vmul.f32 %v1513_v45, %v5425_v32  ;;  %v5486_v32 = vld [vmem:[%s6648_s9] sm:$0x1] }
0x2817   :  { %1522 = vrot.lane.b32.xlu0 %v1520_v47, %s5002_s17 }
0x2889   :  { %v1523_v52 = vpop.permute.xlu0 %1522 }
0x288a   :  { %v1525_v53 = vadd.f32 %v1523_v52, %v1480_v49 }
0x288c   :  { %4580 = vtanh.f32 %v1525_v53 }
0x2892   :  { %v4581_v55 = vpop.eup %4580 }
0x2893   :  { %1529 = vrot.lane.b32.xlu1 %v4581_v55, %s5003_s3 }
0x2905   :  { %v1530_v58 = vpop.permute.xlu1 %1529 }
0x2906   :  { %v1532_v61 = vmul.f32 %v1530_v58, %v1527_v57 }
0x2908   :  { %v5474_v62 = vadd.f32 %v1533_v8, %v1532_v61 }
0x290a   :  { %1536 = vrot.lane.b32.xlu0 %v5474_v62, %s5003_s3 }
0x297c   :  { %v1537_v63 = vpop.permute.xlu0 %1536 }
0x297d   :  { %4383 = vmatmul.msk.f32.vlgmr.msra.gmra.mxu0 %vm151_vm5, %v1537_v63 }
0x297e   :  { %2512 = vmatpush.msra.mxu0 %v5430_v23 }
0x2980   :  { %2513 = vmatpush.msra.mxu0 %v5433_v35 }
0x2982   :  { %2514 = vmatpush.msra.mxu0 %v5436_v36 }
0x2984   :  { %2515 = vmatpush.msra.mxu0 %v5439_v9 }
0x29fa   :  { %v1557_v15 = vpop.f32.mrf.mxu0 }
0x29fb   :  { %v5489_v0 = vadd.f32 %v5486_v32, %v1557_v15  ;;  %v1635_v4 = vadd.f32 %v1557_v15, %v5209_v20 }
0x29fd   :  { %v1561_v1 = vsel %vm839_vm8, %v5489_v0, -inf }
0x29fe   :  { %1562 = vmax.xlane.f32.xlu2 %v1561_v1 }
0x2a16   :  { %1612 = vrot.lane.b32.xlu2 %v1557_v15, %s5005_s24 }
0x2a71   :  { %v5494_v3 = vpop.xlane.xlu2 %1562 }
0x2a72   :  { %vm1564_vm3 = vcmp.ge.f32.partialorder %v5489_v0, %v5494_v3 }
0x2a73   :  { %v1565_v11 = vsel %vm1564_vm3, %v5249_v59, 16 }
0x2a74   :  { %v1566_v14 = vsel %vm839_vm8, %v1565_v11, 2147483647 }
0x2a75   :  { %v1568_v17 = vshra.s32 %v1566_v14, 16  ;;  %v1567_v5 = vand.u32 65535, %v1566_v14 }
0x2a77   :  { %v1570_v18 = vcvt.s32.f32 %v1568_v17  ;;  %v1569_v13 = vcvt.s32.f32 %v1567_v5 }
0x2a79   :  { %1571 = vmin.xlane.f32.xlu1 %v1570_v18  ;;  %v1613_v58 = vpop.permute.xlu2 %1612 }
0x2a92   :  { %1637 = vrot.lane.b32.xlu1 %v1635_v4, %s5006_s25 }
0x2aec   :  { %v1572_v6 = vpop.xlane.xlu1 %1571 }
0x2aed   :  { %vm1573_vm4 = vcmp.eq.f32.partialorder %v1570_v18, %v1572_v6  ;;  %v1578_v26 = vcvt.f32.s32 %v1572_v6 }
0x2aee   :  { %v1574_v24 = vsel %vm1573_vm4, %v1569_v13, inf }
0x2aef   :  { %1575 = vmin.xlane.f32.xlu0 %v1574_v24  ;;  %v1579_v28 = vshll.u32 %v1578_v26, 16 }
0x2b04   :  { %v1638_v6 = vpop.permute.xlu1 %1637 }
0x2b62   :  { %v1576_v27 = vpop.xlane.xlu0 %1575 }
0x2b63   :  { %v1577_v29 = vcvt.f32.s32 %v1576_v27 }
0x2b65   :  { %v1580_v31 = vadd.s32 %v1579_v28, %v1577_v29 }
0x2b67   :  { %v1581_v33 = vperm.slane %v1580_v31, 0 }
0x2b69   :  { %vm1582_vm6 = vcmp.eq.s32.totalorder %v5259_v10, %v1581_v33  ;;  %vm1583_vm7 = vcmp.eq.s32.totalorder %v5262_v16, %v1581_v33 }
0x2b6a   :  { %v4384_v37 = vsel %vm1582_vm6, 1.0, %v6650_v7  ;;  %v4385_v39 = vsel %vm1583_vm7, 1.0, %v6650_v7 }
0x2b6b   :  { %v1588_v41 = vmul.f32 %v4384_v37, %v5264_v19  ;;  %v1589_v42 = vmul.f32 %v4385_v39, %v5266_v21 }
0x2b6d   :  { %v1590_v43 = vsel %vm869_vm13, %v1588_v41, 0.0  ;;  %v1591_v44 = vsel %vm869_vm13, %v1589_v42, 0.0 }
0x2b6e   :  { %v1592_v54 = vadd.f32 %v1591_v44, %v1590_v43 }
0x2b70   :  { %v1593_v45 = vrot.slane %v1592_v54, 4 }
0x2b72   :  { %v1594_v47 = vadd.f32 %v1593_v45, %v1592_v54 }
0x2b74   :  { %v1595_v49 = vrot.slane %v1594_v47, 2 }
0x2b76   :  { %v1596_v52 = vadd.f32 %v1595_v49, %v1594_v47 }
0x2b78   :  { %v1597_v53 = vrot.slane %v1596_v52, 1 }
0x2b7a   :  { %v1598_v55 = vadd.f32 %v1597_v53, %v1596_v52 }
0x2b7c   :  { %v1599_v57 = vadd.f32 %v1598_v55, %v5223_v25  ;;  %v1600_v26 = vadd.f32 %v5469_v48, %v1598_v55 }
0x2b7e   :  { %v1615_v8 = vadd.f32 %v1613_v58, %v1599_v57 }
0x2b80   :  { %v4386_v61 = vmul.f32 -1.442695, %v1615_v8 }
0x2b82   :  { %4582 = vpow2.f32 %v4386_v61 }
0x2b88   :  { %v4583_v19 = vpop.eup %4582 }
0x2b89   :  { %v1619_v63 = vadd.f32 1.0, %v4583_v19 }
0x2b8b   :  { %4584 = vrcp.f32 %v1619_v63  ;;  %v1631_v11 = vand.u32 2147483648, %v1619_v63  ;;  %v1629_v17 = vand.u32 2147483647, %v1619_v63  ;;  %vm1625_vm10 = vweird.f32 %v1619_v63 }
0x2b8d   :  { %v1632_v4 = vor.u32 1.1754944e-38, %v1631_v11  ;;  %vm1630_vm12 = vcmp.eq.f32.partialorder %v1629_v17, 8.507059e+37  ;;  %v5542_v17 = vld [vmem:[#allocation7] sm:$0xff] }
0x2b91   :  { %v4585_v21 = vpop.eup %4584 }
0x2b92   :  { %v1621_v15 = vmul.f32 %v4585_v21, %v1619_v63  ;;  %vm1626_vm9 = vweird.f32 %v4585_v21 }
0x2b93   :  { %vm1627_vm11 = vmor %vm1625_vm10, %vm1626_vm9 }
0x2b94   :  { %v1622_v1 = vsub.f32 1.0, %v1621_v15 }
0x2b96   :  { %v1623_v14 = vmul.f32 %v4585_v21, %v1622_v1 }
0x2b98   :  { %v1624_v18 = vadd.f32 %v4585_v21, %v1623_v14 }
0x2b9a   :  { %v1628_v5 = vsel %vm1627_vm11, %v4585_v21, %v1624_v18 }
0x2b9b   :  { %v1633_v13 = vsel %vm1630_vm12, %v1632_v4, %v1628_v5  ;;  %v5545_v4 = vld [vmem:[#allocation7 + $0x8] sm:$0xff] }
0x2b9c   :  { %v1640_v24 = vmul.f32 %v1638_v6, %v1633_v13  ;;  %v1647_v31 = vsub.f32 1.0, %v1633_v13  ;;  %v1653_v37 = vmul.f32 %v1633_v13, %v5474_v62 }
0x2b9e   :  { %1642 = vrot.lane.b32.xlu0 %v1640_v24, %s5002_s17 }
0x2c10   :  { %v1643_v27 = vpop.permute.xlu0 %1642 }
0x2c11   :  { %v1645_v28 = vadd.f32 %v1643_v27, %v1600_v26 }
0x2c13   :  { %4586 = vtanh.f32 %v1645_v28 }
0x2c19   :  { %v4587_v29 = vpop.eup %4586 }
0x2c1a   :  { %1649 = vrot.lane.b32.xlu2 %v4587_v29, %s5003_s3 }
0x2c74   :  { %v1650_v33 = vpop.permute.xlu2 %1649 }
0x2c75   :  { %v1652_v39 = vmul.f32 %v1650_v33, %v1647_v31 }
0x2c77   :  { %v5515_v41 = vadd.f32 %v1653_v37, %v1652_v39 }
0x2c79   :  { %1656 = vrot.lane.b32.xlu0 %v5515_v41, %s5003_s3 }
0x2ceb   :  { %v1657_v42 = vpop.permute.xlu0 %1656 }
0x2cec   :  { %4387 = vmatmul.msk.f32.vlgmr.msra.gmra.mxu1 %vm151_vm5, %v1657_v42 }
0x2ced   :  { %2632 = vmatpush.msra.mxu1 %v5430_v23 }
0x2cef   :  { %2633 = vmatpush.msra.mxu1 %v5433_v35 }
0x2cf1   :  { %2634 = vmatpush.msra.mxu1 %v5436_v36 }
0x2cf3   :  { %2635 = vmatpush.msra.mxu1 %v5439_v9 }
0x2d69   :  { %v1677_v43 = vpop.f32.mrf.mxu1 }
0x2d6a   :  { %v5525_v62 = vadd.f32 %v5486_v32, %v1677_v43  ;;  %v1755_v53 = vadd.f32 %v1677_v43, %v5209_v20 }
0x2d6c   :  { %v1681_v44 = vsel %vm839_vm8, %v5525_v62, -inf }
0x2d6d   :  { %1682 = vmax.xlane.f32.xlu1 %v1681_v44 }
0x2d86   :  { %1732 = vrot.lane.b32.xlu1 %v1677_v43, %s5005_s24 }
0x2de0   :  { %v5530_v54 = vpop.xlane.xlu1 %1682 }
0x2de1   :  { %vm1684_vm14 = vcmp.ge.f32.partialorder %v5525_v62, %v5530_v54 }
0x2de2   :  { %v1685_v45 = vsel %vm1684_vm14, %v5249_v59, 16 }
0x2de3   :  { %v1686_v47 = vsel %vm839_vm8, %v1685_v45, 2147483647 }
0x2de4   :  { %v1688_v49 = vshra.s32 %v1686_v47, 16  ;;  %v1687_v55 = vand.u32 65535, %v1686_v47 }
0x2de6   :  { %v1690_v52 = vcvt.s32.f32 %v1688_v49  ;;  %v1689_v58 = vcvt.s32.f32 %v1687_v55 }
0x2de8   :  { %1691 = vmin.xlane.f32.xlu2 %v1690_v52 }
0x2df8   :  { %v1733_v39 = vpop.permute.xlu1 %1732 }
0x2e00   :  { %1757 = vrot.lane.b32.xlu2 %v1755_v53, %s5006_s25 }
0x2e5b   :  { %v1692_v57 = vpop.xlane.xlu2 %1691 }
0x2e5c   :  { %vm1693_vm15 = vcmp.eq.f32.partialorder %v1690_v52, %v1692_v57  ;;  %v1698_v61 = vcvt.f32.s32 %v1692_v57 }
0x2e5d   :  { %v1694_v8 = vsel %vm1693_vm15, %v1689_v58, inf }
0x2e5e   :  { %1695 = vmin.xlane.f32.xlu0 %v1694_v8  ;;  %v1699_v63 = vshll.u32 %v1698_v61, 16 }
0x2ed1   :  { %v1696_v19 = vpop.xlane.xlu0 %1695 }
0x2ed2   :  { %v1697_v21 = vcvt.f32.s32 %v1696_v19  ;;  %v1758_v19 = vpop.permute.xlu2 %1757 }
0x2ed4   :  { %v1700_v15 = vadd.s32 %v1699_v63, %v1697_v21 }
0x2ed6   :  { %v1701_v1 = vperm.slane %v1700_v15, 0 }
0x2ed8   :  { %vm1702_vm0 = vcmp.eq.s32.totalorder %v5259_v10, %v1701_v1  ;;  %vm1703_vm1 = vcmp.eq.s32.totalorder %v5262_v16, %v1701_v1 }
0x2ed9   :  { %v4388_v11 = vsel %vm1702_vm0, 1.0, %v6650_v7  ;;  %v4389_v14 = vsel %vm1703_vm1, 1.0, %v6650_v7 }
0x2eda   :  { %v1708_v18 = vmul.f32 %v5542_v17, %v4388_v11  ;;  %v1709_v5 = vmul.f32 %v5545_v4, %v4389_v14 }
0x2edc   :  { %v1710_v6 = vsel %vm869_vm13, %v1708_v18, 0.0  ;;  %v1711_v13 = vsel %vm869_vm13, %v1709_v5, 0.0 }
0x2edd   :  { %v1712_v24 = vadd.f32 %v1711_v13, %v1710_v6 }
0x2edf   :  { %v1713_v26 = vrot.slane %v1712_v24, 4 }
0x2ee1   :  { %v1714_v27 = vadd.f32 %v1713_v26, %v1712_v24 }
0x2ee3   :  { %v1715_v28 = vrot.slane %v1714_v27, 2 }
0x2ee5   :  { %v1716_v29 = vadd.f32 %v1715_v28, %v1714_v27 }
0x2ee7   :  { %v1717_v31 = vrot.slane %v1716_v29, 1 }
0x2ee9   :  { %v1718_v33 = vadd.f32 %v1717_v31, %v1716_v29 }
0x2eeb   :  { %v1719_v37 = vadd.f32 %v1718_v33, %v5223_v25  ;;  %v1720_v15 = vadd.f32 %v5469_v48, %v1718_v33 }
0x2eed   :  { %v1735_v42 = vadd.f32 %v1733_v39, %v1719_v37 }
0x2eef   :  { %v4390_v43 = vmul.f32 -1.442695, %v1735_v42 }
0x2ef1   :  { %4588 = vpow2.f32 %v4390_v43 }
0x2ef7   :  { %v4589_v44 = vpop.eup %4588 }
0x2ef8   :  { %v1739_v45 = vadd.f32 1.0, %v4589_v44 }
0x2efa   :  { %4590 = vrcp.f32 %v1739_v45  ;;  %v1751_v53 = vand.u32 2147483648, %v1739_v45  ;;  %v1749_v57 = vand.u32 2147483647, %v1739_v45  ;;  %vm1745_vm3 = vweird.f32 %v1739_v45 }
0x2efc   :  { %v1752_v8 = vor.u32 1.1754944e-38, %v1751_v53  ;;  %vm1750_vm6 = vcmp.eq.f32.partialorder %v1749_v57, 8.507059e+37 }
0x2f00   :  { %v4591_v47 = vpop.eup %4590 }
0x2f01   :  { %v1741_v49 = vmul.f32 %v4591_v47, %v1739_v45  ;;  %vm1746_vm2 = vweird.f32 %v4591_v47 }
0x2f02   :  { %vm1747_vm4 = vmor %vm1745_vm3, %vm1746_vm2 }
0x2f03   :  { %v1742_v52 = vsub.f32 1.0, %v1741_v49 }
0x2f05   :  { %v1743_v55 = vmul.f32 %v4591_v47, %v1742_v52 }
0x2f07   :  { %v1744_v58 = vadd.f32 %v4591_v47, %v1743_v55 }
0x2f09   :  { %v1748_v61 = vsel %vm1747_vm4, %v4591_v47, %v1744_v58 }
0x2f0a   :  { %v1753_v63 = vsel %vm1750_vm6, %v1752_v8, %v1748_v61 }
0x2f0b   :  { %v1760_v21 = vmul.f32 %v1758_v19, %v1753_v63  ;;  %v1767_v18 = vsub.f32 1.0, %v1753_v63  ;;  %v1773_v6 = vmul.f32 %v1753_v63, %v5515_v41 }
0x2f0d   :  { %1762 = vrot.lane.b32.xlu0 %v1760_v21, %s5002_s17 }
0x2f7f   :  { %v1763_v1 = vpop.permute.xlu0 %1762 }
0x2f80   :  { %v1765_v11 = vadd.f32 %v1763_v1, %v1720_v15 }
0x2f82   :  { %4592 = vtanh.f32 %v1765_v11 }
0x2f88   :  { %v4593_v14 = vpop.eup %4592 }
0x2f89   :  { %1769 = vrot.lane.b32.xlu0 %v4593_v14, %s5003_s3 }
0x2ffb   :  { %v1770_v5 = vpop.permute.xlu0 %1769 }
0x2ffc   :  { %v1772_v13 = vmul.f32 %v1770_v5, %v1767_v18 }
0x2ffe   :  { %v5555_v24 = vadd.f32 %v1773_v6, %v1772_v13 }
0x3000   :  { %1776 = vrot.lane.b32.xlu1 %v5555_v24, %s5003_s3 }
0x3072   :  { %v1777_v26 = vpop.permute.xlu1 %1776 }
0x3073   :  { %4391 = vmatmul.msk.f32.vlgmr.msra.gmra.mxu2 %vm151_vm5, %v1777_v26 }
0x3074   :  { %2752 = vmatpush.msra.mxu2 %v5430_v23 }
0x3076   :  { %2753 = vmatpush.msra.mxu2 %v5433_v35 }
0x3078   :  { %2754 = vmatpush.msra.mxu2 %v5436_v36 }
0x307a   :  { %2755 = vmatpush.msra.mxu2 %v5439_v9 }
0x30f6   :  { %v1797_v27 = vpop.f32.mrf.mxu2 }
0x30f7   :  { %v5565_v41 = vadd.f32 %v5486_v32, %v1797_v27  ;;  %v1875_v42 = vadd.f32 %v1797_v27, %v5209_v20 }
0x30f9   :  { %v1801_v28 = vsel %vm839_vm8, %v5565_v41, -inf }
0x30fa   :  { %1802 = vmax.xlane.f32.xlu2 %v1801_v28 }
0x3112   :  { %1852 = vrot.lane.b32.xlu2 %v1797_v27, %s5005_s24 }
0x316d   :  { %v5570_v29 = vpop.xlane.xlu2 %1802 }
0x316e   :  { %vm1804_vm7 = vcmp.ge.f32.partialorder %v5565_v41, %v5570_v29 }
0x316f   :  { %v1805_v31 = vsel %vm1804_vm7, %v5249_v59, 16 }
0x3170   :  { %v1806_v33 = vsel %vm839_vm8, %v1805_v31, 2147483647 }
0x3171   :  { %v1808_v37 = vshra.s32 %v1806_v33, 16  ;;  %v1807_v43 = vand.u32 65535, %v1806_v33 }
0x3173   :  { %v1810_v39 = vcvt.s32.f32 %v1808_v37  ;;  %v1809_v45 = vcvt.s32.f32 %v1807_v43 }
0x3175   :  { %1811 = vmin.xlane.f32.xlu0 %v1810_v39  ;;  %v1853_v27 = vpop.permute.xlu2 %1852 }
0x3189   :  { %1877 = vrot.lane.b32.xlu0 %v1875_v42, %s5006_s25 }
0x31e8   :  { %v1812_v44 = vpop.xlane.xlu0 %1811 }
0x31e9   :  { %vm1813_vm9 = vcmp.eq.f32.partialorder %v1810_v39, %v1812_v44  ;;  %v1818_v49 = vcvt.f32.s32 %v1812_v44 }
0x31ea   :  { %v1814_v47 = vsel %vm1813_vm9, %v1809_v45, inf }
0x31eb   :  { %1815 = vmin.xlane.f32.xlu1 %v1814_v47  ;;  %v1819_v53 = vshll.u32 %v1818_v49, 16 }
0x325e   :  { %v1816_v52 = vpop.xlane.xlu1 %1815 }
0x325f   :  { %v1817_v55 = vcvt.f32.s32 %v1816_v52 }
0x3261   :  { %v1820_v57 = vadd.s32 %v1819_v53, %v1817_v55  ;;  %v1878_v55 = vpop.permute.xlu0 %1877 }
0x3263   :  { %v1821_v58 = vperm.slane %v1820_v57, 0 }
0x3265   :  { %vm1822_vm10 = vcmp.eq.s32.totalorder %v5259_v10, %v1821_v58  ;;  %vm1823_vm11 = vcmp.eq.s32.totalorder %v5262_v16, %v1821_v58 }
0x3266   :  { %v4392_v8 = vsel %vm1822_vm10, 1.0, %v6650_v7  ;;  %v4393_v61 = vsel %vm1823_vm11, 1.0, %v6650_v7 }
0x3267   :  { %v1828_v19 = vmul.f32 %v5542_v17, %v4392_v8  ;;  %v1829_v63 = vmul.f32 %v5545_v4, %v4393_v61 }
0x3269   :  { %v1830_v21 = vsel %vm869_vm13, %v1828_v19, 0.0  ;;  %v1831_v15 = vsel %vm869_vm13, %v1829_v63, 0.0 }
0x326a   :  { %v1832_v1 = vadd.f32 %v1831_v15, %v1830_v21 }
0x326c   :  { %v1833_v11 = vrot.slane %v1832_v1, 4 }
0x326e   :  { %v1834_v14 = vadd.f32 %v1833_v11, %v1832_v1 }
0x3270   :  { %v1835_v18 = vrot.slane %v1834_v14, 2 }
0x3272   :  { %v1836_v5 = vadd.f32 %v1835_v18, %v1834_v14 }
0x3274   :  { %v1837_v6 = vrot.slane %v1836_v5, 1 }
0x3276   :  { %v1838_v13 = vadd.f32 %v1837_v6, %v1836_v5 }
0x3278   :  { %v1839_v26 = vadd.f32 %v1838_v13, %v5223_v25  ;;  %v1840_v8 = vadd.f32 %v5469_v48, %v1838_v13 }
0x327a   :  { %v1855_v28 = vadd.f32 %v1853_v27, %v1839_v26 }
0x327c   :  { %v4394_v31 = vmul.f32 -1.442695, %v1855_v28 }
0x327e   :  { %4594 = vpow2.f32 %v4394_v31 }
0x3284   :  { %v4595_v33 = vpop.eup %4594 }
0x3285   :  { %v1859_v37 = vadd.f32 1.0, %v4595_v33 }
0x3287   :  { %4596 = vrcp.f32 %v1859_v37  ;;  %v1871_v44 = vand.u32 2147483648, %v1859_v37  ;;  %v1869_v47 = vand.u32 2147483647, %v1859_v37  ;;  %vm1865_vm14 = vweird.f32 %v1859_v37 }
0x3289   :  { %v1872_v52 = vor.u32 1.1754944e-38, %v1871_v44  ;;  %vm1870_vm0 = vcmp.eq.f32.partialorder %v1869_v47, 8.507059e+37 }
0x328d   :  { %v4597_v39 = vpop.eup %4596 }
0x328e   :  { %v1861_v42 = vmul.f32 %v4597_v39, %v1859_v37  ;;  %vm1866_vm12 = vweird.f32 %v4597_v39 }
0x328f   :  { %vm1867_vm15 = vmor %vm1865_vm14, %vm1866_vm12 }
0x3290   :  { %v1862_v43 = vsub.f32 1.0, %v1861_v42 }
0x3292   :  { %v1863_v45 = vmul.f32 %v4597_v39, %v1862_v43 }
0x3294   :  { %v1864_v49 = vadd.f32 %v4597_v39, %v1863_v45 }
0x3296   :  { %v1868_v53 = vsel %vm1867_vm15, %v4597_v39, %v1864_v49 }
0x3297   :  { %v1873_v57 = vsel %vm1870_vm0, %v1872_v52, %v1868_v53 }
0x3298   :  { %v1880_v58 = vmul.f32 %v1878_v55, %v1873_v57  ;;  %v1887_v21 = vsub.f32 1.0, %v1873_v57  ;;  %v1893_v1 = vmul.f32 %v1873_v57, %v5555_v24 }
0x329a   :  { %1882 = vrot.lane.b32.xlu1 %v1880_v58, %s5002_s17 }
0x330c   :  { %v1883_v61 = vpop.permute.xlu1 %1882 }
0x330d   :  { %v1885_v19 = vadd.f32 %v1883_v61, %v1840_v8 }
0x330f   :  { %4598 = vtanh.f32 %v1885_v19 }
0x3315   :  { %v4599_v63 = vpop.eup %4598 }
0x3316   :  { %1889 = vrot.lane.b32.xlu2 %v4599_v63, %s5003_s3 }
0x3370   :  { %v1890_v15 = vpop.permute.xlu2 %1889 }
0x3371   :  { %v1892_v11 = vmul.f32 %v1890_v15, %v1887_v21 }
0x3373   :  { %v5591_v14 = vadd.f32 %v1893_v1, %v1892_v11 }
0x3375   :  { %1896 = vrot.lane.b32.xlu0 %v5591_v14, %s5003_s3 }
0x33e7   :  { %v1897_v18 = vpop.permute.xlu0 %1896 }
0x33e8   :  { %4395 = vmatmul.msk.f32.vlgmr.msra.gmra.mxu3 %vm151_vm5, %v1897_v18 }
0x33e9   :  { %2872 = vmatpush.msra.mxu3 %v5430_v23 }
0x33eb   :  { %2873 = vmatpush.msra.mxu3 %v5433_v35 }
0x33ed   :  { %2874 = vmatpush.msra.mxu3 %v5436_v36 }
0x33ef   :  { %2875 = vmatpush.msra.mxu3 %v5439_v9 }
0x346b   :  { %v1917_v5 = vpop.f32.mrf.mxu3 }
0x346c   :  { %v5601_v24 = vadd.f32 %v5486_v32, %v1917_v5  ;;  %v1995_v33 = vadd.f32 %v1917_v5, %v5209_v20 }
0x346e   :  { %6672 = vst [vmem:[#allocation13_spill] sm:$0xff] %v5601_v24  ;;  %v1921_v6 = vsel %vm839_vm8, %v5601_v24, -inf }
0x346f   :  { %1922 = vmax.xlane.f32.xlu2 %v1921_v6 }
0x3487   :  { %1972 = vrot.lane.b32.xlu2 %v1917_v5, %s5005_s24 }
0x34e2   :  { %v5606_v13 = vpop.xlane.xlu2 %1922 }
0x34e3   :  { %6673 = vst [vmem:[#allocation14_spill] sm:$0xff] %v5606_v13  ;;  %vm1924_vm1 = vcmp.ge.f32.partialorder %v5601_v24, %v5606_v13 }
0x34e4   :  { %v1925_v26 = vsel %vm1924_vm1, %v5249_v59, 16 }
0x34e5   :  { %v1926_v27 = vsel %vm839_vm8, %v1925_v26, 2147483647 }
0x34e6   :  { %v1928_v28 = vshra.s32 %v1926_v27, 16  ;;  %v1927_v37 = vand.u32 65535, %v1926_v27 }
0x34e8   :  { %v1930_v31 = vcvt.s32.f32 %v1928_v28  ;;  %v1929_v42 = vcvt.s32.f32 %v1927_v37 }
0x34ea   :  { %1931 = vmin.xlane.f32.xlu1 %v1930_v31  ;;  %v1973_v26 = vpop.permute.xlu2 %1972 }
0x3503   :  { %1997 = vrot.lane.b32.xlu1 %v1995_v33, %s5006_s25 }
0x355d   :  { %v1932_v39 = vpop.xlane.xlu1 %1931 }
0x355e   :  { %vm1933_vm2 = vcmp.eq.f32.partialorder %v1930_v31, %v1932_v39  ;;  %v1938_v44 = vcvt.f32.s32 %v1932_v39 }
0x355f   :  { %v1934_v43 = vsel %vm1933_vm2, %v1929_v42, inf }
0x3560   :  { %1935 = vmin.xlane.f32.xlu0 %v1934_v43  ;;  %v1939_v47 = vshll.u32 %v1938_v44, 16 }
0x35d3   :  { %v1936_v45 = vpop.xlane.xlu0 %1935 }
0x35d4   :  { %v1937_v49 = vcvt.f32.s32 %v1936_v45 }
0x35d6   :  { %v1940_v52 = vadd.s32 %v1939_v47, %v1937_v49 }
0x35d8   :  { %v1941_v53 = vperm.slane %v1940_v52, 0 }
0x35da   :  { %vm1942_vm3 = vcmp.eq.s32.totalorder %v5259_v10, %v1941_v53  ;;  %vm1943_vm4 = vcmp.eq.s32.totalorder %v5262_v16, %v1941_v53  ;;  %v1998_v53 = vpop.permute.xlu1 %1997 }
0x35db   :  { %v4396_v55 = vsel %vm1942_vm3, 1.0, %v6650_v7  ;;  %v4397_v57 = vsel %vm1943_vm4, 1.0, %v6650_v7 }
0x35dc   :  { %v1948_v58 = vmul.f32 %v5542_v17, %v4396_v55  ;;  %v1949_v8 = vmul.f32 %v5545_v4, %v4397_v57 }
0x35de   :  { %v1950_v61 = vsel %vm869_vm13, %v1948_v58, 0.0  ;;  %v1951_v19 = vsel %vm869_vm13, %v1949_v8, 0.0 }
0x35df   :  { %v1952_v63 = vadd.f32 %v1951_v19, %v1950_v61 }
0x35e1   :  { %v1953_v21 = vrot.slane %v1952_v63, 4 }
0x35e3   :  { %v1954_v15 = vadd.f32 %v1953_v21, %v1952_v63 }
0x35e5   :  { %v1955_v1 = vrot.slane %v1954_v15, 2 }
0x35e7   :  { %v1956_v11 = vadd.f32 %v1955_v1, %v1954_v15 }
0x35e9   :  { %v1957_v18 = vrot.slane %v1956_v11, 1 }
0x35eb   :  { %v1958_v5 = vadd.f32 %v1957_v18, %v1956_v11 }
0x35ed   :  { %v1959_v6 = vadd.f32 %v1958_v5, %v5223_v25  ;;  %v1960_v58 = vadd.f32 %v5469_v48, %v1958_v5 }
0x35ef   :  { %v1975_v27 = vadd.f32 %v1973_v26, %v1959_v6 }
0x35f1   :  { %v4398_v28 = vmul.f32 -1.442695, %v1975_v27 }
0x35f3   :  { %4600 = vpow2.f32 %v4398_v28 }
0x35f9   :  { %v4601_v31 = vpop.eup %4600 }
0x35fa   :  { %v1979_v33 = vadd.f32 1.0, %v4601_v31 }
0x35fc   :  { %4602 = vrcp.f32 %v1979_v33  ;;  %v1991_v43 = vand.u32 2147483648, %v1979_v33  ;;  %v1989_v45 = vand.u32 2147483647, %v1979_v33  ;;  %vm1985_vm7 = vweird.f32 %v1979_v33 }
0x35fe   :  { %v1992_v49 = vor.u32 1.1754944e-38, %v1991_v43  ;;  %vm1990_vm10 = vcmp.eq.f32.partialorder %v1989_v45, 8.507059e+37 }
0x3602   :  { %v4603_v37 = vpop.eup %4602 }
0x3603   :  { %v1981_v39 = vmul.f32 %v4603_v37, %v1979_v33  ;;  %vm1986_vm6 = vweird.f32 %v4603_v37 }
0x3604   :  { %vm1987_vm9 = vmor %vm1985_vm7, %vm1986_vm6 }
0x3605   :  { %v1982_v42 = vsub.f32 1.0, %v1981_v39 }
0x3607   :  { %v1983_v44 = vmul.f32 %v4603_v37, %v1982_v42 }
0x3609   :  { %v1984_v47 = vadd.f32 %v4603_v37, %v1983_v44 }
0x360b   :  { %v1988_v52 = vsel %vm1987_vm9, %v4603_v37, %v1984_v47 }
0x360c   :  { %v1993_v55 = vsel %vm1990_vm10, %v1992_v49, %v1988_v52 }
0x360d   :  { %v2000_v57 = vmul.f32 %v1998_v53, %v1993_v55  ;;  %v2007_v63 = vsub.f32 1.0, %v1993_v55  ;;  %v2013_v15 = vmul.f32 %v1993_v55, %v5591_v14 }
0x360f   :  { %2002 = vrot.lane.b32.xlu0 %v2000_v57, %s5002_s17 }
0x3681   :  { %v2003_v8 = vpop.permute.xlu0 %2002 }
0x3682   :  { %v2005_v61 = vadd.f32 %v2003_v8, %v1960_v58 }
0x3684   :  { %4604 = vtanh.f32 %v2005_v61 }
0x368a   :  { %v4605_v19 = vpop.eup %4604 }
0x368b   :  { %2009 = vrot.lane.b32.xlu2 %v4605_v19, %s5003_s3 }
0x36e5   :  { %v2010_v21 = vpop.permute.xlu2 %2009 }
0x36e6   :  { %v2012_v1 = vmul.f32 %v2010_v21, %v2007_v63 }
0x36e8   :  { %v5627_v11 = vadd.f32 %v2013_v15, %v2012_v1 }
0x36ea   :  { %2016 = vrot.lane.b32.xlu0 %v5627_v11, %s5003_s3 }
0x375c   :  { %v2017_v18 = vpop.permute.xlu0 %2016 }
0x375d   :  { %4399 = vmatmul.msk.f32.vlgmr.msrb.gmra.mxu0 %vm151_vm5, %v2017_v18 }
0x375e   :  { %2992 = vmatpush.msrb.mxu0 %v5430_v23 }
0x3760   :  { %2993 = vmatpush.msrb.mxu0 %v5433_v35 }
0x3762   :  { %2994 = vmatpush.msrb.mxu0 %v5436_v36 }
0x3764   :  { %2995 = vmatpush.msrb.mxu0 %v5439_v9 }
0x37da   :  { %v2037_v5 = vpop.f32.mrf.mxu0 }
0x37db   :  { %v5637_v14 = vadd.f32 %v5486_v32, %v2037_v5  ;;  %v2115_v37 = vadd.f32 %v2037_v5, %v5209_v20 }
0x37dd   :  { %v2041_v6 = vsel %vm839_vm8, %v5637_v14, -inf }
0x37de   :  { %2042 = vmax.xlane.f32.xlu1 %v2041_v6 }
0x37f7   :  { %2092 = vrot.lane.b32.xlu1 %v2037_v5, %s5005_s24 }
0x3851   :  { %v5642_v26 = vpop.xlane.xlu1 %2042 }
0x3852   :  { %vm2044_vm11 = vcmp.ge.f32.partialorder %v5637_v14, %v5642_v26 }
0x3853   :  { %v2045_v27 = vsel %vm2044_vm11, %v5249_v59, 16 }
0x3854   :  { %v2046_v28 = vsel %vm839_vm8, %v2045_v27, 2147483647 }
0x3855   :  { %v2048_v31 = vshra.s32 %v2046_v28, 16  ;;  %v2047_v39 = vand.u32 65535, %v2046_v28 }
0x3857   :  { %v2050_v33 = vcvt.s32.f32 %v2048_v31  ;;  %v2049_v43 = vcvt.s32.f32 %v2047_v39 }
0x3859   :  { %2051 = vmin.xlane.f32.xlu2 %v2050_v33 }
0x3869   :  { %v2093_v31 = vpop.permute.xlu1 %2092 }
0x3871   :  { %2117 = vrot.lane.b32.xlu2 %v2115_v37, %s5006_s25 }
0x38cc   :  { %v2052_v42 = vpop.xlane.xlu2 %2051 }
0x38cd   :  { %vm2053_vm12 = vcmp.eq.f32.partialorder %v2050_v33, %v2052_v42  ;;  %v2058_v45 = vcvt.f32.s32 %v2052_v42 }
0x38ce   :  { %v2054_v44 = vsel %vm2053_vm12, %v2049_v43, inf }
0x38cf   :  { %2055 = vmin.xlane.f32.xlu0 %v2054_v44  ;;  %v2059_v49 = vshll.u32 %v2058_v45, 16 }
0x3942   :  { %v2056_v47 = vpop.xlane.xlu0 %2055 }
0x3943   :  { %v2057_v52 = vcvt.f32.s32 %v2056_v47 }
0x3945   :  { %v2060_v53 = vadd.s32 %v2059_v49, %v2057_v52 }
0x3947   :  { %v2061_v55 = vperm.slane %v2060_v53, 0 }
0x3949   :  { %vm2062_vm14 = vcmp.eq.s32.totalorder %v5259_v10, %v2061_v55  ;;  %vm2063_vm15 = vcmp.eq.s32.totalorder %v5262_v16, %v2061_v55 }
0x394a   :  { %v4400_v57 = vsel %vm2062_vm14, 1.0, %v6650_v7  ;;  %v4401_v58 = vsel %vm2063_vm15, 1.0, %v6650_v7 }
0x394b   :  { %v2068_v8 = vmul.f32 %v5542_v17, %v4400_v57  ;;  %v2069_v61 = vmul.f32 %v5545_v4, %v4401_v58  ;;  %v2118_v58 = vpop.permute.xlu2 %2117 }
0x394d   :  { %v2070_v19 = vsel %vm869_vm13, %v2068_v8, 0.0  ;;  %v2071_v63 = vsel %vm869_vm13, %v2069_v61, 0.0 }
0x394e   :  { %v2072_v21 = vadd.f32 %v2071_v63, %v2070_v19 }
0x3950   :  { %v2073_v15 = vrot.slane %v2072_v21, 4 }
0x3952   :  { %v2074_v1 = vadd.f32 %v2073_v15, %v2072_v21 }
0x3954   :  { %v2075_v18 = vrot.slane %v2074_v1, 2 }
0x3956   :  { %v2076_v5 = vadd.f32 %v2075_v18, %v2074_v1 }
0x3958   :  { %v2077_v6 = vrot.slane %v2076_v5, 1 }
0x395a   :  { %v2078_v27 = vadd.f32 %v2077_v6, %v2076_v5 }
0x395c   :  { %v2079_v28 = vadd.f32 %v2078_v27, %v5223_v25  ;;  %v2080_v19 = vadd.f32 %v5469_v48, %v2078_v27 }
0x395e   :  { %v2095_v33 = vadd.f32 %v2093_v31, %v2079_v28 }
0x3960   :  { %v4402_v37 = vmul.f32 -1.442695, %v2095_v33 }
0x3962   :  { %4606 = vpow2.f32 %v4402_v37 }
0x3968   :  { %v4607_v39 = vpop.eup %4606 }
0x3969   :  { %v2099_v42 = vadd.f32 1.0, %v4607_v39 }
0x396b   :  { %4608 = vrcp.f32 %v2099_v42  ;;  %v2111_v47 = vand.u32 2147483648, %v2099_v42  ;;  %v2109_v52 = vand.u32 2147483647, %v2099_v42  ;;  %vm2105_vm1 = vweird.f32 %v2099_v42 }
0x396d   :  { %v2112_v55 = vor.u32 1.1754944e-38, %v2111_v47  ;;  %vm2110_vm3 = vcmp.eq.f32.partialorder %v2109_v52, 8.507059e+37 }
0x3971   :  { %v4609_v43 = vpop.eup %4608 }
0x3972   :  { %v2101_v44 = vmul.f32 %v4609_v43, %v2099_v42  ;;  %vm2106_vm0 = vweird.f32 %v4609_v43 }
0x3973   :  { %vm2107_vm2 = vmor %vm2105_vm1, %vm2106_vm0 }
0x3974   :  { %v2102_v45 = vsub.f32 1.0, %v2101_v44 }
0x3976   :  { %v2103_v49 = vmul.f32 %v4609_v43, %v2102_v45 }
0x3978   :  { %v2104_v53 = vadd.f32 %v4609_v43, %v2103_v49 }
0x397a   :  { %v2108_v57 = vsel %vm2107_vm2, %v4609_v43, %v2104_v53 }
0x397b   :  { %v2113_v8 = vsel %vm2110_vm3, %v2112_v55, %v2108_v57 }
0x397c   :  { %v2120_v61 = vmul.f32 %v2118_v58, %v2113_v8  ;;  %v2127_v1 = vsub.f32 1.0, %v2113_v8  ;;  %v2133_v5 = vmul.f32 %v2113_v8, %v5627_v11 }
0x397e   :  { %2122 = vrot.lane.b32.xlu0 %v2120_v61, %s5002_s17 }
0x39f0   :  { %v2123_v63 = vpop.permute.xlu0 %2122 }
0x39f1   :  { %v2125_v21 = vadd.f32 %v2123_v63, %v2080_v19 }
0x39f3   :  { %4610 = vtanh.f32 %v2125_v21 }
0x39f9   :  { %v4611_v15 = vpop.eup %4610 }
0x39fa   :  { %2129 = vrot.lane.b32.xlu1 %v4611_v15, %s5003_s3 }
0x3a6c   :  { %v2130_v18 = vpop.permute.xlu1 %2129 }
0x3a6d   :  { %v2132_v6 = vmul.f32 %v2130_v18, %v2127_v1 }
0x3a6f   :  { %v5663_v28 = vadd.f32 %v2133_v5, %v2132_v6 }
0x3a71   :  { %2136 = vrot.lane.b32.xlu0 %v5663_v28, %s5003_s3 }
0x3ae3   :  { %v2137_v31 = vpop.permute.xlu0 %2136 }
0x3ae4   :  { %4403 = vmatmul.msk.f32.vlgmr.msrb.gmra.mxu1 %vm151_vm5, %v2137_v31 }
0x3ae5   :  { %3112 = vmatpush.msrb.mxu1 %v5430_v23 }
0x3ae7   :  { %3113 = vmatpush.msrb.mxu1 %v5433_v35 }
0x3ae9   :  { %3114 = vmatpush.msrb.mxu1 %v5436_v36 }
0x3aeb   :  { %3115 = vmatpush.msrb.mxu1 %v5439_v9 }
0x3b61   :  { %v2157_v27 = vpop.f32.mrf.mxu1 }
0x3b62   :  { %v5673_v11 = vadd.f32 %v5486_v32, %v2157_v27  ;;  %v2235_v39 = vadd.f32 %v2157_v27, %v5209_v20 }
0x3b64   :  { %v2161_v33 = vsel %vm839_vm8, %v5673_v11, -inf }
0x3b65   :  { %2162 = vmax.xlane.f32.xlu2 %v2161_v33 }
0x3b7d   :  { %2212 = vrot.lane.b32.xlu2 %v2157_v27, %s5005_s24 }
0x3bd8   :  { %v5678_v37 = vpop.xlane.xlu2 %2162 }
0x3bd9   :  { %vm2164_vm4 = vcmp.ge.f32.partialorder %v5673_v11, %v5678_v37 }
0x3bda   :  { %v2165_v23 = vsel %vm2164_vm4, %v5249_v59, 16 }
0x3bdb   :  { %v2166_v35 = vsel %vm839_vm8, %v2165_v23, 2147483647 }
0x3bdc   :  { %v2168_v36 = vshra.s32 %v2166_v35, 16  ;;  %v2167_v42 = vand.u32 65535, %v2166_v35 }
0x3bde   :  { %v2170_v9 = vcvt.s32.f32 %v2168_v36  ;;  %v2169_v44 = vcvt.s32.f32 %v2167_v42 }
0x3be0   :  { %2171 = vmin.xlane.f32.xlu1 %v2170_v9  ;;  %v2213_v23 = vpop.permute.xlu2 %2212 }
0x3bf9   :  { %2237 = vrot.lane.b32.xlu1 %v2235_v39, %s5006_s25 }
0x3c53   :  { %v2172_v43 = vpop.xlane.xlu1 %2171 }
0x3c54   :  { %vm2173_vm6 = vcmp.eq.f32.partialorder %v2170_v9, %v2172_v43  ;;  %v2178_v47 = vcvt.f32.s32 %v2172_v43 }
0x3c55   :  { %v2174_v45 = vsel %vm2173_vm6, %v2169_v44, inf }
0x3c56   :  { %2175 = vmin.xlane.f32.xlu0 %v2174_v45  ;;  %v2179_v52 = vshll.u32 %v2178_v47, 16 }
0x3cc9   :  { %v2176_v49 = vpop.xlane.xlu0 %2175 }
0x3cca   :  { %v2177_v53 = vcvt.f32.s32 %v2176_v49 }
0x3ccc   :  { %v2180_v55 = vadd.s32 %v2179_v52, %v2177_v53 }
0x3cce   :  { %v2181_v57 = vperm.slane %v2180_v55, 0 }
0x3cd0   :  { %vm2182_vm7 = vcmp.eq.s32.totalorder %v5259_v10, %v2181_v57  ;;  %vm2183_vm9 = vcmp.eq.s32.totalorder %v5262_v16, %v2181_v57  ;;  %v2238_v57 = vpop.permute.xlu1 %2237 }
0x3cd1   :  { %v4404_v58 = vsel %vm2182_vm7, 1.0, %v6650_v7  ;;  %v4405_v8 = vsel %vm2183_vm9, 1.0, %v6650_v7 }
0x3cd2   :  { %v2188_v61 = vmul.f32 %v5542_v17, %v4404_v58  ;;  %v2189_v19 = vmul.f32 %v5545_v4, %v4405_v8 }
0x3cd4   :  { %v2190_v63 = vsel %vm869_vm13, %v2188_v61, 0.0  ;;  %v2191_v21 = vsel %vm869_vm13, %v2189_v19, 0.0 }
0x3cd5   :  { %v2192_v15 = vadd.f32 %v2191_v21, %v2190_v63 }
0x3cd7   :  { %v2193_v1 = vrot.slane %v2192_v15, 4 }
0x3cd9   :  { %v2194_v18 = vadd.f32 %v2193_v1, %v2192_v15 }
0x3cdb   :  { %v2195_v5 = vrot.slane %v2194_v18, 2 }
0x3cdd   :  { %v2196_v6 = vadd.f32 %v2195_v5, %v2194_v18 }
0x3cdf   :  { %v2197_v31 = vrot.slane %v2196_v6, 1 }
0x3ce1   :  { %v2198_v27 = vadd.f32 %v2197_v31, %v2196_v6 }
0x3ce3   :  { %v2199_v33 = vadd.f32 %v2198_v27, %v5223_v25  ;;  %v2200_v61 = vadd.f32 %v5469_v48, %v2198_v27  ;;  %v5704_v48 = vld [vmem:[#allocation9 + $0x18] sm:$0xff]  ;;  %v5707_v27 = vld [vmem:[#allocation9 + $0x10] sm:$0xff] }
0x3ce5   :  { %v2215_v35 = vadd.f32 %v2213_v23, %v2199_v33  ;;  %v5710_v33 = vld [vmem:[#allocation9 + $0x8] sm:$0xff] }
0x3ce7   :  { %v4406_v36 = vmul.f32 -1.442695, %v2215_v35 }
0x3ce9   :  { %4612 = vpow2.f32 %v4406_v36 }
0x3cef   :  { %v4613_v9 = vpop.eup %4612 }
0x3cf0   :  { %v2219_v39 = vadd.f32 1.0, %v4613_v9 }
0x3cf2   :  { %4614 = vrcp.f32 %v2219_v39  ;;  %v2231_v45 = vand.u32 2147483648, %v2219_v39  ;;  %v2229_v49 = vand.u32 2147483647, %v2219_v39  ;;  %vm2225_vm11 = vweird.f32 %v2219_v39 }
0x3cf4   :  { %v2232_v53 = vor.u32 1.1754944e-38, %v2231_v45  ;;  %vm2230_vm14 = vcmp.eq.f32.partialorder %v2229_v49, 8.507059e+37 }
0x3cf8   :  { %v4615_v42 = vpop.eup %4614 }
0x3cf9   :  { %v2221_v43 = vmul.f32 %v4615_v42, %v2219_v39  ;;  %vm2226_vm10 = vweird.f32 %v4615_v42 }
0x3cfa   :  { %vm2227_vm12 = vmor %vm2225_vm11, %vm2226_vm10 }
0x3cfb   :  { %v2222_v44 = vsub.f32 1.0, %v2221_v43 }
0x3cfd   :  { %v2223_v47 = vmul.f32 %v4615_v42, %v2222_v44 }
0x3cff   :  { %v2224_v52 = vadd.f32 %v4615_v42, %v2223_v47 }
0x3d01   :  { %v2228_v55 = vsel %vm2227_vm12, %v4615_v42, %v2224_v52 }
0x3d02   :  { %v2233_v58 = vsel %vm2230_vm14, %v2232_v53, %v2228_v55 }
0x3d03   :  { %v2240_v8 = vmul.f32 %v2238_v57, %v2233_v58  ;;  %v2247_v15 = vsub.f32 1.0, %v2233_v58  ;;  %v2253_v18 = vmul.f32 %v2233_v58, %v5663_v28  ;;  %v5713_v28 = vld [vmem:[#allocation9] sm:$0xff] }
0x3d05   :  { %2242 = vrot.lane.b32.xlu0 %v2240_v8, %s5002_s17 }
0x3d77   :  { %v2243_v19 = vpop.permute.xlu0 %2242 }
0x3d78   :  { %v2245_v63 = vadd.f32 %v2243_v19, %v2200_v61 }
0x3d7a   :  { %4616 = vtanh.f32 %v2245_v63 }
0x3d80   :  { %v4617_v21 = vpop.eup %4616 }
0x3d81   :  { %2249 = vrot.lane.b32.xlu2 %v4617_v21, %s5003_s3 }
0x3ddb   :  { %v2250_v1 = vpop.permute.xlu2 %2249 }
0x3ddc   :  { %v2252_v5 = vmul.f32 %v2250_v1, %v2247_v15 }
0x3dde   :  { %v5699_v6 = vadd.f32 %v2253_v18, %v2252_v5 }
0x3de0   :  { %2256 = vrot.lane.b32.xlu0 %v5699_v6, %s5003_s3 }
0x3e52   :  { %v2257_v31 = vpop.permute.xlu0 %2256 }
0x3e53   :  { %4407 = vmatmul.msk.f32.vlgmr.msrb.gmra.mxu2 %vm151_vm5, %v2257_v31 }
0x3e54   :  { %3232 = vmatpush.msrb.mxu2 %v5704_v48 }
0x3e56   :  { %3233 = vmatpush.msrb.mxu2 %v5707_v27 }
0x3e58   :  { %3234 = vmatpush.msrb.mxu2 %v5710_v33 }
0x3e5a   :  { %3235 = vmatpush.msrb.mxu2 %v5713_v28 }
0x3ed6   :  { %v2277_v23 = vpop.f32.mrf.mxu2 }
0x3ed7   :  { %v5717_v35 = vadd.f32 %v5486_v32, %v2277_v23  ;;  %v2355_v9 = vadd.f32 %v2277_v23, %v5209_v20 }
0x3ed9   :  { %6674 = vst [vmem:[#allocation15_spill] sm:$0xff] %v5717_v35  ;;  %v2281_v36 = vsel %vm839_vm8, %v5717_v35, -inf }
0x3eda   :  { %2282 = vmax.xlane.f32.xlu1 %v2281_v36 }
0x3ef3   :  { %2357 = vrot.lane.b32.xlu1 %v2355_v9, %s5006_s25 }
0x3f4d   :  { %v5723_v39 = vpop.xlane.xlu1 %2282 }
0x3f4e   :  { %6675 = vst [vmem:[#allocation16_spill] sm:$0xff] %v5723_v39  ;;  %vm2284_vm15 = vcmp.ge.f32.partialorder %v5717_v35, %v5723_v39 }
0x3f4f   :  { %v2285_v42 = vsel %vm2284_vm15, %v5249_v59, 16 }
0x3f50   :  { %v2286_v43 = vsel %vm839_vm8, %v2285_v42, 2147483647 }
0x3f51   :  { %v2288_v44 = vshra.s32 %v2286_v43, 16  ;;  %v2287_v45 = vand.u32 65535, %v2286_v43 }
0x3f53   :  { %v2290_v32 = vcvt.s32.f32 %v2288_v44  ;;  %v2289_v49 = vcvt.s32.f32 %v2287_v45 }
0x3f55   :  { %2291 = vmin.xlane.f32.xlu2 %v2290_v32 }
0x3f6d   :  { %2332 = vrot.lane.b32.xlu2 %v2277_v23, %s5005_s24 }
0x3fc8   :  { %v2292_v47 = vpop.xlane.xlu2 %2291 }
0x3fc9   :  { %vm2293_vm0 = vcmp.eq.f32.partialorder %v2290_v32, %v2292_v47  ;;  %v2298_v53 = vcvt.f32.s32 %v2292_v47 }
0x3fca   :  { %v2294_v52 = vsel %vm2293_vm0, %v2289_v49, inf }
0x3fcb   :  { %2295 = vmin.xlane.f32.xlu0 %v2294_v52  ;;  %v2299_v57 = vshll.u32 %v2298_v53, 16 }
0x3fd0   :  { %v2333_v32 = vpop.permute.xlu2 %2332 }
0x403e   :  { %v2296_v55 = vpop.xlane.xlu0 %2295 }
0x403f   :  { %v2297_v58 = vcvt.f32.s32 %v2296_v55 }
0x4041   :  { %v2300_v8 = vadd.s32 %v2299_v57, %v2297_v58 }
0x4043   :  { %v2301_v61 = vperm.slane %v2300_v8, 0 }
0x4045   :  { %vm2302_vm1 = vcmp.eq.s32.totalorder %v5259_v10, %v2301_v61  ;;  %vm2303_vm2 = vcmp.eq.s32.totalorder %v5262_v16, %v2301_v61 }
0x4046   :  { %v4408_v19 = vsel %vm2302_vm1, 1.0, %v6650_v7  ;;  %v4409_v63 = vsel %vm2303_vm2, 1.0, %v6650_v7 }
0x4047   :  { %v2308_v21 = vmul.f32 %v5542_v17, %v4408_v19  ;;  %v2309_v15 = vmul.f32 %v5545_v4, %v4409_v63 }
0x4049   :  { %v2310_v1 = vsel %vm869_vm13, %v2308_v21, 0.0  ;;  %v2311_v18 = vsel %vm869_vm13, %v2309_v15, 0.0  ;;  %v2358_v15 = vpop.permute.xlu1 %2357 }
0x404a   :  { %v2312_v5 = vadd.f32 %v2311_v18, %v2310_v1 }
0x404c   :  { %v2313_v31 = vrot.slane %v2312_v5, 4 }
0x404e   :  { %v2314_v23 = vadd.f32 %v2313_v31, %v2312_v5  ;;  %v5743_v5 = vld [vmem:[%s6646_s7] sm:$0x1] }
0x4050   :  { %v2315_v36 = vrot.slane %v2314_v23, 2 }
0x4052   :  { %v2316_v9 = vadd.f32 %v2315_v36, %v2314_v23 }
0x4054   :  { %v2317_v42 = vrot.slane %v2316_v9, 1 }
0x4056   :  { %v2318_v43 = vadd.f32 %v2317_v42, %v2316_v9 }
0x4058   :  { %v2319_v44 = vadd.f32 %v2318_v43, %v5223_v25  ;;  %v2320_v31 = vadd.f32 %v5743_v5, %v2318_v43 }
0x405a   :  { %v2335_v45 = vadd.f32 %v2333_v32, %v2319_v44 }
0x405c   :  { %v4410_v47 = vmul.f32 -1.442695, %v2335_v45 }
0x405e   :  { %4618 = vpow2.f32 %v4410_v47 }
0x4064   :  { %v4619_v49 = vpop.eup %4618 }
0x4065   :  { %v2339_v52 = vadd.f32 1.0, %v4619_v49 }
0x4067   :  { %4620 = vrcp.f32 %v2339_v52  ;;  %v2351_v58 = vand.u32 2147483648, %v2339_v52  ;;  %v2349_v61 = vand.u32 2147483647, %v2339_v52  ;;  %vm2345_vm4 = vweird.f32 %v2339_v52 }
0x4069   :  { %v2352_v63 = vor.u32 1.1754944e-38, %v2351_v58  ;;  %vm2350_vm7 = vcmp.eq.f32.partialorder %v2349_v61, 8.507059e+37 }
0x406d   :  { %v4621_v53 = vpop.eup %4620 }
0x406e   :  { %v2341_v55 = vmul.f32 %v4621_v53, %v2339_v52  ;;  %vm2346_vm3 = vweird.f32 %v4621_v53 }
0x406f   :  { %vm2347_vm6 = vmor %vm2345_vm4, %vm2346_vm3 }
0x4070   :  { %v2342_v57 = vsub.f32 1.0, %v2341_v55 }
0x4072   :  { %v2343_v8 = vmul.f32 %v4621_v53, %v2342_v57 }
0x4074   :  { %v2344_v19 = vadd.f32 %v4621_v53, %v2343_v8 }
0x4076   :  { %v2348_v21 = vsel %vm2347_vm6, %v4621_v53, %v2344_v19 }
0x4077   :  { %v2353_v1 = vsel %vm2350_vm7, %v2352_v63, %v2348_v21 }
0x4078   :  { %v2360_v18 = vmul.f32 %v2358_v15, %v2353_v1  ;;  %v2367_v42 = vsub.f32 1.0, %v2353_v1  ;;  %v2373_v32 = vmul.f32 %v2353_v1, %v5699_v6  ;;  %v5760_v6 = vld [vmem:[%s6648_s9] sm:$0x1] }
0x407a   :  { %2362 = vrot.lane.b32.xlu0 %v2360_v18, %s5002_s17 }
0x40ec   :  { %v2363_v23 = vpop.permute.xlu0 %2362 }
0x40ed   :  { %v2365_v36 = vadd.f32 %v2363_v23, %v2320_v31 }
0x40ef   :  { %4622 = vtanh.f32 %v2365_v36 }
0x40f5   :  { %v4623_v9 = vpop.eup %4622 }
0x40f6   :  { %2369 = vrot.lane.b32.xlu2 %v4623_v9, %s5003_s3 }
0x4150   :  { %v2370_v44 = vpop.permute.xlu2 %2369 }
0x4151   :  { %v2372_v45 = vmul.f32 %v2370_v44, %v2367_v42 }
0x4153   :  { %v5748_v47 = vadd.f32 %v2373_v32, %v2372_v45 }
0x4155   :  { %2376 = vrot.lane.b32.xlu0 %v5748_v47, %s5003_s3 }
0x41c7   :  { %v2377_v49 = vpop.permute.xlu0 %2376 }
0x41c8   :  { %4411 = vmatmul.msk.f32.vlgmr.msrb.gmra.mxu3 %vm151_vm5, %v2377_v49 }
0x41c9   :  { %3352 = vmatpush.msrb.mxu3 %v5704_v48 }
0x41cb   :  { %3353 = vmatpush.msrb.mxu3 %v5707_v27 }
0x41cd   :  { %3354 = vmatpush.msrb.mxu3 %v5710_v33 }
0x41cf   :  { %3355 = vmatpush.msrb.mxu3 %v5713_v28 }
0x424b   :  { %v2397_v43 = vpop.f32.mrf.mxu3 }
0x424c   :  { %v5763_v52 = vadd.f32 %v5760_v6, %v2397_v43  ;;  %v2475_v19 = vadd.f32 %v2397_v43, %v5209_v20 }
0x424e   :  { %v2401_v53 = vsel %vm839_vm8, %v5763_v52, -inf }
0x424f   :  { %2402 = vmax.xlane.f32.xlu1 %v2401_v53 }
0x4268   :  { %2452 = vrot.lane.b32.xlu1 %v2397_v43, %s5005_s24 }
0x42c2   :  { %v5768_v55 = vpop.xlane.xlu1 %2402 }
0x42c3   :  { %vm2404_vm9 = vcmp.ge.f32.partialorder %v5763_v52, %v5768_v55 }
0x42c4   :  { %v2405_v57 = vsel %vm2404_vm9, %v5249_v59, 16 }
0x42c5   :  { %v2406_v58 = vsel %vm839_vm8, %v2405_v57, 2147483647 }
0x42c6   :  { %v2408_v8 = vshra.s32 %v2406_v58, 16  ;;  %v2407_v63 = vand.u32 65535, %v2406_v58 }
0x42c8   :  { %v2410_v61 = vcvt.s32.f32 %v2408_v8  ;;  %v2409_v15 = vcvt.s32.f32 %v2407_v63 }
0x42ca   :  { %2411 = vmin.xlane.f32.xlu2 %v2410_v61 }
0x42e2   :  { %2477 = vrot.lane.b32.xlu2 %v2475_v19, %s5006_s25 }
0x433d   :  { %v2412_v21 = vpop.xlane.xlu2 %2411 }
0x433e   :  { %vm2413_vm10 = vcmp.eq.f32.partialorder %v2410_v61, %v2412_v21  ;;  %v2418_v18 = vcvt.f32.s32 %v2412_v21 }
0x433f   :  { %v2414_v1 = vsel %vm2413_vm10, %v2409_v15, inf }
0x4340   :  { %2415 = vmin.xlane.f32.xlu0 %v2414_v1  ;;  %v2419_v23 = vshll.u32 %v2418_v18, 16  ;;  %v2453_v1 = vpop.permute.xlu1 %2452 }
0x43b3   :  { %v2416_v31 = vpop.xlane.xlu0 %2415 }
0x43b4   :  { %v2417_v36 = vcvt.f32.s32 %v2416_v31 }
0x43b6   :  { %v2420_v9 = vadd.s32 %v2419_v23, %v2417_v36 }
0x43b8   :  { %v2421_v42 = vperm.slane %v2420_v9, 0 }
0x43ba   :  { %vm2422_vm11 = vcmp.eq.s32.totalorder %v5259_v10, %v2421_v42  ;;  %vm2423_vm12 = vcmp.eq.s32.totalorder %v5262_v16, %v2421_v42 }
0x43bb   :  { %v4412_v44 = vsel %vm2422_vm11, 1.0, %v6650_v7  ;;  %v4413_v32 = vsel %vm2423_vm12, 1.0, %v6650_v7 }
0x43bc   :  { %v2428_v45 = vmul.f32 %v5542_v17, %v4412_v44  ;;  %v2429_v49 = vmul.f32 %v5545_v4, %v4413_v32 }
0x43be   :  { %v2430_v43 = vsel %vm869_vm13, %v2428_v45, 0.0  ;;  %v2431_v53 = vsel %vm869_vm13, %v2429_v49, 0.0 }
0x43bf   :  { %v2432_v57 = vadd.f32 %v2431_v53, %v2430_v43  ;;  %v2478_v53 = vpop.permute.xlu2 %2477 }
0x43c1   :  { %v2433_v58 = vrot.slane %v2432_v57, 4 }
0x43c3   :  { %v2434_v8 = vadd.f32 %v2433_v58, %v2432_v57 }
0x43c5   :  { %v2435_v61 = vrot.slane %v2434_v8, 2 }
0x43c7   :  { %v2436_v19 = vadd.f32 %v2435_v61, %v2434_v8 }
0x43c9   :  { %v2437_v63 = vrot.slane %v2436_v19, 1 }
0x43cb   :  { %v2438_v21 = vadd.f32 %v2437_v63, %v2436_v19 }
0x43cd   :  { %v2439_v15 = vadd.f32 %v2438_v21, %v5223_v25  ;;  %v2440_v8 = vadd.f32 %v5743_v5, %v2438_v21 }
0x43cf   :  { %v2455_v18 = vadd.f32 %v2453_v1, %v2439_v15 }
0x43d1   :  { %v4414_v31 = vmul.f32 -1.442695, %v2455_v18 }
0x43d3   :  { %4624 = vpow2.f32 %v4414_v31 }
0x43d9   :  { %v4625_v17 = vpop.eup %4624 }
0x43da   :  { %v2459_v23 = vadd.f32 1.0, %v4625_v17 }
0x43dc   :  { %4626 = vrcp.f32 %v2459_v23  ;;  %v2471_v42 = vand.u32 2147483648, %v2459_v23  ;;  %v2469_v32 = vand.u32 2147483647, %v2459_v23  ;;  %vm2465_vm15 = vweird.f32 %v2459_v23 }
0x43de   :  { %v2472_v49 = vor.u32 1.1754944e-38, %v2471_v42  ;;  %vm2470_vm1 = vcmp.eq.f32.partialorder %v2469_v32, 8.507059e+37 }
0x43e2   :  { %v4627_v4 = vpop.eup %4626 }
0x43e3   :  { %v2461_v36 = vmul.f32 %v4627_v4, %v2459_v23  ;;  %vm2466_vm14 = vweird.f32 %v4627_v4 }
0x43e4   :  { %vm2467_vm0 = vmor %vm2465_vm15, %vm2466_vm14 }
0x43e5   :  { %v2462_v9 = vsub.f32 1.0, %v2461_v36 }
0x43e7   :  { %v2463_v44 = vmul.f32 %v4627_v4, %v2462_v9 }
0x43e9   :  { %v2464_v45 = vadd.f32 %v4627_v4, %v2463_v44 }
0x43eb   :  { %v2468_v43 = vsel %vm2467_vm0, %v4627_v4, %v2464_v45 }
0x43ec   :  { %v2473_v57 = vsel %vm2470_vm1, %v2472_v49, %v2468_v43 }
0x43ed   :  { %v2480_v58 = vmul.f32 %v2478_v53, %v2473_v57  ;;  %v2487_v15 = vsub.f32 1.0, %v2473_v57  ;;  %v2493_v18 = vmul.f32 %v2473_v57, %v5748_v47 }
0x43ef   :  { %2482 = vrot.lane.b32.xlu0 %v2480_v58, %s5002_s17 }
0x4461   :  { %v2483_v61 = vpop.permute.xlu0 %2482 }
0x4462   :  { %v2485_v19 = vadd.f32 %v2483_v61, %v2440_v8 }
0x4464   :  { %4628 = vtanh.f32 %v2485_v19 }
0x446a   :  { %v4629_v63 = vpop.eup %4628 }
0x446b   :  { %2489 = vrot.lane.b32.xlu1 %v4629_v63, %s5003_s3 }
0x44dd   :  { %v2490_v1 = vpop.permute.xlu1 %2489 }
0x44de   :  { %v2492_v31 = vmul.f32 %v2490_v1, %v2487_v15 }
0x44e0   :  { %v5789_v17 = vadd.f32 %v2493_v18, %v2492_v31  ;;  %v5816_v31 = vld [vmem:[#allocation7] sm:$0xff] }
0x44e2   :  { %2496 = vrot.lane.b32.xlu0 %v5789_v17, %s5003_s3 }
0x4554   :  { %v2497_v23 = vpop.permute.xlu0 %2496 }
0x4555   :  { %4415 = vmatmul.msk.f32.vlgmr.msra.gmra.mxu0 %vm151_vm5, %v2497_v23 }
0x4556   :  { %3472 = vmatpush.msra.mxu0 %v5704_v48 }
0x4558   :  { %3473 = vmatpush.msra.mxu0 %v5707_v27 }
0x455a   :  { %3474 = vmatpush.msra.mxu0 %v5710_v33 }
0x455c   :  { %3475 = vmatpush.msra.mxu0 %v5713_v28 }
0x45d2   :  { %v2517_v21 = vpop.f32.mrf.mxu0 }
0x45d3   :  { %v5799_v47 = vadd.f32 %v5760_v6, %v2517_v21  ;;  %v2595_v45 = vadd.f32 %v2517_v21, %v5209_v20 }
0x45d5   :  { %v2521_v4 = vsel %vm839_vm8, %v5799_v47, -inf }
0x45d6   :  { %2522 = vmax.xlane.f32.xlu2 %v2521_v4 }
0x45ee   :  { %2572 = vrot.lane.b32.xlu2 %v2517_v21, %s5005_s24  ;;  %v5819_v21 = vld [vmem:[#allocation7 + $0x8] sm:$0xff] }
0x4649   :  { %v5804_v36 = vpop.xlane.xlu2 %2522 }
0x464a   :  { %vm2524_vm2 = vcmp.ge.f32.partialorder %v5799_v47, %v5804_v36 }
0x464b   :  { %v2525_v9 = vsel %vm2524_vm2, %v5249_v59, 16 }
0x464c   :  { %v2526_v42 = vsel %vm839_vm8, %v2525_v9, 2147483647 }
0x464d   :  { %v2528_v44 = vshra.s32 %v2526_v42, 16  ;;  %v2527_v49 = vand.u32 65535, %v2526_v42 }
0x464f   :  { %v2530_v32 = vcvt.s32.f32 %v2528_v44  ;;  %v2529_v53 = vcvt.s32.f32 %v2527_v49 }
0x4651   :  { %2531 = vmin.xlane.f32.xlu1 %v2530_v32 }
0x466a   :  { %2597 = vrot.lane.b32.xlu1 %v2595_v45, %s5006_s25 }
0x46c4   :  { %v2532_v43 = vpop.xlane.xlu1 %2531 }
0x46c5   :  { %vm2533_vm3 = vcmp.eq.f32.partialorder %v2530_v32, %v2532_v43  ;;  %v2538_v58 = vcvt.f32.s32 %v2532_v43 }
0x46c6   :  { %v2534_v57 = vsel %vm2533_vm3, %v2529_v53, inf }
0x46c7   :  { %2535 = vmin.xlane.f32.xlu0 %v2534_v57  ;;  %v2539_v61 = vshll.u32 %v2538_v58, 16 }
0x473a   :  { %v2536_v8 = vpop.xlane.xlu0 %2535 }
0x473b   :  { %v2537_v19 = vcvt.f32.s32 %v2536_v8  ;;  %v2573_v8 = vpop.permute.xlu2 %2572 }
0x473d   :  { %v2540_v63 = vadd.s32 %v2539_v61, %v2537_v19 }
0x473f   :  { %v2541_v15 = vperm.slane %v2540_v63, 0 }
0x4741   :  { %vm2542_vm4 = vcmp.eq.s32.totalorder %v5259_v10, %v2541_v15  ;;  %vm2543_vm6 = vcmp.eq.s32.totalorder %v5262_v16, %v2541_v15 }
0x4742   :  { %v4416_v1 = vsel %vm2542_vm4, 1.0, %v6650_v7  ;;  %v4417_v18 = vsel %vm2543_vm6, 1.0, %v6650_v7 }
0x4743   :  { %v2548_v23 = vmul.f32 %v5816_v31, %v4416_v1  ;;  %v2549_v4 = vmul.f32 %v5819_v21, %v4417_v18 }
0x4745   :  { %v2550_v9 = vsel %vm869_vm13, %v2548_v23, 0.0  ;;  %v2551_v42 = vsel %vm869_vm13, %v2549_v4, 0.0 }
0x4746   :  { %v2552_v44 = vadd.f32 %v2551_v42, %v2550_v9 }
0x4748   :  { %v2553_v32 = vrot.slane %v2552_v44, 4 }
0x474a   :  { %v2554_v45 = vadd.f32 %v2553_v32, %v2552_v44 }
0x474c   :  { %v2555_v49 = vrot.slane %v2554_v45, 2 }
0x474e   :  { %v2556_v43 = vadd.f32 %v2555_v49, %v2554_v45  ;;  %v2598_v49 = vpop.permute.xlu1 %2597 }
0x4750   :  { %v2557_v53 = vrot.slane %v2556_v43, 1 }
0x4752   :  { %v2558_v57 = vadd.f32 %v2557_v53, %v2556_v43 }
0x4754   :  { %v2559_v58 = vadd.f32 %v2558_v57, %v5223_v25 }
0x4756   :  { %v2575_v61 = vadd.f32 %v2573_v8, %v2559_v58  ;;  %v2560_v58 = vadd.f32 %v5743_v5, %v2558_v57 }
0x4758   :  { %v4418_v19 = vmul.f32 -1.442695, %v2575_v61 }
0x475a   :  { %4630 = vpow2.f32 %v4418_v19 }
0x4760   :  { %v4631_v63 = vpop.eup %4630 }
0x4761   :  { %v2579_v15 = vadd.f32 1.0, %v4631_v63 }
0x4763   :  { %4632 = vrcp.f32 %v2579_v15  ;;  %v2591_v4 = vand.u32 2147483648, %v2579_v15  ;;  %v2589_v42 = vand.u32 2147483647, %v2579_v15  ;;  %vm2585_vm9 = vweird.f32 %v2579_v15 }
0x4765   :  { %v2592_v32 = vor.u32 1.1754944e-38, %v2591_v4  ;;  %vm2590_vm11 = vcmp.eq.f32.partialorder %v2589_v42, 8.507059e+37 }
0x4769   :  { %v4633_v1 = vpop.eup %4632 }
0x476a   :  { %v2581_v18 = vmul.f32 %v4633_v1, %v2579_v15  ;;  %vm2586_vm7 = vweird.f32 %v4633_v1 }
0x476b   :  { %vm2587_vm10 = vmor %vm2585_vm9, %vm2586_vm7 }
0x476c   :  { %v2582_v23 = vsub.f32 1.0, %v2581_v18 }
0x476e   :  { %v2583_v9 = vmul.f32 %v4633_v1, %v2582_v23 }
0x4770   :  { %v2584_v44 = vadd.f32 %v4633_v1, %v2583_v9 }
0x4772   :  { %v2588_v45 = vsel %vm2587_vm10, %v4633_v1, %v2584_v44 }
0x4773   :  { %v2593_v43 = vsel %vm2590_vm11, %v2592_v32, %v2588_v45 }
0x4774   :  { %v2600_v53 = vmul.f32 %v2598_v49, %v2593_v43  ;;  %v2607_v63 = vsub.f32 1.0, %v2593_v43  ;;  %v2613_v15 = vmul.f32 %v2593_v43, %v5789_v17 }
0x4776   :  { %2602 = vrot.lane.b32.xlu0 %v2600_v53, %s5002_s17 }
0x47e8   :  { %v2603_v8 = vpop.permute.xlu0 %2602 }
0x47e9   :  { %v2605_v61 = vadd.f32 %v2603_v8, %v2560_v58 }
0x47eb   :  { %4634 = vtanh.f32 %v2605_v61 }
0x47f1   :  { %v4635_v19 = vpop.eup %4634 }
0x47f2   :  { %2609 = vrot.lane.b32.xlu2 %v4635_v19, %s5003_s3 }
0x484c   :  { %v2610_v18 = vpop.permute.xlu2 %2609 }
0x484d   :  { %v2612_v23 = vmul.f32 %v2610_v18, %v2607_v63 }
0x484f   :  { %v5829_v1 = vadd.f32 %v2613_v15, %v2612_v23 }
0x4851   :  { %2616 = vrot.lane.b32.xlu0 %v5829_v1, %s5003_s3 }
0x48c3   :  { %v2617_v4 = vpop.permute.xlu0 %2616 }
0x48c4   :  { %4419 = vmatmul.msk.f32.vlgmr.msra.gmra.mxu1 %vm151_vm5, %v2617_v4 }
0x48c5   :  { %3592 = vmatpush.msra.mxu1 %v5704_v48 }
0x48c7   :  { %3593 = vmatpush.msra.mxu1 %v5707_v27 }
0x48c9   :  { %3594 = vmatpush.msra.mxu1 %v5710_v33 }
0x48cb   :  { %3595 = vmatpush.msra.mxu1 %v5713_v28 }
0x4941   :  { %v2637_v57 = vpop.f32.mrf.mxu1 }
0x4942   :  { %v5839_v17 = vadd.f32 %v5760_v6, %v2637_v57  ;;  %v2715_v43 = vadd.f32 %v2637_v57, %v5209_v20 }
0x4944   :  { %6676 = vst [vmem:[#allocation17_spill] sm:$0xff] %v5839_v17  ;;  %v2641_v9 = vsel %vm839_vm8, %v5839_v17, -inf }
0x4945   :  { %2642 = vmax.xlane.f32.xlu1 %v2641_v9 }
0x495e   :  { %2692 = vrot.lane.b32.xlu1 %v2637_v57, %s5005_s24 }
0x49b8   :  { %v5844_v42 = vpop.xlane.xlu1 %2642 }
0x49b9   :  { %6677 = vst [vmem:[#allocation18_spill] sm:$0xff] %v5844_v42  ;;  %vm2644_vm12 = vcmp.ge.f32.partialorder %v5839_v17, %v5844_v42 }
0x49ba   :  { %v2645_v44 = vsel %vm2644_vm12, %v5249_v59, 16 }
0x49bb   :  { %v2646_v32 = vsel %vm839_vm8, %v2645_v44, 2147483647 }
0x49bc   :  { %v2648_v45 = vshra.s32 %v2646_v32, 16  ;;  %v2647_v53 = vand.u32 65535, %v2646_v32 }
0x49be   :  { %v2650_v49 = vcvt.s32.f32 %v2648_v45  ;;  %v2649_v8 = vcvt.s32.f32 %v2647_v53 }
0x49c0   :  { %2651 = vmin.xlane.f32.xlu2 %v2650_v49 }
0x49d8   :  { %2717 = vrot.lane.b32.xlu2 %v2715_v43, %s5006_s25 }
0x4a33   :  { %v2652_v58 = vpop.xlane.xlu2 %2651 }
0x4a34   :  { %vm2653_vm14 = vcmp.eq.f32.partialorder %v2650_v49, %v2652_v58  ;;  %v2658_v19 = vcvt.f32.s32 %v2652_v58 }
0x4a35   :  { %v2654_v61 = vsel %vm2653_vm14, %v2649_v8, inf }
0x4a36   :  { %2655 = vmin.xlane.f32.xlu0 %v2654_v61  ;;  %v2659_v18 = vshll.u32 %v2658_v19, 16 }
0x4aa9   :  { %v2656_v63 = vpop.xlane.xlu0 %2655 }
0x4aaa   :  { %v2657_v15 = vcvt.f32.s32 %v2656_v63 }
0x4aac   :  { %v2660_v23 = vadd.s32 %v2659_v18, %v2657_v15  ;;  %v2693_v15 = vpop.permute.xlu1 %2692 }
0x4aae   :  { %v2661_v4 = vperm.slane %v2660_v23, 0 }
0x4ab0   :  { %vm2662_vm15 = vcmp.eq.s32.totalorder %v5259_v10, %v2661_v4  ;;  %vm2663_vm0 = vcmp.eq.s32.totalorder %v5262_v16, %v2661_v4 }
0x4ab1   :  { %v4420_v57 = vsel %vm2662_vm15, 1.0, %v6650_v7  ;;  %v4421_v9 = vsel %vm2663_vm0, 1.0, %v6650_v7 }
0x4ab2   :  { %v2668_v44 = vmul.f32 %v5816_v31, %v4420_v57  ;;  %v2669_v32 = vmul.f32 %v5819_v21, %v4421_v9 }
0x4ab4   :  { %v2670_v45 = vsel %vm869_vm13, %v2668_v44, 0.0  ;;  %v2671_v49 = vsel %vm869_vm13, %v2669_v32, 0.0 }
0x4ab5   :  { %v2672_v43 = vadd.f32 %v2671_v49, %v2670_v45 }
0x4ab7   :  { %v2673_v53 = vrot.slane %v2672_v43, 4 }
0x4ab9   :  { %v2674_v58 = vadd.f32 %v2673_v53, %v2672_v43 }
0x4abb   :  { %v2675_v8 = vrot.slane %v2674_v58, 2 }
0x4abd   :  { %v2676_v61 = vadd.f32 %v2675_v8, %v2674_v58  ;;  %v2718_v8 = vpop.permute.xlu2 %2717 }
0x4abf   :  { %v2677_v19 = vrot.slane %v2676_v61, 1 }
0x4ac1   :  { %v2678_v63 = vadd.f32 %v2677_v19, %v2676_v61 }
0x4ac3   :  { %v2679_v18 = vadd.f32 %v2678_v63, %v5223_v25 }
0x4ac5   :  { %v2695_v23 = vadd.f32 %v2693_v15, %v2679_v18  ;;  %v2680_v18 = vadd.f32 %v5743_v5, %v2678_v63 }
0x4ac7   :  { %v4422_v4 = vmul.f32 -1.442695, %v2695_v23 }
0x4ac9   :  { %4636 = vpow2.f32 %v4422_v4 }
0x4acf   :  { %v4637_v57 = vpop.eup %4636 }
0x4ad0   :  { %v2699_v7 = vadd.f32 1.0, %v4637_v57 }
0x4ad2   :  { %4638 = vrcp.f32 %v2699_v7  ;;  %v2711_v32 = vand.u32 2147483648, %v2699_v7  ;;  %v2709_v49 = vand.u32 2147483647, %v2699_v7  ;;  %vm2705_vm2 = vweird.f32 %v2699_v7 }
0x4ad4   :  { %v2712_v53 = vor.u32 1.1754944e-38, %v2711_v32  ;;  %vm2710_vm4 = vcmp.eq.f32.partialorder %v2709_v49, 8.507059e+37 }
0x4ad8   :  { %v4639_v9 = vpop.eup %4638 }
0x4ad9   :  { %v2701_v44 = vmul.f32 %v4639_v9, %v2699_v7  ;;  %vm2706_vm1 = vweird.f32 %v4639_v9 }
0x4ada   :  { %vm2707_vm3 = vmor %vm2705_vm2, %vm2706_vm1 }
0x4adb   :  { %v2702_v17 = vsub.f32 1.0, %v2701_v44 }
0x4add   :  { %v2703_v45 = vmul.f32 %v4639_v9, %v2702_v17 }
0x4adf   :  { %v2704_v43 = vadd.f32 %v4639_v9, %v2703_v45 }
0x4ae1   :  { %v2708_v58 = vsel %vm2707_vm3, %v4639_v9, %v2704_v43 }
0x4ae2   :  { %v2713_v61 = vsel %vm2710_vm4, %v2712_v53, %v2708_v58 }
0x4ae3   :  { %v2720_v19 = vmul.f32 %v2718_v8, %v2713_v61  ;;  %v2727_v17 = vsub.f32 1.0, %v2713_v61  ;;  %v2733_v7 = vmul.f32 %v2713_v61, %v5829_v1 }
0x4ae5   :  { %2722 = vrot.lane.b32.xlu0 %v2720_v19, %s5002_s17 }
0x4b57   :  { %v2723_v15 = vpop.permute.xlu0 %2722 }
0x4b58   :  { %v2725_v23 = vadd.f32 %v2723_v15, %v2680_v18 }
0x4b5a   :  { %4640 = vtanh.f32 %v2725_v23 }
0x4b60   :  { %v4641_v4 = vpop.eup %4640 }
0x4b61   :  { %2729 = vrot.lane.b32.xlu0 %v4641_v4, %s5003_s3 }
0x4bd3   :  { %v2730_v57 = vpop.permute.xlu0 %2729 }
0x4bd4   :  { %v2732_v44 = vmul.f32 %v2730_v57, %v2727_v17 }
0x4bd6   :  { %v5865_v9 = vadd.f32 %v2733_v7, %v2732_v44 }
0x4bd8   :  { %2736 = vrot.lane.b32.xlu1 %v5865_v9, %s5003_s3 }
0x4c4a   :  { %v2737_v32 = vpop.permute.xlu1 %2736 }
0x4c4b   :  { %4423 = vmatmul.msk.f32.vlgmr.msra.gmra.mxu2 %vm151_vm5, %v2737_v32 }
0x4c4c   :  { %3712 = vmatpush.msra.mxu2 %v5704_v48 }
0x4c4e   :  { %3713 = vmatpush.msra.mxu2 %v5707_v27 }
0x4c50   :  { %3714 = vmatpush.msra.mxu2 %v5710_v33 }
0x4c52   :  { %3715 = vmatpush.msra.mxu2 %v5713_v28 }
0x4cce   :  { %v2757_v63 = vpop.f32.mrf.mxu2 }
0x4ccf   :  { %v5875_v1 = vadd.f32 %v5760_v6, %v2757_v63  ;;  %v2835_v61 = vadd.f32 %v2757_v63, %v5209_v20 }
0x4cd1   :  { %v2761_v45 = vsel %vm839_vm8, %v5875_v1, -inf }
0x4cd2   :  { %2762 = vmax.xlane.f32.xlu2 %v2761_v45  ;;  %v6678_v45 = vmov 0.0  }
0x4cea   :  { %2812 = vrot.lane.b32.xlu2 %v2757_v63, %s5005_s24 }
0x4d45   :  { %v5880_v49 = vpop.xlane.xlu2 %2762 }
0x4d46   :  { %vm2764_vm6 = vcmp.ge.f32.partialorder %v5875_v1, %v5880_v49 }
0x4d47   :  { %v2765_v43 = vsel %vm2764_vm6, %v5249_v59, 16 }
0x4d48   :  { %v2766_v53 = vsel %vm839_vm8, %v2765_v43, 2147483647 }
0x4d49   :  { %v2768_v58 = vshra.s32 %v2766_v53, 16  ;;  %v2767_v19 = vand.u32 65535, %v2766_v53 }
0x4d4b   :  { %v2770_v8 = vcvt.s32.f32 %v2768_v58  ;;  %v2769_v15 = vcvt.s32.f32 %v2767_v19 }
0x4d4d   :  { %2771 = vmin.xlane.f32.xlu0 %v2770_v8 }
0x4d61   :  { %2837 = vrot.lane.b32.xlu0 %v2835_v61, %s5006_s25 }
0x4dc0   :  { %v2772_v18 = vpop.xlane.xlu0 %2771 }
0x4dc1   :  { %vm2773_vm7 = vcmp.eq.f32.partialorder %v2770_v8, %v2772_v18  ;;  %v2778_v4 = vcvt.f32.s32 %v2772_v18 }
0x4dc2   :  { %v2774_v23 = vsel %vm2773_vm7, %v2769_v15, inf }
0x4dc3   :  { %2775 = vmin.xlane.f32.xlu1 %v2774_v23  ;;  %v2779_v57 = vshll.u32 %v2778_v4, 16 }
0x4e36   :  { %v2776_v17 = vpop.xlane.xlu1 %2775 }
0x4e37   :  { %v2777_v7 = vcvt.f32.s32 %v2776_v17 }
0x4e39   :  { %v2780_v44 = vadd.s32 %v2779_v57, %v2777_v7 }
0x4e3b   :  { %v2781_v32 = vperm.slane %v2780_v44, 0  ;;  %v2813_v44 = vpop.permute.xlu2 %2812 }
0x4e3d   :  { %vm2782_vm9 = vcmp.eq.s32.totalorder %v5259_v10, %v2781_v32  ;;  %vm2783_vm10 = vcmp.eq.s32.totalorder %v5262_v16, %v2781_v32 }
0x4e3e   :  { %v4424_v63 = vsel %vm2782_vm9, 1.0, %v6678_v45  ;;  %v4425_v43 = vsel %vm2783_vm10, 1.0, %v6678_v45 }
0x4e3f   :  { %v2788_v53 = vmul.f32 %v5816_v31, %v4424_v63  ;;  %v2789_v58 = vmul.f32 %v5819_v21, %v4425_v43 }
0x4e41   :  { %v2790_v8 = vsel %vm869_vm13, %v2788_v53, 0.0  ;;  %v2791_v61 = vsel %vm869_vm13, %v2789_v58, 0.0 }
0x4e42   :  { %v2792_v19 = vadd.f32 %v2791_v61, %v2790_v8 }
0x4e44   :  { %v2793_v18 = vrot.slane %v2792_v19, 4 }
0x4e46   :  { %v2794_v15 = vadd.f32 %v2793_v18, %v2792_v19 }
0x4e48   :  { %v2795_v23 = vrot.slane %v2794_v15, 2 }
0x4e4a   :  { %v2796_v4 = vadd.f32 %v2795_v23, %v2794_v15  ;;  %v2838_v23 = vpop.permute.xlu0 %2837 }
0x4e4c   :  { %v2797_v17 = vrot.slane %v2796_v4, 1 }
0x4e4e   :  { %v2798_v57 = vadd.f32 %v2797_v17, %v2796_v4 }
0x4e50   :  { %v2799_v7 = vadd.f32 %v2798_v57, %v5223_v25 }
0x4e52   :  { %v2815_v32 = vadd.f32 %v2813_v44, %v2799_v7 }
0x4e54   :  { %v4426_v42 = vmul.f32 -1.442695, %v2815_v32 }
0x4e56   :  { %4642 = vpow2.f32 %v4426_v42  ;;  %v2800_v42 = vadd.f32 %v5743_v5, %v2798_v57 }
0x4e5c   :  { %v4643_v63 = vpop.eup %4642 }
0x4e5d   :  { %v2819_v35 = vadd.f32 1.0, %v4643_v63 }
0x4e5f   :  { %4644 = vrcp.f32 %v2819_v35  ;;  %v2831_v58 = vand.u32 2147483648, %v2819_v35  ;;  %v2829_v61 = vand.u32 2147483647, %v2819_v35  ;;  %vm2825_vm12 = vweird.f32 %v2819_v35 }
0x4e61   :  { %v2832_v18 = vor.u32 1.1754944e-38, %v2831_v58  ;;  %vm2830_vm15 = vcmp.eq.f32.partialorder %v2829_v61, 8.507059e+37 }
0x4e65   :  { %v4645_v43 = vpop.eup %4644 }
0x4e66   :  { %v2821_v53 = vmul.f32 %v4645_v43, %v2819_v35  ;;  %vm2826_vm11 = vweird.f32 %v4645_v43 }
0x4e67   :  { %vm2827_vm14 = vmor %vm2825_vm12, %vm2826_vm11 }
0x4e68   :  { %v2822_v39 = vsub.f32 1.0, %v2821_v53 }
0x4e6a   :  { %v2823_v8 = vmul.f32 %v4645_v43, %v2822_v39 }
0x4e6c   :  { %v2824_v19 = vadd.f32 %v4645_v43, %v2823_v8 }
0x4e6e   :  { %v2828_v15 = vsel %vm2827_vm14, %v4645_v43, %v2824_v19 }
0x4e6f   :  { %v2833_v4 = vsel %vm2830_vm15, %v2832_v18, %v2828_v15 }
0x4e70   :  { %v2840_v17 = vmul.f32 %v2838_v23, %v2833_v4  ;;  %v2847_v39 = vsub.f32 1.0, %v2833_v4  ;;  %v2853_v35 = vmul.f32 %v2833_v4, %v5865_v9 }
0x4e72   :  { %2842 = vrot.lane.b32.xlu1 %v2840_v17, %s5002_s17 }
0x4ee4   :  { %v2843_v7 = vpop.permute.xlu1 %2842 }
0x4ee5   :  { %v2845_v44 = vadd.f32 %v2843_v7, %v2800_v42 }
0x4ee7   :  { %4646 = vtanh.f32 %v2845_v44 }
0x4eed   :  { %v4647_v32 = vpop.eup %4646 }
0x4eee   :  { %2849 = vrot.lane.b32.xlu2 %v4647_v32, %s5003_s3 }
0x4f48   :  { %v2850_v63 = vpop.permute.xlu2 %2849 }
0x4f49   :  { %v2852_v53 = vmul.f32 %v2850_v63, %v2847_v39 }
0x4f4b   :  { %v5901_v43 = vadd.f32 %v2853_v35, %v2852_v53 }
0x4f4d   :  { %2856 = vrot.lane.b32.xlu0 %v5901_v43, %s5003_s3 }
0x4fbf   :  { %v2857_v58 = vpop.permute.xlu0 %2856 }
0x4fc0   :  { %4427 = vmatmul.msk.f32.vlgmr.msra.gmra.mxu3 %vm151_vm5, %v2857_v58 }
0x4fc1   :  { %3832 = vmatpush.msra.mxu3 %v5704_v48 }
0x4fc3   :  { %3833 = vmatpush.msra.mxu3 %v5707_v27 }
0x4fc5   :  { %3834 = vmatpush.msra.mxu3 %v5710_v33 }
0x4fc7   :  { %3835 = vmatpush.msra.mxu3 %v5713_v28 }
0x5043   :  { %v2877_v57 = vpop.f32.mrf.mxu3 }
0x5044   :  { %v5911_v9 = vadd.f32 %v5760_v6, %v2877_v57  ;;  %v2955_v4 = vadd.f32 %v2877_v57, %v5209_v20 }
0x5046   :  { %v2881_v8 = vsel %vm839_vm8, %v5911_v9, -inf }
0x5047   :  { %2882 = vmax.xlane.f32.xlu2 %v2881_v8 }
0x505f   :  { %2932 = vrot.lane.b32.xlu2 %v2877_v57, %s5005_s24 }
0x50ba   :  { %v5916_v61 = vpop.xlane.xlu2 %2882 }
0x50bb   :  { %vm2884_vm0 = vcmp.ge.f32.partialorder %v5911_v9, %v5916_v61 }
0x50bc   :  { %v2885_v19 = vsel %vm2884_vm0, %v5249_v59, 16 }
0x50bd   :  { %v2886_v18 = vsel %vm839_vm8, %v2885_v19, 2147483647 }
0x50be   :  { %v2888_v15 = vshra.s32 %v2886_v18, 16  ;;  %v2887_v17 = vand.u32 65535, %v2886_v18 }
0x50c0   :  { %v2890_v23 = vcvt.s32.f32 %v2888_v15  ;;  %v2889_v7 = vcvt.s32.f32 %v2887_v17 }
0x50c2   :  { %2891 = vmin.xlane.f32.xlu1 %v2890_v23 }
0x50db   :  { %2957 = vrot.lane.b32.xlu1 %v2955_v4, %s5006_s25 }
0x5135   :  { %v2892_v42 = vpop.xlane.xlu1 %2891 }
0x5136   :  { %vm2893_vm1 = vcmp.eq.f32.partialorder %v2890_v23, %v2892_v42  ;;  %v2898_v32 = vcvt.f32.s32 %v2892_v42 }
0x5137   :  { %v2894_v44 = vsel %vm2893_vm1, %v2889_v7, inf }
0x5138   :  { %2895 = vmin.xlane.f32.xlu0 %v2894_v44  ;;  %v2899_v63 = vshll.u32 %v2898_v32, 16 }
0x51ab   :  { %v2896_v39 = vpop.xlane.xlu0 %2895 }
0x51ac   :  { %v2897_v35 = vcvt.f32.s32 %v2896_v39 }
0x51ae   :  { %v2900_v53 = vadd.s32 %v2899_v63, %v2897_v35  ;;  %v2933_v35 = vpop.permute.xlu2 %2932 }
0x51b0   :  { %v2901_v58 = vperm.slane %v2900_v53, 0 }
0x51b2   :  { %vm2902_vm2 = vcmp.eq.s32.totalorder %v5259_v10, %v2901_v58  ;;  %vm2903_vm3 = vcmp.eq.s32.totalorder %v5262_v16, %v2901_v58 }
0x51b3   :  { %v4428_v57 = vsel %vm2902_vm2, 1.0, %v6678_v45  ;;  %v4429_v8 = vsel %vm2903_vm3, 1.0, %v6678_v45 }
0x51b4   :  { %v2908_v19 = vmul.f32 %v5816_v31, %v4428_v57  ;;  %v2909_v18 = vmul.f32 %v5819_v21, %v4429_v8 }
0x51b6   :  { %v2910_v15 = vsel %vm869_vm13, %v2908_v19, 0.0  ;;  %v2911_v23 = vsel %vm869_vm13, %v2909_v18, 0.0 }
0x51b7   :  { %v2912_v4 = vadd.f32 %v2911_v23, %v2910_v15 }
0x51b9   :  { %v2913_v17 = vrot.slane %v2912_v4, 4 }
0x51bb   :  { %v2914_v42 = vadd.f32 %v2913_v17, %v2912_v4 }
0x51bd   :  { %v2915_v7 = vrot.slane %v2914_v42, 2 }
0x51bf   :  { %v2916_v44 = vadd.f32 %v2915_v7, %v2914_v42  ;;  %v2958_v7 = vpop.permute.xlu1 %2957 }
0x51c1   :  { %v2917_v32 = vrot.slane %v2916_v44, 1 }
0x51c3   :  { %v2918_v39 = vadd.f32 %v2917_v32, %v2916_v44 }
0x51c5   :  { %v2919_v63 = vadd.f32 %v2918_v39, %v5223_v25 }
0x51c7   :  { %v2935_v53 = vadd.f32 %v2933_v35, %v2919_v63  ;;  %v2920_v63 = vadd.f32 %v5743_v5, %v2918_v39 }
0x51c9   :  { %v4430_v58 = vmul.f32 -1.442695, %v2935_v53 }
0x51cb   :  { %4648 = vpow2.f32 %v4430_v58 }
0x51d1   :  { %v4649_v57 = vpop.eup %4648 }
0x51d2   :  { %v2939_v24 = vadd.f32 1.0, %v4649_v57 }
0x51d4   :  { %4650 = vrcp.f32 %v2939_v24  ;;  %v2951_v18 = vand.u32 2147483648, %v2939_v24  ;;  %v2949_v23 = vand.u32 2147483647, %v2939_v24  ;;  %vm2945_vm6 = vweird.f32 %v2939_v24 }
0x51d6   :  { %v2952_v17 = vor.u32 1.1754944e-38, %v2951_v18  ;;  %vm2950_vm9 = vcmp.eq.f32.partialorder %v2949_v23, 8.507059e+37 }
0x51da   :  { %v4651_v8 = vpop.eup %4650 }
0x51db   :  { %v2941_v19 = vmul.f32 %v4651_v8, %v2939_v24  ;;  %vm2946_vm4 = vweird.f32 %v4651_v8 }
0x51dc   :  { %vm2947_vm7 = vmor %vm2945_vm6, %vm2946_vm4 }
0x51dd   :  { %v2942_v13 = vsub.f32 1.0, %v2941_v19 }
0x51df   :  { %v2943_v15 = vmul.f32 %v4651_v8, %v2942_v13 }
0x51e1   :  { %v2944_v4 = vadd.f32 %v4651_v8, %v2943_v15 }
0x51e3   :  { %v2948_v42 = vsel %vm2947_vm7, %v4651_v8, %v2944_v4 }
0x51e4   :  { %v2953_v44 = vsel %vm2950_vm9, %v2952_v17, %v2948_v42 }
0x51e5   :  { %v2960_v32 = vmul.f32 %v2958_v7, %v2953_v44  ;;  %v2967_v13 = vsub.f32 1.0, %v2953_v44  ;;  %v2973_v24 = vmul.f32 %v2953_v44, %v5901_v43 }
0x51e7   :  { %2962 = vrot.lane.b32.xlu0 %v2960_v32, %s5002_s17 }
0x5259   :  { %v2963_v35 = vpop.permute.xlu0 %2962 }
0x525a   :  { %v2965_v53 = vadd.f32 %v2963_v35, %v2920_v63 }
0x525c   :  { %4652 = vtanh.f32 %v2965_v53 }
0x5262   :  { %v4653_v58 = vpop.eup %4652 }
0x5263   :  { %2969 = vrot.lane.b32.xlu2 %v4653_v58, %s5003_s3 }
0x52bd   :  { %v2970_v57 = vpop.permute.xlu2 %2969 }
0x52be   :  { %v2972_v19 = vmul.f32 %v2970_v57, %v2967_v13 }
0x52c0   :  { %v5937_v8 = vadd.f32 %v2973_v24, %v2972_v19 }
0x52c2   :  { %2976 = vrot.lane.b32.xlu0 %v5937_v8, %s5003_s3 }
0x5334   :  { %v2977_v18 = vpop.permute.xlu0 %2976 }
0x5335   :  { %4431 = vmatmul.msk.f32.vlgmr.msrb.gmra.mxu0 %vm151_vm5, %v2977_v18 }
0x5336   :  { %3952 = vmatpush.msrb.mxu0 %v5704_v48 }
0x5338   :  { %3953 = vmatpush.msrb.mxu0 %v5707_v27 }
0x533a   :  { %3954 = vmatpush.msrb.mxu0 %v5710_v33 }
0x533c   :  { %3955 = vmatpush.msrb.mxu0 %v5713_v28 }
0x53b2   :  { %v2997_v39 = vpop.f32.mrf.mxu0 }
0x53b3   :  { %v5947_v43 = vadd.f32 %v5760_v6, %v2997_v39  ;;  %v3075_v4 = vadd.f32 %v2997_v39, %v5209_v20 }
0x53b5   :  { %6679 = vst [vmem:[#allocation19_spill] sm:$0xff] %v5947_v43  ;;  %v3001_v15 = vsel %vm839_vm8, %v5947_v43, -inf }
0x53b6   :  { %3002 = vmax.xlane.f32.xlu1 %v3001_v15 }
0x53cf   :  { %3052 = vrot.lane.b32.xlu1 %v2997_v39, %s5005_s24 }
0x5429   :  { %v5952_v23 = vpop.xlane.xlu1 %3002 }
0x542a   :  { %6680 = vst [vmem:[#allocation20_spill] sm:$0xff] %v5952_v23  ;;  %vm3004_vm10 = vcmp.ge.f32.partialorder %v5947_v43, %v5952_v23 }
0x542b   :  { %v3005_v48 = vsel %vm3004_vm10, %v5249_v59, 16 }
0x542c   :  { %v3006_v27 = vsel %vm839_vm8, %v3005_v48, 2147483647 }
0x542d   :  { %v3008_v33 = vshra.s32 %v3006_v27, 16  ;;  %v3007_v17 = vand.u32 65535, %v3006_v27 }
0x542f   :  { %v3010_v28 = vcvt.s32.f32 %v3008_v33  ;;  %v3009_v7 = vcvt.s32.f32 %v3007_v17 }
0x5431   :  { %3011 = vmin.xlane.f32.xlu2 %v3010_v28 }
0x5449   :  { %3077 = vrot.lane.b32.xlu2 %v3075_v4, %s5006_s25 }
0x54a4   :  { %v3012_v42 = vpop.xlane.xlu2 %3011 }
0x54a5   :  { %vm3013_vm11 = vcmp.eq.f32.partialorder %v3010_v28, %v3012_v42  ;;  %v3018_v32 = vcvt.f32.s32 %v3012_v42 }
0x54a6   :  { %v3014_v44 = vsel %vm3013_vm11, %v3009_v7, inf }
0x54a7   :  { %3015 = vmin.xlane.f32.xlu0 %v3014_v44  ;;  %v3019_v35 = vshll.u32 %v3018_v32, 16  ;;  %v3053_v44 = vpop.permute.xlu1 %3052 }
0x551a   :  { %v3016_v63 = vpop.xlane.xlu0 %3015 }
0x551b   :  { %v3017_v53 = vcvt.f32.s32 %v3016_v63 }
0x551d   :  { %v3020_v58 = vadd.s32 %v3019_v35, %v3017_v53 }
0x551f   :  { %v3021_v13 = vperm.slane %v3020_v58, 0 }
0x5521   :  { %vm3022_vm12 = vcmp.eq.s32.totalorder %v5259_v10, %v3021_v13  ;;  %vm3023_vm14 = vcmp.eq.s32.totalorder %v5262_v16, %v3021_v13 }
0x5522   :  { %v4432_v57 = vsel %vm3022_vm12, 1.0, %v6678_v45  ;;  %v4433_v24 = vsel %vm3023_vm14, 1.0, %v6678_v45 }
0x5523   :  { %v3028_v19 = vmul.f32 %v5816_v31, %v4432_v57  ;;  %v3029_v18 = vmul.f32 %v5819_v21, %v4433_v24 }
0x5525   :  { %v3030_v39 = vsel %vm869_vm13, %v3028_v19, 0.0  ;;  %v3031_v15 = vsel %vm869_vm13, %v3029_v18, 0.0 }
0x5526   :  { %v3032_v48 = vadd.f32 %v3031_v15, %v3030_v39 }
0x5528   :  { %v3033_v27 = vrot.slane %v3032_v48, 4 }
0x552a   :  { %v3034_v33 = vadd.f32 %v3033_v27, %v3032_v48  ;;  %v3078_v27 = vpop.permute.xlu2 %3077 }
0x552c   :  { %v3035_v28 = vrot.slane %v3034_v33, 2 }
0x552e   :  { %v3036_v4 = vadd.f32 %v3035_v28, %v3034_v33 }
0x5530   :  { %v3037_v17 = vrot.slane %v3036_v4, 1 }
0x5532   :  { %v3038_v42 = vadd.f32 %v3037_v17, %v3036_v4 }
0x5534   :  { %v3039_v7 = vadd.f32 %v3038_v42, %v5223_v25  ;;  %v3040_v4 = vadd.f32 %v5743_v5, %v3038_v42  ;;  %v5978_v5 = vld [vmem:[#allocation9 + $0x18] sm:$0xff]  ;;  %v5981_v42 = vld [vmem:[#allocation9 + $0x10] sm:$0xff] }
0x5536   :  { %v3055_v32 = vadd.f32 %v3053_v44, %v3039_v7 }
0x5538   :  { %v4434_v63 = vmul.f32 -1.442695, %v3055_v32 }
0x553a   :  { %4654 = vpow2.f32 %v4434_v63 }
0x5540   :  { %v4655_v35 = vpop.eup %4654 }
0x5541   :  { %v3059_v53 = vadd.f32 1.0, %v4655_v35 }
0x5543   :  { %4656 = vrcp.f32 %v3059_v53  ;;  %v3071_v24 = vand.u32 2147483648, %v3059_v53  ;;  %v3069_v18 = vand.u32 2147483647, %v3059_v53  ;;  %vm3065_vm0 = vweird.f32 %v3059_v53 }
0x5545   :  { %v3072_v15 = vor.u32 1.1754944e-38, %v3071_v24  ;;  %vm3070_vm2 = vcmp.eq.f32.partialorder %v3069_v18, 8.507059e+37 }
0x5549   :  { %v4657_v58 = vpop.eup %4656 }
0x554a   :  { %v3061_v13 = vmul.f32 %v4657_v58, %v3059_v53  ;;  %vm3066_vm15 = vweird.f32 %v4657_v58 }
0x554b   :  { %vm3067_vm1 = vmor %vm3065_vm0, %vm3066_vm15 }
0x554c   :  { %v3062_v57 = vsub.f32 1.0, %v3061_v13 }
0x554e   :  { %v3063_v19 = vmul.f32 %v4657_v58, %v3062_v57  ;;  %v5984_v57 = vld [vmem:[#allocation9 + $0x8] sm:$0xff] }
0x5550   :  { %v3064_v39 = vadd.f32 %v4657_v58, %v3063_v19 }
0x5552   :  { %v3068_v48 = vsel %vm3067_vm1, %v4657_v58, %v3064_v39 }
0x5553   :  { %v3073_v33 = vsel %vm3070_vm2, %v3072_v15, %v3068_v48 }
0x5554   :  { %v3080_v28 = vmul.f32 %v3078_v27, %v3073_v33  ;;  %v3087_v32 = vsub.f32 1.0, %v3073_v33  ;;  %v3093_v35 = vmul.f32 %v3073_v33, %v5937_v8  ;;  %v5987_v8 = vld [vmem:[#allocation9] sm:$0xff] }
0x5556   :  { %3082 = vrot.lane.b32.xlu0 %v3080_v28, %s5002_s17 }
0x55c8   :  { %v3083_v17 = vpop.permute.xlu0 %3082 }
0x55c9   :  { %v3085_v7 = vadd.f32 %v3083_v17, %v3040_v4 }
0x55cb   :  { %4658 = vtanh.f32 %v3085_v7 }
0x55d1   :  { %v4659_v44 = vpop.eup %4658 }
0x55d2   :  { %3089 = vrot.lane.b32.xlu1 %v4659_v44, %s5003_s3 }
0x5644   :  { %v3090_v63 = vpop.permute.xlu1 %3089 }
0x5645   :  { %v3092_v53 = vmul.f32 %v3090_v63, %v3087_v32 }
0x5647   :  { %v5973_v58 = vadd.f32 %v3093_v35, %v3092_v53 }
0x5649   :  { %3096 = vrot.lane.b32.xlu0 %v5973_v58, %s5003_s3 }
0x56bb   :  { %v3097_v13 = vpop.permute.xlu0 %3096 }
0x56bc   :  { %4435 = vmatmul.msk.f32.vlgmr.msrb.gmra.mxu1 %vm151_vm5, %v3097_v13 }
0x56bd   :  { %4072 = vmatpush.msrb.mxu1 %v5978_v5 }
0x56bf   :  { %4073 = vmatpush.msrb.mxu1 %v5981_v42 }
0x56c1   :  { %4074 = vmatpush.msrb.mxu1 %v5984_v57 }
0x56c3   :  { %4075 = vmatpush.msrb.mxu1 %v5987_v8 }
0x5739   :  { %v3117_v24 = vpop.f32.mrf.mxu1 }
0x573a   :  { %v5991_v19 = vadd.f32 %v5760_v6, %v3117_v24  ;;  %v3195_v6 = vadd.f32 %v3117_v24, %v5209_v20 }
0x573c   :  { %6681 = vst [vmem:[#allocation21_spill] sm:$0xff] %v5991_v19  ;;  %v3121_v18 = vsel %vm839_vm8, %v5991_v19, -inf }
0x573d   :  { %3122 = vmax.xlane.f32.xlu2 %v3121_v18 }
0x5755   :  { %3172 = vrot.lane.b32.xlu2 %v3117_v24, %s5005_s24 }
0x57b0   :  { %v5996_v39 = vpop.xlane.xlu2 %3122 }
0x57b1   :  { %6682 = vst [vmem:[#allocation22_spill] sm:$0xff] %v5996_v39  ;;  %vm3124_vm3 = vcmp.ge.f32.partialorder %v5991_v19, %v5996_v39 }
0x57b2   :  { %v3125_v15 = vsel %vm3124_vm3, %v5249_v59, 16 }
0x57b3   :  { %v3126_v48 = vsel %vm839_vm8, %v3125_v15, 2147483647 }
0x57b4   :  { %v3128_v27 = vshra.s32 %v3126_v48, 16  ;;  %v3127_v28 = vand.u32 65535, %v3126_v48 }
0x57b6   :  { %v3130_v33 = vcvt.s32.f32 %v3128_v27  ;;  %v3129_v17 = vcvt.s32.f32 %v3127_v28 }
0x57b8   :  { %3131 = vmin.xlane.f32.xlu1 %v3130_v33 }
0x57d1   :  { %3197 = vrot.lane.b32.xlu1 %v3195_v6, %s5006_s25 }
0x582b   :  { %v3132_v4 = vpop.xlane.xlu1 %3131 }
0x582c   :  { %vm3133_vm4 = vcmp.eq.f32.partialorder %v3130_v33, %v3132_v4  ;;  %v3138_v44 = vcvt.f32.s32 %v3132_v4 }
0x582d   :  { %v3134_v7 = vsel %vm3133_vm4, %v3129_v17, inf }
0x582e   :  { %3135 = vmin.xlane.f32.xlu0 %v3134_v7  ;;  %v3139_v63 = vshll.u32 %v3138_v44, 16 }
0x58a1   :  { %v3136_v32 = vpop.xlane.xlu0 %3135 }
0x58a2   :  { %v3137_v35 = vcvt.f32.s32 %v3136_v32 }
0x58a4   :  { %v3140_v53 = vadd.s32 %v3139_v63, %v3137_v35  ;;  %v3173_v35 = vpop.permute.xlu2 %3172 }
0x58a6   :  { %v3141_v13 = vperm.slane %v3140_v53, 0 }
0x58a8   :  { %vm3142_vm6 = vcmp.eq.s32.totalorder %v5259_v10, %v3141_v13  ;;  %vm3143_vm7 = vcmp.eq.s32.totalorder %v5262_v16, %v3141_v13 }
0x58a9   :  { %v4436_v24 = vsel %vm3142_vm6, 1.0, %v6678_v45  ;;  %v4437_v18 = vsel %vm3143_vm7, 1.0, %v6678_v45 }
0x58aa   :  { %v3148_v15 = vmul.f32 %v5816_v31, %v4436_v24  ;;  %v3149_v48 = vmul.f32 %v5819_v21, %v4437_v18 }
0x58ac   :  { %v3150_v27 = vsel %vm869_vm13, %v3148_v15, 0.0  ;;  %v3151_v33 = vsel %vm869_vm13, %v3149_v48, 0.0 }
0x58ad   :  { %v3152_v6 = vadd.f32 %v3151_v33, %v3150_v27 }
0x58af   :  { %v3153_v28 = vrot.slane %v3152_v6, 4 }
0x58b1   :  { %v3154_v4 = vadd.f32 %v3153_v28, %v3152_v6 }
0x58b3   :  { %v3155_v17 = vrot.slane %v3154_v4, 2 }
0x58b5   :  { %v3156_v7 = vadd.f32 %v3155_v17, %v3154_v4  ;;  %v3198_v17 = vpop.permute.xlu1 %3197 }
0x58b7   :  { %v3157_v44 = vrot.slane %v3156_v7, 1 }
0x58b9   :  { %v3158_v32 = vadd.f32 %v3157_v44, %v3156_v7 }
0x58bb   :  { %v3159_v63 = vadd.f32 %v3158_v32, %v5223_v25 }
0x58bd   :  { %v3175_v53 = vadd.f32 %v3173_v35, %v3159_v63  ;;  %v6017_v63 = vld [vmem:[%s6646_s7] sm:$0x1] }
0x58bf   :  { %v4438_v13 = vmul.f32 -1.442695, %v3175_v53 }
0x58c1   :  { %4660 = vpow2.f32 %v4438_v13 }
0x58c7   :  { %v4661_v24 = vpop.eup %4660 }
0x58c8   :  { %v3179_v43 = vadd.f32 1.0, %v4661_v24 }
0x58ca   :  { %4662 = vrcp.f32 %v3179_v43  ;;  %v3191_v48 = vand.u32 2147483648, %v3179_v43  ;;  %v3189_v33 = vand.u32 2147483647, %v3179_v43  ;;  %vm3185_vm10 = vweird.f32 %v3179_v43 }
0x58cc   :  { %v3192_v28 = vor.u32 1.1754944e-38, %v3191_v48  ;;  %vm3190_vm12 = vcmp.eq.f32.partialorder %v3189_v33, 8.507059e+37 }
0x58d0   :  { %v4663_v18 = vpop.eup %4662 }
0x58d1   :  { %v3181_v15 = vmul.f32 %v4663_v18, %v3179_v43  ;;  %vm3186_vm9 = vweird.f32 %v4663_v18 }
0x58d2   :  { %vm3187_vm11 = vmor %vm3185_vm10, %vm3186_vm9 }
0x58d3   :  { %v3182_v23 = vsub.f32 1.0, %v3181_v15 }
0x58d5   :  { %v3183_v27 = vmul.f32 %v4663_v18, %v3182_v23  ;;  %v3160_v23 = vadd.f32 %v6017_v63, %v3158_v32 }
0x58d7   :  { %v3184_v6 = vadd.f32 %v4663_v18, %v3183_v27 }
0x58d9   :  { %v3188_v4 = vsel %vm3187_vm11, %v4663_v18, %v3184_v6 }
0x58da   :  { %v3193_v7 = vsel %vm3190_vm12, %v3192_v28, %v3188_v4 }
0x58db   :  { %v3200_v44 = vmul.f32 %v3198_v17, %v3193_v7  ;;  %v3207_v13 = vsub.f32 1.0, %v3193_v7  ;;  %v3213_v18 = vmul.f32 %v3193_v7, %v5973_v58  ;;  %v6034_v58 = vld [vmem:[%s6648_s9] sm:$0x1] }
0x58dd   :  { %3202 = vrot.lane.b32.xlu0 %v3200_v44, %s5002_s17 }
0x594f   :  { %v3203_v35 = vpop.permute.xlu0 %3202 }
0x5950   :  { %v3205_v53 = vadd.f32 %v3203_v35, %v3160_v23 }
0x5952   :  { %4664 = vtanh.f32 %v3205_v53 }
0x5958   :  { %v4665_v43 = vpop.eup %4664 }
0x5959   :  { %3209 = vrot.lane.b32.xlu2 %v4665_v43, %s5003_s3 }
0x59b3   :  { %v3210_v24 = vpop.permute.xlu2 %3209 }
0x59b4   :  { %v3212_v15 = vmul.f32 %v3210_v24, %v3207_v13 }
0x59b6   :  { %v6022_v48 = vadd.f32 %v3213_v18, %v3212_v15 }
0x59b8   :  { %3216 = vrot.lane.b32.xlu0 %v6022_v48, %s5003_s3 }
0x5a2a   :  { %v3217_v27 = vpop.permute.xlu0 %3216 }
0x5a2b   :  { %4439 = vmatmul.msk.f32.vlgmr.msrb.gmra.mxu2 %vm151_vm5, %v3217_v27 }
0x5a2c   :  { %4192 = vmatpush.msrb.mxu2 %v5978_v5 }
0x5a2e   :  { %4193 = vmatpush.msrb.mxu2 %v5981_v42 }
0x5a30   :  { %4194 = vmatpush.msrb.mxu2 %v5984_v57 }
0x5a32   :  { %4195 = vmatpush.msrb.mxu2 %v5987_v8 }
0x5aae   :  { %v3237_v32 = vpop.f32.mrf.mxu2 }
0x5aaf   :  { %v6037_v33 = vadd.f32 %v6034_v58, %v3237_v32  ;;  %v3315_v28 = vadd.f32 %v3237_v32, %v5209_v20 }
0x5ab1   :  { %v3241_v6 = vsel %vm839_vm8, %v6037_v33, -inf }
0x5ab2   :  { %3242 = vmax.xlane.f32.xlu1 %v3241_v6 }
0x5acb   :  { %3317 = vrot.lane.b32.xlu1 %v3315_v28, %s5006_s25 }
0x5b25   :  { %v6043_v4 = vpop.xlane.xlu1 %3242 }
0x5b26   :  { %vm3244_vm14 = vcmp.ge.f32.partialorder %v6037_v33, %v6043_v4 }
0x5b27   :  { %v3245_v17 = vsel %vm3244_vm14, %v5249_v59, 16 }
0x5b28   :  { %v3246_v7 = vsel %vm839_vm8, %v3245_v17, 2147483647 }
0x5b29   :  { %v3248_v44 = vshra.s32 %v3246_v7, 16  ;;  %v3247_v35 = vand.u32 65535, %v3246_v7 }
0x5b2b   :  { %v3250_v23 = vcvt.s32.f32 %v3248_v44  ;;  %v3249_v43 = vcvt.s32.f32 %v3247_v35 }
0x5b2d   :  { %3251 = vmin.xlane.f32.xlu2 %v3250_v23 }
0x5b45   :  { %3292 = vrot.lane.b32.xlu2 %v3237_v32, %s5005_s24 }
0x5ba0   :  { %v3252_v53 = vpop.xlane.xlu2 %3251 }
0x5ba1   :  { %vm3253_vm15 = vcmp.eq.f32.partialorder %v3250_v23, %v3252_v53  ;;  %v3258_v24 = vcvt.f32.s32 %v3252_v53 }
0x5ba2   :  { %v3254_v13 = vsel %vm3253_vm15, %v3249_v43, inf }
0x5ba3   :  { %3255 = vmin.xlane.f32.xlu0 %v3254_v13  ;;  %v3259_v15 = vshll.u32 %v3258_v24, 16 }
0x5c16   :  { %v3256_v18 = vpop.xlane.xlu0 %3255 }
0x5c17   :  { %v3257_v27 = vcvt.f32.s32 %v3256_v18 }
0x5c19   :  { %v3260_v6 = vadd.s32 %v3259_v15, %v3257_v27 }
0x5c1b   :  { %v3261_v28 = vperm.slane %v3260_v6, 0 }
0x5c1d   :  { %vm3262_vm0 = vcmp.eq.s32.totalorder %v5259_v10, %v3261_v28  ;;  %vm3263_vm1 = vcmp.eq.s32.totalorder %v5262_v16, %v3261_v28  ;;  %v3293_v28 = vpop.permute.xlu2 %3292 }
0x5c1e   :  { %v4440_v17 = vsel %vm3262_vm0, 1.0, %v6678_v45  ;;  %v4441_v32 = vsel %vm3263_vm1, 1.0, %v6678_v45 }
0x5c1f   :  { %v3268_v7 = vmul.f32 %v5816_v31, %v4440_v17  ;;  %v3269_v44 = vmul.f32 %v5819_v21, %v4441_v32 }
0x5c21   :  { %v3270_v23 = vsel %vm869_vm13, %v3268_v7, 0.0  ;;  %v3271_v35 = vsel %vm869_vm13, %v3269_v44, 0.0 }
0x5c22   :  { %v3272_v53 = vadd.f32 %v3271_v35, %v3270_v23 }
0x5c24   :  { %v3273_v43 = vrot.slane %v3272_v53, 4 }
0x5c26   :  { %v3274_v13 = vadd.f32 %v3273_v43, %v3272_v53 }
0x5c28   :  { %v3275_v24 = vrot.slane %v3274_v13, 2 }
0x5c2a   :  { %v3276_v18 = vadd.f32 %v3275_v24, %v3274_v13  ;;  %v3318_v24 = vpop.permute.xlu1 %3317 }
0x5c2c   :  { %v3277_v15 = vrot.slane %v3276_v18, 1 }
0x5c2e   :  { %v3278_v27 = vadd.f32 %v3277_v15, %v3276_v18 }
0x5c30   :  { %v3279_v6 = vadd.f32 %v3278_v27, %v5223_v25 }
0x5c32   :  { %v3295_v19 = vadd.f32 %v3293_v28, %v3279_v6 }
0x5c34   :  { %v4442_v39 = vmul.f32 -1.442695, %v3295_v19 }
0x5c36   :  { %4666 = vpow2.f32 %v4442_v39  ;;  %v3280_v39 = vadd.f32 %v6017_v63, %v3278_v27 }
0x5c3c   :  { %v4667_v31 = vpop.eup %4666 }
0x5c3d   :  { %v3299_v17 = vadd.f32 1.0, %v4667_v31 }
0x5c3f   :  { %4668 = vrcp.f32 %v3299_v17  ;;  %v3311_v44 = vand.u32 2147483648, %v3299_v17  ;;  %v3309_v35 = vand.u32 2147483647, %v3299_v17  ;;  %vm3305_vm3 = vweird.f32 %v3299_v17 }
0x5c41   :  { %v3312_v43 = vor.u32 1.1754944e-38, %v3311_v44  ;;  %vm3310_vm6 = vcmp.eq.f32.partialorder %v3309_v35, 8.507059e+37 }
0x5c45   :  { %v4669_v21 = vpop.eup %4668 }
0x5c46   :  { %v3301_v32 = vmul.f32 %v4669_v21, %v3299_v17  ;;  %vm3306_vm2 = vweird.f32 %v4669_v21 }
0x5c47   :  { %vm3307_vm4 = vmor %vm3305_vm3, %vm3306_vm2 }
0x5c48   :  { %v3302_v7 = vsub.f32 1.0, %v3301_v32 }
0x5c4a   :  { %v3303_v23 = vmul.f32 %v4669_v21, %v3302_v7 }
0x5c4c   :  { %v3304_v53 = vadd.f32 %v4669_v21, %v3303_v23 }
0x5c4e   :  { %v3308_v13 = vsel %vm3307_vm4, %v4669_v21, %v3304_v53 }
0x5c4f   :  { %v3313_v18 = vsel %vm3310_vm6, %v3312_v43, %v3308_v13 }
0x5c50   :  { %v3320_v19 = vmul.f32 %v3318_v24, %v3313_v18  ;;  %v3327_v31 = vsub.f32 1.0, %v3313_v18  ;;  %v3333_v17 = vmul.f32 %v3313_v18, %v6022_v48 }
0x5c52   :  { %3322 = vrot.lane.b32.xlu0 %v3320_v19, %s5002_s17 }
0x5cc4   :  { %v3323_v15 = vpop.permute.xlu0 %3322 }
0x5cc5   :  { %v3325_v6 = vadd.f32 %v3323_v15, %v3280_v39 }
0x5cc7   :  { %4670 = vtanh.f32 %v3325_v6 }
0x5ccd   :  { %v4671_v28 = vpop.eup %4670 }
0x5cce   :  { %3329 = vrot.lane.b32.xlu2 %v4671_v28, %s5003_s3 }
0x5d28   :  { %v3330_v32 = vpop.permute.xlu2 %3329 }
0x5d29   :  { %v3332_v7 = vmul.f32 %v3330_v32, %v3327_v31 }
0x5d2b   :  { %v6063_v21 = vadd.f32 %v3333_v17, %v3332_v7  ;;  %v6090_v7 = vld [vmem:[#allocation7] sm:$0xff] }
0x5d2d   :  { %3336 = vrot.lane.b32.xlu0 %v6063_v21, %s5003_s3 }
0x5d9f   :  { %v3337_v44 = vpop.permute.xlu0 %3336 }
0x5da0   :  { %4443 = vmatmul.msk.f32.vlgmr.msrb.gmra.mxu3 %vm151_vm5, %v3337_v44 }
0x5da1   :  { %4312 = vmatpush.msrb.mxu3 %v5978_v5 }
0x5da3   :  { %4313 = vmatpush.msrb.mxu3 %v5981_v42 }
0x5da5   :  { %4314 = vmatpush.msrb.mxu3 %v5984_v57 }
0x5da7   :  { %4315 = vmatpush.msrb.mxu3 %v5987_v8 }
0x5e23   :  { %v3357_v27 = vpop.f32.mrf.mxu3 }
0x5e24   :  { %v6073_v48 = vadd.f32 %v6034_v58, %v3357_v27  ;;  %v3435_v53 = vadd.f32 %v3357_v27, %v5209_v20 }
0x5e26   :  { %6683 = vst [vmem:[#allocation23_spill] sm:$0xff] %v6073_v48  ;;  %v3361_v23 = vsel %vm839_vm8, %v6073_v48, -inf }
0x5e27   :  { %3362 = vmax.xlane.f32.xlu1 %v3361_v23 }
0x5e40   :  { %3412 = vrot.lane.b32.xlu1 %v3357_v27, %s5005_s24  ;;  %v6093_v27 = vld [vmem:[#allocation7 + $0x8] sm:$0xff] }
0x5e9a   :  { %v6078_v35 = vpop.xlane.xlu1 %3362 }
0x5e9b   :  { %6684 = vst [vmem:[#allocation24_spill] sm:$0xff] %v6078_v35  ;;  %vm3364_vm7 = vcmp.ge.f32.partialorder %v6073_v48, %v6078_v35 }
0x5e9c   :  { %v3365_v5 = vsel %vm3364_vm7, %v5249_v59, 16 }
0x5e9d   :  { %v3366_v42 = vsel %vm839_vm8, %v3365_v5, 2147483647 }
0x5e9e   :  { %v3368_v57 = vshra.s32 %v3366_v42, 16  ;;  %v3367_v43 = vand.u32 65535, %v3366_v42 }
0x5ea0   :  { %v3370_v8 = vcvt.s32.f32 %v3368_v57  ;;  %v3369_v24 = vcvt.s32.f32 %v3367_v43 }
0x5ea2   :  { %3371 = vmin.xlane.f32.xlu2 %v3370_v8 }
0x5eba   :  { %3437 = vrot.lane.b32.xlu2 %v3435_v53, %s5006_s25 }
0x5f15   :  { %v3372_v13 = vpop.xlane.xlu2 %3371 }
0x5f16   :  { %vm3373_vm9 = vcmp.eq.f32.partialorder %v3370_v8, %v3372_v13  ;;  %v3378_v19 = vcvt.f32.s32 %v3372_v13 }
0x5f17   :  { %v3374_v18 = vsel %vm3373_vm9, %v3369_v24, inf }
0x5f18   :  { %3375 = vmin.xlane.f32.xlu0 %v3374_v18  ;;  %v3379_v15 = vshll.u32 %v3378_v19, 16 }
0x5f8b   :  { %v3376_v39 = vpop.xlane.xlu0 %3375 }
0x5f8c   :  { %v3377_v6 = vcvt.f32.s32 %v3376_v39  ;;  %v3413_v39 = vpop.permute.xlu1 %3412 }
0x5f8e   :  { %v3380_v28 = vadd.s32 %v3379_v15, %v3377_v6 }
0x5f90   :  { %v3381_v31 = vperm.slane %v3380_v28, 0 }
0x5f92   :  { %vm3382_vm10 = vcmp.eq.s32.totalorder %v5259_v10, %v3381_v31  ;;  %vm3383_vm11 = vcmp.eq.s32.totalorder %v5262_v16, %v3381_v31 }
0x5f93   :  { %v4444_v32 = vsel %vm3382_vm10, 1.0, %v6678_v45  ;;  %v4445_v17 = vsel %vm3383_vm11, 1.0, %v6678_v45 }
0x5f94   :  { %v3388_v44 = vmul.f32 %v6090_v7, %v4444_v32  ;;  %v3389_v23 = vmul.f32 %v6093_v27, %v4445_v17 }
0x5f96   :  { %v3390_v5 = vsel %vm869_vm13, %v3388_v44, 0.0  ;;  %v3391_v42 = vsel %vm869_vm13, %v3389_v23, 0.0 }
0x5f97   :  { %v3392_v57 = vadd.f32 %v3391_v42, %v3390_v5 }
0x5f99   :  { %v3393_v8 = vrot.slane %v3392_v57, 4 }
0x5f9b   :  { %v3394_v53 = vadd.f32 %v3393_v8, %v3392_v57 }
0x5f9d   :  { %v3395_v43 = vrot.slane %v3394_v53, 2 }
0x5f9f   :  { %v3396_v13 = vadd.f32 %v3395_v43, %v3394_v53  ;;  %v3438_v43 = vpop.permute.xlu2 %3437 }
0x5fa1   :  { %v3397_v24 = vrot.slane %v3396_v13, 1 }
0x5fa3   :  { %v3398_v18 = vadd.f32 %v3397_v24, %v3396_v13 }
0x5fa5   :  { %v3399_v19 = vadd.f32 %v3398_v18, %v5223_v25 }
0x5fa7   :  { %v3415_v15 = vadd.f32 %v3413_v39, %v3399_v19  ;;  %v3400_v19 = vadd.f32 %v6017_v63, %v3398_v18 }
0x5fa9   :  { %v4446_v6 = vmul.f32 -1.442695, %v3415_v15 }
0x5fab   :  { %4672 = vpow2.f32 %v4446_v6 }
0x5fb1   :  { %v4673_v28 = vpop.eup %4672 }
0x5fb2   :  { %v3419_v31 = vadd.f32 1.0, %v4673_v28 }
0x5fb4   :  { %4674 = vrcp.f32 %v3419_v31  ;;  %v3431_v23 = vand.u32 2147483648, %v3419_v31  ;;  %v3429_v42 = vand.u32 2147483647, %v3419_v31  ;;  %vm3425_vm14 = vweird.f32 %v3419_v31 }
0x5fb6   :  { %v3432_v8 = vor.u32 1.1754944e-38, %v3431_v23  ;;  %vm3430_vm0 = vcmp.eq.f32.partialorder %v3429_v42, 8.507059e+37 }
0x5fba   :  { %v4675_v32 = vpop.eup %4674 }
0x5fbb   :  { %v3421_v17 = vmul.f32 %v4675_v32, %v3419_v31  ;;  %vm3426_vm12 = vweird.f32 %v4675_v32 }
0x5fbc   :  { %vm3427_vm15 = vmor %vm3425_vm14, %vm3426_vm12 }
0x5fbd   :  { %v3422_v44 = vsub.f32 1.0, %v3421_v17 }
0x5fbf   :  { %v3423_v5 = vmul.f32 %v4675_v32, %v3422_v44 }
0x5fc1   :  { %v3424_v57 = vadd.f32 %v4675_v32, %v3423_v5 }
0x5fc3   :  { %v3428_v53 = vsel %vm3427_vm15, %v4675_v32, %v3424_v57 }
0x5fc4   :  { %v3433_v13 = vsel %vm3430_vm0, %v3432_v8, %v3428_v53 }
0x5fc5   :  { %v3440_v24 = vmul.f32 %v3438_v43, %v3433_v13  ;;  %v3447_v28 = vsub.f32 1.0, %v3433_v13  ;;  %v3453_v31 = vmul.f32 %v3433_v13, %v6063_v21 }
0x5fc7   :  { %3442 = vrot.lane.b32.xlu0 %v3440_v24, %s5002_s17 }
0x6039   :  { %v3443_v39 = vpop.permute.xlu0 %3442 }
0x603a   :  { %v3445_v15 = vadd.f32 %v3443_v39, %v3400_v19 }
0x603c   :  { %4676 = vtanh.f32 %v3445_v15 }
0x6042   :  { %v4677_v6 = vpop.eup %4676 }
0x6043   :  { %3449 = vrot.lane.b32.xlu1 %v4677_v6, %s5003_s3 }
0x60b5   :  { %v3450_v17 = vpop.permute.xlu1 %3449 }
0x60b6   :  { %v3452_v44 = vmul.f32 %v3450_v17, %v3447_v28 }
0x60b8   :  { %v6103_v32 = vadd.f32 %v3453_v31, %v3452_v44 }
0x60ba   :  { %3456 = vrot.lane.b32.xlu0 %v6103_v32, %s5003_s3 }
0x612c   :  { %v3457_v23 = vpop.permute.xlu0 %3456 }
0x612d   :  { %4447 = vmatmul.msk.f32.vlgmr.msra.gmra.mxu0 %vm151_vm5, %v3457_v23 }
0x61aa   :  { %v3477_v18 = vpop.f32.mrf.mxu0 }
0x61ab   :  { %v6109_v5 = vadd.f32 %v6034_v58, %v3477_v18  ;;  %v3555_v13 = vadd.f32 %v3477_v18, %v5209_v20 }
0x61ad   :  { %6685 = vst [vmem:[#allocation25_spill] sm:$0xff] %v6109_v5  ;;  %v3481_v42 = vsel %vm839_vm8, %v6109_v5, -inf }
0x61ae   :  { %3482 = vmax.xlane.f32.xlu2 %v3481_v42 }
0x61c6   :  { %3532 = vrot.lane.b32.xlu2 %v3477_v18, %s5005_s24 }
0x6221   :  { %v6114_v21 = vpop.xlane.xlu2 %3482 }
0x6222   :  { %6686 = vst [vmem:[#allocation26_spill] sm:$0xff] %v6114_v21  ;;  %vm3484_vm1 = vcmp.ge.f32.partialorder %v6109_v5, %v6114_v21 }
0x6223   :  { %v3485_v57 = vsel %vm3484_vm1, %v5249_v59, 16 }
0x6224   :  { %v3486_v8 = vsel %vm839_vm8, %v3485_v57, 2147483647 }
0x6225   :  { %v3488_v53 = vshra.s32 %v3486_v8, 16  ;;  %v3487_v24 = vand.u32 65535, %v3486_v8 }
0x6227   :  { %v3490_v43 = vcvt.s32.f32 %v3488_v53  ;;  %v3489_v39 = vcvt.s32.f32 %v3487_v24 }
0x6229   :  { %3491 = vmin.xlane.f32.xlu1 %v3490_v43 }
0x6242   :  { %3557 = vrot.lane.b32.xlu1 %v3555_v13, %s5006_s25 }
0x629c   :  { %v3492_v19 = vpop.xlane.xlu1 %3491 }
0x629d   :  { %vm3493_vm2 = vcmp.eq.f32.partialorder %v3490_v43, %v3492_v19  ;;  %v3498_v6 = vcvt.f32.s32 %v3492_v19 }
0x629e   :  { %v3494_v15 = vsel %vm3493_vm2, %v3489_v39, inf }
0x629f   :  { %3495 = vmin.xlane.f32.xlu0 %v3494_v15  ;;  %v3499_v17 = vshll.u32 %v3498_v6, 16 }
0x6312   :  { %v3496_v28 = vpop.xlane.xlu0 %3495 }
0x6313   :  { %v3497_v31 = vcvt.f32.s32 %v3496_v28 }
0x6315   :  { %v3500_v44 = vadd.s32 %v3499_v17, %v3497_v31  ;;  %v3533_v31 = vpop.permute.xlu2 %3532 }
0x6317   :  { %v3501_v23 = vperm.slane %v3500_v44, 0 }
0x6319   :  { %vm3502_vm3 = vcmp.eq.s32.totalorder %v5259_v10, %v3501_v23  ;;  %vm3503_vm4 = vcmp.eq.s32.totalorder %v5262_v16, %v3501_v23 }
0x631a   :  { %v4448_v18 = vsel %vm3502_vm3, 1.0, %v6678_v45  ;;  %v4449_v42 = vsel %vm3503_vm4, 1.0, %v6678_v45 }
0x631b   :  { %v3508_v57 = vmul.f32 %v6090_v7, %v4448_v18  ;;  %v3509_v8 = vmul.f32 %v6093_v27, %v4449_v42 }
0x631d   :  { %v3510_v53 = vsel %vm869_vm13, %v3508_v57, 0.0  ;;  %v3511_v43 = vsel %vm869_vm13, %v3509_v8, 0.0 }
0x631e   :  { %v3512_v13 = vadd.f32 %v3511_v43, %v3510_v53 }
0x6320   :  { %v3513_v24 = vrot.slane %v3512_v13, 4 }
0x6322   :  { %v3514_v19 = vadd.f32 %v3513_v24, %v3512_v13 }
0x6324   :  { %v3515_v39 = vrot.slane %v3514_v19, 2 }
0x6326   :  { %v3516_v15 = vadd.f32 %v3515_v39, %v3514_v19  ;;  %v3558_v39 = vpop.permute.xlu1 %3557 }
0x6328   :  { %v3517_v6 = vrot.slane %v3516_v15, 1 }
0x632a   :  { %v3518_v28 = vadd.f32 %v3517_v6, %v3516_v15 }
0x632c   :  { %v3519_v17 = vadd.f32 %v3518_v28, %v5223_v25 }
0x632e   :  { %v3535_v44 = vadd.f32 %v3533_v31, %v3519_v17  ;;  %v3520_v17 = vadd.f32 %v6017_v63, %v3518_v28 }
0x6330   :  { %v4450_v23 = vmul.f32 -1.442695, %v3535_v44 }
0x6332   :  { %4678 = vpow2.f32 %v4450_v23 }
0x6338   :  { %v4679_v18 = vpop.eup %4678 }
0x6339   :  { %v3539_v48 = vadd.f32 1.0, %v4679_v18 }
0x633b   :  { %4680 = vrcp.f32 %v3539_v48  ;;  %v3551_v8 = vand.u32 2147483648, %v3539_v48  ;;  %v3549_v43 = vand.u32 2147483647, %v3539_v48  ;;  %vm3545_vm7 = vweird.f32 %v3539_v48 }
0x633d   :  { %v3552_v24 = vor.u32 1.1754944e-38, %v3551_v8  ;;  %vm3550_vm10 = vcmp.eq.f32.partialorder %v3549_v43, 8.507059e+37 }
0x6341   :  { %v4681_v42 = vpop.eup %4680 }
0x6342   :  { %v3541_v57 = vmul.f32 %v4681_v42, %v3539_v48  ;;  %vm3546_vm6 = vweird.f32 %v4681_v42 }
0x6343   :  { %vm3547_vm9 = vmor %vm3545_vm7, %vm3546_vm6 }
0x6344   :  { %v3542_v35 = vsub.f32 1.0, %v3541_v57 }
0x6346   :  { %v3543_v53 = vmul.f32 %v4681_v42, %v3542_v35 }
0x6348   :  { %v3544_v13 = vadd.f32 %v4681_v42, %v3543_v53 }
0x634a   :  { %v3548_v19 = vsel %vm3547_vm9, %v4681_v42, %v3544_v13 }
0x634b   :  { %v3553_v15 = vsel %vm3550_vm10, %v3552_v24, %v3548_v19 }
0x634c   :  { %v3560_v6 = vmul.f32 %v3558_v39, %v3553_v15  ;;  %v3567_v35 = vsub.f32 1.0, %v3553_v15  ;;  %v3573_v48 = vmul.f32 %v3553_v15, %v6103_v32 }
0x634e   :  { %3562 = vrot.lane.b32.xlu0 %v3560_v6, %s5002_s17 }
0x63c0   :  { %v3563_v31 = vpop.permute.xlu0 %3562 }
0x63c1   :  { %v3565_v44 = vadd.f32 %v3563_v31, %v3520_v17 }
0x63c3   :  { %4682 = vtanh.f32 %v3565_v44 }
0x63c9   :  { %v4683_v23 = vpop.eup %4682 }
0x63ca   :  { %3569 = vrot.lane.b32.xlu2 %v4683_v23, %s5003_s3 }
0x6424   :  { %v3570_v18 = vpop.permute.xlu2 %3569 }
0x6425   :  { %v3572_v57 = vmul.f32 %v3570_v18, %v3567_v35 }
0x6427   :  { %v6135_v42 = vadd.f32 %v3573_v48, %v3572_v57 }
0x6429   :  { %3576 = vrot.lane.b32.xlu0 %v6135_v42, %s5003_s3 }
0x649b   :  { %v3577_v8 = vpop.permute.xlu0 %3576 }
0x649c   :  { %4451 = vmatmul.msk.f32.vlgmr.msra.gmra.mxu1 %vm151_vm5, %v3577_v8 }
0x6519   :  { %v3597_v28 = vpop.f32.mrf.mxu1 }
0x651a   :  { %v6141_v53 = vadd.f32 %v6034_v58, %v3597_v28  ;;  %v3675_v15 = vadd.f32 %v3597_v28, %v5209_v20 }
0x651c   :  { %v3601_v43 = vsel %vm839_vm8, %v6141_v53, -inf }
0x651d   :  { %3602 = vmax.xlane.f32.xlu1 %v3601_v43 }
0x6536   :  { %3652 = vrot.lane.b32.xlu1 %v3597_v28, %s5005_s24 }
0x6590   :  { %v6146_v32 = vpop.xlane.xlu1 %3602 }
0x6591   :  { %vm3604_vm11 = vcmp.ge.f32.partialorder %v6141_v53, %v6146_v32 }
0x6592   :  { %v3605_v13 = vsel %vm3604_vm11, %v5249_v59, 16 }
0x6593   :  { %v3606_v24 = vsel %vm839_vm8, %v3605_v13, 2147483647 }
0x6594   :  { %v3608_v19 = vshra.s32 %v3606_v24, 16  ;;  %v3607_v6 = vand.u32 65535, %v3606_v24 }
0x6596   :  { %v3610_v39 = vcvt.s32.f32 %v3608_v19  ;;  %v3609_v31 = vcvt.s32.f32 %v3607_v6 }
0x6598   :  { %3611 = vmin.xlane.f32.xlu2 %v3610_v39 }
0x65b0   :  { %3677 = vrot.lane.b32.xlu2 %v3675_v15, %s5006_s25 }
0x660b   :  { %v3612_v17 = vpop.xlane.xlu2 %3611 }
0x660c   :  { %vm3613_vm12 = vcmp.eq.f32.partialorder %v3610_v39, %v3612_v17  ;;  %v3618_v23 = vcvt.f32.s32 %v3612_v17 }
0x660d   :  { %v3614_v44 = vsel %vm3613_vm12, %v3609_v31, inf }
0x660e   :  { %3615 = vmin.xlane.f32.xlu0 %v3614_v44  ;;  %v3619_v18 = vshll.u32 %v3618_v23, 16 }
0x6681   :  { %v3616_v35 = vpop.xlane.xlu0 %3615 }
0x6682   :  { %v3617_v48 = vcvt.f32.s32 %v3616_v35 }
0x6684   :  { %v3620_v57 = vadd.s32 %v3619_v18, %v3617_v48  ;;  %v3653_v48 = vpop.permute.xlu1 %3652 }
0x6686   :  { %v3621_v8 = vperm.slane %v3620_v57, 0 }
0x6688   :  { %vm3622_vm14 = vcmp.eq.s32.totalorder %v5259_v10, %v3621_v8  ;;  %vm3623_vm15 = vcmp.eq.s32.totalorder %v5262_v16, %v3621_v8 }
0x6689   :  { %v4452_v28 = vsel %vm3622_vm14, 1.0, %v6678_v45  ;;  %v4453_v43 = vsel %vm3623_vm15, 1.0, %v6678_v45 }
0x668a   :  { %v3628_v13 = vmul.f32 %v6090_v7, %v4452_v28  ;;  %v3629_v24 = vmul.f32 %v6093_v27, %v4453_v43 }
0x668c   :  { %v3630_v19 = vsel %vm869_vm13, %v3628_v13, 0.0  ;;  %v3631_v39 = vsel %vm869_vm13, %v3629_v24, 0.0 }
0x668d   :  { %v3632_v15 = vadd.f32 %v3631_v39, %v3630_v19 }
0x668f   :  { %v3633_v6 = vrot.slane %v3632_v15, 4 }
0x6691   :  { %v3634_v17 = vadd.f32 %v3633_v6, %v3632_v15 }
0x6693   :  { %v3635_v31 = vrot.slane %v3634_v17, 2 }
0x6695   :  { %v3636_v44 = vadd.f32 %v3635_v31, %v3634_v17  ;;  %v3678_v31 = vpop.permute.xlu2 %3677 }
0x6697   :  { %v3637_v23 = vrot.slane %v3636_v44, 1 }
0x6699   :  { %v3638_v35 = vadd.f32 %v3637_v23, %v3636_v44 }
0x669b   :  { %v3639_v18 = vadd.f32 %v3638_v35, %v5223_v25 }
0x669d   :  { %v3655_v57 = vadd.f32 %v3653_v48, %v3639_v18  ;;  %v3640_v18 = vadd.f32 %v6017_v63, %v3638_v35 }
0x669f   :  { %v4454_v8 = vmul.f32 -1.442695, %v3655_v57 }
0x66a1   :  { %4684 = vpow2.f32 %v4454_v8 }
0x66a7   :  { %v4685_v28 = vpop.eup %4684 }
0x66a8   :  { %v3659_v5 = vadd.f32 1.0, %v4685_v28 }
0x66aa   :  { %4686 = vrcp.f32 %v3659_v5  ;;  %v3671_v24 = vand.u32 2147483648, %v3659_v5  ;;  %v3669_v39 = vand.u32 2147483647, %v3659_v5  ;;  %vm3665_vm1 = vweird.f32 %v3659_v5 }
0x66ac   :  { %v3672_v6 = vor.u32 1.1754944e-38, %v3671_v24  ;;  %vm3670_vm3 = vcmp.eq.f32.partialorder %v3669_v39, 8.507059e+37 }
0x66b0   :  { %v4687_v43 = vpop.eup %4686 }
0x66b1   :  { %v3661_v13 = vmul.f32 %v4687_v43, %v3659_v5  ;;  %vm3666_vm0 = vweird.f32 %v4687_v43 }
0x66b2   :  { %vm3667_vm2 = vmor %vm3665_vm1, %vm3666_vm0 }
0x66b3   :  { %v3662_v21 = vsub.f32 1.0, %v3661_v13 }
0x66b5   :  { %v3663_v19 = vmul.f32 %v4687_v43, %v3662_v21 }
0x66b7   :  { %v3664_v15 = vadd.f32 %v4687_v43, %v3663_v19 }
0x66b9   :  { %v3668_v17 = vsel %vm3667_vm2, %v4687_v43, %v3664_v15 }
0x66ba   :  { %v3673_v44 = vsel %vm3670_vm3, %v3672_v6, %v3668_v17 }
0x66bb   :  { %v3680_v23 = vmul.f32 %v3678_v31, %v3673_v44  ;;  %v3687_v21 = vsub.f32 1.0, %v3673_v44  ;;  %v3693_v5 = vmul.f32 %v3673_v44, %v6135_v42 }
0x66bd   :  { %3682 = vrot.lane.b32.xlu0 %v3680_v23, %s5002_s17 }
0x672f   :  { %v3683_v48 = vpop.permute.xlu0 %3682 }
0x6730   :  { %v3685_v57 = vadd.f32 %v3683_v48, %v3640_v18 }
0x6732   :  { %4688 = vtanh.f32 %v3685_v57 }
0x6738   :  { %v4689_v8 = vpop.eup %4688 }
0x6739   :  { %3689 = vrot.lane.b32.xlu0 %v4689_v8, %s5003_s3 }
0x67ab   :  { %v3690_v28 = vpop.permute.xlu0 %3689 }
0x67ac   :  { %v3692_v13 = vmul.f32 %v3690_v28, %v3687_v21 }
0x67ae   :  { %v6167_v43 = vadd.f32 %v3693_v5, %v3692_v13 }
0x67b0   :  { %3696 = vrot.lane.b32.xlu1 %v6167_v43, %s5003_s3 }
0x6822   :  { %v3697_v24 = vpop.permute.xlu1 %3696 }
0x6823   :  { %4455 = vmatmul.msk.f32.vlgmr.msra.gmra.mxu2 %vm151_vm5, %v3697_v24 }
0x68a6   :  { %v3717_v35 = vpop.f32.mrf.mxu2 }
0x68a7   :  { %v6173_v19 = vadd.f32 %v6034_v58, %v3717_v35  ;;  %v3795_v44 = vadd.f32 %v3717_v35, %v5209_v20 }
0x68a9   :  { %6687 = vst [vmem:[#allocation27_spill] sm:$0xff] %v6173_v19  ;;  %v3721_v39 = vsel %vm839_vm8, %v6173_v19, -inf }
0x68aa   :  { %3722 = vmax.xlane.f32.xlu2 %v3721_v39 }
0x68c2   :  { %3772 = vrot.lane.b32.xlu2 %v3717_v35, %s5005_s24 }
0x691d   :  { %v6178_v42 = vpop.xlane.xlu2 %3722 }
0x691e   :  { %6688 = vst [vmem:[#allocation28_spill] sm:$0xff] %v6178_v42  ;;  %vm3724_vm4 = vcmp.ge.f32.partialorder %v6173_v19, %v6178_v42 }
0x691f   :  { %v3725_v15 = vsel %vm3724_vm4, %v5249_v59, 16 }
0x6920   :  { %v3726_v6 = vsel %vm839_vm8, %v3725_v15, 2147483647 }
0x6921   :  { %v3728_v17 = vshra.s32 %v3726_v6, 16  ;;  %v3727_v23 = vand.u32 65535, %v3726_v6 }
0x6923   :  { %v3730_v31 = vcvt.s32.f32 %v3728_v17  ;;  %v3729_v48 = vcvt.s32.f32 %v3727_v23 }
0x6925   :  { %3731 = vmin.xlane.f32.xlu0 %v3730_v31 }
0x6939   :  { %3797 = vrot.lane.b32.xlu0 %v3795_v44, %s5006_s25 }
0x6998   :  { %v3732_v18 = vpop.xlane.xlu0 %3731 }
0x6999   :  { %vm3733_vm6 = vcmp.eq.f32.partialorder %v3730_v31, %v3732_v18  ;;  %v3738_v8 = vcvt.f32.s32 %v3732_v18 }
0x699a   :  { %v3734_v57 = vsel %vm3733_vm6, %v3729_v48, inf }
0x699b   :  { %3735 = vmin.xlane.f32.xlu1 %v3734_v57  ;;  %v3739_v28 = vshll.u32 %v3738_v8, 16 }
0x6a0e   :  { %v3736_v21 = vpop.xlane.xlu1 %3735 }
0x6a0f   :  { %v3737_v5 = vcvt.f32.s32 %v3736_v21 }
0x6a11   :  { %v3740_v13 = vadd.s32 %v3739_v28, %v3737_v5  ;;  %v3773_v5 = vpop.permute.xlu2 %3772 }
0x6a13   :  { %v3741_v24 = vperm.slane %v3740_v13, 0 }
0x6a15   :  { %vm3742_vm7 = vcmp.eq.s32.totalorder %v5259_v10, %v3741_v24  ;;  %vm3743_vm9 = vcmp.eq.s32.totalorder %v5262_v16, %v3741_v24 }
0x6a16   :  { %v4456_v35 = vsel %vm3742_vm7, 1.0, %v6678_v45  ;;  %v4457_v39 = vsel %vm3743_vm9, 1.0, %v6678_v45 }
0x6a17   :  { %v3748_v15 = vmul.f32 %v6090_v7, %v4456_v35  ;;  %v3749_v6 = vmul.f32 %v6093_v27, %v4457_v39 }
0x6a19   :  { %v3750_v17 = vsel %vm869_vm13, %v3748_v15, 0.0  ;;  %v3751_v31 = vsel %vm869_vm13, %v3749_v6, 0.0 }
0x6a1a   :  { %v3752_v44 = vadd.f32 %v3751_v31, %v3750_v17 }
0x6a1c   :  { %v3753_v23 = vrot.slane %v3752_v44, 4 }
0x6a1e   :  { %v3754_v18 = vadd.f32 %v3753_v23, %v3752_v44 }
0x6a20   :  { %v3755_v48 = vrot.slane %v3754_v18, 2 }
0x6a22   :  { %v3756_v57 = vadd.f32 %v3755_v48, %v3754_v18  ;;  %v3798_v48 = vpop.permute.xlu0 %3797 }
0x6a24   :  { %v3757_v8 = vrot.slane %v3756_v57, 1 }
0x6a26   :  { %v3758_v21 = vadd.f32 %v3757_v8, %v3756_v57 }
0x6a28   :  { %v3759_v28 = vadd.f32 %v3758_v21, %v5223_v25 }
0x6a2a   :  { %v3775_v13 = vadd.f32 %v3773_v5, %v3759_v28  ;;  %v3760_v28 = vadd.f32 %v6017_v63, %v3758_v21 }
0x6a2c   :  { %v4458_v24 = vmul.f32 -1.442695, %v3775_v13 }
0x6a2e   :  { %4690 = vpow2.f32 %v4458_v24 }
0x6a34   :  { %v4691_v35 = vpop.eup %4690 }
0x6a35   :  { %v3779_v19 = vadd.f32 1.0, %v4691_v35 }
0x6a37   :  { %4692 = vrcp.f32 %v3779_v19  ;;  %v3791_v6 = vand.u32 2147483648, %v3779_v19  ;;  %v3789_v31 = vand.u32 2147483647, %v3779_v19  ;;  %vm3785_vm11 = vweird.f32 %v3779_v19 }
0x6a39   :  { %v3792_v23 = vor.u32 1.1754944e-38, %v3791_v6  ;;  %vm3790_vm14 = vcmp.eq.f32.partialorder %v3789_v31, 8.507059e+37 }
0x6a3d   :  { %v4693_v39 = vpop.eup %4692 }
0x6a3e   :  { %v3781_v15 = vmul.f32 %v4693_v39, %v3779_v19  ;;  %vm3786_vm10 = vweird.f32 %v4693_v39 }
0x6a3f   :  { %vm3787_vm12 = vmor %vm3785_vm11, %vm3786_vm10 }
0x6a40   :  { %v3782_v42 = vsub.f32 1.0, %v3781_v15 }
0x6a42   :  { %v3783_v17 = vmul.f32 %v4693_v39, %v3782_v42 }
0x6a44   :  { %v3784_v44 = vadd.f32 %v4693_v39, %v3783_v17 }
0x6a46   :  { %v3788_v18 = vsel %vm3787_vm12, %v4693_v39, %v3784_v44 }
0x6a47   :  { %v3793_v57 = vsel %vm3790_vm14, %v3792_v23, %v3788_v18 }
0x6a48   :  { %v3800_v8 = vmul.f32 %v3798_v48, %v3793_v57  ;;  %v3807_v42 = vsub.f32 1.0, %v3793_v57  ;;  %v3813_v19 = vmul.f32 %v3793_v57, %v6167_v43 }
0x6a4a   :  { %3802 = vrot.lane.b32.xlu1 %v3800_v8, %s5002_s17 }
0x6abc   :  { %v3803_v5 = vpop.permute.xlu1 %3802 }
0x6abd   :  { %v3805_v13 = vadd.f32 %v3803_v5, %v3760_v28 }
0x6abf   :  { %4694 = vtanh.f32 %v3805_v13 }
0x6ac5   :  { %v4695_v24 = vpop.eup %4694 }
0x6ac6   :  { %3809 = vrot.lane.b32.xlu2 %v4695_v24, %s5003_s3 }
0x6b20   :  { %v3810_v35 = vpop.permute.xlu2 %3809 }
0x6b21   :  { %v3812_v15 = vmul.f32 %v3810_v35, %v3807_v42 }
0x6b23   :  { %v6199_v39 = vadd.f32 %v3813_v19, %v3812_v15 }
0x6b25   :  { %3816 = vrot.lane.b32.xlu0 %v6199_v39, %s5003_s3 }
0x6b97   :  { %v3817_v6 = vpop.permute.xlu0 %3816 }
0x6b98   :  { %4459 = vmatmul.msk.f32.vlgmr.msra.gmra.mxu3 %vm151_vm5, %v3817_v6 }
0x6c1b   :  { %v3837_v21 = vpop.f32.mrf.mxu3 }
0x6c1c   :  { %v6205_v17 = vadd.f32 %v6034_v58, %v3837_v21  ;;  %v3915_v57 = vadd.f32 %v3837_v21, %v5209_v20 }
0x6c1e   :  { %6689 = vst [vmem:[#allocation29_spill] sm:$0xff] %v6205_v17  ;;  %v3841_v31 = vsel %vm839_vm8, %v6205_v17, -inf }
0x6c1f   :  { %3842 = vmax.xlane.f32.xlu2 %v3841_v31 }
0x6c37   :  { %3892 = vrot.lane.b32.xlu2 %v3837_v21, %s5005_s24 }
0x6c92   :  { %v6210_v43 = vpop.xlane.xlu2 %3842 }
0x6c93   :  { %6690 = vst [vmem:[#allocation30_spill] sm:$0xff] %v6210_v43  ;;  %vm3844_vm15 = vcmp.ge.f32.partialorder %v6205_v17, %v6210_v43 }
0x6c94   :  { %v3845_v44 = vsel %vm3844_vm15, %v5249_v59, 16 }
0x6c95   :  { %v3846_v23 = vsel %vm839_vm8, %v3845_v44, 2147483647 }
0x6c96   :  { %v3848_v18 = vshra.s32 %v3846_v23, 16  ;;  %v3847_v8 = vand.u32 65535, %v3846_v23 }
0x6c98   :  { %v3850_v48 = vcvt.s32.f32 %v3848_v18  ;;  %v3849_v5 = vcvt.s32.f32 %v3847_v8 }
0x6c9a   :  { %3851 = vmin.xlane.f32.xlu1 %v3850_v48 }
0x6cb3   :  { %3917 = vrot.lane.b32.xlu1 %v3915_v57, %s5006_s25 }
0x6d0d   :  { %v3852_v28 = vpop.xlane.xlu1 %3851 }
0x6d0e   :  { %vm3853_vm0 = vcmp.eq.f32.partialorder %v3850_v48, %v3852_v28  ;;  %v3858_v24 = vcvt.f32.s32 %v3852_v28 }
0x6d0f   :  { %v3854_v13 = vsel %vm3853_vm0, %v3849_v5, inf }
0x6d10   :  { %3855 = vmin.xlane.f32.xlu0 %v3854_v13  ;;  %v3859_v35 = vshll.u32 %v3858_v24, 16 }
0x6d83   :  { %v3856_v42 = vpop.xlane.xlu0 %3855 }
0x6d84   :  { %v3857_v19 = vcvt.f32.s32 %v3856_v42 }
0x6d86   :  { %v3860_v15 = vadd.s32 %v3859_v35, %v3857_v19  ;;  %v3893_v19 = vpop.permute.xlu2 %3892 }
0x6d88   :  { %v3861_v6 = vperm.slane %v3860_v15, 0 }
0x6d8a   :  { %vm3862_vm1 = vcmp.eq.s32.totalorder %v5259_v10, %v3861_v6  ;;  %vm3863_vm2 = vcmp.eq.s32.totalorder %v5262_v16, %v3861_v6 }
0x6d8b   :  { %v4460_v21 = vsel %vm3862_vm1, 1.0, %v6678_v45  ;;  %v4461_v31 = vsel %vm3863_vm2, 1.0, %v6678_v45 }
0x6d8c   :  { %v3868_v44 = vmul.f32 %v6090_v7, %v4460_v21  ;;  %v3869_v23 = vmul.f32 %v6093_v27, %v4461_v31 }
0x6d8e   :  { %v3870_v18 = vsel %vm869_vm13, %v3868_v44, 0.0  ;;  %v3871_v48 = vsel %vm869_vm13, %v3869_v23, 0.0 }
0x6d8f   :  { %v3872_v57 = vadd.f32 %v3871_v48, %v3870_v18 }
0x6d91   :  { %v3873_v8 = vrot.slane %v3872_v57, 4 }
0x6d93   :  { %v3874_v28 = vadd.f32 %v3873_v8, %v3872_v57 }
0x6d95   :  { %v3875_v5 = vrot.slane %v3874_v28, 2 }
0x6d97   :  { %v3876_v13 = vadd.f32 %v3875_v5, %v3874_v28  ;;  %v3918_v5 = vpop.permute.xlu1 %3917 }
0x6d99   :  { %v3877_v24 = vrot.slane %v3876_v13, 1 }
0x6d9b   :  { %v3878_v42 = vadd.f32 %v3877_v24, %v3876_v13 }
0x6d9d   :  { %v3879_v35 = vadd.f32 %v3878_v42, %v5223_v25 }
0x6d9f   :  { %v3895_v15 = vadd.f32 %v3893_v19, %v3879_v35  ;;  %v3880_v35 = vadd.f32 %v6017_v63, %v3878_v42 }
0x6da1   :  { %v4462_v6 = vmul.f32 -1.442695, %v3895_v15 }
0x6da3   :  { %4696 = vpow2.f32 %v4462_v6 }
0x6da9   :  { %v4697_v21 = vpop.eup %4696 }
0x6daa   :  { %v3899_v17 = vadd.f32 1.0, %v4697_v21 }
0x6dac   :  { %4698 = vrcp.f32 %v3899_v17  ;;  %v3911_v23 = vand.u32 2147483648, %v3899_v17  ;;  %v3909_v48 = vand.u32 2147483647, %v3899_v17  ;;  %vm3905_vm4 = vweird.f32 %v3899_v17 }
0x6dae   :  { %v3912_v8 = vor.u32 1.1754944e-38, %v3911_v23  ;;  %vm3910_vm7 = vcmp.eq.f32.partialorder %v3909_v48, 8.507059e+37 }
0x6db2   :  { %v4699_v31 = vpop.eup %4698 }
0x6db3   :  { %v3901_v44 = vmul.f32 %v4699_v31, %v3899_v17  ;;  %vm3906_vm3 = vweird.f32 %v4699_v31 }
0x6db4   :  { %vm3907_vm6 = vmor %vm3905_vm4, %vm3906_vm3 }
0x6db5   :  { %v3902_v43 = vsub.f32 1.0, %v3901_v44 }
0x6db7   :  { %v3903_v18 = vmul.f32 %v4699_v31, %v3902_v43 }
0x6db9   :  { %v3904_v57 = vadd.f32 %v4699_v31, %v3903_v18 }
0x6dbb   :  { %v3908_v28 = vsel %vm3907_vm6, %v4699_v31, %v3904_v57 }
0x6dbc   :  { %v3913_v13 = vsel %vm3910_vm7, %v3912_v8, %v3908_v28 }
0x6dbd   :  { %v3920_v24 = vmul.f32 %v3918_v5, %v3913_v13  ;;  %v3927_v43 = vsub.f32 1.0, %v3913_v13  ;;  %v3933_v17 = vmul.f32 %v3913_v13, %v6199_v39 }
0x6dbf   :  { %3922 = vrot.lane.b32.xlu0 %v3920_v24, %s5002_s17 }
0x6e31   :  { %v3923_v19 = vpop.permute.xlu0 %3922 }
0x6e32   :  { %v3925_v15 = vadd.f32 %v3923_v19, %v3880_v35 }
0x6e34   :  { %4700 = vtanh.f32 %v3925_v15 }
0x6e3a   :  { %v4701_v6 = vpop.eup %4700 }
0x6e3b   :  { %3929 = vrot.lane.b32.xlu2 %v4701_v6, %s5003_s3 }
0x6e95   :  { %v3930_v21 = vpop.permute.xlu2 %3929 }
0x6e96   :  { %v3932_v44 = vmul.f32 %v3930_v21, %v3927_v43 }
0x6e98   :  { %v6231_v31 = vadd.f32 %v3933_v17, %v3932_v44 }
0x6e9a   :  { %3936 = vrot.lane.b32.xlu0 %v6231_v31, %s5003_s3 }
0x6f0c   :  { %v3937_v23 = vpop.permute.xlu0 %3936 }
0x6f0d   :  { %4463 = vmatmul.msk.f32.vlgmr.msrb.gmra.mxu0 %vm151_vm5, %v3937_v23 }
0x6f8a   :  { %v3957_v63 = vpop.f32.mrf.mxu0 }
0x6f8b   :  { %v6237_v42 = vadd.f32 %v6034_v58, %v3957_v63  ;;  %v4035_v58 = vadd.f32 %v3957_v63, %v5209_v20 }
0x6f8d   :  { %v3961_v18 = vsel %vm839_vm8, %v6237_v42, -inf }
0x6f8e   :  { %3962 = vmax.xlane.f32.xlu1 %v3961_v18 }
0x6fa7   :  { %4012 = vrot.lane.b32.xlu1 %v3957_v63, %s5005_s24 }
0x7001   :  { %v6242_v39 = vpop.xlane.xlu1 %3962 }
0x7002   :  { %vm3964_vm9 = vcmp.ge.f32.partialorder %v6237_v42, %v6242_v39 }
0x7003   :  { %v3965_v48 = vsel %vm3964_vm9, %v5249_v59, 16 }
0x7004   :  { %v3966_v57 = vsel %vm839_vm8, %v3965_v48, 2147483647 }
0x7005   :  { %v3968_v8 = vshra.s32 %v3966_v57, 16  ;;  %v3967_v5 = vand.u32 65535, %v3966_v57 }
0x7007   :  { %v3970_v28 = vcvt.s32.f32 %v3968_v8  ;;  %v3969_v24 = vcvt.s32.f32 %v3967_v5 }
0x7009   :  { %3971 = vmin.xlane.f32.xlu2 %v3970_v28 }
0x7021   :  { %4037 = vrot.lane.b32.xlu2 %v4035_v58, %s5006_s25 }
0x707c   :  { %v3972_v13 = vpop.xlane.xlu2 %3971 }
0x707d   :  { %vm3973_vm10 = vcmp.eq.f32.partialorder %v3970_v28, %v3972_v13  ;;  %v3978_v19 = vcvt.f32.s32 %v3972_v13 }
0x707e   :  { %v3974_v35 = vsel %vm3973_vm10, %v3969_v24, inf }
0x707f   :  { %3975 = vmin.xlane.f32.xlu0 %v3974_v35  ;;  %v3979_v6 = vshll.u32 %v3978_v19, 16 }
0x70f2   :  { %v3976_v15 = vpop.xlane.xlu0 %3975 }
0x70f3   :  { %v3977_v43 = vcvt.f32.s32 %v3976_v15  ;;  %v4013_v15 = vpop.permute.xlu1 %4012 }
0x70f5   :  { %v3980_v21 = vadd.s32 %v3979_v6, %v3977_v43 }
0x70f7   :  { %v3981_v17 = vperm.slane %v3980_v21, 0 }
0x70f9   :  { %vm3982_vm11 = vcmp.eq.s32.totalorder %v5259_v10, %v3981_v17  ;;  %vm3983_vm12 = vcmp.eq.s32.totalorder %v5262_v16, %v3981_v17 }
0x70fa   :  { %v4464_v44 = vsel %vm3982_vm11, 1.0, %v6678_v45  ;;  %v4465_v23 = vsel %vm3983_vm12, 1.0, %v6678_v45 }
0x70fb   :  { %v3988_v63 = vmul.f32 %v6090_v7, %v4464_v44  ;;  %v3989_v18 = vmul.f32 %v6093_v27, %v4465_v23 }
0x70fd   :  { %v3990_v48 = vsel %vm869_vm13, %v3988_v63, 0.0  ;;  %v3991_v57 = vsel %vm869_vm13, %v3989_v18, 0.0 }
0x70fe   :  { %v3992_v8 = vadd.f32 %v3991_v57, %v3990_v48 }
0x7100   :  { %v3993_v28 = vrot.slane %v3992_v8, 4 }
0x7102   :  { %v3994_v58 = vadd.f32 %v3993_v28, %v3992_v8 }
0x7104   :  { %v3995_v5 = vrot.slane %v3994_v58, 2 }
0x7106   :  { %v3996_v13 = vadd.f32 %v3995_v5, %v3994_v58  ;;  %v4038_v5 = vpop.permute.xlu2 %4037 }
0x7108   :  { %v3997_v24 = vrot.slane %v3996_v13, 1 }
0x710a   :  { %v3998_v35 = vadd.f32 %v3997_v24, %v3996_v13 }
0x710c   :  { %v3999_v19 = vadd.f32 %v3998_v35, %v5223_v25 }
0x710e   :  { %v4015_v6 = vadd.f32 %v4013_v15, %v3999_v19  ;;  %v6263_v19 = vld [vmem:[%s6646_s7] sm:$0x1] }
0x710f   :  { %v4000_v15 = vadd.f32 %v6263_v19, %v3998_v35 }
0x7110   :  { %v4466_v43 = vmul.f32 -1.442695, %v4015_v6 }
0x7112   :  { %4702 = vpow2.f32 %v4466_v43 }
0x7118   :  { %v4703_v21 = vpop.eup %4702 }
0x7119   :  { %v4019_v17 = vadd.f32 1.0, %v4703_v21 }
0x711b   :  { %4704 = vrcp.f32 %v4019_v17  ;;  %v4031_v18 = vand.u32 2147483648, %v4019_v17  ;;  %v4029_v57 = vand.u32 2147483647, %v4019_v17  ;;  %vm4025_vm15 = vweird.f32 %v4019_v17 }
0x711d   :  { %v4032_v28 = vor.u32 1.1754944e-38, %v4031_v18  ;;  %vm4030_vm1 = vcmp.eq.f32.partialorder %v4029_v57, 8.507059e+37  ;;  %v6276_v57 = vld [vmem:[%s6648_s9] sm:$0x1] }
0x7121   :  { %v4705_v44 = vpop.eup %4704 }
0x7122   :  { %v4021_v23 = vmul.f32 %v4705_v44, %v4019_v17  ;;  %vm4026_vm14 = vweird.f32 %v4705_v44 }
0x7123   :  { %vm4027_vm0 = vmor %vm4025_vm15, %vm4026_vm14 }
0x7124   :  { %v4022_v63 = vsub.f32 1.0, %v4021_v23 }
0x7126   :  { %v4023_v48 = vmul.f32 %v4705_v44, %v4022_v63 }
0x7128   :  { %v4024_v8 = vadd.f32 %v4705_v44, %v4023_v48 }
0x712a   :  { %v4028_v58 = vsel %vm4027_vm0, %v4705_v44, %v4024_v8 }
0x712b   :  { %v4033_v13 = vsel %vm4030_vm1, %v4032_v28, %v4028_v58 }
0x712c   :  { %v4040_v24 = vmul.f32 %v4038_v5, %v4033_v13  ;;  %v4047_v17 = vsub.f32 1.0, %v4033_v13  ;;  %v4053_v23 = vmul.f32 %v4033_v13, %v6231_v31 }
0x712e   :  { %4042 = vrot.lane.b32.xlu0 %v4040_v24, %s5002_s17 }
0x71a0   :  { %v4043_v6 = vpop.permute.xlu0 %4042 }
0x71a1   :  { %v4045_v43 = vadd.f32 %v4043_v6, %v4000_v15 }
0x71a3   :  { %4706 = vtanh.f32 %v4045_v43 }
0x71a9   :  { %v4707_v21 = vpop.eup %4706 }
0x71aa   :  { %4049 = vrot.lane.b32.xlu1 %v4707_v21, %s5003_s3 }
0x721c   :  { %v4050_v44 = vpop.permute.xlu1 %4049 }
0x721d   :  { %v4052_v63 = vmul.f32 %v4050_v44, %v4047_v17 }
0x721f   :  { %v6268_v18 = vadd.f32 %v4053_v23, %v4052_v63 }
0x7221   :  { %4056 = vrot.lane.b32.xlu0 %v6268_v18, %s5003_s3 }
0x7293   :  { %v4057_v48 = vpop.permute.xlu0 %4056 }
0x7294   :  { %4467 = vmatmul.msk.f32.vlgmr.msrb.gmra.mxu1 %vm151_vm5, %v4057_v48 }
0x7311   :  { %v4077_v35 = vpop.f32.mrf.mxu1 }
0x7312   :  { %v6279_v8 = vadd.f32 %v6276_v57, %v4077_v35  ;;  %v4155_v15 = vadd.f32 %v4077_v35, %v5209_v20 }
0x7314   :  { %6691 = vst [vmem:[#allocation31_spill] sm:$0xff] %v6279_v8  ;;  %v4081_v31 = vsel %vm839_vm8, %v6279_v8, -inf }
0x7315   :  { %4082 = vmax.xlane.f32.xlu2 %v4081_v31 }
0x732d   :  { %4132 = vrot.lane.b32.xlu2 %v4077_v35, %s5005_s24 }
0x7388   :  { %v6284_v28 = vpop.xlane.xlu2 %4082 }
0x7389   :  { %6692 = vst [vmem:[#allocation32_spill] sm:$0xff] %v6284_v28  ;;  %vm4084_vm2 = vcmp.ge.f32.partialorder %v6279_v8, %v6284_v28 }
0x738a   :  { %v4085_v58 = vsel %vm4084_vm2, %v5249_v59, 16 }
0x738b   :  { %v4086_v5 = vsel %vm839_vm8, %v4085_v58, 2147483647 }
0x738c   :  { %v4088_v13 = vshra.s32 %v4086_v5, 16  ;;  %v4087_v6 = vand.u32 65535, %v4086_v5 }
0x738e   :  { %v4090_v24 = vcvt.s32.f32 %v4088_v13  ;;  %v4089_v21 = vcvt.s32.f32 %v4087_v6 }
0x7390   :  { %4091 = vmin.xlane.f32.xlu1 %v4090_v24 }
0x73a9   :  { %4157 = vrot.lane.b32.xlu1 %v4155_v15, %s5006_s25 }
0x7403   :  { %v4092_v43 = vpop.xlane.xlu1 %4091 }
0x7404   :  { %vm4093_vm3 = vcmp.eq.f32.partialorder %v4090_v24, %v4092_v43  ;;  %v4098_v44 = vcvt.f32.s32 %v4092_v43 }
0x7405   :  { %v4094_v17 = vsel %vm4093_vm3, %v4089_v21, inf }
0x7406   :  { %4095 = vmin.xlane.f32.xlu0 %v4094_v17  ;;  %v4099_v63 = vshll.u32 %v4098_v44, 16 }
0x7479   :  { %v4096_v23 = vpop.xlane.xlu0 %4095 }
0x747a   :  { %v4097_v48 = vcvt.f32.s32 %v4096_v23 }
0x747c   :  { %v4100_v31 = vadd.s32 %v4099_v63, %v4097_v48  ;;  %v4133_v48 = vpop.permute.xlu2 %4132 }
0x747e   :  { %v4101_v8 = vperm.slane %v4100_v31, 0 }
0x7480   :  { %vm4102_vm4 = vcmp.eq.s32.totalorder %v5259_v10, %v4101_v8  ;;  %vm4103_vm6 = vcmp.eq.s32.totalorder %v5262_v16, %v4101_v8 }
0x7481   :  { %v4468_v35 = vsel %vm4102_vm4, 1.0, %v6678_v45  ;;  %v4469_v58 = vsel %vm4103_vm6, 1.0, %v6678_v45 }
0x7482   :  { %v4108_v5 = vmul.f32 %v6090_v7, %v4468_v35  ;;  %v4109_v13 = vmul.f32 %v6093_v27, %v4469_v58 }
0x7484   :  { %v4110_v24 = vsel %vm869_vm13, %v4108_v5, 0.0  ;;  %v4111_v15 = vsel %vm869_vm13, %v4109_v13, 0.0 }
0x7485   :  { %v4112_v6 = vadd.f32 %v4111_v15, %v4110_v24 }
0x7487   :  { %v4113_v43 = vrot.slane %v4112_v6, 4 }
0x7489   :  { %v4114_v21 = vadd.f32 %v4113_v43, %v4112_v6 }
0x748b   :  { %v4115_v17 = vrot.slane %v4114_v21, 2 }
0x748d   :  { %v4116_v44 = vadd.f32 %v4115_v17, %v4114_v21  ;;  %v4158_v17 = vpop.permute.xlu1 %4157 }
0x748f   :  { %v4117_v23 = vrot.slane %v4116_v44, 1 }
0x7491   :  { %v4118_v63 = vadd.f32 %v4117_v23, %v4116_v44 }
0x7493   :  { %v4119_v8 = vadd.f32 %v4118_v63, %v5223_v25 }
0x7495   :  { %v4135_v31 = vadd.f32 %v4133_v48, %v4119_v8 }
0x7497   :  { %v4470_v28 = vmul.f32 -1.442695, %v4135_v31 }
0x7499   :  { %4708 = vpow2.f32 %v4470_v28  ;;  %v4120_v28 = vadd.f32 %v6263_v19, %v4118_v63 }
0x749f   :  { %v4709_v7 = vpop.eup %4708 }
0x74a0   :  { %v4139_v35 = vadd.f32 1.0, %v4709_v7 }
0x74a2   :  { %4710 = vrcp.f32 %v4139_v35  ;;  %v4151_v13 = vand.u32 2147483648, %v4139_v35  ;;  %v4149_v15 = vand.u32 2147483647, %v4139_v35  ;;  %vm4145_vm9 = vweird.f32 %v4139_v35 }
0x74a4   :  { %v4152_v43 = vor.u32 1.1754944e-38, %v4151_v13  ;;  %vm4150_vm11 = vcmp.eq.f32.partialorder %v4149_v15, 8.507059e+37 }
0x74a8   :  { %v4711_v27 = vpop.eup %4710 }
0x74a9   :  { %v4141_v58 = vmul.f32 %v4711_v27, %v4139_v35  ;;  %vm4146_vm7 = vweird.f32 %v4711_v27 }
0x74aa   :  { %vm4147_vm10 = vmor %vm4145_vm9, %vm4146_vm7 }
0x74ab   :  { %v4142_v5 = vsub.f32 1.0, %v4141_v58 }
0x74ad   :  { %v4143_v24 = vmul.f32 %v4711_v27, %v4142_v5 }
0x74af   :  { %v4144_v6 = vadd.f32 %v4711_v27, %v4143_v24 }
0x74b1   :  { %v4148_v21 = vsel %vm4147_vm10, %v4711_v27, %v4144_v6  ;;  %v6323_v6 = vsub.f32 %v5244_v56, %v5251_v60 }
0x74b2   :  { %v4153_v44 = vsel %vm4150_vm11, %v4152_v43, %v4148_v21  ;;  %v6328_v21 = vsub.f32 %v5327_v2, %v5332_v34 }
0x74b3   :  { %v4160_v23 = vmul.f32 %v4158_v17, %v4153_v44  ;;  %v4167_v7 = vsub.f32 1.0, %v4153_v44  ;;  %v4173_v35 = vmul.f32 %v4153_v44, %v6268_v18  ;;  %v882_v43 = vmul.f32 1.442695, %v6323_v6 }
0x74b4   :  { %v1122_v17 = vmul.f32 1.442695, %v6328_v21 }
0x74b5   :  { %4162 = vrot.lane.b32.xlu0 %v4160_v23, %s5002_s17 }
0x7527   :  { %v4163_v8 = vpop.permute.xlu0 %4162 }
0x7528   :  { %v4165_v48 = vadd.f32 %v4163_v8, %v4120_v28  ;;  %v6339_v28 = vsub.f32 %v5565_v41, %v5570_v29  ;;  %v6351_v41 = vsub.f32 %v5799_v47, %v5804_v36  ;;  %v6363_v47 = vsub.f32 %v6037_v33, %v6043_v4 }
0x752a   :  { %4712 = vtanh.f32 %v4165_v48  ;;  %v1842_v34 = vmul.f32 1.442695, %v6339_v28 }
0x752b   :  { %4714 = vpow2.f32 %v882_v43 }
0x752c   :  { %4716 = vpow2.f32 %v1122_v17 }
0x7530   :  { %v4713_v31 = vpop.eup %4712 }
0x7531   :  { %4169 = vrot.lane.b32.xlu2 %v4713_v31, %s5003_s3  ;;  %v4715_v44 = vpop.eup %4714 }
0x7532   :  { %v884_v23 = vsel %vm839_vm8, %v4715_v44, 0.0  ;;  %v4717_v60 = vpop.eup %4716 }
0x7533   :  { %v1124_v2 = vsel %vm839_vm8, %v4717_v60, 0.0 }
0x758b   :  { %v4170_v58 = vpop.permute.xlu2 %4169 }
0x758c   :  { %v4172_v5 = vmul.f32 %v4170_v58, %v4167_v7  ;;  %v2562_v7 = vmul.f32 1.442695, %v6351_v41 }
0x758e   :  { %v6305_v27 = vadd.f32 %v4173_v35, %v4172_v5 }
0x7590   :  { %4176 = vrot.lane.b32.xlu0 %v6305_v27, %s5003_s3 }
0x7602   :  { %v4177_v13 = vpop.permute.xlu0 %4176 }
0x7603   :  { %4471 = vmatmul.msk.f32.vlgmr.msrb.gmra.mxu2 %vm151_vm5, %v4177_v13  ;;  %v3282_v13 = vmul.f32 1.442695, %v6363_v47 }
0x7686   :  { %v6310_v63 = vpop.f32.mrf.mxu2 }
0x7687   :  { %v6314_v24 = vadd.f32 %v6276_v57, %v6310_v63  ;;  %v4275_v18 = vadd.f32 %v6310_v63, %v5209_v20  ;;  %v6333_v20 = vsub.f32 %v5443_v38, %v5448_v40  ;;  %v6345_v38 = vsub.f32 %v5673_v11, %v5678_v37 }
0x7688   :  { %v6357_v11 = vsub.f32 %v5911_v9, %v5916_v61  ;;  %v6369_v9 = vsub.f32 %v6141_v53, %v6146_v32  ;;  %v6381_v53 = vsub.f32 %v6237_v42, %v6242_v39 }
0x7689   :  { %v4201_v15 = vsel %vm839_vm8, %v6314_v24, -inf  ;;  %v1482_v56 = vmul.f32 1.442695, %v6333_v20  ;;  %v2202_v48 = vmul.f32 1.442695, %v6345_v38 }
0x768a   :  { %4202 = vmax.xlane.f32.xlu1 %v4201_v15  ;;  %v2922_v35 = vmul.f32 1.442695, %v6357_v11  ;;  %v3642_v33 = vmul.f32 1.442695, %v6369_v9 }
0x768b   :  { %4718 = vpow2.f32 %v1482_v56  ;;  %v4002_v56 = vmul.f32 1.442695, %v6381_v53 }
0x768c   :  { %4720 = vpow2.f32 %v1842_v34 }
0x768d   :  { %4722 = vpow2.f32 %v2202_v48 }
0x768e   :  { %4724 = vpow2.f32 %v2562_v7 }
0x768f   :  { %4726 = vpow2.f32 %v2922_v35 }
0x7690   :  { %4728 = vpow2.f32 %v3282_v13 }
0x7691   :  { %v4719_v8 = vpop.eup %4718  ;;  %4730 = vpow2.f32 %v3642_v33 }
0x7692   :  { %v1484_v40 = vsel %vm839_vm8, %v4719_v8, 0.0  ;;  %v4721_v31 = vpop.eup %4720  ;;  %4732 = vpow2.f32 %v4002_v56 }
0x7693   :  { %v1844_v29 = vsel %vm839_vm8, %v4721_v31, 0.0  ;;  %v4723_v58 = vpop.eup %4722 }
0x7694   :  { %v2204_v37 = vsel %vm839_vm8, %v4723_v58, 0.0  ;;  %v4725_v5 = vpop.eup %4724 }
0x7695   :  { %v2564_v36 = vsel %vm839_vm8, %v4725_v5, 0.0  ;;  %v4727_v15 = vpop.eup %4726 }
0x7696   :  { %v2924_v61 = vsel %vm839_vm8, %v4727_v15, 0.0  ;;  %v4729_v17 = vpop.eup %4728 }
0x7697   :  { %v4731_v60 = vpop.eup %4730 }
0x76a3   :  { %4277 = vrot.lane.b32.xlu1 %v4275_v18, %s5006_s25 }
0x76cd   :  { %885 = vadd.xlane.f32.xlu1 %v884_v23  ;;  %v3284_v23 = vsel %vm839_vm8, %v4729_v17, 0.0 }
0x76d5   :  { %1125 = vadd.xlane.f32.xlu1 %v1124_v2  ;;  %v4733_v2 = vpop.eup %4732 }
0x76d6   :  { %v4004_v34 = vsel %vm839_vm8, %v4733_v2, 0.0 }
0x76dd   :  { %1485 = vadd.xlane.f32.xlu1 %v1484_v40 }
0x76e5   :  { %1845 = vadd.xlane.f32.xlu1 %v1844_v29 }
0x76ed   :  { %2205 = vadd.xlane.f32.xlu1 %v2204_v37 }
0x76f5   :  { %2565 = vadd.xlane.f32.xlu1 %v2564_v36 }
0x76fd   :  { %2925 = vadd.xlane.f32.xlu1 %v2924_v61  ;;  %v6372_v18 = vpop.xlane.xlu1 %4202 }
0x76fe   :  { %vm4204_vm12 = vcmp.ge.f32.partialorder %v6314_v24, %v6372_v18 }
0x76ff   :  { %v4205_v4 = vsel %vm4204_vm12, %v5249_v59, 16  ;;  %v3644_v59 = vsel %vm839_vm8, %v4731_v60, 0.0 }
0x7700   :  { %v4206_v43 = vsel %vm839_vm8, %v4205_v4, 2147483647 }
0x7701   :  { %v4208_v44 = vshra.s32 %v4206_v43, 16  ;;  %v4207_v56 = vand.u32 65535, %v4206_v43 }
0x7703   :  { %v4210_v32 = vcvt.s32.f32 %v4208_v44 }
0x7705   :  { %3285 = vadd.xlane.f32.xlu1 %v3284_v23  ;;  %4211 = vmin.xlane.f32.xlu2 %v4210_v32 }
0x770d   :  { %3645 = vadd.xlane.f32.xlu1 %v3644_v59 }
0x7715   :  { %4005 = vadd.xlane.f32.xlu1 %v4004_v34  ;;  %v6389_v42 = vpop.permute.xlu1 %4277  ;;  %v4209_v34 = vcvt.s32.f32 %v4207_v56 }
0x771d   :  { %4252 = vrot.lane.b32.xlu2 %v6310_v63, %s5005_s24 }
0x7740   :  { %v886_v39 = vpop.xlane.xlu1 %885 }
0x7741   :  { %4734 = vlog2.f32 %v886_v39 }
0x7747   :  { %v4735_v8 = vpop.eup %4734 }
0x7748   :  { %v888_v40 = vmul.f32 0.6931472, %v4735_v8  ;;  %v1126_v48 = vpop.xlane.xlu1 %1125 }
0x7749   :  { %4736 = vlog2.f32 %v1126_v48 }
0x774a   :  { %v889_v31 = vsub.f32 %v6323_v6, %v888_v40 }
0x774c   :  { %890 = vst.msk [vmem:[%s6649_s10] sm:$0x1] %vm839_vm8, %v889_v31 }
0x774f   :  { %v4737_v29 = vpop.eup %4736 }
0x7750   :  { %v1128_v7 = vmul.f32 0.6931472, %v4737_v29  ;;  %v1486_v58 = vpop.xlane.xlu1 %1485 }
0x7751   :  { %4738 = vlog2.f32 %v1486_v58 }
0x7752   :  { %v1129_v63 = vsub.f32 %v6328_v21, %v1128_v7 }
0x7754   :  { %1130 = vst.msk [vmem:[%s6649_s10 + $0x2] sm:$0x1] %vm839_vm8, %v1129_v63 }
0x7757   :  { %v4739_v37 = vpop.eup %4738 }
0x7758   :  { %v1488_v35 = vmul.f32 0.6931472, %v4739_v37  ;;  %v1846_v5 = vpop.xlane.xlu1 %1845 }
0x7759   :  { %4740 = vlog2.f32 %v1846_v5 }
0x775a   :  { %v1489_v6 = vsub.f32 %v6333_v20, %v1488_v35 }
0x775c   :  { %1490 = vst.msk [vmem:[%s6649_s10 + $0x5] sm:$0x1] %vm839_vm8, %v1489_v6 }
0x775f   :  { %v4741_v36 = vpop.eup %4740 }
0x7760   :  { %v1848_v13 = vmul.f32 0.6931472, %v4741_v36  ;;  %v2206_v15 = vpop.xlane.xlu1 %2205 }
0x7761   :  { %4742 = vlog2.f32 %v2206_v15 }
0x7762   :  { %v1849_v21 = vsub.f32 %v6339_v28, %v1848_v13 }
0x7764   :  { %1850 = vst.msk [vmem:[%s6649_s10 + $0x8] sm:$0x1] %vm839_vm8, %v1849_v21  ;;  %v4867_v21 = vld [vmem:[#allocation7 + $0x8] sm:$0xff] }
0x7767   :  { %v4743_v61 = vpop.eup %4742 }
0x7768   :  { %v2208_v33 = vmul.f32 0.6931472, %v4743_v61  ;;  %v2566_v4 = vpop.xlane.xlu1 %2565 }
0x7769   :  { %4744 = vlog2.f32 %v2566_v4 }
0x776a   :  { %v2209_v20 = vsub.f32 %v6345_v38, %v2208_v33 }
0x776c   :  { %2210 = vst.msk [vmem:[%s6649_s10 + $0xb] sm:$0x1] %vm839_vm8, %v2209_v20 }
0x776f   :  { %v4745_v17 = vpop.eup %4744 }
0x7770   :  { %v2568_v44 = vmul.f32 0.6931472, %v4745_v17  ;;  %v2926_v23 = vpop.xlane.xlu1 %2925 }
0x7771   :  { %4746 = vlog2.f32 %v2926_v23 }
0x7772   :  { %v2569_v28 = vsub.f32 %v6351_v41, %v2568_v44 }
0x7774   :  { %2570 = vst.msk [vmem:[%s6649_s10 + $0xe] sm:$0x1] %vm839_vm8, %v2569_v28 }
0x7777   :  { %v4747_v60 = vpop.eup %4746 }
0x7778   :  { %v2928_v59 = vmul.f32 0.6931472, %v4747_v60  ;;  %v4212_v38 = vpop.xlane.xlu2 %4211  ;;  %v3286_v2 = vpop.xlane.xlu1 %3285 }
0x7779   :  { %vm4213_vm14 = vcmp.eq.f32.partialorder %v4210_v32, %v4212_v38  ;;  %4748 = vlog2.f32 %v3286_v2  ;;  %v4218_v63 = vcvt.f32.s32 %v4212_v38 }
0x777a   :  { %v2929_v39 = vsub.f32 %v6357_v11, %v2928_v59  ;;  %v4214_v8 = vsel %vm4213_vm14, %v4209_v34, inf }
0x777b   :  { %4215 = vmin.xlane.f32.xlu0 %v4214_v8  ;;  %v4219_v35 = vshll.u32 %v4218_v63, 16  ;;  %v1241_v63 = vsub.f32 %v5363_v30, %v5368_v50 }
0x777c   :  { %2930 = vst.msk [vmem:[%s6649_s10 + $0x11] sm:$0x1] %vm839_vm8, %v2929_v39 }
0x777f   :  { %v4749_v41 = vpop.eup %4748 }
0x7780   :  { %v3288_v40 = vmul.f32 0.6931472, %v4749_v41  ;;  %v3646_v48 = vpop.xlane.xlu1 %3645  ;;  %v4253_v60 = vpop.permute.xlu2 %4252 }
0x7781   :  { %4750 = vlog2.f32 %v3646_v48 }
0x7782   :  { %v3289_v43 = vsub.f32 %v6363_v47, %v3288_v40 }
0x7784   :  { %3290 = vst.msk [vmem:[%s6649_s10 + $0x14] sm:$0x1] %vm839_vm8, %v3289_v43 }
0x7787   :  { %v4751_v32 = vpop.eup %4750 }
0x7788   :  { %v3648_v11 = vmul.f32 0.6931472, %v4751_v32  ;;  %v4006_v31 = vpop.xlane.xlu1 %4005 }
0x7789   :  { %4752 = vlog2.f32 %v4006_v31 }
0x778a   :  { %v3649_v29 = vsub.f32 %v6369_v9, %v3648_v11 }
0x778c   :  { %3650 = vst.msk [vmem:[%s6649_s10 + $0x17] sm:$0x1] %vm839_vm8, %v3649_v29 }
0x778f   :  { %v4753_v7 = vpop.eup %4752 }
0x7790   :  { %v4008_v58 = vmul.f32 0.6931472, %v4753_v7 }
0x7792   :  { %v4009_v47 = vsub.f32 %v6381_v53, %v4008_v58  ;;  %v4866_v53 = vld [vmem:[#allocation7] sm:$0xff] }
0x7794   :  { %4010 = vst.msk [vmem:[%s6649_s10 + $0x1a] sm:$0x1] %vm839_vm8, %v4009_v47 }
0x77ee   :  { %v4216_v37 = vpop.xlane.xlu0 %4215 }
0x77ef   :  { %v4217_v5 = vcvt.f32.s32 %v4216_v37  ;;  %v1242_v37 = vmul.f32 1.442695, %v1241_v63 }
0x77f1   :  { %v4220_v6 = vadd.s32 %v4219_v35, %v4217_v5  ;;  %v6456_v35 = vsub.f32 %v5489_v0, %v5494_v3  ;;  %v6465_v0 = vsub.f32 %v5291_v51, %v5296_v12 }
0x77f3   :  { %v4221_v9 = vperm.slane %v4220_v6, 0  ;;  %v1002_v3 = vmul.f32 1.442695, %v6465_v0 }
0x77f5   :  { %vm4222_vm15 = vcmp.eq.s32.totalorder %v5259_v10, %v4221_v9  ;;  %vm4223_vm0 = vcmp.eq.s32.totalorder %v5262_v16, %v4221_v9 }
0x77f6   :  { %v4472_v36 = vsel %vm4222_vm15, 1.0, %v6678_v45  ;;  %v4473_v13 = vsel %vm4223_vm0, 1.0, %v6678_v45 }
0x77f7   :  { %v4228_v15 = vmul.f32 %v4866_v53, %v4472_v36  ;;  %v4229_v61 = vmul.f32 %v4867_v21, %v4473_v13 }
0x77f9   :  { %v4230_v33 = vsel %vm869_vm13, %v4228_v15, 0.0  ;;  %v4231_v4 = vsel %vm869_vm13, %v4229_v61, 0.0  ;;  %v6470_v15 = vsub.f32 %v5399_v46, %v5405_v22 }
0x77fa   :  { %v4232_v20 = vadd.f32 %v4231_v4, %v4230_v33  ;;  %v6481_v4 = vsub.f32 %v5637_v14, %v5642_v26  ;;  %v6493_v14 = vsub.f32 %v5875_v1, %v5880_v49 }
0x77fb   :  { %v1362_v21 = vmul.f32 1.442695, %v6470_v15 }
0x77fc   :  { %v4233_v17 = vrot.slane %v4232_v20, 4  ;;  %v2082_v22 = vmul.f32 1.442695, %v6481_v4 }
0x77fe   :  { %v4234_v44 = vadd.f32 %v4233_v17, %v4232_v20 }
0x7800   :  { %v4235_v23 = vrot.slane %v4234_v44, 2 }
0x7802   :  { %v4236_v28 = vadd.f32 %v4235_v23, %v4234_v44 }
0x7804   :  { %v4237_v10 = vrot.slane %v4236_v28, 1 }
0x7806   :  { %v4238_v56 = vadd.f32 %v4237_v10, %v4236_v28 }
0x7808   :  { %v4239_v16 = vadd.f32 %v4238_v56, %v5223_v25  ;;  %v4240_v29 = vadd.f32 %v6263_v19, %v4238_v56 }
0x780a   :  { %v4255_v59 = vadd.f32 %v4253_v60, %v4239_v16  ;;  %v6693_v60 = vld [vmem:[#allocation22_spill] sm:$0xff] }
0x780c   :  { %v4474_v45 = vmul.f32 -1.442695, %v4255_v59  ;;  %v6694_v59 = vld [vmem:[#allocation21_spill] sm:$0xff] }
0x780e   :  { %4754 = vpow2.f32 %v4474_v45  ;;  %v6499_v45 = vsub.f32 %v6694_v59, %v6693_v60 }
0x7814   :  { %v4755_v38 = vpop.eup %4754 }
0x7815   :  { %v4259_v2 = vadd.f32 1.0, %v4755_v38  ;;  %v3162_v38 = vmul.f32 1.442695, %v6499_v45 }
0x7817   :  { %4756 = vrcp.f32 %v4259_v2  ;;  %v4271_v41 = vand.u32 2147483648, %v4259_v2  ;;  %v4269_v48 = vand.u32 2147483647, %v4259_v2  ;;  %vm4265_vm1 = vweird.f32 %v4259_v2 }
0x7819   :  { %v4272_v32 = vor.u32 1.1754944e-38, %v4271_v41  ;;  %vm4270_vm3 = vcmp.eq.f32.partialorder %v4269_v48, 8.507059e+37  ;;  %v6696_v41 = vld [vmem:[#allocation25_spill] sm:$0xff] }
0x781d   :  { %v4757_v34 = vpop.eup %4756 }
0x781e   :  { %v4261_v39 = vmul.f32 %v4757_v34, %v4259_v2  ;;  %vm4266_vm13 = vweird.f32 %v4757_v34 }
0x781f   :  { %vm4267_vm2 = vmor %vm4265_vm1, %vm4266_vm13 }
0x7820   :  { %v4262_v8 = vsub.f32 1.0, %v4261_v39 }
0x7822   :  { %v4263_v40 = vmul.f32 %v4757_v34, %v4262_v8  ;;  %v6695_v8 = vld [vmem:[#allocation26_spill] sm:$0xff] }
0x7824   :  { %v4264_v43 = vadd.f32 %v4757_v34, %v4263_v40  ;;  %v6510_v40 = vsub.f32 %v6696_v41, %v6695_v8 }
0x7826   :  { %v4268_v11 = vsel %vm4267_vm2, %v4757_v34, %v4264_v43  ;;  %v3522_v43 = vmul.f32 1.442695, %v6510_v40 }
0x7827   :  { %v4273_v25 = vsel %vm4270_vm3, %v4272_v32, %v4268_v11  ;;  %v6697_v11 = vld [vmem:[#allocation30_spill] sm:$0xff] }
0x7828   :  { %v4280_v31 = vmul.f32 %v6389_v42, %v4273_v25  ;;  %v1602_v42 = vmul.f32 1.442695, %v6456_v35  ;;  %v4287_v36 = vsub.f32 1.0, %v4273_v25  ;;  %v4293_v30 = vmul.f32 %v4273_v25, %v6305_v27  ;;  %v6698_v25 = vld [vmem:[#allocation29_spill] sm:$0xff] }
0x7829   :  { %v6475_v27 = vsub.f32 %v5525_v62, %v5530_v54  ;;  %v6487_v62 = vsub.f32 %v5763_v52, %v5768_v55  ;;  %v2802_v52 = vmul.f32 1.442695, %v6493_v14 }
0x782a   :  { %4282 = vrot.lane.b32.xlu0 %v4280_v31, %s5002_s17  ;;  %v6520_v31 = vsub.f32 %v6698_v25, %v6697_v11 }
0x782b   :  { %v1722_v51 = vmul.f32 1.442695, %v6475_v27  ;;  %v2442_v17 = vmul.f32 1.442695, %v6487_v62 }
0x789c   :  { %v4283_v7 = vpop.permute.xlu0 %4282 }
0x789d   :  { %v4285_v58 = vadd.f32 %v4283_v7, %v4240_v29  ;;  %v3882_v7 = vmul.f32 1.442695, %v6520_v31 }
0x789f   :  { %4758 = vtanh.f32 %v4285_v58 }
0x78a0   :  { %4760 = vpow2.f32 %v1242_v37 }
0x78a1   :  { %4762 = vpow2.f32 %v1602_v42 }
0x78a2   :  { %4764 = vpow2.f32 %v1002_v3 }
0x78a3   :  { %4766 = vpow2.f32 %v1362_v21 }
0x78a4   :  { %4768 = vpow2.f32 %v1722_v51 }
0x78a5   :  { %v4759_v47 = vpop.eup %4758  ;;  %4770 = vpow2.f32 %v2082_v22 }
0x78a6   :  { %4289 = vrot.lane.b32.xlu2 %v4759_v47, %s5003_s3  ;;  %v4761_v5 = vpop.eup %4760  ;;  %v6526_v47 = vsub.f32 %v6314_v24, %v6372_v18 }
0x78a7   :  { %v1244_v19 = vsel %vm839_vm8, %v4761_v5, 0.0  ;;  %v4763_v6 = vpop.eup %4762 }
0x78a8   :  { %v1604_v9 = vsel %vm839_vm8, %v4763_v6, 0.0  ;;  %v4765_v61 = vpop.eup %4764  ;;  %v4242_v37 = vmul.f32 1.442695, %v6526_v47 }
0x78a9   :  { %v1004_v33 = vsel %vm839_vm8, %v4765_v61, 0.0  ;;  %v4767_v12 = vpop.eup %4766 }
0x78aa   :  { %v1364_v46 = vsel %vm839_vm8, %v4767_v12, 0.0  ;;  %v4769_v20 = vpop.eup %4768 }
0x78ab   :  { %v1724_v54 = vsel %vm839_vm8, %v4769_v20, 0.0  ;;  %v4771_v23 = vpop.eup %4770 }
0x78ac   :  { %v2084_v26 = vsel %vm839_vm8, %v4771_v23, 0.0 }
0x78cf   :  { %1245 = vadd.xlane.f32.xlu2 %v1244_v19 }
0x78d7   :  { %1605 = vadd.xlane.f32.xlu2 %v1604_v9 }
0x7900   :  { %v4290_v13 = vpop.permute.xlu2 %4289 }
0x7901   :  { %v4292_v50 = vmul.f32 %v4290_v13, %v4287_v36 }
0x7903   :  { %v4294_v53 = vadd.f32 %v4293_v30, %v4292_v50 }
0x7905   :  { %4296 = vrot.lane.b32.xlu0 %v4294_v53, %s5003_s3 }
0x792f   :  { %1005 = vadd.xlane.f32.xlu0 %v1004_v33 }
0x7937   :  { %1365 = vadd.xlane.f32.xlu0 %v1364_v46 }
0x793f   :  { %1725 = vadd.xlane.f32.xlu0 %v1724_v54 }
0x7942   :  { %v1246_v44 = vpop.xlane.xlu2 %1245 }
0x7943   :  { %4772 = vlog2.f32 %v1246_v44 }
0x7944   :  { %4774 = vpow2.f32 %v2442_v17 }
0x7947   :  { %2085 = vadd.xlane.f32.xlu0 %v2084_v26 }
0x7949   :  { %v4773_v28 = vpop.eup %4772 }
0x794a   :  { %v1248_v55 = vmul.f32 0.6931472, %v4773_v28  ;;  %v1606_v10 = vpop.xlane.xlu2 %1605  ;;  %v4775_v56 = vpop.eup %4774 }
0x794b   :  { %4776 = vlog2.f32 %v1606_v10  ;;  %v2444_v1 = vsel %vm839_vm8, %v4775_v56, 0.0 }
0x794c   :  { %v1249_v16 = vsub.f32 %v1241_v63, %v1248_v55  ;;  %4778 = vpow2.f32 %v2802_v52 }
0x794d   :  { %4780 = vpow2.f32 %v3162_v38 }
0x794e   :  { %1250 = vst.msk [vmem:[%s6649_s10 + $0x3] sm:$0x1] %vm839_vm8, %v1249_v16  ;;  %4782 = vpow2.f32 %v3522_v43  ;;  %v6702_v43 = vld [vmem:[#allocation15_spill] sm:$0xff] }
0x794f   :  { %2445 = vadd.xlane.f32.xlu0 %v2444_v1  ;;  %4784 = vpow2.f32 %v3882_v7  ;;  %v6704_v7 = vld [vmem:[#allocation17_spill] sm:$0xff] }
0x7950   :  { %4786 = vpow2.f32 %v4242_v37 }
0x7951   :  { %v4777_v49 = vpop.eup %4776 }
0x7952   :  { %v1608_v2 = vmul.f32 0.6931472, %v4777_v49  ;;  %v4779_v34 = vpop.eup %4778 }
0x7953   :  { %v2804_v48 = vsel %vm839_vm8, %v4779_v34, 0.0  ;;  %v4781_v32 = vpop.eup %4780  ;;  %v6700_v34 = vld [vmem:[#allocation13_spill] sm:$0xff] }
0x7954   :  { %v1609_v39 = vsub.f32 %v6456_v35, %v1608_v2  ;;  %v3164_v29 = vsel %vm839_vm8, %v4781_v32, 0.0  ;;  %v4783_v58 = vpop.eup %4782  ;;  %v6699_v2 = vld [vmem:[#allocation14_spill] sm:$0xff] }
0x7955   :  { %v3524_v63 = vsel %vm839_vm8, %v4783_v58, 0.0  ;;  %v4785_v35 = vpop.eup %4784 }
0x7956   :  { %1610 = vst.msk [vmem:[%s6649_s10 + $0x6] sm:$0x1] %vm839_vm8, %v1609_v39  ;;  %v3884_v42 = vsel %vm839_vm8, %v4785_v35, 0.0  ;;  %v4787_v5 = vpop.eup %4786  ;;  %v1961_v39 = vsub.f32 %v6700_v34, %v6699_v2  ;;  %v6706_v35 = vld [vmem:[#allocation19_spill] sm:$0xff] }
0x7957   :  { %2805 = vadd.xlane.f32.xlu0 %v2804_v48  ;;  %v4244_v19 = vsel %vm839_vm8, %v4787_v5, 0.0  ;;  %v6701_v48 = vld [vmem:[#allocation16_spill] sm:$0xff] }
0x7958   :  { %v1962_v8 = vmul.f32 1.442695, %v1961_v39  ;;  %v2321_v32 = vsub.f32 %v6702_v43, %v6701_v48 }
0x795a   :  { %v2322_v25 = vmul.f32 1.442695, %v2321_v32 }
0x795f   :  { %3165 = vadd.xlane.f32.xlu0 %v3164_v29  ;;  %v6703_v29 = vld [vmem:[#allocation18_spill] sm:$0xff] }
0x7960   :  { %v2681_v58 = vsub.f32 %v6704_v7, %v6703_v29 }
0x7967   :  { %3525 = vadd.xlane.f32.xlu0 %v3524_v63  ;;  %v2682_v63 = vmul.f32 1.442695, %v2681_v58 }
0x796f   :  { %3885 = vadd.xlane.f32.xlu0 %v3884_v42 }
0x7977   :  { %4245 = vadd.xlane.f32.xlu0 %v4244_v19  ;;  %v4297_v6 = vpop.permute.xlu0 %4296 }
0x7978   :  { %4475 = vmatmul.msk.f32.vlgmr.msrb.gmra.mxu3 %vm151_vm5, %v4297_v6 }
0x79a2   :  { %v1006_v9 = vpop.xlane.xlu0 %1005 }
0x79a3   :  { %4788 = vlog2.f32 %v1006_v9  ;;  %v6707_v9 = vld [vmem:[#allocation24_spill] sm:$0xff] }
0x79a9   :  { %v4789_v24 = vpop.eup %4788 }
0x79aa   :  { %v1008_v18 = vmul.f32 0.6931472, %v4789_v24  ;;  %v1366_v36 = vpop.xlane.xlu0 %1365  ;;  %v6708_v24 = vld [vmem:[#allocation23_spill] sm:$0xff] }
0x79ab   :  { %4790 = vlog2.f32 %v1366_v36 }
0x79ac   :  { %v1009_v13 = vsub.f32 %v6465_v0, %v1008_v18  ;;  %v3401_v18 = vsub.f32 %v6708_v24, %v6707_v9 }
0x79ae   :  { %1010 = vst.msk [vmem:[%s6649_s10 + $0x1] sm:$0x1] %vm839_vm8, %v1009_v13  ;;  %v3402_v13 = vmul.f32 1.442695, %v3401_v18 }
0x79b1   :  { %v4791_v30 = vpop.eup %4790 }
0x79b2   :  { %v1368_v50 = vmul.f32 0.6931472, %v4791_v30  ;;  %v1726_v53 = vpop.xlane.xlu0 %1725 }
0x79b3   :  { %4792 = vlog2.f32 %v1726_v53  ;;  %v6710_v53 = vld [vmem:[#allocation27_spill] sm:$0xff] }
0x79b4   :  { %v1369_v3 = vsub.f32 %v6470_v15, %v1368_v50  ;;  %v6709_v50 = vld [vmem:[#allocation28_spill] sm:$0xff] }
0x79b6   :  { %1370 = vst.msk [vmem:[%s6649_s10 + $0x4] sm:$0x1] %vm839_vm8, %v1369_v3  ;;  %v3761_v3 = vsub.f32 %v6710_v53, %v6709_v50 }
0x79b9   :  { %v4793_v21 = vpop.eup %4792 }
0x79ba   :  { %v1728_v61 = vmul.f32 0.6931472, %v4793_v21  ;;  %v2086_v33 = vpop.xlane.xlu0 %2085 }
0x79bb   :  { %4794 = vlog2.f32 %v2086_v33 }
0x79bc   :  { %v1729_v0 = vsub.f32 %v6475_v27, %v1728_v61  ;;  %v3762_v61 = vmul.f32 1.442695, %v3761_v3 }
0x79be   :  { %1730 = vst.msk [vmem:[%s6649_s10 + $0x7] sm:$0x1] %vm839_vm8, %v1729_v0  ;;  %v6711_v0 = vld [vmem:[#allocation32_spill] sm:$0xff] }
0x79c1   :  { %v4795_v51 = vpop.eup %4794 }
0x79c2   :  { %v2088_v12 = vmul.f32 0.6931472, %v4795_v51  ;;  %v2446_v46 = vpop.xlane.xlu0 %2445  ;;  %v6712_v51 = vld [vmem:[#allocation31_spill] sm:$0xff] }
0x79c3   :  { %4796 = vlog2.f32 %v2446_v46 }
0x79c4   :  { %v2089_v15 = vsub.f32 %v6481_v4, %v2088_v12  ;;  %v4121_v12 = vsub.f32 %v6712_v51, %v6711_v0 }
0x79c6   :  { %2090 = vst.msk [vmem:[%s6649_s10 + $0xa] sm:$0x1] %vm839_vm8, %v2089_v15  ;;  %v4122_v15 = vmul.f32 1.442695, %v4121_v12 }
0x79c9   :  { %v4797_v22 = vpop.eup %4796 }
0x79ca   :  { %v2448_v20 = vmul.f32 0.6931472, %v4797_v22  ;;  %v2806_v54 = vpop.xlane.xlu0 %2805 }
0x79cb   :  { %4798 = vlog2.f32 %v2806_v54 }
0x79cc   :  { %v2449_v27 = vsub.f32 %v6487_v62, %v2448_v20 }
0x79ce   :  { %2450 = vst.msk [vmem:[%s6649_s10 + $0xd] sm:$0x1] %vm839_vm8, %v2449_v27 }
0x79d1   :  { %v4799_v17 = vpop.eup %4798 }
0x79d2   :  { %v2808_v44 = vmul.f32 0.6931472, %v4799_v17  ;;  %v3166_v23 = vpop.xlane.xlu0 %3165 }
0x79d3   :  { %4800 = vlog2.f32 %v3166_v23 }
0x79d4   :  { %v2809_v4 = vsub.f32 %v6493_v14, %v2808_v44 }
0x79d6   :  { %2810 = vst.msk [vmem:[%s6649_s10 + $0x10] sm:$0x1] %vm839_vm8, %v2809_v4 }
0x79d9   :  { %v4801_v26 = vpop.eup %4800 }
0x79da   :  { %v3168_v28 = vmul.f32 0.6931472, %v4801_v26  ;;  %v3526_v52 = vpop.xlane.xlu0 %3525 }
0x79db   :  { %4802 = vlog2.f32 %v3526_v52 }
0x79dc   :  { %v3169_v62 = vsub.f32 %v6499_v45, %v3168_v28 }
0x79de   :  { %3170 = vst.msk [vmem:[%s6649_s10 + $0x13] sm:$0x1] %vm839_vm8, %v3169_v62 }
0x79e1   :  { %v4803_v55 = vpop.eup %4802 }
0x79e2   :  { %v3528_v10 = vmul.f32 0.6931472, %v4803_v55  ;;  %v3886_v56 = vpop.xlane.xlu0 %3885 }
0x79e3   :  { %4804 = vlog2.f32 %v3886_v56 }
0x79e4   :  { %v3529_v14 = vsub.f32 %v6510_v40, %v3528_v10 }
0x79e6   :  { %3530 = vst.msk [vmem:[%s6649_s10 + $0x16] sm:$0x1] %vm839_vm8, %v3529_v14 }
0x79e9   :  { %v4805_v16 = vpop.eup %4804 }
0x79ea   :  { %v3888_v60 = vmul.f32 0.6931472, %v4805_v16  ;;  %v4246_v59 = vpop.xlane.xlu0 %4245 }
0x79eb   :  { %4806 = vlog2.f32 %v4246_v59 }
0x79ec   :  { %v3889_v45 = vsub.f32 %v6520_v31, %v3888_v60  ;;  %4808 = vpow2.f32 %v1962_v8 }
0x79ed   :  { %4810 = vpow2.f32 %v2322_v25 }
0x79ee   :  { %3890 = vst.msk [vmem:[%s6649_s10 + $0x19] sm:$0x1] %vm839_vm8, %v3889_v45  ;;  %4812 = vpow2.f32 %v2682_v63 }
0x79f1   :  { %v4807_v1 = vpop.eup %4806 }
0x79f2   :  { %v4248_v49 = vmul.f32 0.6931472, %v4807_v1  ;;  %v4809_v31 = vpop.eup %4808 }
0x79f3   :  { %v4811_v37 = vpop.eup %4810 }
0x79f4   :  { %v4249_v38 = vsub.f32 %v6526_v47, %v4248_v49  ;;  %v1964_v47 = vsel %vm839_vm8, %v4809_v31, 0.0  ;;  %v2324_v5 = vsel %vm839_vm8, %v4811_v37, 0.0  ;;  %v4813_v6 = vpop.eup %4812 }
0x79f5   :  { %v2684_v36 = vsel %vm839_vm8, %v4813_v6, 0.0 }
0x79f6   :  { %4250 = vst.msk [vmem:[%s6649_s10 + $0x1c] sm:$0x1] %vm839_vm8, %v4249_v38 }
0x79fb   :  { %v4317_v41 = vpop.f32.mrf.mxu3 }
0x79fc   :  { %v4320_v40 = vadd.f32 %v6276_v57, %v4317_v41  ;;  %v6705_v57 = vld [vmem:[#allocation20_spill] sm:$0xff] }
0x79fd   :  { %v3041_v42 = vsub.f32 %v6706_v35, %v6705_v57 }
0x79fe   :  { %v4321_v11 = vsel %vm839_vm8, %v4320_v40, -inf }
0x79ff   :  { %4322 = vmax.xlane.f32.xlu2 %v4321_v11  ;;  %v3042_v19 = vmul.f32 1.442695, %v3041_v42 }
0x7a01   :  { %4814 = vpow2.f32 %v3042_v19 }
0x7a02   :  { %4816 = vpow2.f32 %v3402_v13 }
0x7a03   :  { %4818 = vpow2.f32 %v3762_v61 }
0x7a04   :  { %4820 = vpow2.f32 %v4122_v15 }
0x7a07   :  { %1965 = vadd.xlane.f32.xlu2 %v1964_v47  ;;  %v4815_v30 = vpop.eup %4814 }
0x7a08   :  { %v3044_v21 = vsel %vm839_vm8, %v4815_v30, 0.0  ;;  %v4817_v33 = vpop.eup %4816 }
0x7a09   :  { %v3404_v46 = vsel %vm839_vm8, %v4817_v33, 0.0  ;;  %v4819_v22 = vpop.eup %4818 }
0x7a0a   :  { %v3764_v20 = vsel %vm839_vm8, %v4819_v22, 0.0  ;;  %v4821_v54 = vpop.eup %4820 }
0x7a0b   :  { %v4124_v27 = vsel %vm839_vm8, %v4821_v54, 0.0 }
0x7a0f   :  { %2325 = vadd.xlane.f32.xlu2 %v2324_v5 }
0x7a17   :  { %2685 = vadd.xlane.f32.xlu2 %v2684_v36 }
0x7a1f   :  { %3045 = vadd.xlane.f32.xlu2 %v3044_v21 }
0x7a27   :  { %3405 = vadd.xlane.f32.xlu2 %v3404_v46 }
0x7a2f   :  { %3765 = vadd.xlane.f32.xlu2 %v3764_v20 }
0x7a37   :  { %4125 = vadd.xlane.f32.xlu2 %v4124_v27 }
0x7a72   :  { %v4323_v17 = vpop.xlane.xlu2 %4322 }
0x7a73   :  { %v4324_v44 = vsub.f32 %v4320_v40, %v4323_v17 }
0x7a75   :  { %v4325_v23 = vmul.f32 1.442695, %v4324_v44 }
0x7a77   :  { %4822 = vpow2.f32 %v4325_v23 }
0x7a7a   :  { %v1966_v4 = vpop.xlane.xlu2 %1965 }
0x7a7b   :  { %4824 = vlog2.f32 %v1966_v4 }
0x7a7d   :  { %v4823_v26 = vpop.eup %4822 }
0x7a7e   :  { %v4327_v28 = vsel %vm839_vm8, %v4823_v26, 0.0 }
0x7a7f   :  { %4328 = vadd.xlane.f32.xlu1 %v4327_v28 }
0x7a81   :  { %v4825_v52 = vpop.eup %4824 }
0x7a82   :  { %v1968_v62 = vmul.f32 0.6931472, %v4825_v52  ;;  %v2326_v55 = vpop.xlane.xlu2 %2325 }
0x7a83   :  { %4826 = vlog2.f32 %v2326_v55 }
0x7a84   :  { %v1969_v10 = vsub.f32 %v1961_v39, %v1968_v62 }
0x7a86   :  { %1970 = vst.msk [vmem:[%s6649_s10 + $0x9] sm:$0x1] %vm839_vm8, %v1969_v10 }
0x7a89   :  { %v4827_v56 = vpop.eup %4826 }
0x7a8a   :  { %v2328_v14 = vmul.f32 0.6931472, %v4827_v56  ;;  %v2686_v16 = vpop.xlane.xlu2 %2685 }
0x7a8b   :  { %4828 = vlog2.f32 %v2686_v16 }
0x7a8c   :  { %v2329_v60 = vsub.f32 %v2321_v32, %v2328_v14 }
0x7a8e   :  { %2330 = vst.msk [vmem:[%s6649_s10 + $0xc] sm:$0x1] %vm839_vm8, %v2329_v60 }
0x7a91   :  { %v4829_v59 = vpop.eup %4828 }
0x7a92   :  { %v2688_v45 = vmul.f32 0.6931472, %v4829_v59  ;;  %v3046_v1 = vpop.xlane.xlu2 %3045 }
0x7a93   :  { %4830 = vlog2.f32 %v3046_v1 }
0x7a94   :  { %v2689_v49 = vsub.f32 %v2681_v58, %v2688_v45 }
0x7a96   :  { %2690 = vst.msk [vmem:[%s6649_s10 + $0xf] sm:$0x1] %vm839_vm8, %v2689_v49 }
0x7a99   :  { %v4831_v38 = vpop.eup %4830 }
0x7a9a   :  { %v3048_v2 = vmul.f32 0.6931472, %v4831_v38  ;;  %v3406_v34 = vpop.xlane.xlu2 %3405 }
0x7a9b   :  { %4832 = vlog2.f32 %v3406_v34 }
0x7a9c   :  { %v3049_v39 = vsub.f32 %v3041_v42, %v3048_v2 }
0x7a9e   :  { %3050 = vst.msk [vmem:[%s6649_s10 + $0x12] sm:$0x1] %vm839_vm8, %v3049_v39 }
0x7aa1   :  { %v4833_v8 = vpop.eup %4832 }
0x7aa2   :  { %v3408_v41 = vmul.f32 0.6931472, %v4833_v8  ;;  %v3766_v40 = vpop.xlane.xlu2 %3765 }
0x7aa3   :  { %4834 = vlog2.f32 %v3766_v40 }
0x7aa4   :  { %v3409_v48 = vsub.f32 %v3401_v18, %v3408_v41 }
0x7aa6   :  { %3410 = vst.msk [vmem:[%s6649_s10 + $0x15] sm:$0x1] %vm839_vm8, %v3409_v48 }
0x7aa9   :  { %v4835_v43 = vpop.eup %4834 }
0x7aaa   :  { %v3768_v32 = vmul.f32 0.6931472, %v4835_v43  ;;  %v4126_v11 = vpop.xlane.xlu2 %4125 }
0x7aab   :  { %4836 = vlog2.f32 %v4126_v11 }
0x7aac   :  { %v3769_v25 = vsub.f32 %v3761_v3, %v3768_v32 }
0x7aae   :  { %3770 = vst.msk [vmem:[%s6649_s10 + $0x18] sm:$0x1] %vm839_vm8, %v3769_v25 }
0x7ab1   :  { %v4837_v31 = vpop.eup %4836 }
0x7ab2   :  { %v4128_v29 = vmul.f32 0.6931472, %v4837_v31 }
0x7ab4   :  { %v4129_v7 = vsub.f32 %v4121_v12, %v4128_v29 }
0x7ab6   :  { %4130 = vst.msk [vmem:[%s6649_s10 + $0x1b] sm:$0x1] %vm839_vm8, %v4129_v7 }
0x7af2   :  { %v4329_v58 = vpop.xlane.xlu1 %4328 }
0x7af3   :  { %4838 = vlog2.f32 %v4329_v58 }
0x7af9   :  { %v4839_v47 = vpop.eup %4838 }
0x7afa   :  { %v4331_v63 = vmul.f32 0.6931472, %v4839_v47 }
0x7afc   :  { %v4332_v37 = vsub.f32 %v4324_v44, %v4331_v63 }
0x7afe   :  { %4333 = vst.msk [vmem:[%s6649_s10 + $0x1d] sm:$0x1] %vm839_vm8, %v4332_v37 }
0x7aff   :  { %4338 = vsyncpa [#allocation3], 1 }
0x7b00   :  { %4339 = vsyncpa [#allocation5], 1 }
0x7b01   :  { %4340 = vsyncpa [#allocation8], 1 }

</bundles_post_ra>
